<compile_context>
chip_gen: v7x
topology: tpu7x:2x2x1
jax: 0.10.0
libtpu: 0.0.40
codegen_flags: <defaults>
</compile_context>

<pallas_src>
import jax
import jax.numpy as jnp
from jax.experimental import pallas as pl
from jax.experimental.pallas import tpu as pltpu


CONV_CFGS = [  # (in_ch, out_ch, kernel, stride) -- in_ch None => img_stack
    (None, 8, 4, 2), (8, 16, 3, 2), (16, 32, 3, 2),
    (32, 64, 3, 2), (64, 128, 3, 1), (128, 256, 3, 1),
]


def _round_up(x, m):
    return ((x + m - 1) // m) * m


# ---------------------------------------------------------------------------
# Pallas kernel: row-tiled matmul + bias + ReLU (conv1..conv3)
# ---------------------------------------------------------------------------
def _matmul_bias_relu_kernel(x_ref, w_ref, b_ref, o_ref):
    acc = jnp.dot(x_ref[...], w_ref[...], preferred_element_type=jnp.float32)
    acc = jnp.maximum(acc + b_ref[...], 0.0)      # (1, N) bias broadcasts over rows
    o_ref[...] = acc.astype(o_ref.dtype)


def matmul_bias_relu(x, w, b2d, *, out_dtype=jnp.bfloat16):
    """relu(x @ w + b): x (M, K) bf16, w (K, N) bf16 pre-packed, b2d (1, N) f32.

    No K/N padding (full-dim BlockSpec exemption).  Big layers use exactly two
    row blocks ("parallel" -> one per TensorCore on v7x); small layers run as
    a single full-M block.  The single partial tail block is masked on write.
    """
    M, K = x.shape
    Kw, N = w.shape
    assert K == Kw, (K, Kw)

    if M >= 1024:                       # conv1 / conv2: 2 blocks for v7x megacore
        TM = _round_up(pl.cdiv(M, 2), 8)
        grid = (2,)
    else:                               # tiny layers: one full-M block
        TM = M
        grid = (1,)

    return pl.pallas_call(
        _matmul_bias_relu_kernel,
        out_shape=jax.ShapeDtypeStruct((M, N), out_dtype),
        grid=grid,
        in_specs=[
            pl.BlockSpec((TM, K), lambda i: (i, 0)),   # row tile of im2col patches
            pl.BlockSpec((K, N), lambda i: (0, 0)),    # full pre-packed weight
            pl.BlockSpec((1, N), lambda i: (0, 0)),    # bias row (f32)
        ],
        out_specs=pl.BlockSpec((TM, N), lambda i: (i, 0)),
        compiler_params=pltpu.CompilerParams(
            dimension_semantics=("parallel",)),
    )(x, w, b2d)


# ---------------------------------------------------------------------------
# Conv2d (VALID, channels-last) = im2col + fused Pallas matmul/bias/ReLU
# ---------------------------------------------------------------------------
def conv2d_relu(x, wmat, b2d, stride, kh, kw):
    """x: (N, H, W, C) bf16; wmat: (kh*kw*C, O) bf16; b2d: (1, O) f32."""
    Nb, H, W, C = x.shape
    oh = (H - kh) // stride + 1
    ow = (W - kw) // stride + 1

    # im2col, channels-last; rows ordered (n, oy, ox), cols ordered (di, dj, c).
    cols = [x[:, di:di + stride * oh:stride, dj:dj + stride * ow:stride, :]
            for di in range(kh) for dj in range(kw)]
    p = jnp.concatenate(cols, axis=-1).reshape(Nb * oh * ow, kh * kw * C)

    y = matmul_bias_relu(p, wmat, b2d)            # (Nb*oh*ow, O) bf16
    return y.reshape(Nb, oh, ow, -1)              # free reshape (row-major)


def _im2col_pos_major(x, stride, kh, kw):
    """Patch matrix with rows ordered (oy, ox, n) so downstream in-kernel
    gathers (conv5/conv6) reduce to contiguous static row slices."""
    Nb, H, W, C = x.shape
    oh = (H - kh) // stride + 1
    ow = (W - kw) // stride + 1
    cols = [x[:, di:di + stride * oh:stride, dj:dj + stride * ow:stride, :]
            for di in range(kh) for dj in range(kw)]
    p = jnp.concatenate(cols, axis=-1)            # (Nb, oh, ow, kh*kw*C)
    p = jnp.transpose(p, (1, 2, 0, 3))            # (oh, ow, Nb, K) position-major
    return p.reshape(oh * ow * Nb, kh * kw * C)


# ---------------------------------------------------------------------------
# Fused kernel: conv4 + conv5 + conv6 + action_layer + fc1 + fc2 (grid-less,
# everything VMEM-resident).  Geometry is fixed by the module: conv4 input is
# 11x11x32, so conv4 -> 5x5x64, conv5 -> 3x3x128, conv6 -> 1x1x256.
# ---------------------------------------------------------------------------
def _fused_conv_tail_kernel(p4_ref, w4_ref, b4_ref, w5_ref, b5_ref,
                            w6_ref, b6_ref, a_ref, wa_ref, ba_ref,
                            w1x_ref, w1a_ref, b1_ref, w2_ref, b2_ref, o_ref):
    B = o_ref.shape[0]

    # conv4 (k3, s2) as one MXU matmul on the pre-gathered position-major
    # patch matrix: rows ordered (oy4, ox4, n).
    h4 = jnp.dot(p4_ref[...], w4_ref[...], preferred_element_type=jnp.float32)
    h4 = jnp.maximum(h4 + b4_ref[...], 0.0).astype(jnp.bfloat16)     # (25*B, 64)

    # conv5 (k3, s1, 5x5x64 -> 3x3x128): shift-and-matmul.  For fixed
    # (oy5, di, dj) the needed (ox5, n) patch rows are a contiguous slice of
    # h4, so every term is a plain 2-D matmul (no strided/gather access).
    h5_blocks = []
    for oy5 in range(3):
        acc = None
        for di in range(3):
            for dj in range(3):
                r0 = ((oy5 + di) * 5 + dj) * B
                term = jnp.dot(h4[r0:r0 + 3 * B, :], w5_ref[di * 3 + dj],
                               preferred_element_type=jnp.float32)
                acc = term if acc is None else acc + term
        h5_blocks.append(
            jnp.maximum(acc + b5_ref[...], 0.0).astype(jnp.bfloat16))  # (3*B, 128)

    # conv6 (k3, s1, 3x3x128 -> 1x1x256): accumulate 9 (B,128)@(128,256) dots.
    acc6 = None
    for dy in range(3):
        blk = h5_blocks[dy]
        for dx in range(3):
            term = jnp.dot(blk[dx * B:(dx + 1) * B, :], w6_ref[dy * 3 + dx],
                           preferred_element_type=jnp.float32)
            acc6 = term if acc6 is None else acc6 + term
    x256 = jnp.maximum(acc6 + b6_ref[...], 0.0).astype(jnp.bfloat16)   # (B, 256)

    # action_layer: relu(a @ Wa + ba).  K = action_dim is tiny, so do the
    # contraction as a few f32 broadcast multiply-adds on the VPU.
    a = a_ref[...]                                 # (B, A) f32
    wa = wa_ref[...]                               # (A, 128) f32
    a_feat = ba_ref[...]                           # (1, 128) f32
    for k in range(a_ref.shape[1]):
        a_feat = a_feat + a[:, k:k + 1] * wa[k:k + 1, :]
    a_feat = jnp.maximum(a_feat, 0.0)              # (B, 128) f32

    # fc1 on [x256, a_feat]: the concat is eliminated by splitting W1.
    h = jnp.dot(x256, w1x_ref[...], preferred_element_type=jnp.float32)
    h = h + jnp.dot(a_feat.astype(w1a_ref.dtype), w1a_ref[...],
                    preferred_element_type=jnp.float32)
    h = jnp.maximum(h + b1_ref[...], 0.0)          # (B, 100) f32

    # fc2 (N = 1): lane reduction instead of a degenerate matmul.
    q = jnp.sum(h * w2_ref[...], axis=-1, keepdims=True) + b2_ref[...]
    o_ref[...] = q.astype(o_ref.dtype)


# ---------------------------------------------------------------------------
# Parameter construction (mirrors the PyTorch init) and one-time packing
# ---------------------------------------------------------------------------
def init_params(key, img_stack, action_dim, target_action_dim=128):
    raw = {"conv": [], "fc": [], "action": None}
    gain = jnp.sqrt(2.0)  # calculate_gain('relu')

    cfgs = [(img_stack if c_in is None else c_in, c_out, k, s)
            for (c_in, c_out, k, s) in CONV_CFGS]
    for (c_in, c_out, k, s) in cfgs:
        key, wk = jax.random.split(key)
        fan_in, fan_out = c_in * k * k, c_out * k * k
        limit = gain * jnp.sqrt(6.0 / (fan_in + fan_out))   # xavier_uniform_
        w = jax.random.uniform(wk, (c_out, c_in, k, k), jnp.float32, -limit, limit)
        b = jnp.full((c_out,), 0.1, jnp.float32)            # constant_(bias, 0.1)
        raw["conv"].append((w, b, s))

    def linear(key, n_in, n_out):
        k1, k2 = jax.random.split(key)
        bound = 1.0 / jnp.sqrt(float(n_in))                  # PyTorch Linear default
        w = jax.random.uniform(k1, (n_in, n_out), jnp.float32, -bound, bound)
        b = jax.random.uniform(k2, (n_out,), jnp.float32, -bound, bound)
        return w, b

    key, k1, k2, k3 = jax.random.split(key, 4)
    raw["action"] = linear(k1, action_dim, target_action_dim)
    raw["fc"].append(linear(k2, 256 + target_action_dim, 100))
    raw["fc"].append(linear(k3, 100, 1))
    return raw


def pack_params(raw):
    """One-time packing: all reshapes/transposes/casts hoisted out of forward."""
    packed = {"conv": [], "fused": {}}

    def conv_w_2d(w):   # OIHW -> (kh*kw*C, O) bf16, cols/rows ordered (di, dj, c)
        O, C, kh, kw = w.shape
        return (jnp.transpose(w, (2, 3, 1, 0))
                .reshape(kh * kw * C, O).astype(jnp.bfloat16))

    def conv_w_3d(w):   # OIHW -> (kh*kw, C, O) bf16 for per-(di,dj) in-kernel dots
        O, C, kh, kw = w.shape
        return (jnp.transpose(w, (2, 3, 1, 0))
                .reshape(kh * kw, C, O).astype(jnp.bfloat16))

    def brow(b):
        return b.reshape(1, -1).astype(jnp.float32)

    for (w, b, _s) in raw["conv"][:3]:              # conv1..conv3 (separate calls)
        packed["conv"].append((conv_w_2d(w), brow(b)))

    (w4, b4, _), (w5, b5, _), (w6, b6, _) = raw["conv"][3:]
    wa, ba = raw["action"]
    w1, b1 = raw["fc"][0]
    w2, b2 = raw["fc"][1]
    packed["fused"] = dict(
        w4=conv_w_2d(w4), b4=brow(b4),              # (288, 64), (1, 64)
        w5=conv_w_3d(w5), b5=brow(b5),              # (9, 64, 128), (1, 128)
        w6=conv_w_3d(w6), b6=brow(b6),              # (9, 128, 256), (1, 256)
        wa=wa.astype(jnp.float32),                  # (action_dim, 128) f32 (VPU path)
        ba=brow(ba),                                # (1, 128)
        w1x=w1[:256].astype(jnp.bfloat16),          # (256, 100)
        w1a=w1[256:].astype(jnp.bfloat16),          # (128, 100)
        b1=brow(b1),                                # (1, 100)
        w2row=jnp.transpose(w2).astype(jnp.float32),  # (1, 100)
        b2=b2.reshape(1, 1).astype(jnp.float32),    # (1, 1)
    )
    return packed


# ---------------------------------------------------------------------------
# Forward pass (mirrors Critic.forward)
# ---------------------------------------------------------------------------
def critic_forward(packed, x, a):
    # NCHW -> NHWC once, bf16 into the conv stack.
    x = jnp.transpose(x, (0, 2, 3, 1)).astype(jnp.bfloat16)
    for (wmat, b2d), (_, _, k, s) in zip(packed["conv"], CONV_CFGS[:3]):
        x = conv2d_relu(x, wmat, b2d, s, k, k)      # conv1..conv3
    assert x.shape[1:3] == (11, 11), x.shape        # 96x96 input => 11x11x32 here

    # conv4 patch matrix, rows ordered (oy, ox, n) so the fused kernel consumes
    # conv4/conv5 outputs with contiguous static row slices (in-kernel im2col).
    p4 = _im2col_pos_major(x, stride=2, kh=3, kw=3)  # (25*B, 288) bf16

    B = x.shape[0]
    f = packed["fused"]
    return pl.pallas_call(
        _fused_conv_tail_kernel,
        out_shape=jax.ShapeDtypeStruct((B, 1), jnp.float32),
    )(p4, f["w4"], f["b4"], f["w5"], f["b5"], f["w6"], f["b6"],
      a.astype(jnp.float32), f["wa"], f["ba"],
      f["w1x"], f["w1a"], f["b1"], f["w2row"], f["b2"])


# ---------------------------------------------------------------------------
# Pure-JAX reference (f32, lax.conv) for a correctness sanity check
# ---------------------------------------------------------------------------
def critic_forward_ref(raw, x, a):
    for (w, b, s) in raw["conv"]:
        x = jax.lax.conv_general_dilated(
            x, w, window_strides=(s, s), padding="VALID",
            dimension_numbers=("NCHW", "OIHW", "NCHW"))
        x = jax.nn.relu(x + b[None, :, None, None])
    x = x.reshape(-1, 256)
    aw, ab = raw["action"]
    a_feat = jax.nn.relu(a @ aw + ab)
    h = jnp.concatenate([x, a_feat], axis=1)
    w1, b1 = raw["fc"][0]
    h = jax.nn.relu(h @ w1 + b1)
    w2, b2 = raw["fc"][1]
    return h @ w2 + b2


if __name__ == "__main__":
    batch, img_stack, action_dim = 2, 4, 3
    key = jax.random.PRNGKey(0)
    kx, ka, kp = jax.random.split(key, 3)

    # 96x96 frames are required so the conv stack ends at 1x1 (view(-1, 256)).
    x = jax.random.normal(kx, (batch, img_stack, 96, 96), jnp.float32)
    a = jax.random.normal(ka, (batch, action_dim), jnp.float32)

    raw = init_params(kp, img_stack, action_dim)
    packed = pack_params(raw)                     # one-time weight packing

    fwd = jax.jit(critic_forward)
    q = jax.block_until_ready(fwd(packed, x, a))
    assert q.shape == (batch, 1), q.shape

    q_ref = jax.block_until_ready(critic_forward_ref(raw, x, a))
    # bf16 activations/weights on the MXU vs. the f32 XLA reference.
    assert jnp.allclose(q, q_ref, rtol=5e-2, atol=5e-2), (q, q_ref)

    print("KERNEL_OK")
</pallas_src>

<mosaic_0001>
module attributes {stable_mosaic.version = 11 : i64} {
  func.func @_matmul_bias_relu_kernel(%arg0: i32, %arg1: memref<2216x64xbf16, #tpu.memory_space<vmem>>, %arg2: memref<64x8xbf16, #tpu.memory_space<vmem>>, %arg3: memref<1x8xf32, #tpu.memory_space<vmem>>, %arg4: memref<2216x8xbf16, #tpu.memory_space<vmem>>) attributes {dimension_semantics = [#tpu.dimension_semantics<parallel>], iteration_bounds = array<i64: 2>, scalar_prefetch = 0 : i64, scratch_operands = 0 : i64, tpu.core_type = #tpu.core_type<tc>, window_params = [{transform_indices = @transform_0, window_bounds = array<i64: 2216, 64>}, {pipeline_mode = #tpu.pipeline_mode<synchronous>, transform_indices = @transform_1, window_bounds = array<i64: 64, 8>}, {pipeline_mode = #tpu.pipeline_mode<synchronous>, transform_indices = @transform_2, window_bounds = array<i64: 1, 8>}, {transform_indices = @transform_3, window_bounds = array<i64: 2216, 8>}]} {
    %c0 = arith.constant 0 : index
    %c0_0 = arith.constant 0 : index
    %0 = vector.load %arg1[%c0, %c0_0] : memref<2216x64xbf16, #tpu.memory_space<vmem>>, vector<2216x64xbf16>
    %c0_1 = arith.constant 0 : index
    %c0_2 = arith.constant 0 : index
    %1 = vector.load %arg2[%c0_1, %c0_2] : memref<64x8xbf16, #tpu.memory_space<vmem>>, vector<64x8xbf16>
    %cst = arith.constant dense<0.000000e+00> : vector<2216x8xf32>
    %2 = tpu.matmul %0, %1, %cst {dimension_numbers = #tpu.dot_dimension_numbers<[1], [0], [0], [1], [0, 0, 1, 1], [], []>} : vector<2216x64xbf16>, vector<64x8xbf16>, vector<2216x8xf32> -> vector<2216x8xf32>
    %c0_3 = arith.constant 0 : index
    %c0_4 = arith.constant 0 : index
    %3 = vector.load %arg3[%c0_3, %c0_4] : memref<1x8xf32, #tpu.memory_space<vmem>>, vector<1x8xf32>
    %4 = vector.broadcast %3 : vector<1x8xf32> to vector<2216x8xf32>
    %5 = arith.addf %2, %4 : vector<2216x8xf32>
    %cst_5 = arith.constant 0.000000e+00 : f32
    %6 = vector.broadcast %cst_5 : f32 to vector<2216x8xf32>
    %7 = arith.maximumf %5, %6 : vector<2216x8xf32>
    %8 = arith.truncf %7 : vector<2216x8xf32> to vector<2216x8xbf16>
    %c0_6 = arith.constant 0 : index
    %c0_7 = arith.constant 0 : index
    %9 = vector.load %arg4[%c0_6, %c0_7] : memref<2216x8xbf16, #tpu.memory_space<vmem>>, vector<2216x8xbf16>
    tpu.vector_store %arg4[%c0_6, %c0_7], %8 {strides = array<i32>} : memref<2216x8xbf16, #tpu.memory_space<vmem>>, vector<2216x8xbf16>,
    return
  }
  func.func @transform_0(%arg0: i32) -> (i32, i32) {
    %c0_i32 = arith.constant 0 : i32
    %c0_i32_0 = arith.constant 0 : i32
    return %arg0, %c0_i32 : i32, i32
  }
  func.func @transform_1(%arg0: i32) -> (i32, i32) {
    %c0_i32 = arith.constant 0 : i32
    %c0_i32_0 = arith.constant 0 : i32
    %c0_i32_1 = arith.constant 0 : i32
    return %c0_i32, %c0_i32_0 : i32, i32
  }
  func.func @transform_2(%arg0: i32) -> (i32, i32) {
    %c0_i32 = arith.constant 0 : i32
    %c0_i32_0 = arith.constant 0 : i32
    %c0_i32_1 = arith.constant 0 : i32
    return %c0_i32, %c0_i32_0 : i32, i32
  }
  func.func @transform_3(%arg0: i32) -> (i32, i32) {
    %c0_i32 = arith.constant 0 : i32
    %c0_i32_0 = arith.constant 0 : i32
    return %arg0, %c0_i32 : i32, i32
  }
}

module attributes {stable_mosaic.version = 11 : i64} {
  func.func @_matmul_bias_relu_kernel(%arg0: i32, %arg1: memref<536x72xbf16, #tpu.memory_space<vmem>>, %arg2: memref<72x16xbf16, #tpu.memory_space<vmem>>, %arg3: memref<1x16xf32, #tpu.memory_space<vmem>>, %arg4: memref<536x16xbf16, #tpu.memory_space<vmem>>) attributes {dimension_semantics = [#tpu.dimension_semantics<parallel>], iteration_bounds = array<i64: 2>, scalar_prefetch = 0 : i64, scratch_operands = 0 : i64, tpu.core_type = #tpu.core_type<tc>, window_params = [{transform_indices = @transform_0, window_bounds = array<i64: 536, 72>}, {pipeline_mode = #tpu.pipeline_mode<synchronous>, transform_indices = @transform_1, window_bounds = array<i64: 72, 16>}, {pipeline_mode = #tpu.pipeline_mode<synchronous>, transform_indices = @transform_2, window_bounds = array<i64: 1, 16>}, {transform_indices = @transform_3, window_bounds = array<i64: 536, 16>}]} {
    %c0 = arith.constant 0 : index
    %c0_0 = arith.constant 0 : index
    %0 = vector.load %arg1[%c0, %c0_0] : memref<536x72xbf16, #tpu.memory_space<vmem>>, vector<536x72xbf16>
    %c0_1 = arith.constant 0 : index
    %c0_2 = arith.constant 0 : index
    %1 = vector.load %arg2[%c0_1, %c0_2] : memref<72x16xbf16, #tpu.memory_space<vmem>>, vector<72x16xbf16>
    %cst = arith.constant dense<0.000000e+00> : vector<536x16xf32>
    %2 = tpu.matmul %0, %1, %cst {dimension_numbers = #tpu.dot_dimension_numbers<[1], [0], [0], [1], [0, 0, 1, 1], [], []>} : vector<536x72xbf16>, vector<72x16xbf16>, vector<536x16xf32> -> vector<536x16xf32>
    %c0_3 = arith.constant 0 : index
    %c0_4 = arith.constant 0 : index
    %3 = vector.load %arg3[%c0_3, %c0_4] : memref<1x16xf32, #tpu.memory_space<vmem>>, vector<1x16xf32>
    %4 = vector.broadcast %3 : vector<1x16xf32> to vector<536x16xf32>
    %5 = arith.addf %2, %4 : vector<536x16xf32>
    %cst_5 = arith.constant 0.000000e+00 : f32
    %6 = vector.broadcast %cst_5 : f32 to vector<536x16xf32>
    %7 = arith.maximumf %5, %6 : vector<536x16xf32>
    %8 = arith.truncf %7 : vector<536x16xf32> to vector<536x16xbf16>
    %c0_6 = arith.constant 0 : index
    %c0_7 = arith.constant 0 : index
    %9 = vector.load %arg4[%c0_6, %c0_7] : memref<536x16xbf16, #tpu.memory_space<vmem>>, vector<536x16xbf16>
    tpu.vector_store %arg4[%c0_6, %c0_7], %8 {strides = array<i32>} : memref<536x16xbf16, #tpu.memory_space<vmem>>, vector<536x16xbf16>,
    return
  }
  func.func @transform_0(%arg0: i32) -> (i32, i32) {
    %c0_i32 = arith.constant 0 : i32
    %c0_i32_0 = arith.constant 0 : i32
    return %arg0, %c0_i32 : i32, i32
  }
  func.func @transform_1(%arg0: i32) -> (i32, i32) {
    %c0_i32 = arith.constant 0 : i32
    %c0_i32_0 = arith.constant 0 : i32
    %c0_i32_1 = arith.constant 0 : i32
    return %c0_i32, %c0_i32_0 : i32, i32
  }
  func.func @transform_2(%arg0: i32) -> (i32, i32) {
    %c0_i32 = arith.constant 0 : i32
    %c0_i32_0 = arith.constant 0 : i32
    %c0_i32_1 = arith.constant 0 : i32
    return %c0_i32, %c0_i32_0 : i32, i32
  }
  func.func @transform_3(%arg0: i32) -> (i32, i32) {
    %c0_i32 = arith.constant 0 : i32
    %c0_i32_0 = arith.constant 0 : i32
    return %arg0, %c0_i32 : i32, i32
  }
}

module attributes {stable_mosaic.version = 11 : i64} {
  func.func @_matmul_bias_relu_kernel(%arg0: i32, %arg1: memref<242x144xbf16, #tpu.memory_space<vmem>>, %arg2: memref<144x32xbf16, #tpu.memory_space<vmem>>, %arg3: memref<1x32xf32, #tpu.memory_space<vmem>>, %arg4: memref<242x32xbf16, #tpu.memory_space<vmem>>) attributes {dimension_semantics = [#tpu.dimension_semantics<parallel>], iteration_bounds = array<i64: 1>, scalar_prefetch = 0 : i64, scratch_operands = 0 : i64, tpu.core_type = #tpu.core_type<tc>, window_params = [{transform_indices = @transform_0, window_bounds = array<i64: 242, 144>}, {pipeline_mode = #tpu.pipeline_mode<synchronous>, transform_indices = @transform_1, window_bounds = array<i64: 144, 32>}, {pipeline_mode = #tpu.pipeline_mode<synchronous>, transform_indices = @transform_2, window_bounds = array<i64: 1, 32>}, {transform_indices = @transform_3, window_bounds = array<i64: 242, 32>}]} {
    %c0 = arith.constant 0 : index
    %c0_0 = arith.constant 0 : index
    %0 = vector.load %arg1[%c0, %c0_0] : memref<242x144xbf16, #tpu.memory_space<vmem>>, vector<242x144xbf16>
    %c0_1 = arith.constant 0 : index
    %c0_2 = arith.constant 0 : index
    %1 = vector.load %arg2[%c0_1, %c0_2] : memref<144x32xbf16, #tpu.memory_space<vmem>>, vector<144x32xbf16>
    %cst = arith.constant dense<0.000000e+00> : vector<242x32xf32>
    %2 = tpu.matmul %0, %1, %cst {dimension_numbers = #tpu.dot_dimension_numbers<[1], [0], [0], [1], [0, 0, 1, 1], [], []>} : vector<242x144xbf16>, vector<144x32xbf16>, vector<242x32xf32> -> vector<242x32xf32>
    %c0_3 = arith.constant 0 : index
    %c0_4 = arith.constant 0 : index
    %3 = vector.load %arg3[%c0_3, %c0_4] : memref<1x32xf32, #tpu.memory_space<vmem>>, vector<1x32xf32>
    %4 = vector.broadcast %3 : vector<1x32xf32> to vector<242x32xf32>
    %5 = arith.addf %2, %4 : vector<242x32xf32>
    %cst_5 = arith.constant 0.000000e+00 : f32
    %6 = vector.broadcast %cst_5 : f32 to vector<242x32xf32>
    %7 = arith.maximumf %5, %6 : vector<242x32xf32>
    %8 = arith.truncf %7 : vector<242x32xf32> to vector<242x32xbf16>
    %c0_6 = arith.constant 0 : index
    %c0_7 = arith.constant 0 : index
    %9 = vector.load %arg4[%c0_6, %c0_7] : memref<242x32xbf16, #tpu.memory_space<vmem>>, vector<242x32xbf16>
    tpu.vector_store %arg4[%c0_6, %c0_7], %8 {strides = array<i32>} : memref<242x32xbf16, #tpu.memory_space<vmem>>, vector<242x32xbf16>,
    return
  }
  func.func @transform_0(%arg0: i32) -> (i32, i32) {
    %c0_i32 = arith.constant 0 : i32
    %c0_i32_0 = arith.constant 0 : i32
    return %arg0, %c0_i32 : i32, i32
  }
  func.func @transform_1(%arg0: i32) -> (i32, i32) {
    %c0_i32 = arith.constant 0 : i32
    %c0_i32_0 = arith.constant 0 : i32
    %c0_i32_1 = arith.constant 0 : i32
    return %c0_i32, %c0_i32_0 : i32, i32
  }
  func.func @transform_2(%arg0: i32) -> (i32, i32) {
    %c0_i32 = arith.constant 0 : i32
    %c0_i32_0 = arith.constant 0 : i32
    %c0_i32_1 = arith.constant 0 : i32
    return %c0_i32, %c0_i32_0 : i32, i32
  }
  func.func @transform_3(%arg0: i32) -> (i32, i32) {
    %c0_i32 = arith.constant 0 : i32
    %c0_i32_0 = arith.constant 0 : i32
    return %arg0, %c0_i32 : i32, i32
  }
}

module attributes {stable_mosaic.version = 11 : i64} {
  func.func @_fused_conv_tail_kernel(%arg0: memref<50x288xbf16, #tpu.memory_space<vmem>>, %arg1: memref<288x64xbf16, #tpu.memory_space<vmem>>, %arg2: memref<1x64xf32, #tpu.memory_space<vmem>>, %arg3: memref<9x64x128xbf16, #tpu.memory_space<vmem>>, %arg4: memref<1x128xf32, #tpu.memory_space<vmem>>, %arg5: memref<9x128x256xbf16, #tpu.memory_space<vmem>>, %arg6: memref<1x256xf32, #tpu.memory_space<vmem>>, %arg7: memref<2x3xf32, #tpu.memory_space<vmem>>, %arg8: memref<3x128xf32, #tpu.memory_space<vmem>>, %arg9: memref<1x128xf32, #tpu.memory_space<vmem>>, %arg10: memref<256x100xbf16, #tpu.memory_space<vmem>>, %arg11: memref<128x100xbf16, #tpu.memory_space<vmem>>, %arg12: memref<1x100xf32, #tpu.memory_space<vmem>>, %arg13: memref<1x100xf32, #tpu.memory_space<vmem>>, %arg14: memref<1x1xf32, #tpu.memory_space<vmem>>, %arg15: memref<2x1xf32, #tpu.memory_space<vmem>>) attributes {dimension_semantics = [], scalar_prefetch = 0 : i64, scratch_operands = 0 : i64, tpu.core_type = #tpu.core_type<tc>} {
    %c0 = arith.constant 0 : index
    %c0_0 = arith.constant 0 : index
    %0 = vector.load %arg0[%c0, %c0_0] : memref<50x288xbf16, #tpu.memory_space<vmem>>, vector<50x288xbf16>
    %c0_1 = arith.constant 0 : index
    %c0_2 = arith.constant 0 : index
    %1 = vector.load %arg1[%c0_1, %c0_2] : memref<288x64xbf16, #tpu.memory_space<vmem>>, vector<288x64xbf16>
    %cst = arith.constant dense<0.000000e+00> : vector<50x64xf32>
    %2 = tpu.matmul %0, %1, %cst {dimension_numbers = #tpu.dot_dimension_numbers<[1], [0], [0], [1], [0, 0, 1, 1], [], []>} : vector<50x288xbf16>, vector<288x64xbf16>, vector<50x64xf32> -> vector<50x64xf32>
    %c0_3 = arith.constant 0 : index
    %c0_4 = arith.constant 0 : index
    %3 = vector.load %arg2[%c0_3, %c0_4] : memref<1x64xf32, #tpu.memory_space<vmem>>, vector<1x64xf32>
    %4 = vector.broadcast %3 : vector<1x64xf32> to vector<50x64xf32>
    %5 = arith.addf %2, %4 : vector<50x64xf32>
    %cst_5 = arith.constant 0.000000e+00 : f32
    %6 = vector.broadcast %cst_5 : f32 to vector<50x64xf32>
    %7 = arith.maximumf %5, %6 : vector<50x64xf32>
    %8 = arith.truncf %7 : vector<50x64xf32> to vector<50x64xbf16>
    %9 = vector.extract_strided_slice %8 {offsets = [0, 0], sizes = [6, 64], strides = [1, 1]} : vector<50x64xbf16> to vector<6x64xbf16>
    %c0_6 = arith.constant 0 : index
    %c0_7 = arith.constant 0 : index
    %c0_8 = arith.constant 0 : index
    %10 = vector.load %arg3[%c0_6, %c0_7, %c0_8] : memref<9x64x128xbf16, #tpu.memory_space<vmem>>, vector<1x64x128xbf16>
    %11 = vector.shape_cast %10 : vector<1x64x128xbf16> to vector<64x128xbf16>
    %cst_9 = arith.constant dense<0.000000e+00> : vector<6x128xf32>
    %12 = tpu.matmul %9, %11, %cst_9 {dimension_numbers = #tpu.dot_dimension_numbers<[1], [0], [0], [1], [0, 0, 1, 1], [], []>} : vector<6x64xbf16>, vector<64x128xbf16>, vector<6x128xf32> -> vector<6x128xf32>
    %13 = vector.extract_strided_slice %8 {offsets = [2, 0], sizes = [6, 64], strides = [1, 1]} : vector<50x64xbf16> to vector<6x64xbf16>
    %c1 = arith.constant 1 : index
    %c0_10 = arith.constant 0 : index
    %c0_11 = arith.constant 0 : index
    %14 = vector.load %arg3[%c1, %c0_10, %c0_11] : memref<9x64x128xbf16, #tpu.memory_space<vmem>>, vector<1x64x128xbf16>
    %15 = vector.shape_cast %14 : vector<1x64x128xbf16> to vector<64x128xbf16>
    %cst_12 = arith.constant dense<0.000000e+00> : vector<6x128xf32>
    %16 = tpu.matmul %13, %15, %cst_12 {dimension_numbers = #tpu.dot_dimension_numbers<[1], [0], [0], [1], [0, 0, 1, 1], [], []>} : vector<6x64xbf16>, vector<64x128xbf16>, vector<6x128xf32> -> vector<6x128xf32>
    %17 = arith.addf %12, %16 : vector<6x128xf32>
    %18 = vector.extract_strided_slice %8 {offsets = [4, 0], sizes = [6, 64], strides = [1, 1]} : vector<50x64xbf16> to vector<6x64xbf16>
    %c2 = arith.constant 2 : index
    %c0_13 = arith.constant 0 : index
    %c0_14 = arith.constant 0 : index
    %19 = vector.load %arg3[%c2, %c0_13, %c0_14] : memref<9x64x128xbf16, #tpu.memory_space<vmem>>, vector<1x64x128xbf16>
    %20 = vector.shape_cast %19 : vector<1x64x128xbf16> to vector<64x128xbf16>
    %cst_15 = arith.constant dense<0.000000e+00> : vector<6x128xf32>
    %21 = tpu.matmul %18, %20, %cst_15 {dimension_numbers = #tpu.dot_dimension_numbers<[1], [0], [0], [1], [0, 0, 1, 1], [], []>} : vector<6x64xbf16>, vector<64x128xbf16>, vector<6x128xf32> -> vector<6x128xf32>
    %22 = arith.addf %17, %21 : vector<6x128xf32>
    %23 = vector.extract_strided_slice %8 {offsets = [10, 0], sizes = [6, 64], strides = [1, 1]} : vector<50x64xbf16> to vector<6x64xbf16>
    %c3 = arith.constant 3 : index
    %c0_16 = arith.constant 0 : index
    %c0_17 = arith.constant 0 : index
    %24 = vector.load %arg3[%c3, %c0_16, %c0_17] : memref<9x64x128xbf16, #tpu.memory_space<vmem>>, vector<1x64x128xbf16>
    %25 = vector.shape_cast %24 : vector<1x64x128xbf16> to vector<64x128xbf16>
    %cst_18 = arith.constant dense<0.000000e+00> : vector<6x128xf32>
    %26 = tpu.matmul %23, %25, %cst_18 {dimension_numbers = #tpu.dot_dimension_numbers<[1], [0], [0], [1], [0, 0, 1, 1], [], []>} : vector<6x64xbf16>, vector<64x128xbf16>, vector<6x128xf32> -> vector<6x128xf32>
    %27 = arith.addf %22, %26 : vector<6x128xf32>
    %28 = vector.extract_strided_slice %8 {offsets = [12, 0], sizes = [6, 64], strides = [1, 1]} : vector<50x64xbf16> to vector<6x64xbf16>
    %c4 = arith.constant 4 : index
    %c0_19 = arith.constant 0 : index
    %c0_20 = arith.constant 0 : index
    %29 = vector.load %arg3[%c4, %c0_19, %c0_20] : memref<9x64x128xbf16, #tpu.memory_space<vmem>>, vector<1x64x128xbf16>
    %30 = vector.shape_cast %29 : vector<1x64x128xbf16> to vector<64x128xbf16>
    %cst_21 = arith.constant dense<0.000000e+00> : vector<6x128xf32>
    %31 = tpu.matmul %28, %30, %cst_21 {dimension_numbers = #tpu.dot_dimension_numbers<[1], [0], [0], [1], [0, 0, 1, 1], [], []>} : vector<6x64xbf16>, vector<64x128xbf16>, vector<6x128xf32> -> vector<6x128xf32>
    %32 = arith.addf %27, %31 : vector<6x128xf32>
    %33 = vector.extract_strided_slice %8 {offsets = [14, 0], sizes = [6, 64], strides = [1, 1]} : vector<50x64xbf16> to vector<6x64xbf16>
    %c5 = arith.constant 5 : index
    %c0_22 = arith.constant 0 : index
    %c0_23 = arith.constant 0 : index
    %34 = vector.load %arg3[%c5, %c0_22, %c0_23] : memref<9x64x128xbf16, #tpu.memory_space<vmem>>, vector<1x64x128xbf16>
    %35 = vector.shape_cast %34 : vector<1x64x128xbf16> to vector<64x128xbf16>
    %cst_24 = arith.constant dense<0.000000e+00> : vector<6x128xf32>
    %36 = tpu.matmul %33, %35, %cst_24 {dimension_numbers = #tpu.dot_dimension_numbers<[1], [0], [0], [1], [0, 0, 1, 1], [], []>} : vector<6x64xbf16>, vector<64x128xbf16>, vector<6x128xf32> -> vector<6x128xf32>
    %37 = arith.addf %32, %36 : vector<6x128xf32>
    %38 = vector.extract_strided_slice %8 {offsets = [20, 0], sizes = [6, 64], strides = [1, 1]} : vector<50x64xbf16> to vector<6x64xbf16>
    %c6 = arith.constant 6 : index
    %c0_25 = arith.constant 0 : index
    %c0_26 = arith.constant 0 : index
    %39 = vector.load %arg3[%c6, %c0_25, %c0_26] : memref<9x64x128xbf16, #tpu.memory_space<vmem>>, vector<1x64x128xbf16>
    %40 = vector.shape_cast %39 : vector<1x64x128xbf16> to vector<64x128xbf16>
    %cst_27 = arith.constant dense<0.000000e+00> : vector<6x128xf32>
    %41 = tpu.matmul %38, %40, %cst_27 {dimension_numbers = #tpu.dot_dimension_numbers<[1], [0], [0], [1], [0, 0, 1, 1], [], []>} : vector<6x64xbf16>, vector<64x128xbf16>, vector<6x128xf32> -> vector<6x128xf32>
    %42 = arith.addf %37, %41 : vector<6x128xf32>
    %43 = vector.extract_strided_slice %8 {offsets = [22, 0], sizes = [6, 64], strides = [1, 1]} : vector<50x64xbf16> to vector<6x64xbf16>
    %c7 = arith.constant 7 : index
    %c0_28 = arith.constant 0 : index
    %c0_29 = arith.constant 0 : index
    %44 = vector.load %arg3[%c7, %c0_28, %c0_29] : memref<9x64x128xbf16, #tpu.memory_space<vmem>>, vector<1x64x128xbf16>
    %45 = vector.shape_cast %44 : vector<1x64x128xbf16> to vector<64x128xbf16>
    %cst_30 = arith.constant dense<0.000000e+00> : vector<6x128xf32>
    %46 = tpu.matmul %43, %45, %cst_30 {dimension_numbers = #tpu.dot_dimension_numbers<[1], [0], [0], [1], [0, 0, 1, 1], [], []>} : vector<6x64xbf16>, vector<64x128xbf16>, vector<6x128xf32> -> vector<6x128xf32>
    %47 = arith.addf %42, %46 : vector<6x128xf32>
    %48 = vector.extract_strided_slice %8 {offsets = [24, 0], sizes = [6, 64], strides = [1, 1]} : vector<50x64xbf16> to vector<6x64xbf16>
    %c8 = arith.constant 8 : index
    %c0_31 = arith.constant 0 : index
    %c0_32 = arith.constant 0 : index
    %49 = vector.load %arg3[%c8, %c0_31, %c0_32] : memref<9x64x128xbf16, #tpu.memory_space<vmem>>, vector<1x64x128xbf16>
    %50 = vector.shape_cast %49 : vector<1x64x128xbf16> to vector<64x128xbf16>
    %cst_33 = arith.constant dense<0.000000e+00> : vector<6x128xf32>
    %51 = tpu.matmul %48, %50, %cst_33 {dimension_numbers = #tpu.dot_dimension_numbers<[1], [0], [0], [1], [0, 0, 1, 1], [], []>} : vector<6x64xbf16>, vector<64x128xbf16>, vector<6x128xf32> -> vector<6x128xf32>
    %52 = arith.addf %47, %51 : vector<6x128xf32>
    %c0_34 = arith.constant 0 : index
    %c0_35 = arith.constant 0 : index
    %53 = vector.load %arg4[%c0_34, %c0_35] : memref<1x128xf32, #tpu.memory_space<vmem>>, vector<1x128xf32>
    %54 = vector.broadcast %53 : vector<1x128xf32> to vector<6x128xf32>
    %55 = arith.addf %52, %54 : vector<6x128xf32>
    %cst_36 = arith.constant 0.000000e+00 : f32
    %56 = vector.broadcast %cst_36 : f32 to vector<6x128xf32>
    %57 = arith.maximumf %55, %56 : vector<6x128xf32>
    %58 = arith.truncf %57 : vector<6x128xf32> to vector<6x128xbf16>
    %59 = vector.extract_strided_slice %8 {offsets = [10, 0], sizes = [6, 64], strides = [1, 1]} : vector<50x64xbf16> to vector<6x64xbf16>
    %c0_37 = arith.constant 0 : index
    %c0_38 = arith.constant 0 : index
    %c0_39 = arith.constant 0 : index
    %60 = vector.load %arg3[%c0_37, %c0_38, %c0_39] : memref<9x64x128xbf16, #tpu.memory_space<vmem>>, vector<1x64x128xbf16>
    %61 = vector.shape_cast %60 : vector<1x64x128xbf16> to vector<64x128xbf16>
    %cst_40 = arith.constant dense<0.000000e+00> : vector<6x128xf32>
    %62 = tpu.matmul %59, %61, %cst_40 {dimension_numbers = #tpu.dot_dimension_numbers<[1], [0], [0], [1], [0, 0, 1, 1], [], []>} : vector<6x64xbf16>, vector<64x128xbf16>, vector<6x128xf32> -> vector<6x128xf32>
    %63 = vector.extract_strided_slice %8 {offsets = [12, 0], sizes = [6, 64], strides = [1, 1]} : vector<50x64xbf16> to vector<6x64xbf16>
    %c1_41 = arith.constant 1 : index
    %c0_42 = arith.constant 0 : index
    %c0_43 = arith.constant 0 : index
    %64 = vector.load %arg3[%c1_41, %c0_42, %c0_43] : memref<9x64x128xbf16, #tpu.memory_space<vmem>>, vector<1x64x128xbf16>
    %65 = vector.shape_cast %64 : vector<1x64x128xbf16> to vector<64x128xbf16>
    %cst_44 = arith.constant dense<0.000000e+00> : vector<6x128xf32>
    %66 = tpu.matmul %63, %65, %cst_44 {dimension_numbers = #tpu.dot_dimension_numbers<[1], [0], [0], [1], [0, 0, 1, 1], [], []>} : vector<6x64xbf16>, vector<64x128xbf16>, vector<6x128xf32> -> vector<6x128xf32>
    %67 = arith.addf %62, %66 : vector<6x128xf32>
    %68 = vector.extract_strided_slice %8 {offsets = [14, 0], sizes = [6, 64], strides = [1, 1]} : vector<50x64xbf16> to vector<6x64xbf16>
    %c2_45 = arith.constant 2 : index
    %c0_46 = arith.constant 0 : index
    %c0_47 = arith.constant 0 : index
    %69 = vector.load %arg3[%c2_45, %c0_46, %c0_47] : memref<9x64x128xbf16, #tpu.memory_space<vmem>>, vector<1x64x128xbf16>
    %70 = vector.shape_cast %69 : vector<1x64x128xbf16> to vector<64x128xbf16>
    %cst_48 = arith.constant dense<0.000000e+00> : vector<6x128xf32>
    %71 = tpu.matmul %68, %70, %cst_48 {dimension_numbers = #tpu.dot_dimension_numbers<[1], [0], [0], [1], [0, 0, 1, 1], [], []>} : vector<6x64xbf16>, vector<64x128xbf16>, vector<6x128xf32> -> vector<6x128xf32>
    %72 = arith.addf %67, %71 : vector<6x128xf32>
    %73 = vector.extract_strided_slice %8 {offsets = [20, 0], sizes = [6, 64], strides = [1, 1]} : vector<50x64xbf16> to vector<6x64xbf16>
    %c3_49 = arith.constant 3 : index
    %c0_50 = arith.constant 0 : index
    %c0_51 = arith.constant 0 : index
    %74 = vector.load %arg3[%c3_49, %c0_50, %c0_51] : memref<9x64x128xbf16, #tpu.memory_space<vmem>>, vector<1x64x128xbf16>
    %75 = vector.shape_cast %74 : vector<1x64x128xbf16> to vector<64x128xbf16>
    %cst_52 = arith.constant dense<0.000000e+00> : vector<6x128xf32>
    %76 = tpu.matmul %73, %75, %cst_52 {dimension_numbers = #tpu.dot_dimension_numbers<[1], [0], [0], [1], [0, 0, 1, 1], [], []>} : vector<6x64xbf16>, vector<64x128xbf16>, vector<6x128xf32> -> vector<6x128xf32>
    %77 = arith.addf %72, %76 : vector<6x128xf32>
    %78 = vector.extract_strided_slice %8 {offsets = [22, 0], sizes = [6, 64], strides = [1, 1]} : vector<50x64xbf16> to vector<6x64xbf16>
    %c4_53 = arith.constant 4 : index
    %c0_54 = arith.constant 0 : index
    %c0_55 = arith.constant 0 : index
    %79 = vector.load %arg3[%c4_53, %c0_54, %c0_55] : memref<9x64x128xbf16, #tpu.memory_space<vmem>>, vector<1x64x128xbf16>
    %80 = vector.shape_cast %79 : vector<1x64x128xbf16> to vector<64x128xbf16>
    %cst_56 = arith.constant dense<0.000000e+00> : vector<6x128xf32>
    %81 = tpu.matmul %78, %80, %cst_56 {dimension_numbers = #tpu.dot_dimension_numbers<[1], [0], [0], [1], [0, 0, 1, 1], [], []>} : vector<6x64xbf16>, vector<64x128xbf16>, vector<6x128xf32> -> vector<6x128xf32>
    %82 = arith.addf %77, %81 : vector<6x128xf32>
    %83 = vector.extract_strided_slice %8 {offsets = [24, 0], sizes = [6, 64], strides = [1, 1]} : vector<50x64xbf16> to vector<6x64xbf16>
    %c5_57 = arith.constant 5 : index
    %c0_58 = arith.constant 0 : index
    %c0_59 = arith.constant 0 : index
    %84 = vector.load %arg3[%c5_57, %c0_58, %c0_59] : memref<9x64x128xbf16, #tpu.memory_space<vmem>>, vector<1x64x128xbf16>
    %85 = vector.shape_cast %84 : vector<1x64x128xbf16> to vector<64x128xbf16>
    %cst_60 = arith.constant dense<0.000000e+00> : vector<6x128xf32>
    %86 = tpu.matmul %83, %85, %cst_60 {dimension_numbers = #tpu.dot_dimension_numbers<[1], [0], [0], [1], [0, 0, 1, 1], [], []>} : vector<6x64xbf16>, vector<64x128xbf16>, vector<6x128xf32> -> vector<6x128xf32>
    %87 = arith.addf %82, %86 : vector<6x128xf32>
    %88 = vector.extract_strided_slice %8 {offsets = [30, 0], sizes = [6, 64], strides = [1, 1]} : vector<50x64xbf16> to vector<6x64xbf16>
    %c6_61 = arith.constant 6 : index
    %c0_62 = arith.constant 0 : index
    %c0_63 = arith.constant 0 : index
    %89 = vector.load %arg3[%c6_61, %c0_62, %c0_63] : memref<9x64x128xbf16, #tpu.memory_space<vmem>>, vector<1x64x128xbf16>
    %90 = vector.shape_cast %89 : vector<1x64x128xbf16> to vector<64x128xbf16>
    %cst_64 = arith.constant dense<0.000000e+00> : vector<6x128xf32>
    %91 = tpu.matmul %88, %90, %cst_64 {dimension_numbers = #tpu.dot_dimension_numbers<[1], [0], [0], [1], [0, 0, 1, 1], [], []>} : vector<6x64xbf16>, vector<64x128xbf16>, vector<6x128xf32> -> vector<6x128xf32>
    %92 = arith.addf %87, %91 : vector<6x128xf32>
    %93 = vector.extract_strided_slice %8 {offsets = [32, 0], sizes = [6, 64], strides = [1, 1]} : vector<50x64xbf16> to vector<6x64xbf16>
    %c7_65 = arith.constant 7 : index
    %c0_66 = arith.constant 0 : index
    %c0_67 = arith.constant 0 : index
    %94 = vector.load %arg3[%c7_65, %c0_66, %c0_67] : memref<9x64x128xbf16, #tpu.memory_space<vmem>>, vector<1x64x128xbf16>
    %95 = vector.shape_cast %94 : vector<1x64x128xbf16> to vector<64x128xbf16>
    %cst_68 = arith.constant dense<0.000000e+00> : vector<6x128xf32>
    %96 = tpu.matmul %93, %95, %cst_68 {dimension_numbers = #tpu.dot_dimension_numbers<[1], [0], [0], [1], [0, 0, 1, 1], [], []>} : vector<6x64xbf16>, vector<64x128xbf16>, vector<6x128xf32> -> vector<6x128xf32>
    %97 = arith.addf %92, %96 : vector<6x128xf32>
    %98 = vector.extract_strided_slice %8 {offsets = [34, 0], sizes = [6, 64], strides = [1, 1]} : vector<50x64xbf16> to vector<6x64xbf16>
    %c8_69 = arith.constant 8 : index
    %c0_70 = arith.constant 0 : index
    %c0_71 = arith.constant 0 : index
    %99 = vector.load %arg3[%c8_69, %c0_70, %c0_71] : memref<9x64x128xbf16, #tpu.memory_space<vmem>>, vector<1x64x128xbf16>
    %100 = vector.shape_cast %99 : vector<1x64x128xbf16> to vector<64x128xbf16>
    %cst_72 = arith.constant dense<0.000000e+00> : vector<6x128xf32>
    %101 = tpu.matmul %98, %100, %cst_72 {dimension_numbers = #tpu.dot_dimension_numbers<[1], [0], [0], [1], [0, 0, 1, 1], [], []>} : vector<6x64xbf16>, vector<64x128xbf16>, vector<6x128xf32> -> vector<6x128xf32>
    %102 = arith.addf %97, %101 : vector<6x128xf32>
    %c0_73 = arith.constant 0 : index
    %c0_74 = arith.constant 0 : index
    %103 = vector.load %arg4[%c0_73, %c0_74] : memref<1x128xf32, #tpu.memory_space<vmem>>, vector<1x128xf32>
    %104 = vector.broadcast %103 : vector<1x128xf32> to vector<6x128xf32>
    %105 = arith.addf %102, %104 : vector<6x128xf32>
    %cst_75 = arith.constant 0.000000e+00 : f32
    %106 = vector.broadcast %cst_75 : f32 to vector<6x128xf32>
    %107 = arith.maximumf %105, %106 : vector<6x128xf32>
    %108 = arith.truncf %107 : vector<6x128xf32> to vector<6x128xbf16>
    %109 = vector.extract_strided_slice %8 {offsets = [20, 0], sizes = [6, 64], strides = [1, 1]} : vector<50x64xbf16> to vector<6x64xbf16>
    %c0_76 = arith.constant 0 : index
    %c0_77 = arith.constant 0 : index
    %c0_78 = arith.constant 0 : index
    %110 = vector.load %arg3[%c0_76, %c0_77, %c0_78] : memref<9x64x128xbf16, #tpu.memory_space<vmem>>, vector<1x64x128xbf16>
    %111 = vector.shape_cast %110 : vector<1x64x128xbf16> to vector<64x128xbf16>
    %cst_79 = arith.constant dense<0.000000e+00> : vector<6x128xf32>
    %112 = tpu.matmul %109, %111, %cst_79 {dimension_numbers = #tpu.dot_dimension_numbers<[1], [0], [0], [1], [0, 0, 1, 1], [], []>} : vector<6x64xbf16>, vector<64x128xbf16>, vector<6x128xf32> -> vector<6x128xf32>
    %113 = vector.extract_strided_slice %8 {offsets = [22, 0], sizes = [6, 64], strides = [1, 1]} : vector<50x64xbf16> to vector<6x64xbf16>
    %c1_80 = arith.constant 1 : index
    %c0_81 = arith.constant 0 : index
    %c0_82 = arith.constant 0 : index
    %114 = vector.load %arg3[%c1_80, %c0_81, %c0_82] : memref<9x64x128xbf16, #tpu.memory_space<vmem>>, vector<1x64x128xbf16>
    %115 = vector.shape_cast %114 : vector<1x64x128xbf16> to vector<64x128xbf16>
    %cst_83 = arith.constant dense<0.000000e+00> : vector<6x128xf32>
    %116 = tpu.matmul %113, %115, %cst_83 {dimension_numbers = #tpu.dot_dimension_numbers<[1], [0], [0], [1], [0, 0, 1, 1], [], []>} : vector<6x64xbf16>, vector<64x128xbf16>, vector<6x128xf32> -> vector<6x128xf32>
    %117 = arith.addf %112, %116 : vector<6x128xf32>
    %118 = vector.extract_strided_slice %8 {offsets = [24, 0], sizes = [6, 64], strides = [1, 1]} : vector<50x64xbf16> to vector<6x64xbf16>
    %c2_84 = arith.constant 2 : index
    %c0_85 = arith.constant 0 : index
    %c0_86 = arith.constant 0 : index
    %119 = vector.load %arg3[%c2_84, %c0_85, %c0_86] : memref<9x64x128xbf16, #tpu.memory_space<vmem>>, vector<1x64x128xbf16>
    %120 = vector.shape_cast %119 : vector<1x64x128xbf16> to vector<64x128xbf16>
    %cst_87 = arith.constant dense<0.000000e+00> : vector<6x128xf32>
    %121 = tpu.matmul %118, %120, %cst_87 {dimension_numbers = #tpu.dot_dimension_numbers<[1], [0], [0], [1], [0, 0, 1, 1], [], []>} : vector<6x64xbf16>, vector<64x128xbf16>, vector<6x128xf32> -> vector<6x128xf32>
    %122 = arith.addf %117, %121 : vector<6x128xf32>
    %123 = vector.extract_strided_slice %8 {offsets = [30, 0], sizes = [6, 64], strides = [1, 1]} : vector<50x64xbf16> to vector<6x64xbf16>
    %c3_88 = arith.constant 3 : index
    %c0_89 = arith.constant 0 : index
    %c0_90 = arith.constant 0 : index
    %124 = vector.load %arg3[%c3_88, %c0_89, %c0_90] : memref<9x64x128xbf16, #tpu.memory_space<vmem>>, vector<1x64x128xbf16>
    %125 = vector.shape_cast %124 : vector<1x64x128xbf16> to vector<64x128xbf16>
    %cst_91 = arith.constant dense<0.000000e+00> : vector<6x128xf32>
    %126 = tpu.matmul %123, %125, %cst_91 {dimension_numbers = #tpu.dot_dimension_numbers<[1], [0], [0], [1], [0, 0, 1, 1], [], []>} : vector<6x64xbf16>, vector<64x128xbf16>, vector<6x128xf32> -> vector<6x128xf32>
    %127 = arith.addf %122, %126 : vector<6x128xf32>
    %128 = vector.extract_strided_slice %8 {offsets = [32, 0], sizes = [6, 64], strides = [1, 1]} : vector<50x64xbf16> to vector<6x64xbf16>
    %c4_92 = arith.constant 4 : index
    %c0_93 = arith.constant 0 : index
    %c0_94 = arith.constant 0 : index
    %129 = vector.load %arg3[%c4_92, %c0_93, %c0_94] : memref<9x64x128xbf16, #tpu.memory_space<vmem>>, vector<1x64x128xbf16>
    %130 = vector.shape_cast %129 : vector<1x64x128xbf16> to vector<64x128xbf16>
    %cst_95 = arith.constant dense<0.000000e+00> : vector<6x128xf32>
    %131 = tpu.matmul %128, %130, %cst_95 {dimension_numbers = #tpu.dot_dimension_numbers<[1], [0], [0], [1], [0, 0, 1, 1], [], []>} : vector<6x64xbf16>, vector<64x128xbf16>, vector<6x128xf32> -> vector<6x128xf32>
    %132 = arith.addf %127, %131 : vector<6x128xf32>
    %133 = vector.extract_strided_slice %8 {offsets = [34, 0], sizes = [6, 64], strides = [1, 1]} : vector<50x64xbf16> to vector<6x64xbf16>
    %c5_96 = arith.constant 5 : index
    %c0_97 = arith.constant 0 : index
    %c0_98 = arith.constant 0 : index
    %134 = vector.load %arg3[%c5_96, %c0_97, %c0_98] : memref<9x64x128xbf16, #tpu.memory_space<vmem>>, vector<1x64x128xbf16>
    %135 = vector.shape_cast %134 : vector<1x64x128xbf16> to vector<64x128xbf16>
    %cst_99 = arith.constant dense<0.000000e+00> : vector<6x128xf32>
    %136 = tpu.matmul %133, %135, %cst_99 {dimension_numbers = #tpu.dot_dimension_numbers<[1], [0], [0], [1], [0, 0, 1, 1], [], []>} : vector<6x64xbf16>, vector<64x128xbf16>, vector<6x128xf32> -> vector<6x128xf32>
    %137 = arith.addf %132, %136 : vector<6x128xf32>
    %138 = vector.extract_strided_slice %8 {offsets = [40, 0], sizes = [6, 64], strides = [1, 1]} : vector<50x64xbf16> to vector<6x64xbf16>
    %c6_100 = arith.constant 6 : index
    %c0_101 = arith.constant 0 : index
    %c0_102 = arith.constant 0 : index
    %139 = vector.load %arg3[%c6_100, %c0_101, %c0_102] : memref<9x64x128xbf16, #tpu.memory_space<vmem>>, vector<1x64x128xbf16>
    %140 = vector.shape_cast %139 : vector<1x64x128xbf16> to vector<64x128xbf16>
    %cst_103 = arith.constant dense<0.000000e+00> : vector<6x128xf32>
    %141 = tpu.matmul %138, %140, %cst_103 {dimension_numbers = #tpu.dot_dimension_numbers<[1], [0], [0], [1], [0, 0, 1, 1], [], []>} : vector<6x64xbf16>, vector<64x128xbf16>, vector<6x128xf32> -> vector<6x128xf32>
    %142 = arith.addf %137, %141 : vector<6x128xf32>
    %143 = vector.extract_strided_slice %8 {offsets = [42, 0], sizes = [6, 64], strides = [1, 1]} : vector<50x64xbf16> to vector<6x64xbf16>
    %c7_104 = arith.constant 7 : index
    %c0_105 = arith.constant 0 : index
    %c0_106 = arith.constant 0 : index
    %144 = vector.load %arg3[%c7_104, %c0_105, %c0_106] : memref<9x64x128xbf16, #tpu.memory_space<vmem>>, vector<1x64x128xbf16>
    %145 = vector.shape_cast %144 : vector<1x64x128xbf16> to vector<64x128xbf16>
    %cst_107 = arith.constant dense<0.000000e+00> : vector<6x128xf32>
    %146 = tpu.matmul %143, %145, %cst_107 {dimension_numbers = #tpu.dot_dimension_numbers<[1], [0], [0], [1], [0, 0, 1, 1], [], []>} : vector<6x64xbf16>, vector<64x128xbf16>, vector<6x128xf32> -> vector<6x128xf32>
    %147 = arith.addf %142, %146 : vector<6x128xf32>
    %148 = vector.extract_strided_slice %8 {offsets = [44, 0], sizes = [6, 64], strides = [1, 1]} : vector<50x64xbf16> to vector<6x64xbf16>
    %c8_108 = arith.constant 8 : index
    %c0_109 = arith.constant 0 : index
    %c0_110 = arith.constant 0 : index
    %149 = vector.load %arg3[%c8_108, %c0_109, %c0_110] : memref<9x64x128xbf16, #tpu.memory_space<vmem>>, vector<1x64x128xbf16>
    %150 = vector.shape_cast %149 : vector<1x64x128xbf16> to vector<64x128xbf16>
    %cst_111 = arith.constant dense<0.000000e+00> : vector<6x128xf32>
    %151 = tpu.matmul %148, %150, %cst_111 {dimension_numbers = #tpu.dot_dimension_numbers<[1], [0], [0], [1], [0, 0, 1, 1], [], []>} : vector<6x64xbf16>, vector<64x128xbf16>, vector<6x128xf32> -> vector<6x128xf32>
    %152 = arith.addf %147, %151 : vector<6x128xf32>
    %c0_112 = arith.constant 0 : index
    %c0_113 = arith.constant 0 : index
    %153 = vector.load %arg4[%c0_112, %c0_113] : memref<1x128xf32, #tpu.memory_space<vmem>>, vector<1x128xf32>
    %154 = vector.broadcast %153 : vector<1x128xf32> to vector<6x128xf32>
    %155 = arith.addf %152, %154 : vector<6x128xf32>
    %cst_114 = arith.constant 0.000000e+00 : f32
    %156 = vector.broadcast %cst_114 : f32 to vector<6x128xf32>
    %157 = arith.maximumf %155, %156 : vector<6x128xf32>
    %158 = arith.truncf %157 : vector<6x128xf32> to vector<6x128xbf16>
    %159 = vector.extract_strided_slice %58 {offsets = [0, 0], sizes = [2, 128], strides = [1, 1]} : vector<6x128xbf16> to vector<2x128xbf16>
    %c0_115 = arith.constant 0 : index
    %c0_116 = arith.constant 0 : index
    %c0_117 = arith.constant 0 : index
    %160 = vector.load %arg5[%c0_115, %c0_116, %c0_117] : memref<9x128x256xbf16, #tpu.memory_space<vmem>>, vector<1x128x256xbf16>
    %161 = vector.shape_cast %160 : vector<1x128x256xbf16> to vector<128x256xbf16>
    %cst_118 = arith.constant dense<0.000000e+00> : vector<2x256xf32>
    %162 = tpu.matmul %159, %161, %cst_118 {dimension_numbers = #tpu.dot_dimension_numbers<[1], [0], [0], [1], [0, 0, 1, 1], [], []>} : vector<2x128xbf16>, vector<128x256xbf16>, vector<2x256xf32> -> vector<2x256xf32>
    %163 = vector.extract_strided_slice %58 {offsets = [2, 0], sizes = [2, 128], strides = [1, 1]} : vector<6x128xbf16> to vector<2x128xbf16>
    %c1_119 = arith.constant 1 : index
    %c0_120 = arith.constant 0 : index
    %c0_121 = arith.constant 0 : index
    %164 = vector.load %arg5[%c1_119, %c0_120, %c0_121] : memref<9x128x256xbf16, #tpu.memory_space<vmem>>, vector<1x128x256xbf16>
    %165 = vector.shape_cast %164 : vector<1x128x256xbf16> to vector<128x256xbf16>
    %cst_122 = arith.constant dense<0.000000e+00> : vector<2x256xf32>
    %166 = tpu.matmul %163, %165, %cst_122 {dimension_numbers = #tpu.dot_dimension_numbers<[1], [0], [0], [1], [0, 0, 1, 1], [], []>} : vector<2x128xbf16>, vector<128x256xbf16>, vector<2x256xf32> -> vector<2x256xf32>
    %167 = arith.addf %162, %166 : vector<2x256xf32>
    %168 = vector.extract_strided_slice %58 {offsets = [4, 0], sizes = [2, 128], strides = [1, 1]} : vector<6x128xbf16> to vector<2x128xbf16>
    %c2_123 = arith.constant 2 : index
    %c0_124 = arith.constant 0 : index
    %c0_125 = arith.constant 0 : index
    %169 = vector.load %arg5[%c2_123, %c0_124, %c0_125] : memref<9x128x256xbf16, #tpu.memory_space<vmem>>, vector<1x128x256xbf16>
    %170 = vector.shape_cast %169 : vector<1x128x256xbf16> to vector<128x256xbf16>
    %cst_126 = arith.constant dense<0.000000e+00> : vector<2x256xf32>
    %171 = tpu.matmul %168, %170, %cst_126 {dimension_numbers = #tpu.dot_dimension_numbers<[1], [0], [0], [1], [0, 0, 1, 1], [], []>} : vector<2x128xbf16>, vector<128x256xbf16>, vector<2x256xf32> -> vector<2x256xf32>
    %172 = arith.addf %167, %171 : vector<2x256xf32>
    %173 = vector.extract_strided_slice %108 {offsets = [0, 0], sizes = [2, 128], strides = [1, 1]} : vector<6x128xbf16> to vector<2x128xbf16>
    %c3_127 = arith.constant 3 : index
    %c0_128 = arith.constant 0 : index
    %c0_129 = arith.constant 0 : index
    %174 = vector.load %arg5[%c3_127, %c0_128, %c0_129] : memref<9x128x256xbf16, #tpu.memory_space<vmem>>, vector<1x128x256xbf16>
    %175 = vector.shape_cast %174 : vector<1x128x256xbf16> to vector<128x256xbf16>
    %cst_130 = arith.constant dense<0.000000e+00> : vector<2x256xf32>
    %176 = tpu.matmul %173, %175, %cst_130 {dimension_numbers = #tpu.dot_dimension_numbers<[1], [0], [0], [1], [0, 0, 1, 1], [], []>} : vector<2x128xbf16>, vector<128x256xbf16>, vector<2x256xf32> -> vector<2x256xf32>
    %177 = arith.addf %172, %176 : vector<2x256xf32>
    %178 = vector.extract_strided_slice %108 {offsets = [2, 0], sizes = [2, 128], strides = [1, 1]} : vector<6x128xbf16> to vector<2x128xbf16>
    %c4_131 = arith.constant 4 : index
    %c0_132 = arith.constant 0 : index
    %c0_133 = arith.constant 0 : index
    %179 = vector.load %arg5[%c4_131, %c0_132, %c0_133] : memref<9x128x256xbf16, #tpu.memory_space<vmem>>, vector<1x128x256xbf16>
    %180 = vector.shape_cast %179 : vector<1x128x256xbf16> to vector<128x256xbf16>
    %cst_134 = arith.constant dense<0.000000e+00> : vector<2x256xf32>
    %181 = tpu.matmul %178, %180, %cst_134 {dimension_numbers = #tpu.dot_dimension_numbers<[1], [0], [0], [1], [0, 0, 1, 1], [], []>} : vector<2x128xbf16>, vector<128x256xbf16>, vector<2x256xf32> -> vector<2x256xf32>
    %182 = arith.addf %177, %181 : vector<2x256xf32>
    %183 = vector.extract_strided_slice %108 {offsets = [4, 0], sizes = [2, 128], strides = [1, 1]} : vector<6x128xbf16> to vector<2x128xbf16>
    %c5_135 = arith.constant 5 : index
    %c0_136 = arith.constant 0 : index
    %c0_137 = arith.constant 0 : index
    %184 = vector.load %arg5[%c5_135, %c0_136, %c0_137] : memref<9x128x256xbf16, #tpu.memory_space<vmem>>, vector<1x128x256xbf16>
    %185 = vector.shape_cast %184 : vector<1x128x256xbf16> to vector<128x256xbf16>
    %cst_138 = arith.constant dense<0.000000e+00> : vector<2x256xf32>
    %186 = tpu.matmul %183, %185, %cst_138 {dimension_numbers = #tpu.dot_dimension_numbers<[1], [0], [0], [1], [0, 0, 1, 1], [], []>} : vector<2x128xbf16>, vector<128x256xbf16>, vector<2x256xf32> -> vector<2x256xf32>
    %187 = arith.addf %182, %186 : vector<2x256xf32>
    %188 = vector.extract_strided_slice %158 {offsets = [0, 0], sizes = [2, 128], strides = [1, 1]} : vector<6x128xbf16> to vector<2x128xbf16>
    %c6_139 = arith.constant 6 : index
    %c0_140 = arith.constant 0 : index
    %c0_141 = arith.constant 0 : index
    %189 = vector.load %arg5[%c6_139, %c0_140, %c0_141] : memref<9x128x256xbf16, #tpu.memory_space<vmem>>, vector<1x128x256xbf16>
    %190 = vector.shape_cast %189 : vector<1x128x256xbf16> to vector<128x256xbf16>
    %cst_142 = arith.constant dense<0.000000e+00> : vector<2x256xf32>
    %191 = tpu.matmul %188, %190, %cst_142 {dimension_numbers = #tpu.dot_dimension_numbers<[1], [0], [0], [1], [0, 0, 1, 1], [], []>} : vector<2x128xbf16>, vector<128x256xbf16>, vector<2x256xf32> -> vector<2x256xf32>
    %192 = arith.addf %187, %191 : vector<2x256xf32>
    %193 = vector.extract_strided_slice %158 {offsets = [2, 0], sizes = [2, 128], strides = [1, 1]} : vector<6x128xbf16> to vector<2x128xbf16>
    %c7_143 = arith.constant 7 : index
    %c0_144 = arith.constant 0 : index
    %c0_145 = arith.constant 0 : index
    %194 = vector.load %arg5[%c7_143, %c0_144, %c0_145] : memref<9x128x256xbf16, #tpu.memory_space<vmem>>, vector<1x128x256xbf16>
    %195 = vector.shape_cast %194 : vector<1x128x256xbf16> to vector<128x256xbf16>
    %cst_146 = arith.constant dense<0.000000e+00> : vector<2x256xf32>
    %196 = tpu.matmul %193, %195, %cst_146 {dimension_numbers = #tpu.dot_dimension_numbers<[1], [0], [0], [1], [0, 0, 1, 1], [], []>} : vector<2x128xbf16>, vector<128x256xbf16>, vector<2x256xf32> -> vector<2x256xf32>
    %197 = arith.addf %192, %196 : vector<2x256xf32>
    %198 = vector.extract_strided_slice %158 {offsets = [4, 0], sizes = [2, 128], strides = [1, 1]} : vector<6x128xbf16> to vector<2x128xbf16>
    %c8_147 = arith.constant 8 : index
    %c0_148 = arith.constant 0 : index
    %c0_149 = arith.constant 0 : index
    %199 = vector.load %arg5[%c8_147, %c0_148, %c0_149] : memref<9x128x256xbf16, #tpu.memory_space<vmem>>, vector<1x128x256xbf16>
    %200 = vector.shape_cast %199 : vector<1x128x256xbf16> to vector<128x256xbf16>
    %cst_150 = arith.constant dense<0.000000e+00> : vector<2x256xf32>
    %201 = tpu.matmul %198, %200, %cst_150 {dimension_numbers = #tpu.dot_dimension_numbers<[1], [0], [0], [1], [0, 0, 1, 1], [], []>} : vector<2x128xbf16>, vector<128x256xbf16>, vector<2x256xf32> -> vector<2x256xf32>
    %202 = arith.addf %197, %201 : vector<2x256xf32>
    %c0_151 = arith.constant 0 : index
    %c0_152 = arith.constant 0 : index
    %203 = vector.load %arg6[%c0_151, %c0_152] : memref<1x256xf32, #tpu.memory_space<vmem>>, vector<1x256xf32>
    %204 = vector.broadcast %203 : vector<1x256xf32> to vector<2x256xf32>
    %205 = arith.addf %202, %204 : vector<2x256xf32>
    %cst_153 = arith.constant 0.000000e+00 : f32
    %206 = vector.broadcast %cst_153 : f32 to vector<2x256xf32>
    %207 = arith.maximumf %205, %206 : vector<2x256xf32>
    %208 = arith.truncf %207 : vector<2x256xf32> to vector<2x256xbf16>
    %c0_154 = arith.constant 0 : index
    %c0_155 = arith.constant 0 : index
    %209 = vector.load %arg7[%c0_154, %c0_155] : memref<2x3xf32, #tpu.memory_space<vmem>>, vector<2x3xf32>
    %c0_156 = arith.constant 0 : index
    %c0_157 = arith.constant 0 : index
    %210 = vector.load %arg8[%c0_156, %c0_157] : memref<3x128xf32, #tpu.memory_space<vmem>>, vector<3x128xf32>
    %c0_158 = arith.constant 0 : index
    %c0_159 = arith.constant 0 : index
    %211 = vector.load %arg9[%c0_158, %c0_159] : memref<1x128xf32, #tpu.memory_space<vmem>>, vector<1x128xf32>
    %212 = vector.extract_strided_slice %209 {offsets = [0, 0], sizes = [2, 1], strides = [1, 1]} : vector<2x3xf32> to vector<2x1xf32>
    %213 = vector.extract_strided_slice %210 {offsets = [0, 0], sizes = [1, 128], strides = [1, 1]} : vector<3x128xf32> to vector<1x128xf32>
    %214 = vector.broadcast %212 : vector<2x1xf32> to vector<2x128xf32>
    %215 = vector.broadcast %213 : vector<1x128xf32> to vector<2x128xf32>
    %216 = arith.mulf %214, %215 : vector<2x128xf32>
    %217 = vector.broadcast %211 : vector<1x128xf32> to vector<2x128xf32>
    %218 = arith.addf %217, %216 : vector<2x128xf32>
    %219 = vector.extract_strided_slice %209 {offsets = [0, 1], sizes = [2, 1], strides = [1, 1]} : vector<2x3xf32> to vector<2x1xf32>
    %220 = vector.extract_strided_slice %210 {offsets = [1, 0], sizes = [1, 128], strides = [1, 1]} : vector<3x128xf32> to vector<1x128xf32>
    %221 = vector.broadcast %219 : vector<2x1xf32> to vector<2x128xf32>
    %222 = vector.broadcast %220 : vector<1x128xf32> to vector<2x128xf32>
    %223 = arith.mulf %221, %222 : vector<2x128xf32>
    %224 = arith.addf %218, %223 : vector<2x128xf32>
    %225 = vector.extract_strided_slice %209 {offsets = [0, 2], sizes = [2, 1], strides = [1, 1]} : vector<2x3xf32> to vector<2x1xf32>
    %226 = vector.extract_strided_slice %210 {offsets = [2, 0], sizes = [1, 128], strides = [1, 1]} : vector<3x128xf32> to vector<1x128xf32>
    %227 = vector.broadcast %225 : vector<2x1xf32> to vector<2x128xf32>
    %228 = vector.broadcast %226 : vector<1x128xf32> to vector<2x128xf32>
    %229 = arith.mulf %227, %228 : vector<2x128xf32>
    %230 = arith.addf %224, %229 : vector<2x128xf32>
    %cst_160 = arith.constant 0.000000e+00 : f32
    %231 = vector.broadcast %cst_160 : f32 to vector<2x128xf32>
    %232 = arith.maximumf %230, %231 : vector<2x128xf32>
    %c0_161 = arith.constant 0 : index
    %c0_162 = arith.constant 0 : index
    %233 = vector.load %arg10[%c0_161, %c0_162] : memref<256x100xbf16, #tpu.memory_space<vmem>>, vector<256x100xbf16>
    %cst_163 = arith.constant dense<0.000000e+00> : vector<2x100xf32>
    %234 = tpu.matmul %208, %233, %cst_163 {dimension_numbers = #tpu.dot_dimension_numbers<[1], [0], [0], [1], [0, 0, 1, 1], [], []>} : vector<2x256xbf16>, vector<256x100xbf16>, vector<2x100xf32> -> vector<2x100xf32>
    %235 = arith.truncf %232 : vector<2x128xf32> to vector<2x128xbf16>
    %c0_164 = arith.constant 0 : index
    %c0_165 = arith.constant 0 : index
    %236 = vector.load %arg11[%c0_164, %c0_165] : memref<128x100xbf16, #tpu.memory_space<vmem>>, vector<128x100xbf16>
    %cst_166 = arith.constant dense<0.000000e+00> : vector<2x100xf32>
    %237 = tpu.matmul %235, %236, %cst_166 {dimension_numbers = #tpu.dot_dimension_numbers<[1], [0], [0], [1], [0, 0, 1, 1], [], []>} : vector<2x128xbf16>, vector<128x100xbf16>, vector<2x100xf32> -> vector<2x100xf32>
    %238 = arith.addf %234, %237 : vector<2x100xf32>
    %c0_167 = arith.constant 0 : index
    %c0_168 = arith.constant 0 : index
    %239 = vector.load %arg12[%c0_167, %c0_168] : memref<1x100xf32, #tpu.memory_space<vmem>>, vector<1x100xf32>
    %240 = vector.broadcast %239 : vector<1x100xf32> to vector<2x100xf32>
    %241 = arith.addf %238, %240 : vector<2x100xf32>
    %cst_169 = arith.constant 0.000000e+00 : f32
    %242 = vector.broadcast %cst_169 : f32 to vector<2x100xf32>
    %243 = arith.maximumf %241, %242 : vector<2x100xf32>
    %c0_170 = arith.constant 0 : index
    %c0_171 = arith.constant 0 : index
    %244 = vector.load %arg13[%c0_170, %c0_171] : memref<1x100xf32, #tpu.memory_space<vmem>>, vector<1x100xf32>
    %245 = vector.broadcast %244 : vector<1x100xf32> to vector<2x100xf32>
    %246 = arith.mulf %243, %245 : vector<2x100xf32>
    %cst_172 = arith.constant dense<0.000000e+00> : vector<2xf32>
    %247 = vector.multi_reduction <add>, %246, %cst_172 [1] : vector<2x100xf32> to vector<2xf32>
    %248 = vector.shape_cast %247 : vector<2xf32> to vector<2x1xf32>
    %c0_173 = arith.constant 0 : index
    %c0_174 = arith.constant 0 : index
    %249 = vector.load %arg14[%c0_173, %c0_174] : memref<1x1xf32, #tpu.memory_space<vmem>>, vector<1x1xf32>
    %250 = vector.broadcast %249 : vector<1x1xf32> to vector<2x1xf32>
    %251 = arith.addf %248, %250 : vector<2x1xf32>
    %c0_175 = arith.constant 0 : index
    %c0_176 = arith.constant 0 : index
    %252 = vector.load %arg15[%c0_175, %c0_176] : memref<2x1xf32, #tpu.memory_space<vmem>>, vector<2x1xf32>
    tpu.vector_store %arg15[%c0_175, %c0_176], %251 {strides = array<i32>} : memref<2x1xf32, #tpu.memory_space<vmem>>, vector<2x1xf32>,
    return
  }
}

</mosaic_0001>

<bundles_post_ra>
// kernel: critic_forward.4
= control target key start
LH: loop header
LB: loop body
LE: loop exit
PB: predicated region body
PF: predicated region fallthrough
CT: control target
= control target key end

     0   :  { %s6816_s12 = smov 0   ;;  %s6818_s13 = smov 0   ;;  %s8484_s0 = inlined_call_operand.vmem [shape: bf16[4418,64], index: 0, kind: input, shape index: {}]   ;;  %s8485_s1 = inlined_call_operand.vmem [shape: bf16[64,8], index: 1, kind: input, shape index: {}]   ;;  %s8486_s2 = inlined_call_operand.vmem [shape: f32[1,8], index: 2, kind: input, shape index: {}]   ;;  %s8487_s3 = inlined_call_operand.vmem [shape: bf16[4418,8], index: 3, kind: output, shape index: {}]  }
   0x1   :  { %s6820_s14 = smov 0  }
   0x2 LB: > { %s6829_s15 = sadd.s32 4294967295, %s6760_s14   ;;  %s6831_s16 = sadd.s32 1, %s6760_s14   ;;  %s6760_s14 = sphi %s6820_s14, %s8494_s14   ;;  %s6756_s13 = sphi %s6818_s13, %s8493_s13   ;;  %s6752_s12 = sphi %s6816_s12, %s8492_s12  }
   0x3   : > { %s85_s17 = ssub.s32 %s6760_s14, %s6831_s16  ;;  %s88_s18 = sadd.s32 1, %s6756_s13 }
   0x4   : > { %p86_p0 = scmp.eq.s32.totalorder %s85_s17, 0  ;;  %p98_p1 = scmp.ne.s32.totalorder %s6756_s13, %s6752_s12 }
   0x5   : > { %p99_p2 = scmp.eq.s32.totalorder %s6829_s15, 1  ;;  %p4897_p3 = scmp.ge.s32.totalorder %s6760_s14, 1 }
   0x6   : > { %s6839_s19 = scalar_select %p86_p0, %s6756_s13, %s88_s18  }
   0x7   : > { %p6841_p4 = por %p99_p2, %p98_p1  ;;  %p146_p5 = scmp.lt.s32.totalorder %s6760_s14, 3 }
   0x9   : > { %p147_p6 = pnand %p4897_p3, %p146_p5 }
   0xa   : > { %v6560_v0 = vld [vmem:[%s8485_s1] sm:$0xff] (!%p147_p6)   ;;  %v6794_v1 = vmov (!%p147_p6), 0.0   ;;  %v6561_v2 = vld [vmem:[%s8485_s1 + $0x8] sm:$0xff] (!%p147_p6)   ;;  %s6854_s25 = smul.u32 (!%p147_p6), 277, %s6829_s15  ;;  %vm6795_vm0 = vmmov (!%p147_p6), 0   ;;  %v6562_v3 = vld [vmem:[%s8485_s1 + $0x10] sm:$0xff] (!%p147_p6)  }
   0xb   : > { %150 = sbr.rel (%p147_p6) target bundleno = 891 (0x37b), region = 32  ;;  %5897 = vmatprep.subr.bf16.mxu0 (!%p147_p6), %v6794_v1  ;;  %6461 = vmatprep.subr.bf16.mxu1 (!%p147_p6), %v6794_v1  ;;  %v6563_v4 = vld [vmem:[%s8485_s1 + $0x18] sm:$0xff] (!%p147_p6)   ;;  %vm1202_vm1 = vcmask (!%p147_p6), 523264   ;;  %s170_s8 = sand.u32 (!%p147_p6), 1, %s6752_s12   ;;  %v7095_v59 = vld [vmem:[%s8486_s2] ss:$0 sm:$0xff] (!%p147_p6) }
   0xc   : > { %5898 = vmatpush3.bf16.msra.mxu0 (!%p147_p6), %v6560_v0  ;;  %6465 = vmatpush3.bf16.msra.mxu1 (!%p147_p6), %v6560_v0  ;;  %p178_p7 = scmp.lt.s32.totalorder (!%p147_p6), %s6854_s25, 552  ;;  %s6469_s11 = smul.u32 (!%p147_p6), 1108, %s170_s8  ;;  %vm4150_vm2 = vcmask (!%p147_p6), 60416  }
   0xd   : > { %5899 = vmatprep.subr.bf16.mxu0 (!%p147_p6), %v6794_v1  ;;  %6462 = vmatprep.subr.bf16.mxu1 (!%p147_p6), %v6794_v1 }
   0xe   : > { %5905 = vmatprep.mubr.msk.bf16.mxu0 (!%p147_p6), %vm6795_vm0, %v6794_v1  ;;  %6185 = vmatprep.mubr.msk.bf16.mxu1 (!%p147_p6), %vm6795_vm0, %v6794_v1  ;;  %s7113_s12 = scalar_lea.vmem (!%p147_p6), [#allocation2], %s6469_s11  }
  0x10   : > { %5900 = vmatpush3.bf16.msra.mxu0 (!%p147_p6), %v6561_v2  ;;  %6466 = vmatpush3.bf16.msra.mxu1 (!%p147_p6), %v6561_v2 }
  0x11   : > { %5901 = vmatprep.subr.bf16.mxu0 (!%p147_p6), %v6794_v1  ;;  %6463 = vmatprep.subr.bf16.mxu1 (!%p147_p6), %v6794_v1 }
  0x12   : > { %s179_s28 = scalar_select %p178_p7, %s6854_s25, 552 }
  0x13   : > { %s4436_s24 = ssub.s32 (%p6841_p4), 553, %s6854_s25  ;;  %s5751_s26 = smul.u32 (%p6841_p4), 1108, %s6829_s15 }
  0x14   : > { %s4898_s29 = sshll.u32 %s179_s28, 2  ;;  %5902 = vmatpush3.bf16.msra.mxu0 %v6562_v3  ;;  %6467 = vmatpush3.bf16.msra.mxu1 %v6562_v3  ;;  %p4437_p8 = scmp.lt.s32.totalorder (%p6841_p4), %s4436_s24, 277 }
  0x15   : > { %s6872_s5 = scalar_lea.vmem %s8484_s0, %s4898_s29  ;;  %5903 = vmatprep.subr.bf16.mxu0 %v6794_v1  ;;  %6464 = vmatprep.subr.bf16.mxu1 %v6794_v1  ;;  %s8292_s29 = scalar_lea.vmem (%p6841_p4), %s8487_s3, %s5751_s26  }
  0x16   : > { %v6564_v5 = vld [vmem:[%s6872_s5] sm:$0xff]   ;;  %v6565_v6 = vld [vmem:[%s6872_s5 + $0x230] sm:$0xff]   ;;  %v6566_v7 = vld [vmem:[%s6872_s5 + $0x8] sm:$0xff]  }
  0x17   : > { %v6567_v8 = vld [vmem:[%s6872_s5 + $0x238] sm:$0xff]   ;;  %v6568_v9 = vld [vmem:[%s6872_s5 + $0x10] sm:$0xff]   ;;  %v6569_v10 = vld [vmem:[%s6872_s5 + $0x240] sm:$0xff]  }
  0x18   : > { %5904 = vmatpush3.bf16.msra.mxu0 %v6563_v4  ;;  %6468 = vmatpush3.bf16.msra.mxu1 %v6563_v4  ;;  %v6570_v11 = vld [vmem:[%s6872_s5 + $0x18] sm:$0xff]   ;;  %v6571_v12 = vld [vmem:[%s6872_s5 + $0x248] sm:$0xff]   ;;  %v6572_v13 = vld [vmem:[%s6872_s5 + $0x20] sm:$0xff]  }
  0x19   : > { %v6573_v14 = vld [vmem:[%s6872_s5 + $0x250] sm:$0xff]   ;;  %v6574_v15 = vld [vmem:[%s6872_s5 + $0x28] sm:$0xff]   ;;  %v6575_v16 = vld [vmem:[%s6872_s5 + $0x258] sm:$0xff]  }
  0x1a   : > { %v6576_v17 = vld [vmem:[%s6872_s5 + $0x30] sm:$0xff]   ;;  %v6577_v18 = vld [vmem:[%s6872_s5 + $0x260] sm:$0xff]   ;;  %v6578_v19 = vld [vmem:[%s6872_s5 + $0x38] sm:$0xff]  }
  0x1b   : > { %5906 = vmatmul.mubr.msk.bf16.vlgmr.msra.gmra.mrb[0].mxu0 %vm1202_vm1, %v6564_v5  ;;  %6186 = vmatmul.mubr.msk.bf16.vlgmr.msra.gmra.mrb[0].mxu1 %vm1202_vm1, %v6565_v6  ;;  %v6579_v20 = vld [vmem:[%s6872_s5 + $0x268] sm:$0xff]   ;;  %v6580_v21 = vld [vmem:[%s6872_s5 + $0x40] sm:$0xff]   ;;  %v6581_v22 = vld [vmem:[%s6872_s5 + $0x270] sm:$0xff]  }
  0x1c   : > { %5909 = vmatprep.mubr.msk.bf16.mxu0 %vm6795_vm0, %v6794_v1  ;;  %6189 = vmatprep.mubr.msk.bf16.mxu1 %vm6795_vm0, %v6794_v1  ;;  %v6582_v23 = vld [vmem:[%s6872_s5 + $0x48] sm:$0xff]   ;;  %v6583_v24 = vld [vmem:[%s6872_s5 + $0x278] sm:$0xff]   ;;  %v6584_v25 = vld [vmem:[%s6872_s5 + $0x50] sm:$0xff]  }
  0x1d   : > { %v6585_v26 = vld [vmem:[%s6872_s5 + $0x280] sm:$0xff]   ;;  %v6586_v27 = vld [vmem:[%s6872_s5 + $0x58] sm:$0xff]   ;;  %v6587_v28 = vld [vmem:[%s6872_s5 + $0x288] sm:$0xff]  }
  0x1e   : > { %v6588_v29 = vld [vmem:[%s6872_s5 + $0x60] sm:$0xff]   ;;  %v6589_v30 = vld [vmem:[%s6872_s5 + $0x290] sm:$0xff]   ;;  %v6590_v31 = vld [vmem:[%s6872_s5 + $0x68] sm:$0xff]  }
  0x1f   : > { %v6591_v32 = vld [vmem:[%s6872_s5 + $0x298] sm:$0xff]   ;;  %v6592_v33 = vld [vmem:[%s6872_s5 + $0x70] sm:$0xff]   ;;  %v6593_v34 = vld [vmem:[%s6872_s5 + $0x2a0] sm:$0xff]  }
  0x20   : > { %v6594_v35 = vld [vmem:[%s6872_s5 + $0x78] sm:$0xff]   ;;  %v6595_v36 = vld [vmem:[%s6872_s5 + $0x2a8] sm:$0xff]   ;;  %v6596_v37 = vld [vmem:[%s6872_s5 + $0x80] sm:$0xff]  }
  0x21   : > { %v6597_v38 = vld [vmem:[%s6872_s5 + $0x2b0] sm:$0xff]   ;;  %v6598_v39 = vld [vmem:[%s6872_s5 + $0x88] sm:$0xff]   ;;  %v6599_v40 = vld [vmem:[%s6872_s5 + $0x2b8] sm:$0xff]  }
  0x22   : > { %v6600_v41 = vld [vmem:[%s6872_s5 + $0x90] sm:$0xff]   ;;  %v6601_v42 = vld [vmem:[%s6872_s5 + $0x2c0] sm:$0xff]   ;;  %v6602_v43 = vld [vmem:[%s6872_s5 + $0x98] sm:$0xff]  }
  0x23   : > { %5910 = vmatmul.mubr.msk.bf16.gmra.mrb[4].mxu0 %vm1202_vm1, %v6566_v7  ;;  %6190 = vmatmul.mubr.msk.bf16.gmra.mrb[4].mxu1 %vm1202_vm1, %v6567_v8  ;;  %v6603_v44 = vld [vmem:[%s6872_s5 + $0x2c8] sm:$0xff]   ;;  %v6604_v45 = vld [vmem:[%s6872_s5 + $0xa0] sm:$0xff]   ;;  %v6605_v46 = vld [vmem:[%s6872_s5 + $0x2d0] sm:$0xff]  }
  0x24   : > { %5913 = vmatprep.mubr.msk.bf16.mxu0 %vm6795_vm0, %v6794_v1  ;;  %6193 = vmatprep.mubr.msk.bf16.mxu1 %vm6795_vm0, %v6794_v1  ;;  %v6606_v47 = vld [vmem:[%s6872_s5 + $0xa8] sm:$0xff]   ;;  %v6607_v48 = vld [vmem:[%s6872_s5 + $0x2d8] sm:$0xff]   ;;  %v6608_v49 = vld [vmem:[%s6872_s5 + $0xb0] sm:$0xff]  }
  0x25   : > { %v6609_v50 = vld [vmem:[%s6872_s5 + $0x2e0] sm:$0xff]   ;;  %v6610_v51 = vld [vmem:[%s6872_s5 + $0xb8] sm:$0xff]   ;;  %v6611_v52 = vld [vmem:[%s6872_s5 + $0x2e8] sm:$0xff]  }
  0x26   : > { %v6612_v53 = vld [vmem:[%s6872_s5 + $0xc0] sm:$0xff]   ;;  %v6613_v54 = vld [vmem:[%s6872_s5 + $0x2f0] sm:$0xff]   ;;  %v6614_v55 = vld [vmem:[%s6872_s5 + $0xc8] sm:$0xff]  }
  0x27   : > { %v6615_v56 = vld [vmem:[%s6872_s5 + $0x2f8] sm:$0xff]   ;;  %v6616_v57 = vld [vmem:[%s6872_s5 + $0xd0] sm:$0xff]   ;;  %v6617_v58 = vld [vmem:[%s6872_s5 + $0x300] sm:$0xff]  }
  0x28   : > { %v6618_v0 = vld [vmem:[%s6872_s5 + $0xd8] sm:$0xff]   ;;  %v6619_v4 = vld [vmem:[%s6872_s5 + $0x308] sm:$0xff]  }
  0x2b   : > { %5914 = vmatmul.mubr.msk.bf16.gmra.mrb[8].mxu0 %vm1202_vm1, %v6568_v9  ;;  %6194 = vmatmul.mubr.msk.bf16.gmra.mrb[8].mxu1 %vm1202_vm1, %v6569_v10 }
  0x2c   : > { %5917 = vmatprep.mubr.msk.bf16.mxu0 %vm6795_vm0, %v6794_v1  ;;  %6197 = vmatprep.mubr.msk.bf16.mxu1 %vm6795_vm0, %v6794_v1 }
  0x33   : > { %5918 = vmatmul.mubr.msk.bf16.gmra.mrb[12].mxu0 %vm1202_vm1, %v6570_v11  ;;  %6198 = vmatmul.mubr.msk.bf16.gmra.mrb[12].mxu1 %vm1202_vm1, %v6571_v12 }
  0x34   : > { %5921 = vmatprep.mubr.msk.bf16.mxu0 %vm6795_vm0, %v6794_v1  ;;  %6201 = vmatprep.mubr.msk.bf16.mxu1 %vm6795_vm0, %v6794_v1 }
  0x3b   : > { %5922 = vmatmul.mubr.msk.bf16.gmra.mrb[16].mxu0 %vm1202_vm1, %v6572_v13  ;;  %6202 = vmatmul.mubr.msk.bf16.gmra.mrb[16].mxu1 %vm1202_vm1, %v6573_v14 }
  0x3c   : > { %5925 = vmatprep.mubr.msk.bf16.mxu0 %vm6795_vm0, %v6794_v1  ;;  %6205 = vmatprep.mubr.msk.bf16.mxu1 %vm6795_vm0, %v6794_v1 }
  0x43   : > { %5926 = vmatmul.mubr.msk.bf16.gmra.mrb[20].mxu0 %vm1202_vm1, %v6574_v15  ;;  %6206 = vmatmul.mubr.msk.bf16.gmra.mrb[20].mxu1 %vm1202_vm1, %v6575_v16 }
  0x44   : > { %5929 = vmatprep.mubr.msk.bf16.mxu0 %vm6795_vm0, %v6794_v1  ;;  %6209 = vmatprep.mubr.msk.bf16.mxu1 %vm6795_vm0, %v6794_v1 }
  0x4b   : > { %5930 = vmatmul.mubr.msk.bf16.gmra.mrb[24].mxu0 %vm1202_vm1, %v6576_v17  ;;  %6210 = vmatmul.mubr.msk.bf16.gmra.mrb[24].mxu1 %vm1202_vm1, %v6577_v18 }
  0x4c   : > { %5933 = vmatprep.mubr.msk.bf16.mxu0 %vm6795_vm0, %v6794_v1  ;;  %6213 = vmatprep.mubr.msk.bf16.mxu1 %vm6795_vm0, %v6794_v1 }
  0x53   : > { %5934 = vmatmul.mubr.msk.bf16.gmra.mrb[28].mxu0 %vm1202_vm1, %v6578_v19  ;;  %6214 = vmatmul.mubr.msk.bf16.gmra.mrb[28].mxu1 %vm1202_vm1, %v6579_v20 }
  0x54   : > { %5937 = vmatprep.mubr.msk.bf16.mxu0 %vm6795_vm0, %v6794_v1  ;;  %6217 = vmatprep.mubr.msk.bf16.mxu1 %vm6795_vm0, %v6794_v1 }
  0x5b   : > { %5938 = vmatmul.mubr.msk.bf16.gmra.mrb[32].mxu0 %vm1202_vm1, %v6580_v21  ;;  %6218 = vmatmul.mubr.msk.bf16.gmra.mrb[32].mxu1 %vm1202_vm1, %v6581_v22 }
  0x5c   : > { %5941 = vmatprep.mubr.msk.bf16.mxu0 %vm6795_vm0, %v6794_v1  ;;  %6221 = vmatprep.mubr.msk.bf16.mxu1 %vm6795_vm0, %v6794_v1 }
  0x63   : > { %5942 = vmatmul.mubr.msk.bf16.gmra.mrb[36].mxu0 %vm1202_vm1, %v6582_v23  ;;  %6222 = vmatmul.mubr.msk.bf16.gmra.mrb[36].mxu1 %vm1202_vm1, %v6583_v24  ;;  %v6620_v23 = vld [vmem:[%s6872_s5 + $0xe0] sm:$0xff]  }
  0x64   : > { %5945 = vmatprep.mubr.msk.bf16.mxu0 %vm6795_vm0, %v6794_v1  ;;  %6225 = vmatprep.mubr.msk.bf16.mxu1 %vm6795_vm0, %v6794_v1 }
  0x6b   : > { %5946 = vmatmul.mubr.msk.bf16.gmra.mrb[40].mxu0 %vm1202_vm1, %v6584_v25  ;;  %6226 = vmatmul.mubr.msk.bf16.gmra.mrb[40].mxu1 %vm1202_vm1, %v6585_v26  ;;  %v6621_v26 = vld [vmem:[%s6872_s5 + $0x310] sm:$0xff]  }
  0x6c   : > { %5949 = vmatprep.mubr.msk.bf16.mxu0 %vm6795_vm0, %v6794_v1  ;;  %6229 = vmatprep.mubr.msk.bf16.mxu1 %vm6795_vm0, %v6794_v1 }
  0x73   : > { %5950 = vmatmul.mubr.msk.bf16.gmra.mrb[44].mxu0 %vm1202_vm1, %v6586_v27  ;;  %6230 = vmatmul.mubr.msk.bf16.gmra.mrb[44].mxu1 %vm1202_vm1, %v6587_v28 }
  0x74   : > { %5953 = vmatprep.mubr.msk.bf16.mxu0 %vm6795_vm0, %v6794_v1  ;;  %6233 = vmatprep.mubr.msk.bf16.mxu1 %vm6795_vm0, %v6794_v1 }
  0x7b   : > { %5954 = vmatmul.mubr.msk.bf16.gmra.mrb[48].mxu0 %vm1202_vm1, %v6588_v29  ;;  %6234 = vmatmul.mubr.msk.bf16.gmra.mrb[48].mxu1 %vm1202_vm1, %v6589_v30 }
  0x7c   : > { %5957 = vmatprep.mubr.msk.bf16.mxu0 %vm6795_vm0, %v6794_v1  ;;  %6237 = vmatprep.mubr.msk.bf16.mxu1 %vm6795_vm0, %v6794_v1 }
  0x83   : > { %5958 = vmatmul.mubr.msk.bf16.gmra.mrb[52].mxu0 %vm1202_vm1, %v6590_v31  ;;  %6238 = vmatmul.mubr.msk.bf16.gmra.mrb[52].mxu1 %vm1202_vm1, %v6591_v32 }
  0x84   : > { %5961 = vmatprep.mubr.msk.bf16.mxu0 %vm6795_vm0, %v6794_v1  ;;  %6241 = vmatprep.mubr.msk.bf16.mxu1 %vm6795_vm0, %v6794_v1 }
  0x8b   : > { %5962 = vmatmul.mubr.msk.bf16.gmra.mrb[56].mxu0 %vm1202_vm1, %v6592_v33  ;;  %6242 = vmatmul.mubr.msk.bf16.gmra.mrb[56].mxu1 %vm1202_vm1, %v6593_v34 }
  0x8c   : > { %5965 = vmatprep.mubr.msk.bf16.mxu0 %vm6795_vm0, %v6794_v1  ;;  %6245 = vmatprep.mubr.msk.bf16.mxu1 %vm6795_vm0, %v6794_v1 }
  0x93   : > { %5966 = vmatmul.mubr.msk.bf16.gmra.mrb[60].mxu0 %vm1202_vm1, %v6594_v35  ;;  %6246 = vmatmul.mubr.msk.bf16.gmra.mrb[60].mxu1 %vm1202_vm1, %v6595_v36 }
  0x94   : > { %5969 = vmatprep.mubr.msk.bf16.mxu0 %vm6795_vm0, %v6794_v1  ;;  %6249 = vmatprep.mubr.msk.bf16.mxu1 %vm6795_vm0, %v6794_v1 }
  0x9b   : > { %5970 = vmatmul.mubr.msk.bf16.gmra.mrb[64].mxu0 %vm1202_vm1, %v6596_v37  ;;  %6250 = vmatmul.mubr.msk.bf16.gmra.mrb[64].mxu1 %vm1202_vm1, %v6597_v38 }
  0x9c   : > { %5973 = vmatprep.mubr.msk.bf16.mxu0 %vm6795_vm0, %v6794_v1  ;;  %6253 = vmatprep.mubr.msk.bf16.mxu1 %vm6795_vm0, %v6794_v1 }
  0xa3   : > { %5974 = vmatmul.mubr.msk.bf16.gmra.mrb[68].mxu0 %vm1202_vm1, %v6598_v39  ;;  %6254 = vmatmul.mubr.msk.bf16.gmra.mrb[68].mxu1 %vm1202_vm1, %v6599_v40 }
  0xa4   : > { %5977 = vmatprep.mubr.msk.bf16.mxu0 %vm6795_vm0, %v6794_v1  ;;  %6257 = vmatprep.mubr.msk.bf16.mxu1 %vm6795_vm0, %v6794_v1 }
  0xab   : > { %5978 = vmatmul.mubr.msk.bf16.gmra.mrb[72].mxu0 %vm1202_vm1, %v6600_v41  ;;  %6258 = vmatmul.mubr.msk.bf16.gmra.mrb[72].mxu1 %vm1202_vm1, %v6601_v42 }
  0xac   : > { %5981 = vmatprep.mubr.msk.bf16.mxu0 %vm6795_vm0, %v6794_v1  ;;  %6261 = vmatprep.mubr.msk.bf16.mxu1 %vm6795_vm0, %v6794_v1 }
  0xb3   : > { %5982 = vmatmul.mubr.msk.bf16.gmra.mrb[76].mxu0 %vm1202_vm1, %v6602_v43  ;;  %6262 = vmatmul.mubr.msk.bf16.gmra.mrb[76].mxu1 %vm1202_vm1, %v6603_v44 }
  0xb4   : > { %5985 = vmatprep.mubr.msk.bf16.mxu0 %vm6795_vm0, %v6794_v1  ;;  %6265 = vmatprep.mubr.msk.bf16.mxu1 %vm6795_vm0, %v6794_v1 }
  0xbb   : > { %5986 = vmatmul.mubr.msk.bf16.gmra.mrb[80].mxu0 %vm1202_vm1, %v6604_v45  ;;  %6266 = vmatmul.mubr.msk.bf16.gmra.mrb[80].mxu1 %vm1202_vm1, %v6605_v46  ;;  %v6622_v45 = vld [vmem:[%s6872_s5 + $0xe8] sm:$0xff]  }
  0xbc   : > { %5989 = vmatprep.mubr.msk.bf16.mxu0 %vm6795_vm0, %v6794_v1  ;;  %6269 = vmatprep.mubr.msk.bf16.mxu1 %vm6795_vm0, %v6794_v1 }
  0xc3   : > { %5990 = vmatmul.mubr.msk.bf16.gmra.mrb[84].mxu0 %vm1202_vm1, %v6606_v47  ;;  %6270 = vmatmul.mubr.msk.bf16.gmra.mrb[84].mxu1 %vm1202_vm1, %v6607_v48  ;;  %v6623_v48 = vld [vmem:[%s6872_s5 + $0x318] sm:$0xff]  }
  0xc4   : > { %5993 = vmatprep.mubr.msk.bf16.mxu0 %vm6795_vm0, %v6794_v1  ;;  %6273 = vmatprep.mubr.msk.bf16.mxu1 %vm6795_vm0, %v6794_v1 }
  0xcb   : > { %5994 = vmatmul.mubr.msk.bf16.gmra.mrb[88].mxu0 %vm1202_vm1, %v6608_v49  ;;  %6274 = vmatmul.mubr.msk.bf16.gmra.mrb[88].mxu1 %vm1202_vm1, %v6609_v50 }
  0xcc   : > { %5997 = vmatprep.mubr.msk.bf16.mxu0 %vm6795_vm0, %v6794_v1  ;;  %6277 = vmatprep.mubr.msk.bf16.mxu1 %vm6795_vm0, %v6794_v1 }
  0xd3   : > { %5998 = vmatmul.mubr.msk.bf16.gmra.mrb[92].mxu0 %vm1202_vm1, %v6610_v51  ;;  %6278 = vmatmul.mubr.msk.bf16.gmra.mrb[92].mxu1 %vm1202_vm1, %v6611_v52 }
  0xd4   : > { %6001 = vmatprep.mubr.msk.bf16.mxu0 %vm6795_vm0, %v6794_v1  ;;  %6281 = vmatprep.mubr.msk.bf16.mxu1 %vm6795_vm0, %v6794_v1 }
  0xdb   : > { %6002 = vmatmul.mubr.msk.bf16.gmra.mrb[96].mxu0 %vm1202_vm1, %v6612_v53  ;;  %6282 = vmatmul.mubr.msk.bf16.gmra.mrb[96].mxu1 %vm1202_vm1, %v6613_v54 }
  0xdc   : > { %6005 = vmatprep.mubr.msk.bf16.mxu0 %vm6795_vm0, %v6794_v1  ;;  %6285 = vmatprep.mubr.msk.bf16.mxu1 %vm6795_vm0, %v6794_v1 }
  0xe3   : > { %6006 = vmatmul.mubr.msk.bf16.gmra.mrb[100].mxu0 %vm1202_vm1, %v6614_v55  ;;  %6286 = vmatmul.mubr.msk.bf16.gmra.mrb[100].mxu1 %vm1202_vm1, %v6615_v56 }
  0xe4   : > { %6009 = vmatprep.mubr.msk.bf16.mxu0 %vm6795_vm0, %v6794_v1  ;;  %6289 = vmatprep.mubr.msk.bf16.mxu1 %vm6795_vm0, %v6794_v1 }
  0xeb   : > { %6010 = vmatmul.mubr.msk.bf16.gmra.mrb[104].mxu0 %vm1202_vm1, %v6616_v57  ;;  %6290 = vmatmul.mubr.msk.bf16.gmra.mrb[104].mxu1 %vm1202_vm1, %v6617_v58 }
  0xec   : > { %6013 = vmatprep.mubr.msk.bf16.mxu0 %vm6795_vm0, %v6794_v1  ;;  %6293 = vmatprep.mubr.msk.bf16.mxu1 %vm6795_vm0, %v6794_v1 }
  0xee   : > { %v1654_v60 = vpop.f32.mrb[0].mxu0  ;;  %v2214_v61 = vpop.f32.mrb[0].mxu1 }
  0xef   : > { %v1655_v62 = vadd.f32 %v7095_v59, %v1654_v60  ;;  %v5907_v63 = vpop.f32.mrb[1].mxu0  ;;  %v2215_v2 = vadd.f32 %v7095_v59, %v2214_v61  ;;  %v6187_v3 = vpop.f32.mrb[1].mxu1 }
  0xf0   : > { %v1657_v5 = vpop.f32.mrb[2].mxu0  ;;  %v2217_v6 = vpop.f32.mrb[2].mxu1 }
  0xf1   : > { %v2764_v7 = vmax.f32 %v1655_v62, 0.0  ;;  %v1658_v8 = vadd.f32 %v7095_v59, %v1657_v5  ;;  %v5908_v9 = vpop.f32.mrb[3].mxu0  ;;  %v2904_v10 = vmax.f32 %v2215_v2, 0.0  ;;  %v2218_v11 = vadd.f32 %v7095_v59, %v2217_v6  ;;  %v6188_v12 = vpop.f32.mrb[3].mxu1  ;;  %v6624_v5 = vld [vmem:[%s6872_s5 + $0xf0] sm:$0xff]  }
  0xf3   : > { %v5474_v13 = vpack.c.bf16 %v2764_v7, %v2764_v7  ;;  %v2765_v14 = vmax.f32 %v1658_v8, 0.0  ;;  %6014 = vmatmul.mubr.msk.bf16.gmra.mrb[108].mxu0 %vm1202_vm1, %v6618_v0  ;;  %v5614_v15 = vpack.c.bf16 %v2904_v10, %v2904_v10  ;;  %v2905_v16 = vmax.f32 %v2218_v11, 0.0  ;;  %6294 = vmatmul.mubr.msk.bf16.gmra.mrb[108].mxu1 %vm1202_vm1, %v6619_v4  ;;  %v6625_v8 = vld [vmem:[%s6872_s5 + $0x320] sm:$0xff]  }
  0xf4   : > { %6017 = vmatprep.mubr.msk.bf16.mxu0 %vm6795_vm0, %v6794_v1  ;;  %6297 = vmatprep.mubr.msk.bf16.mxu1 %vm6795_vm0, %v6794_v1 }
  0xf5   : > { %4151 = vst.msk [vmem:[%s7113_s12] sm:$0xf] %vm4150_vm2, %v5474_v13  ;;  %v5475_v17 = vpack.c.bf16 %v2765_v14, %v2765_v14  ;;  %4291 = vst.msk [vmem:[%s7113_s12 + $0x230] sm:$0xf] %vm4150_vm2, %v5614_v15  ;;  %v5615_v18 = vpack.c.bf16 %v2905_v16, %v2905_v16 }
  0xf6   : > { %v1662_v19 = vpop.f32.mrb[4].mxu0  ;;  %v2222_v20 = vpop.f32.mrb[4].mxu1 }
  0xf7   : > { %4152 = vst.msk [vmem:[%s7113_s12 + $0x4] sm:$0xf] %vm4150_vm2, %v5475_v17  ;;  %v1663_v21 = vadd.f32 %v7095_v59, %v1662_v19  ;;  %v5911_v22 = vpop.f32.mrb[5].mxu0  ;;  %4292 = vst.msk [vmem:[%s7113_s12 + $0x234] sm:$0xf] %vm4150_vm2, %v5615_v18  ;;  %v2223_v24 = vadd.f32 %v7095_v59, %v2222_v20  ;;  %v6191_v25 = vpop.f32.mrb[5].mxu1 }
  0xf8   : > { %v1665_v27 = vpop.f32.mrb[6].mxu0  ;;  %v2225_v28 = vpop.f32.mrb[6].mxu1 }
  0xf9   : > { %v2766_v29 = vmax.f32 %v1663_v21, 0.0  ;;  %v1666_v30 = vadd.f32 %v7095_v59, %v1665_v27  ;;  %v5912_v31 = vpop.f32.mrb[7].mxu0  ;;  %v2906_v32 = vmax.f32 %v2223_v24, 0.0  ;;  %v2226_v33 = vadd.f32 %v7095_v59, %v2225_v28  ;;  %v6192_v34 = vpop.f32.mrb[7].mxu1  ;;  %v6626_v27 = vld [vmem:[%s6872_s5 + $0xf8] sm:$0xff]  }
  0xfb   : > { %v5476_v35 = vpack.c.bf16 %v2766_v29, %v2766_v29  ;;  %v2767_v36 = vmax.f32 %v1666_v30, 0.0  ;;  %6018 = vmatmul.mubr.msk.bf16.gmra.mrb[112].mxu0 %vm1202_vm1, %v6620_v23  ;;  %v5616_v37 = vpack.c.bf16 %v2906_v32, %v2906_v32  ;;  %v2907_v38 = vmax.f32 %v2226_v33, 0.0  ;;  %6298 = vmatmul.mubr.msk.bf16.gmra.mrb[112].mxu1 %vm1202_vm1, %v6621_v26  ;;  %v6627_v30 = vld [vmem:[%s6872_s5 + $0x328] sm:$0xff]  }
  0xfc   : > { %6021 = vmatprep.mubr.msk.bf16.mxu0 %vm6795_vm0, %v6794_v1  ;;  %6301 = vmatprep.mubr.msk.bf16.mxu1 %vm6795_vm0, %v6794_v1 }
  0xfd   : > { %4153 = vst.msk [vmem:[%s7113_s12 + $0x8] sm:$0xf] %vm4150_vm2, %v5476_v35  ;;  %v5477_v39 = vpack.c.bf16 %v2767_v36, %v2767_v36  ;;  %4293 = vst.msk [vmem:[%s7113_s12 + $0x238] sm:$0xf] %vm4150_vm2, %v5616_v37  ;;  %v5617_v40 = vpack.c.bf16 %v2907_v38, %v2907_v38 }
  0xfe   : > { %v1670_v41 = vpop.f32.mrb[8].mxu0  ;;  %v2230_v42 = vpop.f32.mrb[8].mxu1 }
  0xff   : > { %4154 = vst.msk [vmem:[%s7113_s12 + $0xc] sm:$0xf] %vm4150_vm2, %v5477_v39  ;;  %v1671_v43 = vadd.f32 %v7095_v59, %v1670_v41  ;;  %v5915_v44 = vpop.f32.mrb[9].mxu0  ;;  %4294 = vst.msk [vmem:[%s7113_s12 + $0x23c] sm:$0xf] %vm4150_vm2, %v5617_v40  ;;  %v2231_v46 = vadd.f32 %v7095_v59, %v2230_v42  ;;  %v6195_v47 = vpop.f32.mrb[9].mxu1 }
 0x100   : > { %v1673_v49 = vpop.f32.mrb[10].mxu0  ;;  %v2233_v50 = vpop.f32.mrb[10].mxu1 }
 0x101   : > { %v2768_v51 = vmax.f32 %v1671_v43, 0.0  ;;  %v1674_v52 = vadd.f32 %v7095_v59, %v1673_v49  ;;  %v5916_v53 = vpop.f32.mrb[11].mxu0  ;;  %v2908_v54 = vmax.f32 %v2231_v46, 0.0  ;;  %v2234_v55 = vadd.f32 %v7095_v59, %v2233_v50  ;;  %v6196_v56 = vpop.f32.mrb[11].mxu1  ;;  %v6628_v49 = vld [vmem:[%s6872_s5 + $0x100] sm:$0xff]  }
 0x103   : > { %v5478_v57 = vpack.c.bf16 %v2768_v51, %v2768_v51  ;;  %v2769_v58 = vmax.f32 %v1674_v52, 0.0  ;;  %6022 = vmatmul.mubr.msk.bf16.gmra.mrb[116].mxu0 %vm1202_vm1, %v6622_v45  ;;  %v5618_v60 = vpack.c.bf16 %v2908_v54, %v2908_v54  ;;  %v2909_v61 = vmax.f32 %v2234_v55, 0.0  ;;  %6302 = vmatmul.mubr.msk.bf16.gmra.mrb[116].mxu1 %vm1202_vm1, %v6623_v48  ;;  %v6629_v52 = vld [vmem:[%s6872_s5 + $0x330] sm:$0xff]  }
 0x104   : > { %6025 = vmatprep.mubr.msk.bf16.mxu0 %vm6795_vm0, %v6794_v1  ;;  %6305 = vmatprep.mubr.msk.bf16.mxu1 %vm6795_vm0, %v6794_v1 }
 0x105   : > { %4155 = vst.msk [vmem:[%s7113_s12 + $0x10] sm:$0xf] %vm4150_vm2, %v5478_v57  ;;  %v5479_v62 = vpack.c.bf16 %v2769_v58, %v2769_v58  ;;  %4295 = vst.msk [vmem:[%s7113_s12 + $0x240] sm:$0xf] %vm4150_vm2, %v5618_v60  ;;  %v5619_v63 = vpack.c.bf16 %v2909_v61, %v2909_v61 }
 0x106   : > { %v1678_v0 = vpop.f32.mrb[12].mxu0  ;;  %v2238_v2 = vpop.f32.mrb[12].mxu1 }
 0x107   : > { %4156 = vst.msk [vmem:[%s7113_s12 + $0x14] sm:$0xf] %vm4150_vm2, %v5479_v62  ;;  %v1679_v3 = vadd.f32 %v7095_v59, %v1678_v0  ;;  %v5919_v4 = vpop.f32.mrb[13].mxu0  ;;  %4296 = vst.msk [vmem:[%s7113_s12 + $0x244] sm:$0xf] %vm4150_vm2, %v5619_v63  ;;  %v2239_v6 = vadd.f32 %v7095_v59, %v2238_v2  ;;  %v6199_v7 = vpop.f32.mrb[13].mxu1 }
 0x108   : > { %v1681_v9 = vpop.f32.mrb[14].mxu0  ;;  %v2241_v10 = vpop.f32.mrb[14].mxu1 }
 0x109   : > { %v2770_v11 = vmax.f32 %v1679_v3, 0.0  ;;  %v1682_v12 = vadd.f32 %v7095_v59, %v1681_v9  ;;  %v5920_v13 = vpop.f32.mrb[15].mxu0  ;;  %v2910_v14 = vmax.f32 %v2239_v6, 0.0  ;;  %v2242_v15 = vadd.f32 %v7095_v59, %v2241_v10  ;;  %v6200_v16 = vpop.f32.mrb[15].mxu1  ;;  %v6630_v9 = vld [vmem:[%s6872_s5 + $0x108] sm:$0xff]  }
 0x10b   : > { %v5480_v17 = vpack.c.bf16 %v2770_v11, %v2770_v11  ;;  %v2771_v18 = vmax.f32 %v1682_v12, 0.0  ;;  %6026 = vmatmul.mubr.msk.bf16.gmra.mrb[120].mxu0 %vm1202_vm1, %v6624_v5  ;;  %v5620_v19 = vpack.c.bf16 %v2910_v14, %v2910_v14  ;;  %v2911_v20 = vmax.f32 %v2242_v15, 0.0  ;;  %6306 = vmatmul.mubr.msk.bf16.gmra.mrb[120].mxu1 %vm1202_vm1, %v6625_v8  ;;  %v6631_v12 = vld [vmem:[%s6872_s5 + $0x338] sm:$0xff]  }
 0x10c   : > { %6029 = vmatprep.mubr.msk.bf16.mxu0 %vm6795_vm0, %v6794_v1  ;;  %6309 = vmatprep.mubr.msk.bf16.mxu1 %vm6795_vm0, %v6794_v1 }
 0x10d   : > { %4157 = vst.msk [vmem:[%s7113_s12 + $0x18] sm:$0xf] %vm4150_vm2, %v5480_v17  ;;  %v5481_v21 = vpack.c.bf16 %v2771_v18, %v2771_v18  ;;  %4297 = vst.msk [vmem:[%s7113_s12 + $0x248] sm:$0xf] %vm4150_vm2, %v5620_v19  ;;  %v5621_v22 = vpack.c.bf16 %v2911_v20, %v2911_v20 }
 0x10e   : > { %v1686_v23 = vpop.f32.mrb[16].mxu0  ;;  %v2246_v24 = vpop.f32.mrb[16].mxu1 }
 0x10f   : > { %4158 = vst.msk [vmem:[%s7113_s12 + $0x1c] sm:$0xf] %vm4150_vm2, %v5481_v21  ;;  %v1687_v25 = vadd.f32 %v7095_v59, %v1686_v23  ;;  %v5923_v26 = vpop.f32.mrb[17].mxu0  ;;  %4298 = vst.msk [vmem:[%s7113_s12 + $0x24c] sm:$0xf] %vm4150_vm2, %v5621_v22  ;;  %v2247_v28 = vadd.f32 %v7095_v59, %v2246_v24  ;;  %v6203_v29 = vpop.f32.mrb[17].mxu1 }
 0x110   : > { %v1689_v31 = vpop.f32.mrb[18].mxu0  ;;  %v2249_v32 = vpop.f32.mrb[18].mxu1 }
 0x111   : > { %v2772_v33 = vmax.f32 %v1687_v25, 0.0  ;;  %v1690_v34 = vadd.f32 %v7095_v59, %v1689_v31  ;;  %v5924_v35 = vpop.f32.mrb[19].mxu0  ;;  %v2912_v36 = vmax.f32 %v2247_v28, 0.0  ;;  %v2250_v37 = vadd.f32 %v7095_v59, %v2249_v32  ;;  %v6204_v38 = vpop.f32.mrb[19].mxu1  ;;  %v6632_v31 = vld [vmem:[%s6872_s5 + $0x110] sm:$0xff]  }
 0x113   : > { %v5482_v39 = vpack.c.bf16 %v2772_v33, %v2772_v33  ;;  %v2773_v40 = vmax.f32 %v1690_v34, 0.0  ;;  %6030 = vmatmul.mubr.msk.bf16.gmra.mrb[124].mxu0 %vm1202_vm1, %v6626_v27  ;;  %v5622_v41 = vpack.c.bf16 %v2912_v36, %v2912_v36  ;;  %v2913_v42 = vmax.f32 %v2250_v37, 0.0  ;;  %6310 = vmatmul.mubr.msk.bf16.gmra.mrb[124].mxu1 %vm1202_vm1, %v6627_v30  ;;  %v6633_v34 = vld [vmem:[%s6872_s5 + $0x340] sm:$0xff]  }
 0x114   : > { %6033 = vmatprep.mubr.msk.bf16.mxu0 %vm6795_vm0, %v6794_v1  ;;  %6313 = vmatprep.mubr.msk.bf16.mxu1 %vm6795_vm0, %v6794_v1 }
 0x115   : > { %4159 = vst.msk [vmem:[%s7113_s12 + $0x20] sm:$0xf] %vm4150_vm2, %v5482_v39  ;;  %v5483_v43 = vpack.c.bf16 %v2773_v40, %v2773_v40  ;;  %4299 = vst.msk [vmem:[%s7113_s12 + $0x250] sm:$0xf] %vm4150_vm2, %v5622_v41  ;;  %v5623_v44 = vpack.c.bf16 %v2913_v42, %v2913_v42 }
 0x116   : > { %v1694_v45 = vpop.f32.mrb[20].mxu0  ;;  %v2254_v46 = vpop.f32.mrb[20].mxu1 }
 0x117   : > { %4160 = vst.msk [vmem:[%s7113_s12 + $0x24] sm:$0xf] %vm4150_vm2, %v5483_v43  ;;  %v1695_v47 = vadd.f32 %v7095_v59, %v1694_v45  ;;  %v5927_v48 = vpop.f32.mrb[21].mxu0  ;;  %4300 = vst.msk [vmem:[%s7113_s12 + $0x254] sm:$0xf] %vm4150_vm2, %v5623_v44  ;;  %v2255_v50 = vadd.f32 %v7095_v59, %v2254_v46  ;;  %v6207_v51 = vpop.f32.mrb[21].mxu1 }
 0x118   : > { %v1697_v53 = vpop.f32.mrb[22].mxu0  ;;  %v2257_v54 = vpop.f32.mrb[22].mxu1 }
 0x119   : > { %v2774_v55 = vmax.f32 %v1695_v47, 0.0  ;;  %v1698_v56 = vadd.f32 %v7095_v59, %v1697_v53  ;;  %v5928_v57 = vpop.f32.mrb[23].mxu0  ;;  %v2914_v58 = vmax.f32 %v2255_v50, 0.0  ;;  %v2258_v60 = vadd.f32 %v7095_v59, %v2257_v54  ;;  %v6208_v61 = vpop.f32.mrb[23].mxu1  ;;  %v6634_v53 = vld [vmem:[%s6872_s5 + $0x118] sm:$0xff]  }
 0x11b   : > { %v5484_v62 = vpack.c.bf16 %v2774_v55, %v2774_v55  ;;  %v2775_v63 = vmax.f32 %v1698_v56, 0.0  ;;  %6034 = vmatmul.mubr.msk.bf16.gmra.mrb[128].mxu0 %vm1202_vm1, %v6628_v49  ;;  %v5624_v0 = vpack.c.bf16 %v2914_v58, %v2914_v58  ;;  %v2915_v2 = vmax.f32 %v2258_v60, 0.0  ;;  %6314 = vmatmul.mubr.msk.bf16.gmra.mrb[128].mxu1 %vm1202_vm1, %v6629_v52  ;;  %v6635_v56 = vld [vmem:[%s6872_s5 + $0x348] sm:$0xff]  }
 0x11c   : > { %6037 = vmatprep.mubr.msk.bf16.mxu0 %vm6795_vm0, %v6794_v1  ;;  %6317 = vmatprep.mubr.msk.bf16.mxu1 %vm6795_vm0, %v6794_v1 }
 0x11d   : > { %4161 = vst.msk [vmem:[%s7113_s12 + $0x28] sm:$0xf] %vm4150_vm2, %v5484_v62  ;;  %v5485_v3 = vpack.c.bf16 %v2775_v63, %v2775_v63  ;;  %4301 = vst.msk [vmem:[%s7113_s12 + $0x258] sm:$0xf] %vm4150_vm2, %v5624_v0  ;;  %v5625_v4 = vpack.c.bf16 %v2915_v2, %v2915_v2 }
 0x11e   : > { %v1702_v5 = vpop.f32.mrb[24].mxu0  ;;  %v2262_v6 = vpop.f32.mrb[24].mxu1 }
 0x11f   : > { %4162 = vst.msk [vmem:[%s7113_s12 + $0x2c] sm:$0xf] %vm4150_vm2, %v5485_v3  ;;  %v1703_v7 = vadd.f32 %v7095_v59, %v1702_v5  ;;  %v5931_v8 = vpop.f32.mrb[25].mxu0  ;;  %4302 = vst.msk [vmem:[%s7113_s12 + $0x25c] sm:$0xf] %vm4150_vm2, %v5625_v4  ;;  %v2263_v10 = vadd.f32 %v7095_v59, %v2262_v6  ;;  %v6211_v11 = vpop.f32.mrb[25].mxu1 }
 0x120   : > { %v1705_v13 = vpop.f32.mrb[26].mxu0  ;;  %v2265_v14 = vpop.f32.mrb[26].mxu1 }
 0x121   : > { %v2776_v15 = vmax.f32 %v1703_v7, 0.0  ;;  %v1706_v16 = vadd.f32 %v7095_v59, %v1705_v13  ;;  %v5932_v17 = vpop.f32.mrb[27].mxu0  ;;  %v2916_v18 = vmax.f32 %v2263_v10, 0.0  ;;  %v2266_v19 = vadd.f32 %v7095_v59, %v2265_v14  ;;  %v6212_v20 = vpop.f32.mrb[27].mxu1  ;;  %v6636_v13 = vld [vmem:[%s6872_s5 + $0x120] sm:$0xff]  }
 0x123   : > { %v5486_v21 = vpack.c.bf16 %v2776_v15, %v2776_v15  ;;  %v2777_v22 = vmax.f32 %v1706_v16, 0.0  ;;  %6038 = vmatmul.mubr.msk.bf16.gmra.mrb[132].mxu0 %vm1202_vm1, %v6630_v9  ;;  %v5626_v23 = vpack.c.bf16 %v2916_v18, %v2916_v18  ;;  %v2917_v24 = vmax.f32 %v2266_v19, 0.0  ;;  %6318 = vmatmul.mubr.msk.bf16.gmra.mrb[132].mxu1 %vm1202_vm1, %v6631_v12  ;;  %v6637_v16 = vld [vmem:[%s6872_s5 + $0x350] sm:$0xff]  }
 0x124   : > { %6041 = vmatprep.mubr.msk.bf16.mxu0 %vm6795_vm0, %v6794_v1  ;;  %6321 = vmatprep.mubr.msk.bf16.mxu1 %vm6795_vm0, %v6794_v1 }
 0x125   : > { %4163 = vst.msk [vmem:[%s7113_s12 + $0x30] sm:$0xf] %vm4150_vm2, %v5486_v21  ;;  %v5487_v25 = vpack.c.bf16 %v2777_v22, %v2777_v22  ;;  %4303 = vst.msk [vmem:[%s7113_s12 + $0x260] sm:$0xf] %vm4150_vm2, %v5626_v23  ;;  %v5627_v26 = vpack.c.bf16 %v2917_v24, %v2917_v24 }
 0x126   : > { %v1710_v27 = vpop.f32.mrb[28].mxu0  ;;  %v2270_v28 = vpop.f32.mrb[28].mxu1 }
 0x127   : > { %4164 = vst.msk [vmem:[%s7113_s12 + $0x34] sm:$0xf] %vm4150_vm2, %v5487_v25  ;;  %v1711_v29 = vadd.f32 %v7095_v59, %v1710_v27  ;;  %v5935_v30 = vpop.f32.mrb[29].mxu0  ;;  %4304 = vst.msk [vmem:[%s7113_s12 + $0x264] sm:$0xf] %vm4150_vm2, %v5627_v26  ;;  %v2271_v32 = vadd.f32 %v7095_v59, %v2270_v28  ;;  %v6215_v33 = vpop.f32.mrb[29].mxu1 }
 0x128   : > { %v1713_v35 = vpop.f32.mrb[30].mxu0  ;;  %v2273_v36 = vpop.f32.mrb[30].mxu1 }
 0x129   : > { %v2778_v37 = vmax.f32 %v1711_v29, 0.0  ;;  %v1714_v38 = vadd.f32 %v7095_v59, %v1713_v35  ;;  %v5936_v39 = vpop.f32.mrb[31].mxu0  ;;  %v2918_v40 = vmax.f32 %v2271_v32, 0.0  ;;  %v2274_v41 = vadd.f32 %v7095_v59, %v2273_v36  ;;  %v6216_v42 = vpop.f32.mrb[31].mxu1  ;;  %v6638_v35 = vld [vmem:[%s6872_s5 + $0x128] sm:$0xff]  }
 0x12b   : > { %v5488_v43 = vpack.c.bf16 %v2778_v37, %v2778_v37  ;;  %v2779_v44 = vmax.f32 %v1714_v38, 0.0  ;;  %6042 = vmatmul.mubr.msk.bf16.gmra.mrb[136].mxu0 %vm1202_vm1, %v6632_v31  ;;  %v5628_v45 = vpack.c.bf16 %v2918_v40, %v2918_v40  ;;  %v2919_v46 = vmax.f32 %v2274_v41, 0.0  ;;  %6322 = vmatmul.mubr.msk.bf16.gmra.mrb[136].mxu1 %vm1202_vm1, %v6633_v34  ;;  %v6639_v38 = vld [vmem:[%s6872_s5 + $0x358] sm:$0xff]  }
 0x12c   : > { %6045 = vmatprep.mubr.msk.bf16.mxu0 %vm6795_vm0, %v6794_v1  ;;  %6325 = vmatprep.mubr.msk.bf16.mxu1 %vm6795_vm0, %v6794_v1 }
 0x12d   : > { %4165 = vst.msk [vmem:[%s7113_s12 + $0x38] sm:$0xf] %vm4150_vm2, %v5488_v43  ;;  %v5489_v47 = vpack.c.bf16 %v2779_v44, %v2779_v44  ;;  %4305 = vst.msk [vmem:[%s7113_s12 + $0x268] sm:$0xf] %vm4150_vm2, %v5628_v45  ;;  %v5629_v48 = vpack.c.bf16 %v2919_v46, %v2919_v46 }
 0x12e   : > { %v1718_v49 = vpop.f32.mrb[32].mxu0  ;;  %v2278_v50 = vpop.f32.mrb[32].mxu1 }
 0x12f   : > { %4166 = vst.msk [vmem:[%s7113_s12 + $0x3c] sm:$0xf] %vm4150_vm2, %v5489_v47  ;;  %v1719_v51 = vadd.f32 %v7095_v59, %v1718_v49  ;;  %v5939_v52 = vpop.f32.mrb[33].mxu0  ;;  %4306 = vst.msk [vmem:[%s7113_s12 + $0x26c] sm:$0xf] %vm4150_vm2, %v5629_v48  ;;  %v2279_v54 = vadd.f32 %v7095_v59, %v2278_v50  ;;  %v6219_v55 = vpop.f32.mrb[33].mxu1 }
 0x130   : > { %v1721_v57 = vpop.f32.mrb[34].mxu0  ;;  %v2281_v58 = vpop.f32.mrb[34].mxu1 }
 0x131   : > { %v2780_v60 = vmax.f32 %v1719_v51, 0.0  ;;  %v1722_v61 = vadd.f32 %v7095_v59, %v1721_v57  ;;  %v5940_v62 = vpop.f32.mrb[35].mxu0  ;;  %v2920_v63 = vmax.f32 %v2279_v54, 0.0  ;;  %v2282_v0 = vadd.f32 %v7095_v59, %v2281_v58  ;;  %v6220_v2 = vpop.f32.mrb[35].mxu1  ;;  %v6640_v57 = vld [vmem:[%s6872_s5 + $0x130] sm:$0xff]  }
 0x133   : > { %v5490_v3 = vpack.c.bf16 %v2780_v60, %v2780_v60  ;;  %v2781_v4 = vmax.f32 %v1722_v61, 0.0  ;;  %6046 = vmatmul.mubr.msk.bf16.gmra.mrb[140].mxu0 %vm1202_vm1, %v6634_v53  ;;  %v5630_v5 = vpack.c.bf16 %v2920_v63, %v2920_v63  ;;  %v2921_v6 = vmax.f32 %v2282_v0, 0.0  ;;  %6326 = vmatmul.mubr.msk.bf16.gmra.mrb[140].mxu1 %vm1202_vm1, %v6635_v56  ;;  %v6641_v61 = vld [vmem:[%s6872_s5 + $0x360] sm:$0xff]  }
 0x134   : > { %6049 = vmatprep.mubr.msk.bf16.mxu0 %vm6795_vm0, %v6794_v1  ;;  %6329 = vmatprep.mubr.msk.bf16.mxu1 %vm6795_vm0, %v6794_v1 }
 0x135   : > { %4167 = vst.msk [vmem:[%s7113_s12 + $0x40] sm:$0xf] %vm4150_vm2, %v5490_v3  ;;  %v5491_v7 = vpack.c.bf16 %v2781_v4, %v2781_v4  ;;  %4307 = vst.msk [vmem:[%s7113_s12 + $0x270] sm:$0xf] %vm4150_vm2, %v5630_v5  ;;  %v5631_v8 = vpack.c.bf16 %v2921_v6, %v2921_v6 }
 0x136   : > { %v1726_v9 = vpop.f32.mrb[36].mxu0  ;;  %v2286_v10 = vpop.f32.mrb[36].mxu1 }
 0x137   : > { %4168 = vst.msk [vmem:[%s7113_s12 + $0x44] sm:$0xf] %vm4150_vm2, %v5491_v7  ;;  %v1727_v11 = vadd.f32 %v7095_v59, %v1726_v9  ;;  %v5943_v12 = vpop.f32.mrb[37].mxu0  ;;  %4308 = vst.msk [vmem:[%s7113_s12 + $0x274] sm:$0xf] %vm4150_vm2, %v5631_v8  ;;  %v2287_v14 = vadd.f32 %v7095_v59, %v2286_v10  ;;  %v6223_v15 = vpop.f32.mrb[37].mxu1 }
 0x138   : > { %v1729_v17 = vpop.f32.mrb[38].mxu0  ;;  %v2289_v18 = vpop.f32.mrb[38].mxu1 }
 0x139   : > { %v2782_v19 = vmax.f32 %v1727_v11, 0.0  ;;  %v1730_v20 = vadd.f32 %v7095_v59, %v1729_v17  ;;  %v5944_v21 = vpop.f32.mrb[39].mxu0  ;;  %v2922_v22 = vmax.f32 %v2287_v14, 0.0  ;;  %v2290_v23 = vadd.f32 %v7095_v59, %v2289_v18  ;;  %v6224_v24 = vpop.f32.mrb[39].mxu1  ;;  %v6642_v17 = vld [vmem:[%s6872_s5 + $0x138] sm:$0xff]  }
 0x13b   : > { %v5492_v25 = vpack.c.bf16 %v2782_v19, %v2782_v19  ;;  %v2783_v26 = vmax.f32 %v1730_v20, 0.0  ;;  %6050 = vmatmul.mubr.msk.bf16.gmra.mrb[144].mxu0 %vm1202_vm1, %v6636_v13  ;;  %v5632_v27 = vpack.c.bf16 %v2922_v22, %v2922_v22  ;;  %v2923_v28 = vmax.f32 %v2290_v23, 0.0  ;;  %6330 = vmatmul.mubr.msk.bf16.gmra.mrb[144].mxu1 %vm1202_vm1, %v6637_v16  ;;  %v6643_v20 = vld [vmem:[%s6872_s5 + $0x368] sm:$0xff]  }
 0x13c   : > { %6053 = vmatprep.mubr.msk.bf16.mxu0 %vm6795_vm0, %v6794_v1  ;;  %6333 = vmatprep.mubr.msk.bf16.mxu1 %vm6795_vm0, %v6794_v1 }
 0x13d   : > { %4169 = vst.msk [vmem:[%s7113_s12 + $0x48] sm:$0xf] %vm4150_vm2, %v5492_v25  ;;  %v5493_v29 = vpack.c.bf16 %v2783_v26, %v2783_v26  ;;  %4309 = vst.msk [vmem:[%s7113_s12 + $0x278] sm:$0xf] %vm4150_vm2, %v5632_v27  ;;  %v5633_v30 = vpack.c.bf16 %v2923_v28, %v2923_v28 }
 0x13e   : > { %v1734_v31 = vpop.f32.mrb[40].mxu0  ;;  %v2294_v32 = vpop.f32.mrb[40].mxu1 }
 0x13f   : > { %4170 = vst.msk [vmem:[%s7113_s12 + $0x4c] sm:$0xf] %vm4150_vm2, %v5493_v29  ;;  %v1735_v33 = vadd.f32 %v7095_v59, %v1734_v31  ;;  %v5947_v34 = vpop.f32.mrb[41].mxu0  ;;  %4310 = vst.msk [vmem:[%s7113_s12 + $0x27c] sm:$0xf] %vm4150_vm2, %v5633_v30  ;;  %v2295_v36 = vadd.f32 %v7095_v59, %v2294_v32  ;;  %v6227_v37 = vpop.f32.mrb[41].mxu1 }
 0x140   : > { %v1737_v39 = vpop.f32.mrb[42].mxu0  ;;  %v2297_v40 = vpop.f32.mrb[42].mxu1 }
 0x141   : > { %v2784_v41 = vmax.f32 %v1735_v33, 0.0  ;;  %v1738_v42 = vadd.f32 %v7095_v59, %v1737_v39  ;;  %v5948_v43 = vpop.f32.mrb[43].mxu0  ;;  %v2924_v44 = vmax.f32 %v2295_v36, 0.0  ;;  %v2298_v45 = vadd.f32 %v7095_v59, %v2297_v40  ;;  %v6228_v46 = vpop.f32.mrb[43].mxu1  ;;  %v6644_v39 = vld [vmem:[%s6872_s5 + $0x140] sm:$0xff]  }
 0x143   : > { %v5494_v47 = vpack.c.bf16 %v2784_v41, %v2784_v41  ;;  %v2785_v48 = vmax.f32 %v1738_v42, 0.0  ;;  %6054 = vmatmul.mubr.msk.bf16.gmra.mrb[148].mxu0 %vm1202_vm1, %v6638_v35  ;;  %v5634_v49 = vpack.c.bf16 %v2924_v44, %v2924_v44  ;;  %v2925_v50 = vmax.f32 %v2298_v45, 0.0  ;;  %6334 = vmatmul.mubr.msk.bf16.gmra.mrb[148].mxu1 %vm1202_vm1, %v6639_v38  ;;  %v6645_v42 = vld [vmem:[%s6872_s5 + $0x370] sm:$0xff]  }
 0x144   : > { %6057 = vmatprep.mubr.msk.bf16.mxu0 %vm6795_vm0, %v6794_v1  ;;  %6337 = vmatprep.mubr.msk.bf16.mxu1 %vm6795_vm0, %v6794_v1 }
 0x145   : > { %4171 = vst.msk [vmem:[%s7113_s12 + $0x50] sm:$0xf] %vm4150_vm2, %v5494_v47  ;;  %v5495_v51 = vpack.c.bf16 %v2785_v48, %v2785_v48  ;;  %4311 = vst.msk [vmem:[%s7113_s12 + $0x280] sm:$0xf] %vm4150_vm2, %v5634_v49  ;;  %v5635_v52 = vpack.c.bf16 %v2925_v50, %v2925_v50 }
 0x146   : > { %v1742_v53 = vpop.f32.mrb[44].mxu0  ;;  %v2302_v54 = vpop.f32.mrb[44].mxu1 }
 0x147   : > { %4172 = vst.msk [vmem:[%s7113_s12 + $0x54] sm:$0xf] %vm4150_vm2, %v5495_v51  ;;  %v1743_v55 = vadd.f32 %v7095_v59, %v1742_v53  ;;  %v5951_v56 = vpop.f32.mrb[45].mxu0  ;;  %4312 = vst.msk [vmem:[%s7113_s12 + $0x284] sm:$0xf] %vm4150_vm2, %v5635_v52  ;;  %v2303_v58 = vadd.f32 %v7095_v59, %v2302_v54  ;;  %v6231_v60 = vpop.f32.mrb[45].mxu1 }
 0x148   : > { %v1745_v62 = vpop.f32.mrb[46].mxu0  ;;  %v2305_v63 = vpop.f32.mrb[46].mxu1 }
 0x149   : > { %v2786_v0 = vmax.f32 %v1743_v55, 0.0  ;;  %v1746_v2 = vadd.f32 %v7095_v59, %v1745_v62  ;;  %v5952_v3 = vpop.f32.mrb[47].mxu0  ;;  %v2926_v4 = vmax.f32 %v2303_v58, 0.0  ;;  %v2306_v5 = vadd.f32 %v7095_v59, %v2305_v63  ;;  %v6232_v6 = vpop.f32.mrb[47].mxu1  ;;  %v6646_v62 = vld [vmem:[%s6872_s5 + $0x148] sm:$0xff]  }
 0x14b   : > { %v5496_v7 = vpack.c.bf16 %v2786_v0, %v2786_v0  ;;  %v2787_v8 = vmax.f32 %v1746_v2, 0.0  ;;  %6058 = vmatmul.mubr.msk.bf16.gmra.mrb[152].mxu0 %vm1202_vm1, %v6640_v57  ;;  %v5636_v9 = vpack.c.bf16 %v2926_v4, %v2926_v4  ;;  %v2927_v10 = vmax.f32 %v2306_v5, 0.0  ;;  %6338 = vmatmul.mubr.msk.bf16.gmra.mrb[152].mxu1 %vm1202_vm1, %v6641_v61  ;;  %v6647_v2 = vld [vmem:[%s6872_s5 + $0x378] sm:$0xff]  }
 0x14c   : > { %6061 = vmatprep.mubr.msk.bf16.mxu0 %vm6795_vm0, %v6794_v1  ;;  %6341 = vmatprep.mubr.msk.bf16.mxu1 %vm6795_vm0, %v6794_v1 }
 0x14d   : > { %4173 = vst.msk [vmem:[%s7113_s12 + $0x58] sm:$0xf] %vm4150_vm2, %v5496_v7  ;;  %v5497_v11 = vpack.c.bf16 %v2787_v8, %v2787_v8  ;;  %4313 = vst.msk [vmem:[%s7113_s12 + $0x288] sm:$0xf] %vm4150_vm2, %v5636_v9  ;;  %v5637_v12 = vpack.c.bf16 %v2927_v10, %v2927_v10 }
 0x14e   : > { %v1750_v13 = vpop.f32.mrb[48].mxu0  ;;  %v2310_v14 = vpop.f32.mrb[48].mxu1 }
 0x14f   : > { %4174 = vst.msk [vmem:[%s7113_s12 + $0x5c] sm:$0xf] %vm4150_vm2, %v5497_v11  ;;  %v1751_v15 = vadd.f32 %v7095_v59, %v1750_v13  ;;  %v5955_v16 = vpop.f32.mrb[49].mxu0  ;;  %4314 = vst.msk [vmem:[%s7113_s12 + $0x28c] sm:$0xf] %vm4150_vm2, %v5637_v12  ;;  %v2311_v18 = vadd.f32 %v7095_v59, %v2310_v14  ;;  %v6235_v19 = vpop.f32.mrb[49].mxu1 }
 0x150   : > { %v1753_v21 = vpop.f32.mrb[50].mxu0  ;;  %v2313_v22 = vpop.f32.mrb[50].mxu1 }
 0x151   : > { %v2788_v23 = vmax.f32 %v1751_v15, 0.0  ;;  %v1754_v24 = vadd.f32 %v7095_v59, %v1753_v21  ;;  %v5956_v25 = vpop.f32.mrb[51].mxu0  ;;  %v2928_v26 = vmax.f32 %v2311_v18, 0.0  ;;  %v2314_v27 = vadd.f32 %v7095_v59, %v2313_v22  ;;  %v6236_v28 = vpop.f32.mrb[51].mxu1  ;;  %v6648_v21 = vld [vmem:[%s6872_s5 + $0x150] sm:$0xff]  }
 0x153   : > { %v5498_v29 = vpack.c.bf16 %v2788_v23, %v2788_v23  ;;  %v2789_v30 = vmax.f32 %v1754_v24, 0.0  ;;  %6062 = vmatmul.mubr.msk.bf16.gmra.mrb[156].mxu0 %vm1202_vm1, %v6642_v17  ;;  %v5638_v31 = vpack.c.bf16 %v2928_v26, %v2928_v26  ;;  %v2929_v32 = vmax.f32 %v2314_v27, 0.0  ;;  %6342 = vmatmul.mubr.msk.bf16.gmra.mrb[156].mxu1 %vm1202_vm1, %v6643_v20  ;;  %v6649_v24 = vld [vmem:[%s6872_s5 + $0x380] sm:$0xff]  }
 0x154   : > { %6065 = vmatprep.mubr.msk.bf16.mxu0 %vm6795_vm0, %v6794_v1  ;;  %6345 = vmatprep.mubr.msk.bf16.mxu1 %vm6795_vm0, %v6794_v1 }
 0x155   : > { %4175 = vst.msk [vmem:[%s7113_s12 + $0x60] sm:$0xf] %vm4150_vm2, %v5498_v29  ;;  %v5499_v33 = vpack.c.bf16 %v2789_v30, %v2789_v30  ;;  %4315 = vst.msk [vmem:[%s7113_s12 + $0x290] sm:$0xf] %vm4150_vm2, %v5638_v31  ;;  %v5639_v34 = vpack.c.bf16 %v2929_v32, %v2929_v32 }
 0x156   : > { %v1758_v35 = vpop.f32.mrb[52].mxu0  ;;  %v2318_v36 = vpop.f32.mrb[52].mxu1 }
 0x157   : > { %4176 = vst.msk [vmem:[%s7113_s12 + $0x64] sm:$0xf] %vm4150_vm2, %v5499_v33  ;;  %v1759_v37 = vadd.f32 %v7095_v59, %v1758_v35  ;;  %v5959_v38 = vpop.f32.mrb[53].mxu0  ;;  %4316 = vst.msk [vmem:[%s7113_s12 + $0x294] sm:$0xf] %vm4150_vm2, %v5639_v34  ;;  %v2319_v40 = vadd.f32 %v7095_v59, %v2318_v36  ;;  %v6239_v41 = vpop.f32.mrb[53].mxu1 }
 0x158   : > { %v1761_v43 = vpop.f32.mrb[54].mxu0  ;;  %v2321_v44 = vpop.f32.mrb[54].mxu1 }
 0x159   : > { %v2790_v45 = vmax.f32 %v1759_v37, 0.0  ;;  %v1762_v46 = vadd.f32 %v7095_v59, %v1761_v43  ;;  %v5960_v47 = vpop.f32.mrb[55].mxu0  ;;  %v2930_v48 = vmax.f32 %v2319_v40, 0.0  ;;  %v2322_v49 = vadd.f32 %v7095_v59, %v2321_v44  ;;  %v6240_v50 = vpop.f32.mrb[55].mxu1  ;;  %v6650_v43 = vld [vmem:[%s6872_s5 + $0x158] sm:$0xff]  }
 0x15b   : > { %v5500_v51 = vpack.c.bf16 %v2790_v45, %v2790_v45  ;;  %v2791_v52 = vmax.f32 %v1762_v46, 0.0  ;;  %6066 = vmatmul.mubr.msk.bf16.gmra.mrb[160].mxu0 %vm1202_vm1, %v6644_v39  ;;  %v5640_v53 = vpack.c.bf16 %v2930_v48, %v2930_v48  ;;  %v2931_v54 = vmax.f32 %v2322_v49, 0.0  ;;  %6346 = vmatmul.mubr.msk.bf16.gmra.mrb[160].mxu1 %vm1202_vm1, %v6645_v42  ;;  %v6651_v46 = vld [vmem:[%s6872_s5 + $0x388] sm:$0xff]  }
 0x15c   : > { %6069 = vmatprep.mubr.msk.bf16.mxu0 %vm6795_vm0, %v6794_v1  ;;  %6349 = vmatprep.mubr.msk.bf16.mxu1 %vm6795_vm0, %v6794_v1 }
 0x15d   : > { %4177 = vst.msk [vmem:[%s7113_s12 + $0x68] sm:$0xf] %vm4150_vm2, %v5500_v51  ;;  %v5501_v55 = vpack.c.bf16 %v2791_v52, %v2791_v52  ;;  %4317 = vst.msk [vmem:[%s7113_s12 + $0x298] sm:$0xf] %vm4150_vm2, %v5640_v53  ;;  %v5641_v56 = vpack.c.bf16 %v2931_v54, %v2931_v54 }
 0x15e   : > { %v1766_v57 = vpop.f32.mrb[56].mxu0  ;;  %v2326_v58 = vpop.f32.mrb[56].mxu1 }
 0x15f   : > { %4178 = vst.msk [vmem:[%s7113_s12 + $0x6c] sm:$0xf] %vm4150_vm2, %v5501_v55  ;;  %v1767_v60 = vadd.f32 %v7095_v59, %v1766_v57  ;;  %v5963_v61 = vpop.f32.mrb[57].mxu0  ;;  %4318 = vst.msk [vmem:[%s7113_s12 + $0x29c] sm:$0xf] %vm4150_vm2, %v5641_v56  ;;  %v2327_v63 = vadd.f32 %v7095_v59, %v2326_v58  ;;  %v6243_v0 = vpop.f32.mrb[57].mxu1 }
 0x160   : > { %v1769_v3 = vpop.f32.mrb[58].mxu0  ;;  %v2329_v4 = vpop.f32.mrb[58].mxu1 }
 0x161   : > { %v2792_v5 = vmax.f32 %v1767_v60, 0.0  ;;  %v1770_v6 = vadd.f32 %v7095_v59, %v1769_v3  ;;  %v5964_v7 = vpop.f32.mrb[59].mxu0  ;;  %v2932_v8 = vmax.f32 %v2327_v63, 0.0  ;;  %v2330_v9 = vadd.f32 %v7095_v59, %v2329_v4  ;;  %v6244_v10 = vpop.f32.mrb[59].mxu1  ;;  %v7444_v63 = vld [vmem:[%s8486_s2] ss:$0 sm:$0xff] }
 0x162   : > { %v6652_v3 = vld [vmem:[%s6872_s5 + $0x160] sm:$0xff]  }
 0x163   : > { %v5502_v11 = vpack.c.bf16 %v2792_v5, %v2792_v5  ;;  %v2793_v12 = vmax.f32 %v1770_v6, 0.0  ;;  %6070 = vmatmul.mubr.msk.bf16.gmra.mrb[164].mxu0 %vm1202_vm1, %v6646_v62  ;;  %v5642_v13 = vpack.c.bf16 %v2932_v8, %v2932_v8  ;;  %v2933_v14 = vmax.f32 %v2330_v9, 0.0  ;;  %6350 = vmatmul.mubr.msk.bf16.gmra.mrb[164].mxu1 %vm1202_vm1, %v6647_v2  ;;  %v6653_v6 = vld [vmem:[%s6872_s5 + $0x390] sm:$0xff]  }
 0x164   : > { %6073 = vmatprep.mubr.msk.bf16.mxu0 %vm6795_vm0, %v6794_v1  ;;  %6353 = vmatprep.mubr.msk.bf16.mxu1 %vm6795_vm0, %v6794_v1 }
 0x165   : > { %4179 = vst.msk [vmem:[%s7113_s12 + $0x70] sm:$0xf] %vm4150_vm2, %v5502_v11  ;;  %v5503_v15 = vpack.c.bf16 %v2793_v12, %v2793_v12  ;;  %4319 = vst.msk [vmem:[%s7113_s12 + $0x2a0] sm:$0xf] %vm4150_vm2, %v5642_v13  ;;  %v5643_v16 = vpack.c.bf16 %v2933_v14, %v2933_v14 }
 0x166   : > { %v1774_v17 = vpop.f32.mrb[60].mxu0  ;;  %v2334_v18 = vpop.f32.mrb[60].mxu1 }
 0x167   : > { %4180 = vst.msk [vmem:[%s7113_s12 + $0x74] sm:$0xf] %vm4150_vm2, %v5503_v15  ;;  %v1775_v19 = vadd.f32 %v7095_v59, %v1774_v17  ;;  %v5967_v20 = vpop.f32.mrb[61].mxu0  ;;  %4320 = vst.msk [vmem:[%s7113_s12 + $0x2a4] sm:$0xf] %vm4150_vm2, %v5643_v16  ;;  %v2335_v22 = vadd.f32 %v7095_v59, %v2334_v18  ;;  %v6247_v23 = vpop.f32.mrb[61].mxu1 }
 0x168   : > { %v1777_v25 = vpop.f32.mrb[62].mxu0  ;;  %v2337_v26 = vpop.f32.mrb[62].mxu1 }
 0x169   : > { %v2794_v27 = vmax.f32 %v1775_v19, 0.0  ;;  %v1778_v28 = vadd.f32 %v7095_v59, %v1777_v25  ;;  %v5968_v29 = vpop.f32.mrb[63].mxu0  ;;  %v2934_v30 = vmax.f32 %v2335_v22, 0.0  ;;  %v2338_v31 = vadd.f32 %v7095_v59, %v2337_v26  ;;  %v6248_v32 = vpop.f32.mrb[63].mxu1  ;;  %v6654_v25 = vld [vmem:[%s6872_s5 + $0x168] sm:$0xff]  }
 0x16b   : > { %v5504_v33 = vpack.c.bf16 %v2794_v27, %v2794_v27  ;;  %v2795_v34 = vmax.f32 %v1778_v28, 0.0  ;;  %6074 = vmatmul.mubr.msk.bf16.gmra.mrb[168].mxu0 %vm1202_vm1, %v6648_v21  ;;  %v5644_v35 = vpack.c.bf16 %v2934_v30, %v2934_v30  ;;  %v2935_v36 = vmax.f32 %v2338_v31, 0.0  ;;  %6354 = vmatmul.mubr.msk.bf16.gmra.mrb[168].mxu1 %vm1202_vm1, %v6649_v24  ;;  %v6655_v28 = vld [vmem:[%s6872_s5 + $0x398] sm:$0xff]  }
 0x16c   : > { %6077 = vmatprep.mubr.msk.bf16.mxu0 %vm6795_vm0, %v6794_v1  ;;  %6357 = vmatprep.mubr.msk.bf16.mxu1 %vm6795_vm0, %v6794_v1 }
 0x16d   : > { %4181 = vst.msk [vmem:[%s7113_s12 + $0x78] sm:$0xf] %vm4150_vm2, %v5504_v33  ;;  %v5505_v37 = vpack.c.bf16 %v2795_v34, %v2795_v34  ;;  %4321 = vst.msk [vmem:[%s7113_s12 + $0x2a8] sm:$0xf] %vm4150_vm2, %v5644_v35  ;;  %v5645_v38 = vpack.c.bf16 %v2935_v36, %v2935_v36 }
 0x16e   : > { %v1782_v39 = vpop.f32.mrb[64].mxu0  ;;  %v2342_v40 = vpop.f32.mrb[64].mxu1 }
 0x16f   : > { %4182 = vst.msk [vmem:[%s7113_s12 + $0x7c] sm:$0xf] %vm4150_vm2, %v5505_v37  ;;  %v1783_v41 = vadd.f32 %v7095_v59, %v1782_v39  ;;  %v5971_v42 = vpop.f32.mrb[65].mxu0  ;;  %4322 = vst.msk [vmem:[%s7113_s12 + $0x2ac] sm:$0xf] %vm4150_vm2, %v5645_v38  ;;  %v2343_v44 = vadd.f32 %v7095_v59, %v2342_v40  ;;  %v6251_v45 = vpop.f32.mrb[65].mxu1 }
 0x170   : > { %v1785_v47 = vpop.f32.mrb[66].mxu0  ;;  %v2345_v48 = vpop.f32.mrb[66].mxu1 }
 0x171   : > { %v2796_v49 = vmax.f32 %v1783_v41, 0.0  ;;  %v1786_v50 = vadd.f32 %v7095_v59, %v1785_v47  ;;  %v5972_v51 = vpop.f32.mrb[67].mxu0  ;;  %v2936_v52 = vmax.f32 %v2343_v44, 0.0  ;;  %v2346_v53 = vadd.f32 %v7095_v59, %v2345_v48  ;;  %v6252_v54 = vpop.f32.mrb[67].mxu1  ;;  %v6656_v47 = vld [vmem:[%s6872_s5 + $0x170] sm:$0xff]  }
 0x173   : > { %v5506_v55 = vpack.c.bf16 %v2796_v49, %v2796_v49  ;;  %v2797_v56 = vmax.f32 %v1786_v50, 0.0  ;;  %6078 = vmatmul.mubr.msk.bf16.gmra.mrb[172].mxu0 %vm1202_vm1, %v6650_v43  ;;  %v5646_v57 = vpack.c.bf16 %v2936_v52, %v2936_v52  ;;  %v2937_v58 = vmax.f32 %v2346_v53, 0.0  ;;  %6358 = vmatmul.mubr.msk.bf16.gmra.mrb[172].mxu1 %vm1202_vm1, %v6651_v46  ;;  %v6657_v50 = vld [vmem:[%s6872_s5 + $0x3a0] sm:$0xff]  }
 0x174   : > { %6081 = vmatprep.mubr.msk.bf16.mxu0 %vm6795_vm0, %v6794_v1  ;;  %6361 = vmatprep.mubr.msk.bf16.mxu1 %vm6795_vm0, %v6794_v1 }
 0x175   : > { %4183 = vst.msk [vmem:[%s7113_s12 + $0x80] sm:$0xf] %vm4150_vm2, %v5506_v55  ;;  %v5507_v59 = vpack.c.bf16 %v2797_v56, %v2797_v56  ;;  %4323 = vst.msk [vmem:[%s7113_s12 + $0x2b0] sm:$0xf] %vm4150_vm2, %v5646_v57  ;;  %v5647_v60 = vpack.c.bf16 %v2937_v58, %v2937_v58 }
 0x176   : > { %v1790_v61 = vpop.f32.mrb[68].mxu0  ;;  %v2350_v62 = vpop.f32.mrb[68].mxu1 }
 0x177   : > { %4184 = vst.msk [vmem:[%s7113_s12 + $0x84] sm:$0xf] %vm4150_vm2, %v5507_v59  ;;  %v1791_v0 = vadd.f32 %v7444_v63, %v1790_v61  ;;  %v5975_v2 = vpop.f32.mrb[69].mxu0  ;;  %4324 = vst.msk [vmem:[%s7113_s12 + $0x2b4] sm:$0xf] %vm4150_vm2, %v5647_v60  ;;  %v2351_v4 = vadd.f32 %v7444_v63, %v2350_v62  ;;  %v6255_v5 = vpop.f32.mrb[69].mxu1 }
 0x178   : > { %v1793_v7 = vpop.f32.mrb[70].mxu0  ;;  %v2353_v8 = vpop.f32.mrb[70].mxu1 }
 0x179   : > { %v2798_v9 = vmax.f32 %v1791_v0, 0.0  ;;  %v1794_v10 = vadd.f32 %v7444_v63, %v1793_v7  ;;  %v5976_v11 = vpop.f32.mrb[71].mxu0  ;;  %v2938_v12 = vmax.f32 %v2351_v4, 0.0  ;;  %v2354_v13 = vadd.f32 %v7444_v63, %v2353_v8  ;;  %v6256_v14 = vpop.f32.mrb[71].mxu1  ;;  %v6658_v7 = vld [vmem:[%s6872_s5 + $0x178] sm:$0xff]  }
 0x17b   : > { %v5508_v15 = vpack.c.bf16 %v2798_v9, %v2798_v9  ;;  %v2799_v16 = vmax.f32 %v1794_v10, 0.0  ;;  %6082 = vmatmul.mubr.msk.bf16.gmra.mrb[176].mxu0 %vm1202_vm1, %v6652_v3  ;;  %v5648_v17 = vpack.c.bf16 %v2938_v12, %v2938_v12  ;;  %v2939_v18 = vmax.f32 %v2354_v13, 0.0  ;;  %6362 = vmatmul.mubr.msk.bf16.gmra.mrb[176].mxu1 %vm1202_vm1, %v6653_v6  ;;  %v6659_v10 = vld [vmem:[%s6872_s5 + $0x3a8] sm:$0xff]  }
 0x17c   : > { %6085 = vmatprep.mubr.msk.bf16.mxu0 %vm6795_vm0, %v6794_v1  ;;  %6365 = vmatprep.mubr.msk.bf16.mxu1 %vm6795_vm0, %v6794_v1 }
 0x17d   : > { %4185 = vst.msk [vmem:[%s7113_s12 + $0x88] sm:$0xf] %vm4150_vm2, %v5508_v15  ;;  %v5509_v19 = vpack.c.bf16 %v2799_v16, %v2799_v16  ;;  %4325 = vst.msk [vmem:[%s7113_s12 + $0x2b8] sm:$0xf] %vm4150_vm2, %v5648_v17  ;;  %v5649_v20 = vpack.c.bf16 %v2939_v18, %v2939_v18 }
 0x17e   : > { %v1798_v21 = vpop.f32.mrb[72].mxu0  ;;  %v2358_v22 = vpop.f32.mrb[72].mxu1 }
 0x17f   : > { %4186 = vst.msk [vmem:[%s7113_s12 + $0x8c] sm:$0xf] %vm4150_vm2, %v5509_v19  ;;  %v1799_v23 = vadd.f32 %v7444_v63, %v1798_v21  ;;  %v5979_v24 = vpop.f32.mrb[73].mxu0  ;;  %4326 = vst.msk [vmem:[%s7113_s12 + $0x2bc] sm:$0xf] %vm4150_vm2, %v5649_v20  ;;  %v2359_v26 = vadd.f32 %v7444_v63, %v2358_v22  ;;  %v6259_v27 = vpop.f32.mrb[73].mxu1 }
 0x180   : > { %v1801_v29 = vpop.f32.mrb[74].mxu0  ;;  %v2361_v30 = vpop.f32.mrb[74].mxu1 }
 0x181   : > { %v2800_v31 = vmax.f32 %v1799_v23, 0.0  ;;  %v1802_v32 = vadd.f32 %v7444_v63, %v1801_v29  ;;  %v5980_v33 = vpop.f32.mrb[75].mxu0  ;;  %v2940_v34 = vmax.f32 %v2359_v26, 0.0  ;;  %v2362_v35 = vadd.f32 %v7444_v63, %v2361_v30  ;;  %v6260_v36 = vpop.f32.mrb[75].mxu1  ;;  %v6660_v29 = vld [vmem:[%s6872_s5 + $0x180] sm:$0xff]  }
 0x183   : > { %v5510_v37 = vpack.c.bf16 %v2800_v31, %v2800_v31  ;;  %v2801_v38 = vmax.f32 %v1802_v32, 0.0  ;;  %6086 = vmatmul.mubr.msk.bf16.gmra.mrb[180].mxu0 %vm1202_vm1, %v6654_v25  ;;  %v5650_v39 = vpack.c.bf16 %v2940_v34, %v2940_v34  ;;  %v2941_v40 = vmax.f32 %v2362_v35, 0.0  ;;  %6366 = vmatmul.mubr.msk.bf16.gmra.mrb[180].mxu1 %vm1202_vm1, %v6655_v28  ;;  %v6661_v32 = vld [vmem:[%s6872_s5 + $0x3b0] sm:$0xff]  }
 0x184   : > { %6089 = vmatprep.mubr.msk.bf16.mxu0 %vm6795_vm0, %v6794_v1  ;;  %6369 = vmatprep.mubr.msk.bf16.mxu1 %vm6795_vm0, %v6794_v1 }
 0x185   : > { %4187 = vst.msk [vmem:[%s7113_s12 + $0x90] sm:$0xf] %vm4150_vm2, %v5510_v37  ;;  %v5511_v41 = vpack.c.bf16 %v2801_v38, %v2801_v38  ;;  %4327 = vst.msk [vmem:[%s7113_s12 + $0x2c0] sm:$0xf] %vm4150_vm2, %v5650_v39  ;;  %v5651_v42 = vpack.c.bf16 %v2941_v40, %v2941_v40 }
 0x186   : > { %v1806_v43 = vpop.f32.mrb[76].mxu0  ;;  %v2366_v44 = vpop.f32.mrb[76].mxu1 }
 0x187   : > { %4188 = vst.msk [vmem:[%s7113_s12 + $0x94] sm:$0xf] %vm4150_vm2, %v5511_v41  ;;  %v1807_v45 = vadd.f32 %v7444_v63, %v1806_v43  ;;  %v5983_v46 = vpop.f32.mrb[77].mxu0  ;;  %4328 = vst.msk [vmem:[%s7113_s12 + $0x2c4] sm:$0xf] %vm4150_vm2, %v5651_v42  ;;  %v2367_v48 = vadd.f32 %v7444_v63, %v2366_v44  ;;  %v6263_v49 = vpop.f32.mrb[77].mxu1 }
 0x188   : > { %v1809_v51 = vpop.f32.mrb[78].mxu0  ;;  %v2369_v52 = vpop.f32.mrb[78].mxu1 }
 0x189   : > { %v2802_v53 = vmax.f32 %v1807_v45, 0.0  ;;  %v1810_v54 = vadd.f32 %v7444_v63, %v1809_v51  ;;  %v5984_v55 = vpop.f32.mrb[79].mxu0  ;;  %v2942_v56 = vmax.f32 %v2367_v48, 0.0  ;;  %v2370_v57 = vadd.f32 %v7444_v63, %v2369_v52  ;;  %v6264_v58 = vpop.f32.mrb[79].mxu1  ;;  %v6662_v51 = vld [vmem:[%s6872_s5 + $0x188] sm:$0xff]  }
 0x18b   : > { %v5512_v59 = vpack.c.bf16 %v2802_v53, %v2802_v53  ;;  %v2803_v60 = vmax.f32 %v1810_v54, 0.0  ;;  %6090 = vmatmul.mubr.msk.bf16.gmra.mrb[184].mxu0 %vm1202_vm1, %v6656_v47  ;;  %v5652_v61 = vpack.c.bf16 %v2942_v56, %v2942_v56  ;;  %v2943_v62 = vmax.f32 %v2370_v57, 0.0  ;;  %6370 = vmatmul.mubr.msk.bf16.gmra.mrb[184].mxu1 %vm1202_vm1, %v6657_v50  ;;  %v6663_v54 = vld [vmem:[%s6872_s5 + $0x3b8] sm:$0xff]  }
 0x18c   : > { %6093 = vmatprep.mubr.msk.bf16.mxu0 %vm6795_vm0, %v6794_v1  ;;  %6373 = vmatprep.mubr.msk.bf16.mxu1 %vm6795_vm0, %v6794_v1 }
 0x18d   : > { %4189 = vst.msk [vmem:[%s7113_s12 + $0x98] sm:$0xf] %vm4150_vm2, %v5512_v59  ;;  %v5513_v0 = vpack.c.bf16 %v2803_v60, %v2803_v60  ;;  %4329 = vst.msk [vmem:[%s7113_s12 + $0x2c8] sm:$0xf] %vm4150_vm2, %v5652_v61  ;;  %v5653_v2 = vpack.c.bf16 %v2943_v62, %v2943_v62 }
 0x18e   : > { %v1814_v3 = vpop.f32.mrb[80].mxu0  ;;  %v2374_v4 = vpop.f32.mrb[80].mxu1 }
 0x18f   : > { %4190 = vst.msk [vmem:[%s7113_s12 + $0x9c] sm:$0xf] %vm4150_vm2, %v5513_v0  ;;  %v1815_v5 = vadd.f32 %v7444_v63, %v1814_v3  ;;  %v5987_v6 = vpop.f32.mrb[81].mxu0  ;;  %4330 = vst.msk [vmem:[%s7113_s12 + $0x2cc] sm:$0xf] %vm4150_vm2, %v5653_v2  ;;  %v2375_v8 = vadd.f32 %v7444_v63, %v2374_v4  ;;  %v6267_v9 = vpop.f32.mrb[81].mxu1 }
 0x190   : > { %v1817_v11 = vpop.f32.mrb[82].mxu0  ;;  %v2377_v12 = vpop.f32.mrb[82].mxu1 }
 0x191   : > { %v2804_v13 = vmax.f32 %v1815_v5, 0.0  ;;  %v1818_v14 = vadd.f32 %v7444_v63, %v1817_v11  ;;  %v5988_v15 = vpop.f32.mrb[83].mxu0  ;;  %v2944_v16 = vmax.f32 %v2375_v8, 0.0  ;;  %v2378_v17 = vadd.f32 %v7444_v63, %v2377_v12  ;;  %v6268_v18 = vpop.f32.mrb[83].mxu1  ;;  %v6664_v11 = vld [vmem:[%s6872_s5 + $0x190] sm:$0xff]  }
 0x193   : > { %v5514_v19 = vpack.c.bf16 %v2804_v13, %v2804_v13  ;;  %v2805_v20 = vmax.f32 %v1818_v14, 0.0  ;;  %6094 = vmatmul.mubr.msk.bf16.gmra.mrb[188].mxu0 %vm1202_vm1, %v6658_v7  ;;  %v5654_v21 = vpack.c.bf16 %v2944_v16, %v2944_v16  ;;  %v2945_v22 = vmax.f32 %v2378_v17, 0.0  ;;  %6374 = vmatmul.mubr.msk.bf16.gmra.mrb[188].mxu1 %vm1202_vm1, %v6659_v10  ;;  %v6665_v14 = vld [vmem:[%s6872_s5 + $0x3c0] sm:$0xff]  }
 0x194   : > { %6097 = vmatprep.mubr.msk.bf16.mxu0 %vm6795_vm0, %v6794_v1  ;;  %6377 = vmatprep.mubr.msk.bf16.mxu1 %vm6795_vm0, %v6794_v1 }
 0x195   : > { %4191 = vst.msk [vmem:[%s7113_s12 + $0xa0] sm:$0xf] %vm4150_vm2, %v5514_v19  ;;  %v5515_v23 = vpack.c.bf16 %v2805_v20, %v2805_v20  ;;  %4331 = vst.msk [vmem:[%s7113_s12 + $0x2d0] sm:$0xf] %vm4150_vm2, %v5654_v21  ;;  %v5655_v24 = vpack.c.bf16 %v2945_v22, %v2945_v22 }
 0x196   : > { %v1822_v25 = vpop.f32.mrb[84].mxu0  ;;  %v2382_v26 = vpop.f32.mrb[84].mxu1 }
 0x197   : > { %4192 = vst.msk [vmem:[%s7113_s12 + $0xa4] sm:$0xf] %vm4150_vm2, %v5515_v23  ;;  %v1823_v27 = vadd.f32 %v7444_v63, %v1822_v25  ;;  %v5991_v28 = vpop.f32.mrb[85].mxu0  ;;  %4332 = vst.msk [vmem:[%s7113_s12 + $0x2d4] sm:$0xf] %vm4150_vm2, %v5655_v24  ;;  %v2383_v30 = vadd.f32 %v7444_v63, %v2382_v26  ;;  %v6271_v31 = vpop.f32.mrb[85].mxu1 }
 0x198   : > { %v1825_v33 = vpop.f32.mrb[86].mxu0  ;;  %v2385_v34 = vpop.f32.mrb[86].mxu1 }
 0x199   : > { %v2806_v35 = vmax.f32 %v1823_v27, 0.0  ;;  %v1826_v36 = vadd.f32 %v7444_v63, %v1825_v33  ;;  %v5992_v37 = vpop.f32.mrb[87].mxu0  ;;  %v2946_v38 = vmax.f32 %v2383_v30, 0.0  ;;  %v2386_v39 = vadd.f32 %v7444_v63, %v2385_v34  ;;  %v6272_v40 = vpop.f32.mrb[87].mxu1  ;;  %v6666_v33 = vld [vmem:[%s6872_s5 + $0x198] sm:$0xff]  }
 0x19b   : > { %v5516_v41 = vpack.c.bf16 %v2806_v35, %v2806_v35  ;;  %v2807_v42 = vmax.f32 %v1826_v36, 0.0  ;;  %6098 = vmatmul.mubr.msk.bf16.gmra.mrb[192].mxu0 %vm1202_vm1, %v6660_v29  ;;  %v5656_v43 = vpack.c.bf16 %v2946_v38, %v2946_v38  ;;  %v2947_v44 = vmax.f32 %v2386_v39, 0.0  ;;  %6378 = vmatmul.mubr.msk.bf16.gmra.mrb[192].mxu1 %vm1202_vm1, %v6661_v32  ;;  %v6667_v36 = vld [vmem:[%s6872_s5 + $0x3c8] sm:$0xff]  }
 0x19c   : > { %6101 = vmatprep.mubr.msk.bf16.mxu0 %vm6795_vm0, %v6794_v1  ;;  %6381 = vmatprep.mubr.msk.bf16.mxu1 %vm6795_vm0, %v6794_v1 }
 0x19d   : > { %4193 = vst.msk [vmem:[%s7113_s12 + $0xa8] sm:$0xf] %vm4150_vm2, %v5516_v41  ;;  %v5517_v45 = vpack.c.bf16 %v2807_v42, %v2807_v42  ;;  %4333 = vst.msk [vmem:[%s7113_s12 + $0x2d8] sm:$0xf] %vm4150_vm2, %v5656_v43  ;;  %v5657_v46 = vpack.c.bf16 %v2947_v44, %v2947_v44 }
 0x19e   : > { %v1830_v47 = vpop.f32.mrb[88].mxu0  ;;  %v2390_v48 = vpop.f32.mrb[88].mxu1 }
 0x19f   : > { %4194 = vst.msk [vmem:[%s7113_s12 + $0xac] sm:$0xf] %vm4150_vm2, %v5517_v45  ;;  %v1831_v49 = vadd.f32 %v7444_v63, %v1830_v47  ;;  %v5995_v50 = vpop.f32.mrb[89].mxu0  ;;  %4334 = vst.msk [vmem:[%s7113_s12 + $0x2dc] sm:$0xf] %vm4150_vm2, %v5657_v46  ;;  %v2391_v52 = vadd.f32 %v7444_v63, %v2390_v48  ;;  %v6275_v53 = vpop.f32.mrb[89].mxu1 }
 0x1a0   : > { %v1833_v55 = vpop.f32.mrb[90].mxu0  ;;  %v2393_v56 = vpop.f32.mrb[90].mxu1 }
 0x1a1   : > { %v2808_v57 = vmax.f32 %v1831_v49, 0.0  ;;  %v1834_v58 = vadd.f32 %v7444_v63, %v1833_v55  ;;  %v5996_v59 = vpop.f32.mrb[91].mxu0  ;;  %v2948_v60 = vmax.f32 %v2391_v52, 0.0  ;;  %v2394_v61 = vadd.f32 %v7444_v63, %v2393_v56  ;;  %v6276_v62 = vpop.f32.mrb[91].mxu1  ;;  %v6668_v55 = vld [vmem:[%s6872_s5 + $0x1a0] sm:$0xff]  }
 0x1a3   : > { %v5518_v0 = vpack.c.bf16 %v2808_v57, %v2808_v57  ;;  %v2809_v2 = vmax.f32 %v1834_v58, 0.0  ;;  %6102 = vmatmul.mubr.msk.bf16.gmra.mrb[196].mxu0 %vm1202_vm1, %v6662_v51  ;;  %v5658_v3 = vpack.c.bf16 %v2948_v60, %v2948_v60  ;;  %v2949_v4 = vmax.f32 %v2394_v61, 0.0  ;;  %6382 = vmatmul.mubr.msk.bf16.gmra.mrb[196].mxu1 %vm1202_vm1, %v6663_v54  ;;  %v6669_v58 = vld [vmem:[%s6872_s5 + $0x3d0] sm:$0xff]  }
 0x1a4   : > { %6105 = vmatprep.mubr.msk.bf16.mxu0 %vm6795_vm0, %v6794_v1  ;;  %6385 = vmatprep.mubr.msk.bf16.mxu1 %vm6795_vm0, %v6794_v1 }
 0x1a5   : > { %4195 = vst.msk [vmem:[%s7113_s12 + $0xb0] sm:$0xf] %vm4150_vm2, %v5518_v0  ;;  %v5519_v5 = vpack.c.bf16 %v2809_v2, %v2809_v2  ;;  %4335 = vst.msk [vmem:[%s7113_s12 + $0x2e0] sm:$0xf] %vm4150_vm2, %v5658_v3  ;;  %v5659_v6 = vpack.c.bf16 %v2949_v4, %v2949_v4 }
 0x1a6   : > { %v1838_v7 = vpop.f32.mrb[92].mxu0  ;;  %v2398_v8 = vpop.f32.mrb[92].mxu1 }
 0x1a7   : > { %4196 = vst.msk [vmem:[%s7113_s12 + $0xb4] sm:$0xf] %vm4150_vm2, %v5519_v5  ;;  %v1839_v9 = vadd.f32 %v7444_v63, %v1838_v7  ;;  %v5999_v10 = vpop.f32.mrb[93].mxu0  ;;  %4336 = vst.msk [vmem:[%s7113_s12 + $0x2e4] sm:$0xf] %vm4150_vm2, %v5659_v6  ;;  %v2399_v12 = vadd.f32 %v7444_v63, %v2398_v8  ;;  %v6279_v13 = vpop.f32.mrb[93].mxu1 }
 0x1a8   : > { %v1841_v15 = vpop.f32.mrb[94].mxu0  ;;  %v2401_v16 = vpop.f32.mrb[94].mxu1 }
 0x1a9   : > { %v2810_v17 = vmax.f32 %v1839_v9, 0.0  ;;  %v1842_v18 = vadd.f32 %v7444_v63, %v1841_v15  ;;  %v6000_v19 = vpop.f32.mrb[95].mxu0  ;;  %v2950_v20 = vmax.f32 %v2399_v12, 0.0  ;;  %v2402_v21 = vadd.f32 %v7444_v63, %v2401_v16  ;;  %v6280_v22 = vpop.f32.mrb[95].mxu1  ;;  %v6670_v15 = vld [vmem:[%s6872_s5 + $0x1a8] sm:$0xff]  }
 0x1ab   : > { %v5520_v23 = vpack.c.bf16 %v2810_v17, %v2810_v17  ;;  %v2811_v24 = vmax.f32 %v1842_v18, 0.0  ;;  %6106 = vmatmul.mubr.msk.bf16.gmra.mrb[200].mxu0 %vm1202_vm1, %v6664_v11  ;;  %v5660_v25 = vpack.c.bf16 %v2950_v20, %v2950_v20  ;;  %v2951_v26 = vmax.f32 %v2402_v21, 0.0  ;;  %6386 = vmatmul.mubr.msk.bf16.gmra.mrb[200].mxu1 %vm1202_vm1, %v6665_v14  ;;  %v6671_v18 = vld [vmem:[%s6872_s5 + $0x3d8] sm:$0xff]  }
 0x1ac   : > { %6109 = vmatprep.mubr.msk.bf16.mxu0 %vm6795_vm0, %v6794_v1  ;;  %6389 = vmatprep.mubr.msk.bf16.mxu1 %vm6795_vm0, %v6794_v1 }
 0x1ad   : > { %4197 = vst.msk [vmem:[%s7113_s12 + $0xb8] sm:$0xf] %vm4150_vm2, %v5520_v23  ;;  %v5521_v27 = vpack.c.bf16 %v2811_v24, %v2811_v24  ;;  %4337 = vst.msk [vmem:[%s7113_s12 + $0x2e8] sm:$0xf] %vm4150_vm2, %v5660_v25  ;;  %v5661_v28 = vpack.c.bf16 %v2951_v26, %v2951_v26 }
 0x1ae   : > { %v1846_v29 = vpop.f32.mrb[96].mxu0  ;;  %v2406_v30 = vpop.f32.mrb[96].mxu1 }
 0x1af   : > { %4198 = vst.msk [vmem:[%s7113_s12 + $0xbc] sm:$0xf] %vm4150_vm2, %v5521_v27  ;;  %v1847_v31 = vadd.f32 %v7444_v63, %v1846_v29  ;;  %v6003_v32 = vpop.f32.mrb[97].mxu0  ;;  %4338 = vst.msk [vmem:[%s7113_s12 + $0x2ec] sm:$0xf] %vm4150_vm2, %v5661_v28  ;;  %v2407_v34 = vadd.f32 %v7444_v63, %v2406_v30  ;;  %v6283_v35 = vpop.f32.mrb[97].mxu1 }
 0x1b0   : > { %v1849_v37 = vpop.f32.mrb[98].mxu0  ;;  %v2409_v38 = vpop.f32.mrb[98].mxu1 }
 0x1b1   : > { %v2812_v39 = vmax.f32 %v1847_v31, 0.0  ;;  %v1850_v40 = vadd.f32 %v7444_v63, %v1849_v37  ;;  %v6004_v41 = vpop.f32.mrb[99].mxu0  ;;  %v2952_v42 = vmax.f32 %v2407_v34, 0.0  ;;  %v2410_v43 = vadd.f32 %v7444_v63, %v2409_v38  ;;  %v6284_v44 = vpop.f32.mrb[99].mxu1  ;;  %v6672_v37 = vld [vmem:[%s6872_s5 + $0x1b0] sm:$0xff]  }
 0x1b3   : > { %v5522_v45 = vpack.c.bf16 %v2812_v39, %v2812_v39  ;;  %v2813_v46 = vmax.f32 %v1850_v40, 0.0  ;;  %6110 = vmatmul.mubr.msk.bf16.gmra.mrb[204].mxu0 %vm1202_vm1, %v6666_v33  ;;  %v5662_v47 = vpack.c.bf16 %v2952_v42, %v2952_v42  ;;  %v2953_v48 = vmax.f32 %v2410_v43, 0.0  ;;  %6390 = vmatmul.mubr.msk.bf16.gmra.mrb[204].mxu1 %vm1202_vm1, %v6667_v36  ;;  %v6673_v40 = vld [vmem:[%s6872_s5 + $0x3e0] sm:$0xff]  }
 0x1b4   : > { %6113 = vmatprep.mubr.msk.bf16.mxu0 %vm6795_vm0, %v6794_v1  ;;  %6393 = vmatprep.mubr.msk.bf16.mxu1 %vm6795_vm0, %v6794_v1 }
 0x1b5   : > { %4199 = vst.msk [vmem:[%s7113_s12 + $0xc0] sm:$0xf] %vm4150_vm2, %v5522_v45  ;;  %v5523_v49 = vpack.c.bf16 %v2813_v46, %v2813_v46  ;;  %4339 = vst.msk [vmem:[%s7113_s12 + $0x2f0] sm:$0xf] %vm4150_vm2, %v5662_v47  ;;  %v5663_v50 = vpack.c.bf16 %v2953_v48, %v2953_v48 }
 0x1b6   : > { %v1854_v51 = vpop.f32.mrb[100].mxu0  ;;  %v2414_v52 = vpop.f32.mrb[100].mxu1 }
 0x1b7   : > { %4200 = vst.msk [vmem:[%s7113_s12 + $0xc4] sm:$0xf] %vm4150_vm2, %v5523_v49  ;;  %v1855_v53 = vadd.f32 %v7444_v63, %v1854_v51  ;;  %v6007_v54 = vpop.f32.mrb[101].mxu0  ;;  %4340 = vst.msk [vmem:[%s7113_s12 + $0x2f4] sm:$0xf] %vm4150_vm2, %v5663_v50  ;;  %v2415_v56 = vadd.f32 %v7444_v63, %v2414_v52  ;;  %v6287_v57 = vpop.f32.mrb[101].mxu1 }
 0x1b8   : > { %v1857_v59 = vpop.f32.mrb[102].mxu0  ;;  %v2417_v60 = vpop.f32.mrb[102].mxu1 }
 0x1b9   : > { %v2814_v61 = vmax.f32 %v1855_v53, 0.0  ;;  %v1858_v62 = vadd.f32 %v7444_v63, %v1857_v59  ;;  %v6008_v0 = vpop.f32.mrb[103].mxu0  ;;  %v2954_v2 = vmax.f32 %v2415_v56, 0.0  ;;  %v2418_v3 = vadd.f32 %v7444_v63, %v2417_v60  ;;  %v6288_v4 = vpop.f32.mrb[103].mxu1  ;;  %v6674_v59 = vld [vmem:[%s6872_s5 + $0x1b8] sm:$0xff]  }
 0x1bb   : > { %v5524_v5 = vpack.c.bf16 %v2814_v61, %v2814_v61  ;;  %v2815_v6 = vmax.f32 %v1858_v62, 0.0  ;;  %6114 = vmatmul.mubr.msk.bf16.gmra.mrb[208].mxu0 %vm1202_vm1, %v6668_v55  ;;  %v5664_v7 = vpack.c.bf16 %v2954_v2, %v2954_v2  ;;  %v2955_v8 = vmax.f32 %v2418_v3, 0.0  ;;  %6394 = vmatmul.mubr.msk.bf16.gmra.mrb[208].mxu1 %vm1202_vm1, %v6669_v58  ;;  %v6675_v62 = vld [vmem:[%s6872_s5 + $0x3e8] sm:$0xff]  }
 0x1bc   : > { %6117 = vmatprep.mubr.msk.bf16.mxu0 %vm6795_vm0, %v6794_v1  ;;  %6397 = vmatprep.mubr.msk.bf16.mxu1 %vm6795_vm0, %v6794_v1 }
 0x1bd   : > { %4201 = vst.msk [vmem:[%s7113_s12 + $0xc8] sm:$0xf] %vm4150_vm2, %v5524_v5  ;;  %v5525_v9 = vpack.c.bf16 %v2815_v6, %v2815_v6  ;;  %4341 = vst.msk [vmem:[%s7113_s12 + $0x2f8] sm:$0xf] %vm4150_vm2, %v5664_v7  ;;  %v5665_v10 = vpack.c.bf16 %v2955_v8, %v2955_v8 }
 0x1be   : > { %v1862_v11 = vpop.f32.mrb[104].mxu0  ;;  %v2422_v12 = vpop.f32.mrb[104].mxu1 }
 0x1bf   : > { %4202 = vst.msk [vmem:[%s7113_s12 + $0xcc] sm:$0xf] %vm4150_vm2, %v5525_v9  ;;  %v1863_v13 = vadd.f32 %v7444_v63, %v1862_v11  ;;  %v6011_v14 = vpop.f32.mrb[105].mxu0  ;;  %4342 = vst.msk [vmem:[%s7113_s12 + $0x2fc] sm:$0xf] %vm4150_vm2, %v5665_v10  ;;  %v2423_v16 = vadd.f32 %v7444_v63, %v2422_v12  ;;  %v6291_v17 = vpop.f32.mrb[105].mxu1 }
 0x1c0   : > { %v1865_v19 = vpop.f32.mrb[106].mxu0  ;;  %v2425_v20 = vpop.f32.mrb[106].mxu1 }
 0x1c1   : > { %v2816_v21 = vmax.f32 %v1863_v13, 0.0  ;;  %v1866_v22 = vadd.f32 %v7444_v63, %v1865_v19  ;;  %v6012_v23 = vpop.f32.mrb[107].mxu0  ;;  %v2956_v24 = vmax.f32 %v2423_v16, 0.0  ;;  %v2426_v25 = vadd.f32 %v7444_v63, %v2425_v20  ;;  %v6292_v26 = vpop.f32.mrb[107].mxu1  ;;  %v6676_v19 = vld [vmem:[%s6872_s5 + $0x1c0] sm:$0xff]  }
 0x1c3   : > { %v5526_v27 = vpack.c.bf16 %v2816_v21, %v2816_v21  ;;  %v2817_v28 = vmax.f32 %v1866_v22, 0.0  ;;  %6118 = vmatmul.mubr.msk.bf16.gmra.mrb[212].mxu0 %vm1202_vm1, %v6670_v15  ;;  %v5666_v29 = vpack.c.bf16 %v2956_v24, %v2956_v24  ;;  %v2957_v30 = vmax.f32 %v2426_v25, 0.0  ;;  %6398 = vmatmul.mubr.msk.bf16.gmra.mrb[212].mxu1 %vm1202_vm1, %v6671_v18  ;;  %v6677_v22 = vld [vmem:[%s6872_s5 + $0x3f0] sm:$0xff]  }
 0x1c4   : > { %6121 = vmatprep.mubr.msk.bf16.mxu0 %vm6795_vm0, %v6794_v1  ;;  %6401 = vmatprep.mubr.msk.bf16.mxu1 %vm6795_vm0, %v6794_v1 }
 0x1c5   : > { %4203 = vst.msk [vmem:[%s7113_s12 + $0xd0] sm:$0xf] %vm4150_vm2, %v5526_v27  ;;  %v5527_v31 = vpack.c.bf16 %v2817_v28, %v2817_v28  ;;  %4343 = vst.msk [vmem:[%s7113_s12 + $0x300] sm:$0xf] %vm4150_vm2, %v5666_v29  ;;  %v5667_v32 = vpack.c.bf16 %v2957_v30, %v2957_v30 }
 0x1c6   : > { %v1870_v33 = vpop.f32.mrb[108].mxu0  ;;  %v2430_v34 = vpop.f32.mrb[108].mxu1 }
 0x1c7   : > { %4204 = vst.msk [vmem:[%s7113_s12 + $0xd4] sm:$0xf] %vm4150_vm2, %v5527_v31  ;;  %v1871_v35 = vadd.f32 %v7444_v63, %v1870_v33  ;;  %v6015_v36 = vpop.f32.mrb[109].mxu0  ;;  %4344 = vst.msk [vmem:[%s7113_s12 + $0x304] sm:$0xf] %vm4150_vm2, %v5667_v32  ;;  %v2431_v38 = vadd.f32 %v7444_v63, %v2430_v34  ;;  %v6295_v39 = vpop.f32.mrb[109].mxu1 }
 0x1c8   : > { %v1873_v41 = vpop.f32.mrb[110].mxu0  ;;  %v2433_v42 = vpop.f32.mrb[110].mxu1 }
 0x1c9   : > { %v2818_v43 = vmax.f32 %v1871_v35, 0.0  ;;  %v1874_v44 = vadd.f32 %v7444_v63, %v1873_v41  ;;  %v6016_v45 = vpop.f32.mrb[111].mxu0  ;;  %v2958_v46 = vmax.f32 %v2431_v38, 0.0  ;;  %v2434_v47 = vadd.f32 %v7444_v63, %v2433_v42  ;;  %v6296_v48 = vpop.f32.mrb[111].mxu1  ;;  %v6678_v41 = vld [vmem:[%s6872_s5 + $0x1c8] sm:$0xff]  }
 0x1cb   : > { %v5528_v49 = vpack.c.bf16 %v2818_v43, %v2818_v43  ;;  %v2819_v50 = vmax.f32 %v1874_v44, 0.0  ;;  %6122 = vmatmul.mubr.msk.bf16.gmra.mrb[216].mxu0 %vm1202_vm1, %v6672_v37  ;;  %v5668_v51 = vpack.c.bf16 %v2958_v46, %v2958_v46  ;;  %v2959_v52 = vmax.f32 %v2434_v47, 0.0  ;;  %6402 = vmatmul.mubr.msk.bf16.gmra.mrb[216].mxu1 %vm1202_vm1, %v6673_v40  ;;  %v6679_v44 = vld [vmem:[%s6872_s5 + $0x3f8] sm:$0xff]  }
 0x1cc   : > { %6125 = vmatprep.mubr.msk.bf16.mxu0 %vm6795_vm0, %v6794_v1  ;;  %6405 = vmatprep.mubr.msk.bf16.mxu1 %vm6795_vm0, %v6794_v1 }
 0x1cd   : > { %4205 = vst.msk [vmem:[%s7113_s12 + $0xd8] sm:$0xf] %vm4150_vm2, %v5528_v49  ;;  %v5529_v53 = vpack.c.bf16 %v2819_v50, %v2819_v50  ;;  %4345 = vst.msk [vmem:[%s7113_s12 + $0x308] sm:$0xf] %vm4150_vm2, %v5668_v51  ;;  %v5669_v54 = vpack.c.bf16 %v2959_v52, %v2959_v52 }
 0x1ce   : > { %v1878_v55 = vpop.f32.mrb[112].mxu0  ;;  %v2438_v56 = vpop.f32.mrb[112].mxu1 }
 0x1cf   : > { %4206 = vst.msk [vmem:[%s7113_s12 + $0xdc] sm:$0xf] %vm4150_vm2, %v5529_v53  ;;  %v1879_v57 = vadd.f32 %v7444_v63, %v1878_v55  ;;  %v6019_v58 = vpop.f32.mrb[113].mxu0  ;;  %4346 = vst.msk [vmem:[%s7113_s12 + $0x30c] sm:$0xf] %vm4150_vm2, %v5669_v54  ;;  %v2439_v60 = vadd.f32 %v7444_v63, %v2438_v56  ;;  %v6299_v61 = vpop.f32.mrb[113].mxu1 }
 0x1d0   : > { %v1881_v0 = vpop.f32.mrb[114].mxu0  ;;  %v2441_v2 = vpop.f32.mrb[114].mxu1 }
 0x1d1   : > { %v2820_v3 = vmax.f32 %v1879_v57, 0.0  ;;  %v1882_v4 = vadd.f32 %v7444_v63, %v1881_v0  ;;  %v6020_v5 = vpop.f32.mrb[115].mxu0  ;;  %v2960_v6 = vmax.f32 %v2439_v60, 0.0  ;;  %v2442_v7 = vadd.f32 %v7444_v63, %v2441_v2  ;;  %v6300_v8 = vpop.f32.mrb[115].mxu1  ;;  %v6680_v0 = vld [vmem:[%s6872_s5 + $0x1d0] sm:$0xff]  }
 0x1d3   : > { %v5530_v9 = vpack.c.bf16 %v2820_v3, %v2820_v3  ;;  %v2821_v10 = vmax.f32 %v1882_v4, 0.0  ;;  %6126 = vmatmul.mubr.msk.bf16.gmra.mrb[220].mxu0 %vm1202_vm1, %v6674_v59  ;;  %v5670_v11 = vpack.c.bf16 %v2960_v6, %v2960_v6  ;;  %v2961_v12 = vmax.f32 %v2442_v7, 0.0  ;;  %6406 = vmatmul.mubr.msk.bf16.gmra.mrb[220].mxu1 %vm1202_vm1, %v6675_v62  ;;  %v6681_v4 = vld [vmem:[%s6872_s5 + $0x400] sm:$0xff]  }
 0x1d4   : > { %6129 = vmatprep.mubr.msk.bf16.mxu0 %vm6795_vm0, %v6794_v1  ;;  %6409 = vmatprep.mubr.msk.bf16.mxu1 %vm6795_vm0, %v6794_v1 }
 0x1d5   : > { %4207 = vst.msk [vmem:[%s7113_s12 + $0xe0] sm:$0xf] %vm4150_vm2, %v5530_v9  ;;  %v5531_v13 = vpack.c.bf16 %v2821_v10, %v2821_v10  ;;  %4347 = vst.msk [vmem:[%s7113_s12 + $0x310] sm:$0xf] %vm4150_vm2, %v5670_v11  ;;  %v5671_v14 = vpack.c.bf16 %v2961_v12, %v2961_v12 }
 0x1d6   : > { %v1886_v15 = vpop.f32.mrb[116].mxu0  ;;  %v2446_v16 = vpop.f32.mrb[116].mxu1 }
 0x1d7   : > { %4208 = vst.msk [vmem:[%s7113_s12 + $0xe4] sm:$0xf] %vm4150_vm2, %v5531_v13  ;;  %v1887_v17 = vadd.f32 %v7444_v63, %v1886_v15  ;;  %v6023_v18 = vpop.f32.mrb[117].mxu0  ;;  %4348 = vst.msk [vmem:[%s7113_s12 + $0x314] sm:$0xf] %vm4150_vm2, %v5671_v14  ;;  %v2447_v20 = vadd.f32 %v7444_v63, %v2446_v16  ;;  %v6303_v21 = vpop.f32.mrb[117].mxu1 }
 0x1d8   : > { %v1889_v23 = vpop.f32.mrb[118].mxu0  ;;  %v2449_v24 = vpop.f32.mrb[118].mxu1 }
 0x1d9   : > { %v2822_v25 = vmax.f32 %v1887_v17, 0.0  ;;  %v1890_v26 = vadd.f32 %v7444_v63, %v1889_v23  ;;  %v6024_v27 = vpop.f32.mrb[119].mxu0  ;;  %v2962_v28 = vmax.f32 %v2447_v20, 0.0  ;;  %v2450_v29 = vadd.f32 %v7444_v63, %v2449_v24  ;;  %v6304_v30 = vpop.f32.mrb[119].mxu1  ;;  %v6682_v23 = vld [vmem:[%s6872_s5 + $0x1d8] sm:$0xff]  }
 0x1db   : > { %v5532_v31 = vpack.c.bf16 %v2822_v25, %v2822_v25  ;;  %v2823_v32 = vmax.f32 %v1890_v26, 0.0  ;;  %6130 = vmatmul.mubr.msk.bf16.gmra.mrb[224].mxu0 %vm1202_vm1, %v6676_v19  ;;  %v5672_v33 = vpack.c.bf16 %v2962_v28, %v2962_v28  ;;  %v2963_v34 = vmax.f32 %v2450_v29, 0.0  ;;  %6410 = vmatmul.mubr.msk.bf16.gmra.mrb[224].mxu1 %vm1202_vm1, %v6677_v22  ;;  %v6683_v26 = vld [vmem:[%s6872_s5 + $0x408] sm:$0xff]  }
 0x1dc   : > { %6133 = vmatprep.mubr.msk.bf16.mxu0 %vm6795_vm0, %v6794_v1  ;;  %6413 = vmatprep.mubr.msk.bf16.mxu1 %vm6795_vm0, %v6794_v1 }
 0x1dd   : > { %4209 = vst.msk [vmem:[%s7113_s12 + $0xe8] sm:$0xf] %vm4150_vm2, %v5532_v31  ;;  %v5533_v35 = vpack.c.bf16 %v2823_v32, %v2823_v32  ;;  %4349 = vst.msk [vmem:[%s7113_s12 + $0x318] sm:$0xf] %vm4150_vm2, %v5672_v33  ;;  %v5673_v36 = vpack.c.bf16 %v2963_v34, %v2963_v34 }
 0x1de   : > { %v1894_v37 = vpop.f32.mrb[120].mxu0  ;;  %v2454_v38 = vpop.f32.mrb[120].mxu1 }
 0x1df   : > { %4210 = vst.msk [vmem:[%s7113_s12 + $0xec] sm:$0xf] %vm4150_vm2, %v5533_v35  ;;  %v1895_v39 = vadd.f32 %v7444_v63, %v1894_v37  ;;  %v6027_v40 = vpop.f32.mrb[121].mxu0  ;;  %4350 = vst.msk [vmem:[%s7113_s12 + $0x31c] sm:$0xf] %vm4150_vm2, %v5673_v36  ;;  %v2455_v42 = vadd.f32 %v7444_v63, %v2454_v38  ;;  %v6307_v43 = vpop.f32.mrb[121].mxu1 }
 0x1e0   : > { %v1897_v45 = vpop.f32.mrb[122].mxu0  ;;  %v2457_v46 = vpop.f32.mrb[122].mxu1 }
 0x1e1   : > { %v2824_v47 = vmax.f32 %v1895_v39, 0.0  ;;  %v1898_v48 = vadd.f32 %v7444_v63, %v1897_v45  ;;  %v6028_v49 = vpop.f32.mrb[123].mxu0  ;;  %v2964_v50 = vmax.f32 %v2455_v42, 0.0  ;;  %v2458_v51 = vadd.f32 %v7444_v63, %v2457_v46  ;;  %v6308_v52 = vpop.f32.mrb[123].mxu1  ;;  %v6684_v45 = vld [vmem:[%s6872_s5 + $0x1e0] sm:$0xff]  }
 0x1e3   : > { %v5534_v53 = vpack.c.bf16 %v2824_v47, %v2824_v47  ;;  %v2825_v54 = vmax.f32 %v1898_v48, 0.0  ;;  %6134 = vmatmul.mubr.msk.bf16.gmra.mrb[228].mxu0 %vm1202_vm1, %v6678_v41  ;;  %v5674_v55 = vpack.c.bf16 %v2964_v50, %v2964_v50  ;;  %v2965_v56 = vmax.f32 %v2458_v51, 0.0  ;;  %6414 = vmatmul.mubr.msk.bf16.gmra.mrb[228].mxu1 %vm1202_vm1, %v6679_v44  ;;  %v6685_v48 = vld [vmem:[%s6872_s5 + $0x410] sm:$0xff]  }
 0x1e4   : > { %6137 = vmatprep.mubr.msk.bf16.mxu0 %vm6795_vm0, %v6794_v1  ;;  %6417 = vmatprep.mubr.msk.bf16.mxu1 %vm6795_vm0, %v6794_v1 }
 0x1e5   : > { %4211 = vst.msk [vmem:[%s7113_s12 + $0xf0] sm:$0xf] %vm4150_vm2, %v5534_v53  ;;  %v5535_v57 = vpack.c.bf16 %v2825_v54, %v2825_v54  ;;  %4351 = vst.msk [vmem:[%s7113_s12 + $0x320] sm:$0xf] %vm4150_vm2, %v5674_v55  ;;  %v5675_v58 = vpack.c.bf16 %v2965_v56, %v2965_v56 }
 0x1e6   : > { %v1902_v59 = vpop.f32.mrb[124].mxu0  ;;  %v2462_v60 = vpop.f32.mrb[124].mxu1 }
 0x1e7   : > { %4212 = vst.msk [vmem:[%s7113_s12 + $0xf4] sm:$0xf] %vm4150_vm2, %v5535_v57  ;;  %v1903_v61 = vadd.f32 %v7444_v63, %v1902_v59  ;;  %v6031_v62 = vpop.f32.mrb[125].mxu0  ;;  %4352 = vst.msk [vmem:[%s7113_s12 + $0x324] sm:$0xf] %vm4150_vm2, %v5675_v58  ;;  %v2463_v2 = vadd.f32 %v7444_v63, %v2462_v60  ;;  %v6311_v3 = vpop.f32.mrb[125].mxu1 }
 0x1e8   : > { %v1905_v5 = vpop.f32.mrb[126].mxu0  ;;  %v2465_v6 = vpop.f32.mrb[126].mxu1 }
 0x1e9   : > { %v2826_v7 = vmax.f32 %v1903_v61, 0.0  ;;  %v1906_v8 = vadd.f32 %v7444_v63, %v1905_v5  ;;  %v6032_v9 = vpop.f32.mrb[127].mxu0  ;;  %v2966_v10 = vmax.f32 %v2463_v2, 0.0  ;;  %v2466_v11 = vadd.f32 %v7444_v63, %v2465_v6  ;;  %v6312_v12 = vpop.f32.mrb[127].mxu1  ;;  %v6686_v5 = vld [vmem:[%s6872_s5 + $0x1e8] sm:$0xff]  }
 0x1ea   : > { %v7793_v6 = vld [vmem:[%s8486_s2] ss:$0 sm:$0xff]  ;;  %v6687_v9 = vld [vmem:[%s6872_s5 + $0x418] sm:$0xff]  }
 0x1eb   : > { %v5536_v13 = vpack.c.bf16 %v2826_v7, %v2826_v7  ;;  %v2827_v14 = vmax.f32 %v1906_v8, 0.0  ;;  %6138 = vmatmul.mubr.msk.bf16.gmra.mrb[232].mxu0 %vm1202_vm1, %v6680_v0  ;;  %v5676_v15 = vpack.c.bf16 %v2966_v10, %v2966_v10  ;;  %v2967_v16 = vmax.f32 %v2466_v11, 0.0  ;;  %6418 = vmatmul.mubr.msk.bf16.gmra.mrb[232].mxu1 %vm1202_vm1, %v6681_v4 }
 0x1ec   : > { %6141 = vmatprep.mubr.msk.bf16.mxu0 %vm6795_vm0, %v6794_v1  ;;  %6421 = vmatprep.mubr.msk.bf16.mxu1 %vm6795_vm0, %v6794_v1 }
 0x1ed   : > { %4213 = vst.msk [vmem:[%s7113_s12 + $0xf8] sm:$0xf] %vm4150_vm2, %v5536_v13  ;;  %v5537_v17 = vpack.c.bf16 %v2827_v14, %v2827_v14  ;;  %4353 = vst.msk [vmem:[%s7113_s12 + $0x328] sm:$0xf] %vm4150_vm2, %v5676_v15  ;;  %v5677_v18 = vpack.c.bf16 %v2967_v16, %v2967_v16 }
 0x1ee   : > { %v1910_v19 = vpop.f32.mrb[128].mxu0  ;;  %v2470_v20 = vpop.f32.mrb[128].mxu1 }
 0x1ef   : > { %4214 = vst.msk [vmem:[%s7113_s12 + $0xfc] sm:$0xf] %vm4150_vm2, %v5537_v17  ;;  %v1911_v21 = vadd.f32 %v7444_v63, %v1910_v19  ;;  %v6035_v22 = vpop.f32.mrb[129].mxu0  ;;  %4354 = vst.msk [vmem:[%s7113_s12 + $0x32c] sm:$0xf] %vm4150_vm2, %v5677_v18  ;;  %v2471_v24 = vadd.f32 %v7444_v63, %v2470_v20  ;;  %v6315_v25 = vpop.f32.mrb[129].mxu1 }
 0x1f0   : > { %v1913_v27 = vpop.f32.mrb[130].mxu0  ;;  %v2473_v28 = vpop.f32.mrb[130].mxu1 }
 0x1f1   : > { %v2828_v29 = vmax.f32 %v1911_v21, 0.0  ;;  %v1914_v30 = vadd.f32 %v7444_v63, %v1913_v27  ;;  %v6036_v31 = vpop.f32.mrb[131].mxu0  ;;  %v2968_v32 = vmax.f32 %v2471_v24, 0.0  ;;  %v2474_v33 = vadd.f32 %v7444_v63, %v2473_v28  ;;  %v6316_v34 = vpop.f32.mrb[131].mxu1  ;;  %v6688_v27 = vld [vmem:[%s6872_s5 + $0x1f0] sm:$0xff]  }
 0x1f3   : > { %v5538_v35 = vpack.c.bf16 %v2828_v29, %v2828_v29  ;;  %v2829_v36 = vmax.f32 %v1914_v30, 0.0  ;;  %6142 = vmatmul.mubr.msk.bf16.gmra.mrb[236].mxu0 %vm1202_vm1, %v6682_v23  ;;  %v5678_v37 = vpack.c.bf16 %v2968_v32, %v2968_v32  ;;  %v2969_v38 = vmax.f32 %v2474_v33, 0.0  ;;  %6422 = vmatmul.mubr.msk.bf16.gmra.mrb[236].mxu1 %vm1202_vm1, %v6683_v26  ;;  %v6689_v30 = vld [vmem:[%s6872_s5 + $0x420] sm:$0xff]  }
 0x1f4   : > { %6145 = vmatprep.mubr.msk.bf16.mxu0 %vm6795_vm0, %v6794_v1  ;;  %6425 = vmatprep.mubr.msk.bf16.mxu1 %vm6795_vm0, %v6794_v1 }
 0x1f5   : > { %4215 = vst.msk [vmem:[%s7113_s12 + $0x100] sm:$0xf] %vm4150_vm2, %v5538_v35  ;;  %v5539_v39 = vpack.c.bf16 %v2829_v36, %v2829_v36  ;;  %4355 = vst.msk [vmem:[%s7113_s12 + $0x330] sm:$0xf] %vm4150_vm2, %v5678_v37  ;;  %v5679_v40 = vpack.c.bf16 %v2969_v38, %v2969_v38 }
 0x1f6   : > { %v1918_v41 = vpop.f32.mrb[132].mxu0  ;;  %v2478_v42 = vpop.f32.mrb[132].mxu1 }
 0x1f7   : > { %4216 = vst.msk [vmem:[%s7113_s12 + $0x104] sm:$0xf] %vm4150_vm2, %v5539_v39  ;;  %v1919_v43 = vadd.f32 %v7444_v63, %v1918_v41  ;;  %v6039_v44 = vpop.f32.mrb[133].mxu0  ;;  %4356 = vst.msk [vmem:[%s7113_s12 + $0x334] sm:$0xf] %vm4150_vm2, %v5679_v40  ;;  %v2479_v46 = vadd.f32 %v7444_v63, %v2478_v42  ;;  %v6319_v47 = vpop.f32.mrb[133].mxu1 }
 0x1f8   : > { %v1921_v49 = vpop.f32.mrb[134].mxu0  ;;  %v2481_v50 = vpop.f32.mrb[134].mxu1 }
 0x1f9   : > { %v2830_v51 = vmax.f32 %v1919_v43, 0.0  ;;  %v1922_v52 = vadd.f32 %v7444_v63, %v1921_v49  ;;  %v6040_v53 = vpop.f32.mrb[135].mxu0  ;;  %v2970_v54 = vmax.f32 %v2479_v46, 0.0  ;;  %v2482_v55 = vadd.f32 %v7444_v63, %v2481_v50  ;;  %v6320_v56 = vpop.f32.mrb[135].mxu1  ;;  %v6690_v49 = vld [vmem:[%s6872_s5 + $0x1f8] sm:$0xff]  }
 0x1fb   : > { %v5540_v57 = vpack.c.bf16 %v2830_v51, %v2830_v51  ;;  %v2831_v58 = vmax.f32 %v1922_v52, 0.0  ;;  %6146 = vmatmul.mubr.msk.bf16.gmra.mrb[240].mxu0 %vm1202_vm1, %v6684_v45  ;;  %v5680_v59 = vpack.c.bf16 %v2970_v54, %v2970_v54  ;;  %v2971_v60 = vmax.f32 %v2482_v55, 0.0  ;;  %6426 = vmatmul.mubr.msk.bf16.gmra.mrb[240].mxu1 %vm1202_vm1, %v6685_v48  ;;  %v6691_v52 = vld [vmem:[%s6872_s5 + $0x428] sm:$0xff]  }
 0x1fc   : > { %6149 = vmatprep.mubr.msk.bf16.mxu0 %vm6795_vm0, %v6794_v1  ;;  %6429 = vmatprep.mubr.msk.bf16.mxu1 %vm6795_vm0, %v6794_v1 }
 0x1fd   : > { %4217 = vst.msk [vmem:[%s7113_s12 + $0x108] sm:$0xf] %vm4150_vm2, %v5540_v57  ;;  %v5541_v61 = vpack.c.bf16 %v2831_v58, %v2831_v58  ;;  %4357 = vst.msk [vmem:[%s7113_s12 + $0x338] sm:$0xf] %vm4150_vm2, %v5680_v59  ;;  %v5681_v62 = vpack.c.bf16 %v2971_v60, %v2971_v60 }
 0x1fe   : > { %v1926_v0 = vpop.f32.mrb[136].mxu0  ;;  %v2486_v2 = vpop.f32.mrb[136].mxu1 }
 0x1ff   : > { %4218 = vst.msk [vmem:[%s7113_s12 + $0x10c] sm:$0xf] %vm4150_vm2, %v5541_v61  ;;  %v1927_v3 = vadd.f32 %v7444_v63, %v1926_v0  ;;  %v6043_v4 = vpop.f32.mrb[137].mxu0  ;;  %4358 = vst.msk [vmem:[%s7113_s12 + $0x33c] sm:$0xf] %vm4150_vm2, %v5681_v62  ;;  %v2487_v7 = vadd.f32 %v7793_v6, %v2486_v2  ;;  %v6323_v8 = vpop.f32.mrb[137].mxu1 }
 0x200   : > { %v1929_v10 = vpop.f32.mrb[138].mxu0  ;;  %v2489_v11 = vpop.f32.mrb[138].mxu1 }
 0x201   : > { %v2832_v12 = vmax.f32 %v1927_v3, 0.0  ;;  %v1930_v63 = vadd.f32 %v7793_v6, %v1929_v10  ;;  %v6044_v13 = vpop.f32.mrb[139].mxu0  ;;  %v2972_v14 = vmax.f32 %v2487_v7, 0.0  ;;  %v2490_v15 = vadd.f32 %v7793_v6, %v2489_v11  ;;  %v6324_v16 = vpop.f32.mrb[139].mxu1  ;;  %v6692_v10 = vld [vmem:[%s6872_s5 + $0x200] sm:$0xff]  }
 0x203   : > { %v5542_v17 = vpack.c.bf16 %v2832_v12, %v2832_v12  ;;  %v2833_v18 = vmax.f32 %v1930_v63, 0.0  ;;  %6150 = vmatmul.mubr.msk.bf16.gmra.mrb[244].mxu0 %vm1202_vm1, %v6686_v5  ;;  %v5682_v19 = vpack.c.bf16 %v2972_v14, %v2972_v14  ;;  %v2973_v20 = vmax.f32 %v2490_v15, 0.0  ;;  %6430 = vmatmul.mubr.msk.bf16.gmra.mrb[244].mxu1 %vm1202_vm1, %v6687_v9  ;;  %v6693_v63 = vld [vmem:[%s6872_s5 + $0x430] sm:$0xff]  }
 0x204   : > { %6153 = vmatprep.mubr.msk.bf16.mxu0 %vm6795_vm0, %v6794_v1  ;;  %6433 = vmatprep.mubr.msk.bf16.mxu1 %vm6795_vm0, %v6794_v1 }
 0x205   : > { %4219 = vst.msk [vmem:[%s7113_s12 + $0x110] sm:$0xf] %vm4150_vm2, %v5542_v17  ;;  %v5543_v21 = vpack.c.bf16 %v2833_v18, %v2833_v18  ;;  %4359 = vst.msk [vmem:[%s7113_s12 + $0x340] sm:$0xf] %vm4150_vm2, %v5682_v19  ;;  %v5683_v22 = vpack.c.bf16 %v2973_v20, %v2973_v20 }
 0x206   : > { %v1934_v23 = vpop.f32.mrb[140].mxu0  ;;  %v2494_v24 = vpop.f32.mrb[140].mxu1 }
 0x207   : > { %4220 = vst.msk [vmem:[%s7113_s12 + $0x114] sm:$0xf] %vm4150_vm2, %v5543_v21  ;;  %v1935_v25 = vadd.f32 %v7793_v6, %v1934_v23  ;;  %v6047_v26 = vpop.f32.mrb[141].mxu0  ;;  %4360 = vst.msk [vmem:[%s7113_s12 + $0x344] sm:$0xf] %vm4150_vm2, %v5683_v22  ;;  %v2495_v28 = vadd.f32 %v7793_v6, %v2494_v24  ;;  %v6327_v29 = vpop.f32.mrb[141].mxu1 }
 0x208   : > { %v1937_v31 = vpop.f32.mrb[142].mxu0  ;;  %v2497_v32 = vpop.f32.mrb[142].mxu1 }
 0x209   : > { %v2834_v33 = vmax.f32 %v1935_v25, 0.0  ;;  %v1938_v34 = vadd.f32 %v7793_v6, %v1937_v31  ;;  %v6048_v35 = vpop.f32.mrb[143].mxu0  ;;  %v2974_v36 = vmax.f32 %v2495_v28, 0.0  ;;  %v2498_v37 = vadd.f32 %v7793_v6, %v2497_v32  ;;  %v6328_v38 = vpop.f32.mrb[143].mxu1  ;;  %v6694_v31 = vld [vmem:[%s6872_s5 + $0x208] sm:$0xff]  }
 0x20b   : > { %v5544_v39 = vpack.c.bf16 %v2834_v33, %v2834_v33  ;;  %v2835_v40 = vmax.f32 %v1938_v34, 0.0  ;;  %6154 = vmatmul.mubr.msk.bf16.gmra.mrb[248].mxu0 %vm1202_vm1, %v6688_v27  ;;  %v5684_v41 = vpack.c.bf16 %v2974_v36, %v2974_v36  ;;  %v2975_v42 = vmax.f32 %v2498_v37, 0.0  ;;  %6434 = vmatmul.mubr.msk.bf16.gmra.mrb[248].mxu1 %vm1202_vm1, %v6689_v30  ;;  %v6695_v34 = vld [vmem:[%s6872_s5 + $0x438] sm:$0xff]  }
 0x20c   : > { %6157 = vmatprep.mubr.msk.bf16.mxu0 %vm6795_vm0, %v6794_v1  ;;  %6437 = vmatprep.mubr.msk.bf16.mxu1 %vm6795_vm0, %v6794_v1 }
 0x20d   : > { %4221 = vst.msk [vmem:[%s7113_s12 + $0x118] sm:$0xf] %vm4150_vm2, %v5544_v39  ;;  %v5545_v43 = vpack.c.bf16 %v2835_v40, %v2835_v40  ;;  %4361 = vst.msk [vmem:[%s7113_s12 + $0x348] sm:$0xf] %vm4150_vm2, %v5684_v41  ;;  %v5685_v44 = vpack.c.bf16 %v2975_v42, %v2975_v42 }
 0x20e   : > { %v1942_v45 = vpop.f32.mrb[144].mxu0  ;;  %v2502_v46 = vpop.f32.mrb[144].mxu1 }
 0x20f   : > { %4222 = vst.msk [vmem:[%s7113_s12 + $0x11c] sm:$0xf] %vm4150_vm2, %v5545_v43  ;;  %v1943_v47 = vadd.f32 %v7793_v6, %v1942_v45  ;;  %v6051_v48 = vpop.f32.mrb[145].mxu0  ;;  %4362 = vst.msk [vmem:[%s7113_s12 + $0x34c] sm:$0xf] %vm4150_vm2, %v5685_v44  ;;  %v2503_v50 = vadd.f32 %v7793_v6, %v2502_v46  ;;  %v6331_v51 = vpop.f32.mrb[145].mxu1 }
 0x210   : > { %v1945_v53 = vpop.f32.mrb[146].mxu0  ;;  %v2505_v54 = vpop.f32.mrb[146].mxu1 }
 0x211   : > { %v2836_v55 = vmax.f32 %v1943_v47, 0.0  ;;  %v1946_v56 = vadd.f32 %v7793_v6, %v1945_v53  ;;  %v6052_v57 = vpop.f32.mrb[147].mxu0  ;;  %v2976_v58 = vmax.f32 %v2503_v50, 0.0  ;;  %v2506_v59 = vadd.f32 %v7793_v6, %v2505_v54  ;;  %v6332_v60 = vpop.f32.mrb[147].mxu1  ;;  %v6696_v53 = vld [vmem:[%s6872_s5 + $0x210] sm:$0xff]  }
 0x213   : > { %v5546_v61 = vpack.c.bf16 %v2836_v55, %v2836_v55  ;;  %v2837_v62 = vmax.f32 %v1946_v56, 0.0  ;;  %6158 = vmatmul.mubr.msk.bf16.gmra.mrb[252].mxu0 %vm1202_vm1, %v6690_v49  ;;  %v5686_v0 = vpack.c.bf16 %v2976_v58, %v2976_v58  ;;  %v2977_v2 = vmax.f32 %v2506_v59, 0.0  ;;  %6438 = vmatmul.mubr.msk.bf16.gmra.mrb[252].mxu1 %vm1202_vm1, %v6691_v52  ;;  %v6697_v56 = vld [vmem:[%s6872_s5 + $0x440] sm:$0xff]  }
 0x214   : > { %6161 = vmatprep.mubr.msk.bf16.mxu0 %vm6795_vm0, %v6794_v1  ;;  %6441 = vmatprep.mubr.msk.bf16.mxu1 %vm6795_vm0, %v6794_v1 }
 0x215   : > { %4223 = vst.msk [vmem:[%s7113_s12 + $0x120] sm:$0xf] %vm4150_vm2, %v5546_v61  ;;  %v5547_v3 = vpack.c.bf16 %v2837_v62, %v2837_v62  ;;  %4363 = vst.msk [vmem:[%s7113_s12 + $0x350] sm:$0xf] %vm4150_vm2, %v5686_v0  ;;  %v5687_v4 = vpack.c.bf16 %v2977_v2, %v2977_v2 }
 0x216   : > { %v1950_v5 = vpop.f32.mrb[148].mxu0  ;;  %v2510_v7 = vpop.f32.mrb[148].mxu1 }
 0x217   : > { %4224 = vst.msk [vmem:[%s7113_s12 + $0x124] sm:$0xf] %vm4150_vm2, %v5547_v3  ;;  %v1951_v8 = vadd.f32 %v7793_v6, %v1950_v5  ;;  %v6055_v9 = vpop.f32.mrb[149].mxu0  ;;  %4364 = vst.msk [vmem:[%s7113_s12 + $0x354] sm:$0xf] %vm4150_vm2, %v5687_v4  ;;  %v2511_v11 = vadd.f32 %v7793_v6, %v2510_v7  ;;  %v6335_v12 = vpop.f32.mrb[149].mxu1 }
 0x218   : > { %v1953_v13 = vpop.f32.mrb[150].mxu0  ;;  %v2513_v14 = vpop.f32.mrb[150].mxu1 }
 0x219   : > { %v2838_v15 = vmax.f32 %v1951_v8, 0.0  ;;  %v1954_v16 = vadd.f32 %v7793_v6, %v1953_v13  ;;  %v6056_v17 = vpop.f32.mrb[151].mxu0  ;;  %v2978_v18 = vmax.f32 %v2511_v11, 0.0  ;;  %v2514_v19 = vadd.f32 %v7793_v6, %v2513_v14  ;;  %v6336_v20 = vpop.f32.mrb[151].mxu1  ;;  %v6698_v13 = vld [vmem:[%s6872_s5 + $0x218] sm:$0xff]  }
 0x21b   : > { %v5548_v21 = vpack.c.bf16 %v2838_v15, %v2838_v15  ;;  %v2839_v22 = vmax.f32 %v1954_v16, 0.0  ;;  %6162 = vmatmul.mubr.msk.bf16.gmra.mrb[0].mxu0 %vm1202_vm1, %v6692_v10  ;;  %v5688_v23 = vpack.c.bf16 %v2978_v18, %v2978_v18  ;;  %v2979_v24 = vmax.f32 %v2514_v19, 0.0  ;;  %6442 = vmatmul.mubr.msk.bf16.gmra.mrb[0].mxu1 %vm1202_vm1, %v6693_v63  ;;  %v6699_v16 = vld [vmem:[%s6872_s5 + $0x448] sm:$0xff]  }
 0x21c   : > { %6165 = vmatprep.mubr.msk.bf16.mxu0 %vm6795_vm0, %v6794_v1  ;;  %6445 = vmatprep.mubr.msk.bf16.mxu1 %vm6795_vm0, %v6794_v1 }
 0x21d   : > { %4225 = vst.msk [vmem:[%s7113_s12 + $0x128] sm:$0xf] %vm4150_vm2, %v5548_v21  ;;  %v5549_v25 = vpack.c.bf16 %v2839_v22, %v2839_v22  ;;  %4365 = vst.msk [vmem:[%s7113_s12 + $0x358] sm:$0xf] %vm4150_vm2, %v5688_v23  ;;  %v5689_v26 = vpack.c.bf16 %v2979_v24, %v2979_v24 }
 0x21e   : > { %v1958_v27 = vpop.f32.mrb[152].mxu0  ;;  %v2518_v28 = vpop.f32.mrb[152].mxu1 }
 0x21f   : > { %4226 = vst.msk [vmem:[%s7113_s12 + $0x12c] sm:$0xf] %vm4150_vm2, %v5549_v25  ;;  %v1959_v29 = vadd.f32 %v7793_v6, %v1958_v27  ;;  %v6059_v30 = vpop.f32.mrb[153].mxu0  ;;  %4366 = vst.msk [vmem:[%s7113_s12 + $0x35c] sm:$0xf] %vm4150_vm2, %v5689_v26  ;;  %v2519_v32 = vadd.f32 %v7793_v6, %v2518_v28  ;;  %v6339_v33 = vpop.f32.mrb[153].mxu1 }
 0x220   : > { %v1961_v35 = vpop.f32.mrb[154].mxu0  ;;  %v2521_v36 = vpop.f32.mrb[154].mxu1 }
 0x221   : > { %v2840_v37 = vmax.f32 %v1959_v29, 0.0  ;;  %v1962_v38 = vadd.f32 %v7793_v6, %v1961_v35  ;;  %v6060_v39 = vpop.f32.mrb[155].mxu0  ;;  %v2980_v40 = vmax.f32 %v2519_v32, 0.0  ;;  %v2522_v41 = vadd.f32 %v7793_v6, %v2521_v36  ;;  %v6340_v42 = vpop.f32.mrb[155].mxu1  ;;  %v6700_v35 = vld [vmem:[%s6872_s5 + $0x220] sm:$0xff]  }
 0x223   : > { %v5550_v43 = vpack.c.bf16 %v2840_v37, %v2840_v37  ;;  %v2841_v44 = vmax.f32 %v1962_v38, 0.0  ;;  %6166 = vmatmul.mubr.msk.bf16.gmra.mrb[4].mxu0 %vm1202_vm1, %v6694_v31  ;;  %v5690_v45 = vpack.c.bf16 %v2980_v40, %v2980_v40  ;;  %v2981_v46 = vmax.f32 %v2522_v41, 0.0  ;;  %6446 = vmatmul.mubr.msk.bf16.gmra.mrb[4].mxu1 %vm1202_vm1, %v6695_v34  ;;  %v6701_v38 = vld [vmem:[%s6872_s5 + $0x450] ss:$0 sps:$4 sm:$0xff]  }
 0x224   : > { %6169 = vmatprep.mubr.msk.bf16.mxu0 %vm6795_vm0, %v6794_v1  ;;  %6449 = vmatprep.mubr.msk.bf16.mxu1 %vm6795_vm0, %v6794_v1 }
 0x225   : > { %4227 = vst.msk [vmem:[%s7113_s12 + $0x130] sm:$0xf] %vm4150_vm2, %v5550_v43  ;;  %v5551_v47 = vpack.c.bf16 %v2841_v44, %v2841_v44  ;;  %4367 = vst.msk [vmem:[%s7113_s12 + $0x360] sm:$0xf] %vm4150_vm2, %v5690_v45  ;;  %v5691_v48 = vpack.c.bf16 %v2981_v46, %v2981_v46 }
 0x226   : > { %v1966_v49 = vpop.f32.mrb[156].mxu0  ;;  %v2526_v50 = vpop.f32.mrb[156].mxu1 }
 0x227   : > { %4228 = vst.msk [vmem:[%s7113_s12 + $0x134] sm:$0xf] %vm4150_vm2, %v5551_v47  ;;  %v1967_v51 = vadd.f32 %v7793_v6, %v1966_v49  ;;  %v6063_v52 = vpop.f32.mrb[157].mxu0  ;;  %4368 = vst.msk [vmem:[%s7113_s12 + $0x364] sm:$0xf] %vm4150_vm2, %v5691_v48  ;;  %v2527_v54 = vadd.f32 %v7793_v6, %v2526_v50  ;;  %v6343_v55 = vpop.f32.mrb[157].mxu1 }
 0x228   : > { %v1969_v57 = vpop.f32.mrb[158].mxu0  ;;  %v2529_v58 = vpop.f32.mrb[158].mxu1 }
 0x229   : > { %v2842_v59 = vmax.f32 %v1967_v51, 0.0  ;;  %v1970_v60 = vadd.f32 %v7793_v6, %v1969_v57  ;;  %v6064_v61 = vpop.f32.mrb[159].mxu0  ;;  %v2982_v62 = vmax.f32 %v2527_v54, 0.0  ;;  %v2530_v0 = vadd.f32 %v7793_v6, %v2529_v58  ;;  %v6344_v2 = vpop.f32.mrb[159].mxu1  ;;  %v6702_v57 = vld [vmem:[%s6872_s5 + $0x228] sm:$0xff]  }
 0x22b   : > { %v5552_v3 = vpack.c.bf16 %v2842_v59, %v2842_v59  ;;  %v2843_v4 = vmax.f32 %v1970_v60, 0.0  ;;  %6170 = vmatmul.mubr.msk.bf16.gmra.mrb[8].mxu0 %vm1202_vm1, %v6696_v53  ;;  %v5692_v5 = vpack.c.bf16 %v2982_v62, %v2982_v62  ;;  %v2983_v7 = vmax.f32 %v2530_v0, 0.0  ;;  %6450 = vmatmul.mubr.msk.bf16.gmra.mrb[8].mxu1 %vm1202_vm1, %v6697_v56 }
 0x22c   : > { %6173 = vmatprep.mubr.msk.bf16.mxu0 %vm6795_vm0, %v6794_v1  ;;  %6453 = vmatprep.mubr.msk.bf16.mxu1 %vm6795_vm0, %v6794_v1 }
 0x22d   : > { %4229 = vst.msk [vmem:[%s7113_s12 + $0x138] sm:$0xf] %vm4150_vm2, %v5552_v3  ;;  %v5553_v8 = vpack.c.bf16 %v2843_v4, %v2843_v4  ;;  %4369 = vst.msk [vmem:[%s7113_s12 + $0x368] sm:$0xf] %vm4150_vm2, %v5692_v5  ;;  %v5693_v9 = vpack.c.bf16 %v2983_v7, %v2983_v7 }
 0x22e   : > { %v1974_v10 = vpop.f32.mrb[160].mxu0  ;;  %v2534_v11 = vpop.f32.mrb[160].mxu1 }
 0x22f   : > { %4230 = vst.msk [vmem:[%s7113_s12 + $0x13c] sm:$0xf] %vm4150_vm2, %v5553_v8  ;;  %v1975_v12 = vadd.f32 %v7793_v6, %v1974_v10  ;;  %v6067_v63 = vpop.f32.mrb[161].mxu0  ;;  %4370 = vst.msk [vmem:[%s7113_s12 + $0x36c] sm:$0xf] %vm4150_vm2, %v5693_v9  ;;  %v2535_v14 = vadd.f32 %v7793_v6, %v2534_v11  ;;  %v6347_v15 = vpop.f32.mrb[161].mxu1 }
 0x230   : > { %v1977_v17 = vpop.f32.mrb[162].mxu0  ;;  %v2537_v18 = vpop.f32.mrb[162].mxu1 }
 0x231   : > { %v2844_v19 = vmax.f32 %v1975_v12, 0.0  ;;  %v1978_v20 = vadd.f32 %v7793_v6, %v1977_v17  ;;  %v6068_v21 = vpop.f32.mrb[163].mxu0  ;;  %v2984_v22 = vmax.f32 %v2535_v14, 0.0  ;;  %v2538_v23 = vadd.f32 %v7793_v6, %v2537_v18  ;;  %v6348_v24 = vpop.f32.mrb[163].mxu1 }
 0x233   : > { %v5554_v25 = vpack.c.bf16 %v2844_v19, %v2844_v19  ;;  %v2845_v26 = vmax.f32 %v1978_v20, 0.0  ;;  %6174 = vmatmul.mubr.msk.bf16.gmra.mrb[12].mxu0 %vm1202_vm1, %v6698_v13  ;;  %v5694_v27 = vpack.c.bf16 %v2984_v22, %v2984_v22  ;;  %v2985_v28 = vmax.f32 %v2538_v23, 0.0  ;;  %6454 = vmatmul.mubr.msk.bf16.gmra.mrb[12].mxu1 %vm1202_vm1, %v6699_v16 }
 0x234   : > { %6177 = vmatprep.mubr.msk.bf16.mxu0 %vm6795_vm0, %v6794_v1  ;;  %6457 = vmatprep.mubr.msk.bf16.mxu1 %vm6795_vm0, %v6794_v1 }
 0x235   : > { %4231 = vst.msk [vmem:[%s7113_s12 + $0x140] sm:$0xf] %vm4150_vm2, %v5554_v25  ;;  %v5555_v29 = vpack.c.bf16 %v2845_v26, %v2845_v26  ;;  %4371 = vst.msk [vmem:[%s7113_s12 + $0x370] sm:$0xf] %vm4150_vm2, %v5694_v27  ;;  %v5695_v30 = vpack.c.bf16 %v2985_v28, %v2985_v28 }
 0x236   : > { %v1982_v31 = vpop.f32.mrb[164].mxu0  ;;  %v2542_v32 = vpop.f32.mrb[164].mxu1 }
 0x237   : > { %4232 = vst.msk [vmem:[%s7113_s12 + $0x144] sm:$0xf] %vm4150_vm2, %v5555_v29  ;;  %v1983_v33 = vadd.f32 %v7793_v6, %v1982_v31  ;;  %v6071_v34 = vpop.f32.mrb[165].mxu0  ;;  %4372 = vst.msk [vmem:[%s7113_s12 + $0x374] sm:$0xf] %vm4150_vm2, %v5695_v30  ;;  %v2543_v36 = vadd.f32 %v7793_v6, %v2542_v32  ;;  %v6351_v37 = vpop.f32.mrb[165].mxu1 }
 0x238   : > { %v1985_v39 = vpop.f32.mrb[166].mxu0  ;;  %v2545_v40 = vpop.f32.mrb[166].mxu1 }
 0x239   : > { %v2846_v41 = vmax.f32 %v1983_v33, 0.0  ;;  %v1986_v42 = vadd.f32 %v7793_v6, %v1985_v39  ;;  %v6072_v43 = vpop.f32.mrb[167].mxu0  ;;  %v2986_v44 = vmax.f32 %v2543_v36, 0.0  ;;  %v2546_v45 = vadd.f32 %v7793_v6, %v2545_v40  ;;  %v6352_v46 = vpop.f32.mrb[167].mxu1 }
 0x23b   : > { %v5556_v47 = vpack.c.bf16 %v2846_v41, %v2846_v41  ;;  %v2847_v48 = vmax.f32 %v1986_v42, 0.0  ;;  %6178 = vmatmul.mubr.msk.bf16.gmra.mrb[16].mxu0 %vm1202_vm1, %v6700_v35  ;;  %v5696_v49 = vpack.c.bf16 %v2986_v44, %v2986_v44  ;;  %v2987_v50 = vmax.f32 %v2546_v45, 0.0  ;;  %6458 = vmatmul.mubr.msk.bf16.gmra.mrb[16].mxu1 %vm1202_vm1, %v6701_v38 }
 0x23c   : > { %6181 = vmatprep.mubr.msk.bf16.mxu0 %vm6795_vm0, %v6794_v1 }
 0x23d   : > { %4233 = vst.msk [vmem:[%s7113_s12 + $0x148] sm:$0xf] %vm4150_vm2, %v5556_v47  ;;  %v5557_v51 = vpack.c.bf16 %v2847_v48, %v2847_v48  ;;  %4373 = vst.msk [vmem:[%s7113_s12 + $0x378] sm:$0xf] %vm4150_vm2, %v5696_v49  ;;  %v5697_v52 = vpack.c.bf16 %v2987_v50, %v2987_v50 }
 0x23e   : > { %v1990_v53 = vpop.f32.mrb[168].mxu0  ;;  %v2550_v54 = vpop.f32.mrb[168].mxu1 }
 0x23f   : > { %4234 = vst.msk [vmem:[%s7113_s12 + $0x14c] sm:$0xf] %vm4150_vm2, %v5557_v51  ;;  %v1991_v55 = vadd.f32 %v7793_v6, %v1990_v53  ;;  %v6075_v56 = vpop.f32.mrb[169].mxu0  ;;  %4374 = vst.msk [vmem:[%s7113_s12 + $0x37c] sm:$0xf] %vm4150_vm2, %v5697_v52  ;;  %v2551_v58 = vadd.f32 %v7793_v6, %v2550_v54  ;;  %v6355_v1 = vpop.f32.mrb[169].mxu1 }
 0x240   : > { %v1993_v59 = vpop.f32.mrb[170].mxu0  ;;  %v2553_v60 = vpop.f32.mrb[170].mxu1 }
 0x241   : > { %v2848_v61 = vmax.f32 %v1991_v55, 0.0  ;;  %v1994_v62 = vadd.f32 %v7793_v6, %v1993_v59  ;;  %v6076_v0 = vpop.f32.mrb[171].mxu0  ;;  %v2988_v2 = vmax.f32 %v2551_v58, 0.0  ;;  %v2554_v3 = vadd.f32 %v7793_v6, %v2553_v60  ;;  %v6356_v4 = vpop.f32.mrb[171].mxu1 }
 0x243   : > { %v5558_v5 = vpack.c.bf16 %v2848_v61, %v2848_v61  ;;  %v2849_v7 = vmax.f32 %v1994_v62, 0.0  ;;  %6182 = vmatmul.mubr.msk.bf16.gmra.mrb[20].mxu0 %vm1202_vm1, %v6702_v57  ;;  %v5698_v8 = vpack.c.bf16 %v2988_v2, %v2988_v2  ;;  %v2989_v9 = vmax.f32 %v2554_v3, 0.0 }
 0x245   : > { %4235 = vst.msk [vmem:[%s7113_s12 + $0x150] sm:$0xf] %vm4150_vm2, %v5558_v5  ;;  %v5559_v10 = vpack.c.bf16 %v2849_v7, %v2849_v7  ;;  %4375 = vst.msk [vmem:[%s7113_s12 + $0x380] sm:$0xf] %vm4150_vm2, %v5698_v8  ;;  %v5699_v11 = vpack.c.bf16 %v2989_v9, %v2989_v9 }
 0x246   : > { %v1998_v12 = vpop.f32.mrb[172].mxu0  ;;  %v2558_v63 = vpop.f32.mrb[172].mxu1 }
 0x247   : > { %4236 = vst.msk [vmem:[%s7113_s12 + $0x154] sm:$0xf] %vm4150_vm2, %v5559_v10  ;;  %v1999_v13 = vadd.f32 %v7793_v6, %v1998_v12  ;;  %v6079_v14 = vpop.f32.mrb[173].mxu0  ;;  %4376 = vst.msk [vmem:[%s7113_s12 + $0x384] sm:$0xf] %vm4150_vm2, %v5699_v11  ;;  %v2559_v15 = vadd.f32 %v7793_v6, %v2558_v63  ;;  %v6359_v16 = vpop.f32.mrb[173].mxu1 }
 0x248   : > { %v2001_v17 = vpop.f32.mrb[174].mxu0  ;;  %v2561_v18 = vpop.f32.mrb[174].mxu1 }
 0x249   : > { %v2850_v19 = vmax.f32 %v1999_v13, 0.0  ;;  %v2002_v20 = vadd.f32 %v7793_v6, %v2001_v17  ;;  %v6080_v21 = vpop.f32.mrb[175].mxu0  ;;  %v2990_v22 = vmax.f32 %v2559_v15, 0.0  ;;  %v2562_v23 = vadd.f32 %v7793_v6, %v2561_v18  ;;  %v6360_v24 = vpop.f32.mrb[175].mxu1 }
 0x24b   : > { %v5560_v25 = vpack.c.bf16 %v2850_v19, %v2850_v19  ;;  %v2851_v26 = vmax.f32 %v2002_v20, 0.0  ;;  %v5700_v27 = vpack.c.bf16 %v2990_v22, %v2990_v22  ;;  %v2991_v28 = vmax.f32 %v2562_v23, 0.0 }
 0x24d   : > { %4237 = vst.msk [vmem:[%s7113_s12 + $0x158] sm:$0xf] %vm4150_vm2, %v5560_v25  ;;  %v5561_v29 = vpack.c.bf16 %v2851_v26, %v2851_v26  ;;  %4377 = vst.msk [vmem:[%s7113_s12 + $0x388] sm:$0xf] %vm4150_vm2, %v5700_v27  ;;  %v5701_v30 = vpack.c.bf16 %v2991_v28, %v2991_v28 }
 0x24e   : > { %v2006_v31 = vpop.f32.mrb[176].mxu0  ;;  %v2566_v32 = vpop.f32.mrb[176].mxu1 }
 0x24f   : > { %4238 = vst.msk [vmem:[%s7113_s12 + $0x15c] sm:$0xf] %vm4150_vm2, %v5561_v29  ;;  %v2007_v33 = vadd.f32 %v7793_v6, %v2006_v31  ;;  %v6083_v34 = vpop.f32.mrb[177].mxu0  ;;  %4378 = vst.msk [vmem:[%s7113_s12 + $0x38c] sm:$0xf] %vm4150_vm2, %v5701_v30  ;;  %v2567_v35 = vadd.f32 %v7793_v6, %v2566_v32  ;;  %v6363_v36 = vpop.f32.mrb[177].mxu1 }
 0x250   : > { %v2009_v37 = vpop.f32.mrb[178].mxu0  ;;  %v2569_v38 = vpop.f32.mrb[178].mxu1 }
 0x251   : > { %v2852_v39 = vmax.f32 %v2007_v33, 0.0  ;;  %v2010_v40 = vadd.f32 %v7793_v6, %v2009_v37  ;;  %v6084_v41 = vpop.f32.mrb[179].mxu0  ;;  %v2992_v42 = vmax.f32 %v2567_v35, 0.0  ;;  %v2570_v43 = vadd.f32 %v7793_v6, %v2569_v38  ;;  %v6364_v44 = vpop.f32.mrb[179].mxu1 }
 0x253   : > { %v5562_v45 = vpack.c.bf16 %v2852_v39, %v2852_v39  ;;  %v2853_v46 = vmax.f32 %v2010_v40, 0.0  ;;  %v5702_v47 = vpack.c.bf16 %v2992_v42, %v2992_v42  ;;  %v2993_v48 = vmax.f32 %v2570_v43, 0.0 }
 0x255   : > { %4239 = vst.msk [vmem:[%s7113_s12 + $0x160] sm:$0xf] %vm4150_vm2, %v5562_v45  ;;  %v5563_v49 = vpack.c.bf16 %v2853_v46, %v2853_v46  ;;  %4379 = vst.msk [vmem:[%s7113_s12 + $0x390] sm:$0xf] %vm4150_vm2, %v5702_v47  ;;  %v5703_v50 = vpack.c.bf16 %v2993_v48, %v2993_v48 }
 0x256   : > { %v2014_v51 = vpop.f32.mrb[180].mxu0  ;;  %v2574_v52 = vpop.f32.mrb[180].mxu1 }
 0x257   : > { %4240 = vst.msk [vmem:[%s7113_s12 + $0x164] sm:$0xf] %vm4150_vm2, %v5563_v49  ;;  %v2015_v53 = vadd.f32 %v7793_v6, %v2014_v51  ;;  %v6087_v54 = vpop.f32.mrb[181].mxu0  ;;  %4380 = vst.msk [vmem:[%s7113_s12 + $0x394] sm:$0xf] %vm4150_vm2, %v5703_v50  ;;  %v2575_v55 = vadd.f32 %v7793_v6, %v2574_v52  ;;  %v6367_v56 = vpop.f32.mrb[181].mxu1 }
 0x258   : > { %v2017_v57 = vpop.f32.mrb[182].mxu0  ;;  %v2577_v58 = vpop.f32.mrb[182].mxu1 }
 0x259   : > { %v2854_v1 = vmax.f32 %v2015_v53, 0.0  ;;  %v2018_v59 = vadd.f32 %v7793_v6, %v2017_v57  ;;  %v6088_v60 = vpop.f32.mrb[183].mxu0  ;;  %v2994_v61 = vmax.f32 %v2575_v55, 0.0  ;;  %v2578_v62 = vadd.f32 %v7793_v6, %v2577_v58  ;;  %v6368_v0 = vpop.f32.mrb[183].mxu1 }
 0x25b   : > { %v5564_v2 = vpack.c.bf16 %v2854_v1, %v2854_v1  ;;  %v2855_v3 = vmax.f32 %v2018_v59, 0.0  ;;  %v5704_v4 = vpack.c.bf16 %v2994_v61, %v2994_v61  ;;  %v2995_v5 = vmax.f32 %v2578_v62, 0.0 }
 0x25d   : > { %4241 = vst.msk [vmem:[%s7113_s12 + $0x168] sm:$0xf] %vm4150_vm2, %v5564_v2  ;;  %v5565_v7 = vpack.c.bf16 %v2855_v3, %v2855_v3  ;;  %4381 = vst.msk [vmem:[%s7113_s12 + $0x398] sm:$0xf] %vm4150_vm2, %v5704_v4  ;;  %v5705_v8 = vpack.c.bf16 %v2995_v5, %v2995_v5 }
 0x25e   : > { %v2022_v9 = vpop.f32.mrb[184].mxu0  ;;  %v2582_v10 = vpop.f32.mrb[184].mxu1 }
 0x25f   : > { %4242 = vst.msk [vmem:[%s7113_s12 + $0x16c] sm:$0xf] %vm4150_vm2, %v5565_v7  ;;  %v2023_v11 = vadd.f32 %v7793_v6, %v2022_v9  ;;  %v6091_v12 = vpop.f32.mrb[185].mxu0  ;;  %4382 = vst.msk [vmem:[%s7113_s12 + $0x39c] sm:$0xf] %vm4150_vm2, %v5705_v8  ;;  %v2583_v63 = vadd.f32 %v7793_v6, %v2582_v10  ;;  %v6371_v13 = vpop.f32.mrb[185].mxu1 }
 0x260   : > { %v2025_v14 = vpop.f32.mrb[186].mxu0  ;;  %v2585_v15 = vpop.f32.mrb[186].mxu1 }
 0x261   : > { %v2856_v16 = vmax.f32 %v2023_v11, 0.0  ;;  %v2026_v17 = vadd.f32 %v7793_v6, %v2025_v14  ;;  %v6092_v18 = vpop.f32.mrb[187].mxu0  ;;  %v2996_v19 = vmax.f32 %v2583_v63, 0.0  ;;  %v2586_v20 = vadd.f32 %v7793_v6, %v2585_v15  ;;  %v6372_v21 = vpop.f32.mrb[187].mxu1 }
 0x263   : > { %v5566_v22 = vpack.c.bf16 %v2856_v16, %v2856_v16  ;;  %v2857_v23 = vmax.f32 %v2026_v17, 0.0  ;;  %v5706_v24 = vpack.c.bf16 %v2996_v19, %v2996_v19  ;;  %v2997_v25 = vmax.f32 %v2586_v20, 0.0 }
 0x265   : > { %4243 = vst.msk [vmem:[%s7113_s12 + $0x170] sm:$0xf] %vm4150_vm2, %v5566_v22  ;;  %v5567_v26 = vpack.c.bf16 %v2857_v23, %v2857_v23  ;;  %4383 = vst.msk [vmem:[%s7113_s12 + $0x3a0] sm:$0xf] %vm4150_vm2, %v5706_v24  ;;  %v5707_v27 = vpack.c.bf16 %v2997_v25, %v2997_v25 }
 0x266   : > { %v2030_v28 = vpop.f32.mrb[188].mxu0  ;;  %v2590_v29 = vpop.f32.mrb[188].mxu1 }
 0x267   : > { %4244 = vst.msk [vmem:[%s7113_s12 + $0x174] sm:$0xf] %vm4150_vm2, %v5567_v26  ;;  %v2031_v30 = vadd.f32 %v7793_v6, %v2030_v28  ;;  %v6095_v31 = vpop.f32.mrb[189].mxu0  ;;  %4384 = vst.msk [vmem:[%s7113_s12 + $0x3a4] sm:$0xf] %vm4150_vm2, %v5707_v27  ;;  %v2591_v32 = vadd.f32 %v7793_v6, %v2590_v29  ;;  %v6375_v33 = vpop.f32.mrb[189].mxu1 }
 0x268   : > { %v2033_v34 = vpop.f32.mrb[190].mxu0  ;;  %v2593_v35 = vpop.f32.mrb[190].mxu1 }
 0x269   : > { %v2858_v36 = vmax.f32 %v2031_v30, 0.0  ;;  %v2034_v37 = vadd.f32 %v7793_v6, %v2033_v34  ;;  %v6096_v38 = vpop.f32.mrb[191].mxu0  ;;  %v2998_v39 = vmax.f32 %v2591_v32, 0.0  ;;  %v2594_v40 = vadd.f32 %v7793_v6, %v2593_v35  ;;  %v6376_v41 = vpop.f32.mrb[191].mxu1 }
 0x26b   : > { %v5568_v42 = vpack.c.bf16 %v2858_v36, %v2858_v36  ;;  %v2859_v43 = vmax.f32 %v2034_v37, 0.0  ;;  %v5708_v44 = vpack.c.bf16 %v2998_v39, %v2998_v39  ;;  %v2999_v45 = vmax.f32 %v2594_v40, 0.0 }
 0x26d   : > { %4245 = vst.msk [vmem:[%s7113_s12 + $0x178] sm:$0xf] %vm4150_vm2, %v5568_v42  ;;  %v5569_v46 = vpack.c.bf16 %v2859_v43, %v2859_v43  ;;  %4385 = vst.msk [vmem:[%s7113_s12 + $0x3a8] sm:$0xf] %vm4150_vm2, %v5708_v44  ;;  %v5709_v47 = vpack.c.bf16 %v2999_v45, %v2999_v45 }
 0x26e   : > { %v2038_v48 = vpop.f32.mrb[192].mxu0  ;;  %v2598_v49 = vpop.f32.mrb[192].mxu1 }
 0x26f   : > { %4246 = vst.msk [vmem:[%s7113_s12 + $0x17c] sm:$0xf] %vm4150_vm2, %v5569_v46  ;;  %v2039_v50 = vadd.f32 %v7793_v6, %v2038_v48  ;;  %v6099_v51 = vpop.f32.mrb[193].mxu0  ;;  %4386 = vst.msk [vmem:[%s7113_s12 + $0x3ac] sm:$0xf] %vm4150_vm2, %v5709_v47  ;;  %v2599_v52 = vadd.f32 %v7793_v6, %v2598_v49  ;;  %v6379_v53 = vpop.f32.mrb[193].mxu1 }
 0x270   : > { %v2041_v54 = vpop.f32.mrb[194].mxu0  ;;  %v2601_v55 = vpop.f32.mrb[194].mxu1 }
 0x271   : > { %v2860_v56 = vmax.f32 %v2039_v50, 0.0  ;;  %v2042_v57 = vadd.f32 %v7793_v6, %v2041_v54  ;;  %v6100_v58 = vpop.f32.mrb[195].mxu0  ;;  %v3000_v1 = vmax.f32 %v2599_v52, 0.0  ;;  %v2602_v59 = vadd.f32 %v7793_v6, %v2601_v55  ;;  %v6380_v60 = vpop.f32.mrb[195].mxu1 }
 0x273   : > { %v5570_v61 = vpack.c.bf16 %v2860_v56, %v2860_v56  ;;  %v2861_v62 = vmax.f32 %v2042_v57, 0.0  ;;  %v5710_v0 = vpack.c.bf16 %v3000_v1, %v3000_v1  ;;  %v3001_v2 = vmax.f32 %v2602_v59, 0.0 }
 0x275   : > { %4247 = vst.msk [vmem:[%s7113_s12 + $0x180] sm:$0xf] %vm4150_vm2, %v5570_v61  ;;  %v5571_v3 = vpack.c.bf16 %v2861_v62, %v2861_v62  ;;  %4387 = vst.msk [vmem:[%s7113_s12 + $0x3b0] sm:$0xf] %vm4150_vm2, %v5710_v0  ;;  %v5711_v4 = vpack.c.bf16 %v3001_v2, %v3001_v2 }
 0x276   : > { %v2046_v5 = vpop.f32.mrb[196].mxu0  ;;  %v2606_v7 = vpop.f32.mrb[196].mxu1 }
 0x277   : > { %4248 = vst.msk [vmem:[%s7113_s12 + $0x184] sm:$0xf] %vm4150_vm2, %v5571_v3  ;;  %v2047_v8 = vadd.f32 %v7793_v6, %v2046_v5  ;;  %v6103_v9 = vpop.f32.mrb[197].mxu0  ;;  %4388 = vst.msk [vmem:[%s7113_s12 + $0x3b4] sm:$0xf] %vm4150_vm2, %v5711_v4  ;;  %v2607_v10 = vadd.f32 %v7793_v6, %v2606_v7  ;;  %v6383_v11 = vpop.f32.mrb[197].mxu1 }
 0x278   : > { %v2049_v12 = vpop.f32.mrb[198].mxu0  ;;  %v2609_v63 = vpop.f32.mrb[198].mxu1 }
 0x279   : > { %v2862_v13 = vmax.f32 %v2047_v8, 0.0  ;;  %v2050_v14 = vadd.f32 %v7793_v6, %v2049_v12  ;;  %v6104_v15 = vpop.f32.mrb[199].mxu0  ;;  %v3002_v16 = vmax.f32 %v2607_v10, 0.0  ;;  %v2610_v17 = vadd.f32 %v7793_v6, %v2609_v63  ;;  %v6384_v18 = vpop.f32.mrb[199].mxu1 }
 0x27b   : > { %v5572_v19 = vpack.c.bf16 %v2862_v13, %v2862_v13  ;;  %v2863_v20 = vmax.f32 %v2050_v14, 0.0  ;;  %v5712_v21 = vpack.c.bf16 %v3002_v16, %v3002_v16  ;;  %v3003_v22 = vmax.f32 %v2610_v17, 0.0 }
 0x27d   : > { %4249 = vst.msk [vmem:[%s7113_s12 + $0x188] sm:$0xf] %vm4150_vm2, %v5572_v19  ;;  %v5573_v23 = vpack.c.bf16 %v2863_v20, %v2863_v20  ;;  %4389 = vst.msk [vmem:[%s7113_s12 + $0x3b8] sm:$0xf] %vm4150_vm2, %v5712_v21  ;;  %v5713_v24 = vpack.c.bf16 %v3003_v22, %v3003_v22 }
 0x27e   : > { %v2054_v25 = vpop.f32.mrb[200].mxu0  ;;  %v2614_v26 = vpop.f32.mrb[200].mxu1 }
 0x27f   : > { %4250 = vst.msk [vmem:[%s7113_s12 + $0x18c] sm:$0xf] %vm4150_vm2, %v5573_v23  ;;  %v2055_v27 = vadd.f32 %v7793_v6, %v2054_v25  ;;  %v6107_v28 = vpop.f32.mrb[201].mxu0  ;;  %4390 = vst.msk [vmem:[%s7113_s12 + $0x3bc] sm:$0xf] %vm4150_vm2, %v5713_v24  ;;  %v2615_v29 = vadd.f32 %v7793_v6, %v2614_v26  ;;  %v6387_v30 = vpop.f32.mrb[201].mxu1 }
 0x280   : > { %v2057_v31 = vpop.f32.mrb[202].mxu0  ;;  %v2617_v32 = vpop.f32.mrb[202].mxu1 }
 0x281   : > { %v2864_v33 = vmax.f32 %v2055_v27, 0.0  ;;  %v2058_v34 = vadd.f32 %v7793_v6, %v2057_v31  ;;  %v6108_v35 = vpop.f32.mrb[203].mxu0  ;;  %v3004_v36 = vmax.f32 %v2615_v29, 0.0  ;;  %v2618_v37 = vadd.f32 %v7793_v6, %v2617_v32  ;;  %v6388_v38 = vpop.f32.mrb[203].mxu1 }
 0x283   : > { %v5574_v39 = vpack.c.bf16 %v2864_v33, %v2864_v33  ;;  %v2865_v40 = vmax.f32 %v2058_v34, 0.0  ;;  %v5714_v41 = vpack.c.bf16 %v3004_v36, %v3004_v36  ;;  %v3005_v42 = vmax.f32 %v2618_v37, 0.0  ;;  %v8091_v34 = vld [vmem:[%s8486_s2] ss:$0 sm:$0xff] }
 0x285   : > { %4251 = vst.msk [vmem:[%s7113_s12 + $0x190] sm:$0xf] %vm4150_vm2, %v5574_v39  ;;  %v5575_v43 = vpack.c.bf16 %v2865_v40, %v2865_v40  ;;  %4391 = vst.msk [vmem:[%s7113_s12 + $0x3c0] sm:$0xf] %vm4150_vm2, %v5714_v41  ;;  %v5715_v44 = vpack.c.bf16 %v3005_v42, %v3005_v42 }
 0x286   : > { %v2062_v45 = vpop.f32.mrb[204].mxu0  ;;  %v2622_v46 = vpop.f32.mrb[204].mxu1 }
 0x287   : > { %4252 = vst.msk [vmem:[%s7113_s12 + $0x194] sm:$0xf] %vm4150_vm2, %v5575_v43  ;;  %v2063_v47 = vadd.f32 %v7793_v6, %v2062_v45  ;;  %v6111_v48 = vpop.f32.mrb[205].mxu0  ;;  %4392 = vst.msk [vmem:[%s7113_s12 + $0x3c4] sm:$0xf] %vm4150_vm2, %v5715_v44  ;;  %v2623_v49 = vadd.f32 %v7793_v6, %v2622_v46  ;;  %v6391_v50 = vpop.f32.mrb[205].mxu1 }
 0x288   : > { %v2065_v51 = vpop.f32.mrb[206].mxu0  ;;  %v2625_v52 = vpop.f32.mrb[206].mxu1 }
 0x289   : > { %v2866_v53 = vmax.f32 %v2063_v47, 0.0  ;;  %v2066_v54 = vadd.f32 %v7793_v6, %v2065_v51  ;;  %v6112_v55 = vpop.f32.mrb[207].mxu0  ;;  %v3006_v56 = vmax.f32 %v2623_v49, 0.0  ;;  %v2626_v57 = vadd.f32 %v7793_v6, %v2625_v52  ;;  %v6392_v58 = vpop.f32.mrb[207].mxu1 }
 0x28b   : > { %v5576_v1 = vpack.c.bf16 %v2866_v53, %v2866_v53  ;;  %v2867_v59 = vmax.f32 %v2066_v54, 0.0  ;;  %v5716_v60 = vpack.c.bf16 %v3006_v56, %v3006_v56  ;;  %v3007_v61 = vmax.f32 %v2626_v57, 0.0 }
 0x28d   : > { %4253 = vst.msk [vmem:[%s7113_s12 + $0x198] sm:$0xf] %vm4150_vm2, %v5576_v1  ;;  %v5577_v62 = vpack.c.bf16 %v2867_v59, %v2867_v59  ;;  %4393 = vst.msk [vmem:[%s7113_s12 + $0x3c8] sm:$0xf] %vm4150_vm2, %v5716_v60  ;;  %v5717_v0 = vpack.c.bf16 %v3007_v61, %v3007_v61 }
 0x28e   : > { %v2070_v2 = vpop.f32.mrb[208].mxu0  ;;  %v2630_v3 = vpop.f32.mrb[208].mxu1 }
 0x28f   : > { %4254 = vst.msk [vmem:[%s7113_s12 + $0x19c] sm:$0xf] %vm4150_vm2, %v5577_v62  ;;  %v2071_v4 = vadd.f32 %v7793_v6, %v2070_v2  ;;  %v6115_v5 = vpop.f32.mrb[209].mxu0  ;;  %4394 = vst.msk [vmem:[%s7113_s12 + $0x3cc] sm:$0xf] %vm4150_vm2, %v5717_v0  ;;  %v2631_v7 = vadd.f32 %v7793_v6, %v2630_v3  ;;  %v6395_v8 = vpop.f32.mrb[209].mxu1 }
 0x290   : > { %v2073_v9 = vpop.f32.mrb[210].mxu0  ;;  %v2633_v10 = vpop.f32.mrb[210].mxu1 }
 0x291   : > { %v2868_v11 = vmax.f32 %v2071_v4, 0.0  ;;  %v2074_v12 = vadd.f32 %v7793_v6, %v2073_v9  ;;  %v6116_v63 = vpop.f32.mrb[211].mxu0  ;;  %v3008_v13 = vmax.f32 %v2631_v7, 0.0  ;;  %v2634_v14 = vadd.f32 %v7793_v6, %v2633_v10  ;;  %v6396_v15 = vpop.f32.mrb[211].mxu1 }
 0x293   : > { %v5578_v16 = vpack.c.bf16 %v2868_v11, %v2868_v11  ;;  %v2869_v17 = vmax.f32 %v2074_v12, 0.0  ;;  %v5718_v18 = vpack.c.bf16 %v3008_v13, %v3008_v13  ;;  %v3009_v19 = vmax.f32 %v2634_v14, 0.0 }
 0x295   : > { %4255 = vst.msk [vmem:[%s7113_s12 + $0x1a0] sm:$0xf] %vm4150_vm2, %v5578_v16  ;;  %v5579_v20 = vpack.c.bf16 %v2869_v17, %v2869_v17  ;;  %4395 = vst.msk [vmem:[%s7113_s12 + $0x3d0] sm:$0xf] %vm4150_vm2, %v5718_v18  ;;  %v5719_v21 = vpack.c.bf16 %v3009_v19, %v3009_v19 }
 0x296   : > { %v2078_v22 = vpop.f32.mrb[212].mxu0  ;;  %v2638_v23 = vpop.f32.mrb[212].mxu1 }
 0x297   : > { %4256 = vst.msk [vmem:[%s7113_s12 + $0x1a4] sm:$0xf] %vm4150_vm2, %v5579_v20  ;;  %v2079_v24 = vadd.f32 %v7793_v6, %v2078_v22  ;;  %v6119_v25 = vpop.f32.mrb[213].mxu0  ;;  %4396 = vst.msk [vmem:[%s7113_s12 + $0x3d4] sm:$0xf] %vm4150_vm2, %v5719_v21  ;;  %v2639_v26 = vadd.f32 %v7793_v6, %v2638_v23  ;;  %v6399_v27 = vpop.f32.mrb[213].mxu1 }
 0x298   : > { %v2081_v28 = vpop.f32.mrb[214].mxu0  ;;  %v2641_v29 = vpop.f32.mrb[214].mxu1 }
 0x299   : > { %v2870_v30 = vmax.f32 %v2079_v24, 0.0  ;;  %v2082_v31 = vadd.f32 %v7793_v6, %v2081_v28  ;;  %v6120_v32 = vpop.f32.mrb[215].mxu0  ;;  %v3010_v33 = vmax.f32 %v2639_v26, 0.0  ;;  %v2642_v35 = vadd.f32 %v8091_v34, %v2641_v29  ;;  %v6400_v36 = vpop.f32.mrb[215].mxu1 }
 0x29b   : > { %v5580_v37 = vpack.c.bf16 %v2870_v30, %v2870_v30  ;;  %v2871_v38 = vmax.f32 %v2082_v31, 0.0  ;;  %v5720_v39 = vpack.c.bf16 %v3010_v33, %v3010_v33  ;;  %v3011_v40 = vmax.f32 %v2642_v35, 0.0 }
 0x29d   : > { %4257 = vst.msk [vmem:[%s7113_s12 + $0x1a8] sm:$0xf] %vm4150_vm2, %v5580_v37  ;;  %v5581_v41 = vpack.c.bf16 %v2871_v38, %v2871_v38  ;;  %4397 = vst.msk [vmem:[%s7113_s12 + $0x3d8] sm:$0xf] %vm4150_vm2, %v5720_v39  ;;  %v5721_v6 = vpack.c.bf16 %v3011_v40, %v3011_v40 }
 0x29e   : > { %v2086_v42 = vpop.f32.mrb[216].mxu0  ;;  %v2646_v43 = vpop.f32.mrb[216].mxu1 }
 0x29f   : > { %4258 = vst.msk [vmem:[%s7113_s12 + $0x1ac] sm:$0xf] %vm4150_vm2, %v5581_v41  ;;  %v2087_v44 = vadd.f32 %v8091_v34, %v2086_v42  ;;  %v6123_v45 = vpop.f32.mrb[217].mxu0  ;;  %4398 = vst.msk [vmem:[%s7113_s12 + $0x3dc] sm:$0xf] %vm4150_vm2, %v5721_v6  ;;  %v2647_v46 = vadd.f32 %v8091_v34, %v2646_v43  ;;  %v6403_v47 = vpop.f32.mrb[217].mxu1 }
 0x2a0   : > { %v2089_v48 = vpop.f32.mrb[218].mxu0  ;;  %v2649_v49 = vpop.f32.mrb[218].mxu1 }
 0x2a1   : > { %v2872_v50 = vmax.f32 %v2087_v44, 0.0  ;;  %v2090_v51 = vadd.f32 %v8091_v34, %v2089_v48  ;;  %v6124_v52 = vpop.f32.mrb[219].mxu0  ;;  %v3012_v53 = vmax.f32 %v2647_v46, 0.0  ;;  %v2650_v54 = vadd.f32 %v8091_v34, %v2649_v49  ;;  %v6404_v55 = vpop.f32.mrb[219].mxu1 }
 0x2a3   : > { %v5582_v56 = vpack.c.bf16 %v2872_v50, %v2872_v50  ;;  %v2873_v57 = vmax.f32 %v2090_v51, 0.0  ;;  %v5722_v58 = vpack.c.bf16 %v3012_v53, %v3012_v53  ;;  %v3013_v1 = vmax.f32 %v2650_v54, 0.0 }
 0x2a5   : > { %4259 = vst.msk [vmem:[%s7113_s12 + $0x1b0] sm:$0xf] %vm4150_vm2, %v5582_v56  ;;  %v5583_v59 = vpack.c.bf16 %v2873_v57, %v2873_v57  ;;  %4399 = vst.msk [vmem:[%s7113_s12 + $0x3e0] sm:$0xf] %vm4150_vm2, %v5722_v58  ;;  %v5723_v60 = vpack.c.bf16 %v3013_v1, %v3013_v1 }
 0x2a6   : > { %v2094_v61 = vpop.f32.mrb[220].mxu0  ;;  %v2654_v62 = vpop.f32.mrb[220].mxu1 }
 0x2a7   : > { %4260 = vst.msk [vmem:[%s7113_s12 + $0x1b4] sm:$0xf] %vm4150_vm2, %v5583_v59  ;;  %v2095_v0 = vadd.f32 %v8091_v34, %v2094_v61  ;;  %v6127_v2 = vpop.f32.mrb[221].mxu0  ;;  %4400 = vst.msk [vmem:[%s7113_s12 + $0x3e4] sm:$0xf] %vm4150_vm2, %v5723_v60  ;;  %v2655_v3 = vadd.f32 %v8091_v34, %v2654_v62  ;;  %v6407_v4 = vpop.f32.mrb[221].mxu1 }
 0x2a8   : > { %v2097_v5 = vpop.f32.mrb[222].mxu0  ;;  %v2657_v7 = vpop.f32.mrb[222].mxu1 }
 0x2a9   : > { %v2874_v8 = vmax.f32 %v2095_v0, 0.0  ;;  %v2098_v9 = vadd.f32 %v8091_v34, %v2097_v5  ;;  %v6128_v10 = vpop.f32.mrb[223].mxu0  ;;  %v3014_v11 = vmax.f32 %v2655_v3, 0.0  ;;  %v2658_v12 = vadd.f32 %v8091_v34, %v2657_v7  ;;  %v6408_v63 = vpop.f32.mrb[223].mxu1 }
 0x2ab   : > { %v5584_v13 = vpack.c.bf16 %v2874_v8, %v2874_v8  ;;  %v2875_v14 = vmax.f32 %v2098_v9, 0.0  ;;  %v5724_v15 = vpack.c.bf16 %v3014_v11, %v3014_v11  ;;  %v3015_v16 = vmax.f32 %v2658_v12, 0.0 }
 0x2ad   : > { %4261 = vst.msk [vmem:[%s7113_s12 + $0x1b8] sm:$0xf] %vm4150_vm2, %v5584_v13  ;;  %v5585_v17 = vpack.c.bf16 %v2875_v14, %v2875_v14  ;;  %4401 = vst.msk [vmem:[%s7113_s12 + $0x3e8] sm:$0xf] %vm4150_vm2, %v5724_v15  ;;  %v5725_v18 = vpack.c.bf16 %v3015_v16, %v3015_v16 }
 0x2ae   : > { %v2102_v19 = vpop.f32.mrb[224].mxu0  ;;  %v2662_v20 = vpop.f32.mrb[224].mxu1 }
 0x2af   : > { %4262 = vst.msk [vmem:[%s7113_s12 + $0x1bc] sm:$0xf] %vm4150_vm2, %v5585_v17  ;;  %v2103_v21 = vadd.f32 %v8091_v34, %v2102_v19  ;;  %v6131_v22 = vpop.f32.mrb[225].mxu0  ;;  %4402 = vst.msk [vmem:[%s7113_s12 + $0x3ec] sm:$0xf] %vm4150_vm2, %v5725_v18  ;;  %v2663_v23 = vadd.f32 %v8091_v34, %v2662_v20  ;;  %v6411_v24 = vpop.f32.mrb[225].mxu1 }
 0x2b0   : > { %v2105_v25 = vpop.f32.mrb[226].mxu0  ;;  %v2665_v26 = vpop.f32.mrb[226].mxu1 }
 0x2b1   : > { %v2876_v27 = vmax.f32 %v2103_v21, 0.0  ;;  %v2106_v28 = vadd.f32 %v8091_v34, %v2105_v25  ;;  %v6132_v29 = vpop.f32.mrb[227].mxu0  ;;  %v3016_v30 = vmax.f32 %v2663_v23, 0.0  ;;  %v2666_v31 = vadd.f32 %v8091_v34, %v2665_v26  ;;  %v6412_v32 = vpop.f32.mrb[227].mxu1 }
 0x2b3   : > { %v5586_v33 = vpack.c.bf16 %v2876_v27, %v2876_v27  ;;  %v2877_v35 = vmax.f32 %v2106_v28, 0.0  ;;  %v5726_v36 = vpack.c.bf16 %v3016_v30, %v3016_v30  ;;  %v3017_v37 = vmax.f32 %v2666_v31, 0.0 }
 0x2b5   : > { %4263 = vst.msk [vmem:[%s7113_s12 + $0x1c0] sm:$0xf] %vm4150_vm2, %v5586_v33  ;;  %v5587_v38 = vpack.c.bf16 %v2877_v35, %v2877_v35  ;;  %4403 = vst.msk [vmem:[%s7113_s12 + $0x3f0] sm:$0xf] %vm4150_vm2, %v5726_v36  ;;  %v5727_v39 = vpack.c.bf16 %v3017_v37, %v3017_v37 }
 0x2b6   : > { %v2110_v40 = vpop.f32.mrb[228].mxu0  ;;  %v2670_v41 = vpop.f32.mrb[228].mxu1 }
 0x2b7   : > { %4264 = vst.msk [vmem:[%s7113_s12 + $0x1c4] sm:$0xf] %vm4150_vm2, %v5587_v38  ;;  %v2111_v6 = vadd.f32 %v8091_v34, %v2110_v40  ;;  %v6135_v42 = vpop.f32.mrb[229].mxu0  ;;  %4404 = vst.msk [vmem:[%s7113_s12 + $0x3f4] sm:$0xf] %vm4150_vm2, %v5727_v39  ;;  %v2671_v43 = vadd.f32 %v8091_v34, %v2670_v41  ;;  %v6415_v44 = vpop.f32.mrb[229].mxu1 }
 0x2b8   : > { %v2113_v45 = vpop.f32.mrb[230].mxu0  ;;  %v2673_v46 = vpop.f32.mrb[230].mxu1 }
 0x2b9   : > { %v2878_v47 = vmax.f32 %v2111_v6, 0.0  ;;  %v2114_v48 = vadd.f32 %v8091_v34, %v2113_v45  ;;  %v6136_v49 = vpop.f32.mrb[231].mxu0  ;;  %v3018_v50 = vmax.f32 %v2671_v43, 0.0  ;;  %v2674_v51 = vadd.f32 %v8091_v34, %v2673_v46  ;;  %v6416_v52 = vpop.f32.mrb[231].mxu1 }
 0x2bb   : > { %v5588_v53 = vpack.c.bf16 %v2878_v47, %v2878_v47  ;;  %v2879_v54 = vmax.f32 %v2114_v48, 0.0  ;;  %v5728_v55 = vpack.c.bf16 %v3018_v50, %v3018_v50  ;;  %v3019_v56 = vmax.f32 %v2674_v51, 0.0 }
 0x2bd   : > { %4265 = vst.msk [vmem:[%s7113_s12 + $0x1c8] sm:$0xf] %vm4150_vm2, %v5588_v53  ;;  %v5589_v57 = vpack.c.bf16 %v2879_v54, %v2879_v54  ;;  %4405 = vst.msk [vmem:[%s7113_s12 + $0x3f8] sm:$0xf] %vm4150_vm2, %v5728_v55  ;;  %v5729_v58 = vpack.c.bf16 %v3019_v56, %v3019_v56 }
 0x2be   : > { %v2118_v1 = vpop.f32.mrb[232].mxu0  ;;  %v2678_v59 = vpop.f32.mrb[232].mxu1 }
 0x2bf   : > { %4266 = vst.msk [vmem:[%s7113_s12 + $0x1cc] sm:$0xf] %vm4150_vm2, %v5589_v57  ;;  %v2119_v60 = vadd.f32 %v8091_v34, %v2118_v1  ;;  %v6139_v61 = vpop.f32.mrb[233].mxu0  ;;  %4406 = vst.msk [vmem:[%s7113_s12 + $0x3fc] sm:$0xf] %vm4150_vm2, %v5729_v58  ;;  %v2679_v62 = vadd.f32 %v8091_v34, %v2678_v59  ;;  %v6419_v0 = vpop.f32.mrb[233].mxu1 }
 0x2c0   : > { %v2121_v2 = vpop.f32.mrb[234].mxu0  ;;  %v2681_v3 = vpop.f32.mrb[234].mxu1 }
 0x2c1   : > { %v2880_v4 = vmax.f32 %v2119_v60, 0.0  ;;  %v2122_v5 = vadd.f32 %v8091_v34, %v2121_v2  ;;  %v6140_v7 = vpop.f32.mrb[235].mxu0  ;;  %v3020_v8 = vmax.f32 %v2679_v62, 0.0  ;;  %v2682_v9 = vadd.f32 %v8091_v34, %v2681_v3  ;;  %v6420_v10 = vpop.f32.mrb[235].mxu1 }
 0x2c3   : > { %v5590_v11 = vpack.c.bf16 %v2880_v4, %v2880_v4  ;;  %v2881_v12 = vmax.f32 %v2122_v5, 0.0  ;;  %v5730_v63 = vpack.c.bf16 %v3020_v8, %v3020_v8  ;;  %v3021_v13 = vmax.f32 %v2682_v9, 0.0 }
 0x2c5   : > { %4267 = vst.msk [vmem:[%s7113_s12 + $0x1d0] sm:$0xf] %vm4150_vm2, %v5590_v11  ;;  %v5591_v14 = vpack.c.bf16 %v2881_v12, %v2881_v12  ;;  %4407 = vst.msk [vmem:[%s7113_s12 + $0x400] sm:$0xf] %vm4150_vm2, %v5730_v63  ;;  %v5731_v15 = vpack.c.bf16 %v3021_v13, %v3021_v13 }
 0x2c6   : > { %v2126_v16 = vpop.f32.mrb[236].mxu0  ;;  %v2686_v17 = vpop.f32.mrb[236].mxu1 }
 0x2c7   : > { %4268 = vst.msk [vmem:[%s7113_s12 + $0x1d4] sm:$0xf] %vm4150_vm2, %v5591_v14  ;;  %v2127_v18 = vadd.f32 %v8091_v34, %v2126_v16  ;;  %v6143_v19 = vpop.f32.mrb[237].mxu0  ;;  %4408 = vst.msk [vmem:[%s7113_s12 + $0x404] sm:$0xf] %vm4150_vm2, %v5731_v15  ;;  %v2687_v20 = vadd.f32 %v8091_v34, %v2686_v17  ;;  %v6423_v21 = vpop.f32.mrb[237].mxu1 }
 0x2c8   : > { %v2129_v22 = vpop.f32.mrb[238].mxu0  ;;  %v2689_v23 = vpop.f32.mrb[238].mxu1 }
 0x2c9   : > { %v2882_v24 = vmax.f32 %v2127_v18, 0.0  ;;  %v2130_v25 = vadd.f32 %v8091_v34, %v2129_v22  ;;  %v6144_v26 = vpop.f32.mrb[239].mxu0  ;;  %v3022_v27 = vmax.f32 %v2687_v20, 0.0  ;;  %v2690_v28 = vadd.f32 %v8091_v34, %v2689_v23  ;;  %v6424_v29 = vpop.f32.mrb[239].mxu1 }
 0x2cb   : > { %v5592_v30 = vpack.c.bf16 %v2882_v24, %v2882_v24  ;;  %v2883_v31 = vmax.f32 %v2130_v25, 0.0  ;;  %v5732_v32 = vpack.c.bf16 %v3022_v27, %v3022_v27  ;;  %v3023_v33 = vmax.f32 %v2690_v28, 0.0 }
 0x2cd   : > { %4269 = vst.msk [vmem:[%s7113_s12 + $0x1d8] sm:$0xf] %vm4150_vm2, %v5592_v30  ;;  %v5593_v35 = vpack.c.bf16 %v2883_v31, %v2883_v31  ;;  %4409 = vst.msk [vmem:[%s7113_s12 + $0x408] sm:$0xf] %vm4150_vm2, %v5732_v32  ;;  %v5733_v36 = vpack.c.bf16 %v3023_v33, %v3023_v33 }
 0x2ce   : > { %v2134_v37 = vpop.f32.mrb[240].mxu0  ;;  %v2694_v38 = vpop.f32.mrb[240].mxu1 }
 0x2cf   : > { %4270 = vst.msk [vmem:[%s7113_s12 + $0x1dc] sm:$0xf] %vm4150_vm2, %v5593_v35  ;;  %v2135_v39 = vadd.f32 %v8091_v34, %v2134_v37  ;;  %v6147_v40 = vpop.f32.mrb[241].mxu0  ;;  %4410 = vst.msk [vmem:[%s7113_s12 + $0x40c] sm:$0xf] %vm4150_vm2, %v5733_v36  ;;  %v2695_v41 = vadd.f32 %v8091_v34, %v2694_v38  ;;  %v6427_v6 = vpop.f32.mrb[241].mxu1 }
 0x2d0   : > { %v2137_v42 = vpop.f32.mrb[242].mxu0  ;;  %v2697_v43 = vpop.f32.mrb[242].mxu1 }
 0x2d1   : > { %v2884_v44 = vmax.f32 %v2135_v39, 0.0  ;;  %v2138_v45 = vadd.f32 %v8091_v34, %v2137_v42  ;;  %v6148_v46 = vpop.f32.mrb[243].mxu0  ;;  %v3024_v47 = vmax.f32 %v2695_v41, 0.0  ;;  %v2698_v48 = vadd.f32 %v8091_v34, %v2697_v43  ;;  %v6428_v49 = vpop.f32.mrb[243].mxu1 }
 0x2d3   : > { %v5594_v50 = vpack.c.bf16 %v2884_v44, %v2884_v44  ;;  %v2885_v51 = vmax.f32 %v2138_v45, 0.0  ;;  %v5734_v52 = vpack.c.bf16 %v3024_v47, %v3024_v47  ;;  %v3025_v53 = vmax.f32 %v2698_v48, 0.0 }
 0x2d5   : > { %4271 = vst.msk [vmem:[%s7113_s12 + $0x1e0] sm:$0xf] %vm4150_vm2, %v5594_v50  ;;  %v5595_v54 = vpack.c.bf16 %v2885_v51, %v2885_v51  ;;  %4411 = vst.msk [vmem:[%s7113_s12 + $0x410] sm:$0xf] %vm4150_vm2, %v5734_v52  ;;  %v5735_v55 = vpack.c.bf16 %v3025_v53, %v3025_v53 }
 0x2d6   : > { %v2142_v56 = vpop.f32.mrb[244].mxu0  ;;  %v2702_v57 = vpop.f32.mrb[244].mxu1 }
 0x2d7   : > { %4272 = vst.msk [vmem:[%s7113_s12 + $0x1e4] sm:$0xf] %vm4150_vm2, %v5595_v54  ;;  %v2143_v58 = vadd.f32 %v8091_v34, %v2142_v56  ;;  %v6151_v1 = vpop.f32.mrb[245].mxu0  ;;  %4412 = vst.msk [vmem:[%s7113_s12 + $0x414] sm:$0xf] %vm4150_vm2, %v5735_v55  ;;  %v2703_v59 = vadd.f32 %v8091_v34, %v2702_v57  ;;  %v6431_v60 = vpop.f32.mrb[245].mxu1 }
 0x2d8   : > { %v2145_v61 = vpop.f32.mrb[246].mxu0  ;;  %v2705_v62 = vpop.f32.mrb[246].mxu1 }
 0x2d9   : > { %v2886_v0 = vmax.f32 %v2143_v58, 0.0  ;;  %v2146_v2 = vadd.f32 %v8091_v34, %v2145_v61  ;;  %v6152_v3 = vpop.f32.mrb[247].mxu0  ;;  %v3026_v4 = vmax.f32 %v2703_v59, 0.0  ;;  %v2706_v5 = vadd.f32 %v8091_v34, %v2705_v62  ;;  %v6432_v7 = vpop.f32.mrb[247].mxu1 }
 0x2db   : > { %v5596_v8 = vpack.c.bf16 %v2886_v0, %v2886_v0  ;;  %v2887_v9 = vmax.f32 %v2146_v2, 0.0  ;;  %v5736_v10 = vpack.c.bf16 %v3026_v4, %v3026_v4  ;;  %v3027_v11 = vmax.f32 %v2706_v5, 0.0 }
 0x2dd   : > { %4273 = vst.msk [vmem:[%s7113_s12 + $0x1e8] sm:$0xf] %vm4150_vm2, %v5596_v8  ;;  %v5597_v12 = vpack.c.bf16 %v2887_v9, %v2887_v9  ;;  %4413 = vst.msk [vmem:[%s7113_s12 + $0x418] sm:$0xf] %vm4150_vm2, %v5736_v10  ;;  %v5737_v63 = vpack.c.bf16 %v3027_v11, %v3027_v11 }
 0x2de   : > { %v2150_v13 = vpop.f32.mrb[248].mxu0  ;;  %v2710_v14 = vpop.f32.mrb[248].mxu1 }
 0x2df   : > { %4274 = vst.msk [vmem:[%s7113_s12 + $0x1ec] sm:$0xf] %vm4150_vm2, %v5597_v12  ;;  %v2151_v15 = vadd.f32 %v8091_v34, %v2150_v13  ;;  %v6155_v16 = vpop.f32.mrb[249].mxu0  ;;  %4414 = vst.msk [vmem:[%s7113_s12 + $0x41c] sm:$0xf] %vm4150_vm2, %v5737_v63  ;;  %v2711_v17 = vadd.f32 %v8091_v34, %v2710_v14  ;;  %v6435_v18 = vpop.f32.mrb[249].mxu1 }
 0x2e0   : > { %v2153_v19 = vpop.f32.mrb[250].mxu0  ;;  %v2713_v20 = vpop.f32.mrb[250].mxu1 }
 0x2e1   : > { %v2888_v21 = vmax.f32 %v2151_v15, 0.0  ;;  %v2154_v22 = vadd.f32 %v8091_v34, %v2153_v19  ;;  %v6156_v23 = vpop.f32.mrb[251].mxu0  ;;  %v3028_v24 = vmax.f32 %v2711_v17, 0.0  ;;  %v2714_v25 = vadd.f32 %v8091_v34, %v2713_v20  ;;  %v6436_v26 = vpop.f32.mrb[251].mxu1 }
 0x2e3   : > { %v5598_v27 = vpack.c.bf16 %v2888_v21, %v2888_v21  ;;  %v2889_v28 = vmax.f32 %v2154_v22, 0.0  ;;  %v5738_v29 = vpack.c.bf16 %v3028_v24, %v3028_v24  ;;  %v3029_v30 = vmax.f32 %v2714_v25, 0.0 }
 0x2e5   : > { %4275 = vst.msk [vmem:[%s7113_s12 + $0x1f0] sm:$0xf] %vm4150_vm2, %v5598_v27  ;;  %v5599_v31 = vpack.c.bf16 %v2889_v28, %v2889_v28  ;;  %4415 = vst.msk [vmem:[%s7113_s12 + $0x420] sm:$0xf] %vm4150_vm2, %v5738_v29  ;;  %v5739_v32 = vpack.c.bf16 %v3029_v30, %v3029_v30 }
 0x2e6   : > { %v2158_v33 = vpop.f32.mrb[252].mxu0  ;;  %v2718_v35 = vpop.f32.mrb[252].mxu1 }
 0x2e7   : > { %4276 = vst.msk [vmem:[%s7113_s12 + $0x1f4] sm:$0xf] %vm4150_vm2, %v5599_v31  ;;  %v2159_v36 = vadd.f32 %v8091_v34, %v2158_v33  ;;  %v6159_v37 = vpop.f32.mrb[253].mxu0  ;;  %4416 = vst.msk [vmem:[%s7113_s12 + $0x424] sm:$0xf] %vm4150_vm2, %v5739_v32  ;;  %v2719_v38 = vadd.f32 %v8091_v34, %v2718_v35  ;;  %v6439_v39 = vpop.f32.mrb[253].mxu1 }
 0x2e8   : > { %v2161_v40 = vpop.f32.mrb[254].mxu0  ;;  %v2721_v41 = vpop.f32.mrb[254].mxu1 }
 0x2e9   : > { %v2890_v6 = vmax.f32 %v2159_v36, 0.0  ;;  %v2162_v42 = vadd.f32 %v8091_v34, %v2161_v40  ;;  %v6160_v43 = vpop.f32.mrb[255].mxu0  ;;  %v3030_v44 = vmax.f32 %v2719_v38, 0.0  ;;  %v2722_v45 = vadd.f32 %v8091_v34, %v2721_v41  ;;  %v6440_v46 = vpop.f32.mrb[255].mxu1 }
 0x2eb   : > { %v5600_v47 = vpack.c.bf16 %v2890_v6, %v2890_v6  ;;  %v2891_v48 = vmax.f32 %v2162_v42, 0.0  ;;  %v5740_v49 = vpack.c.bf16 %v3030_v44, %v3030_v44  ;;  %v3031_v50 = vmax.f32 %v2722_v45, 0.0 }
 0x2ed   : > { %4277 = vst.msk [vmem:[%s7113_s12 + $0x1f8] sm:$0xf] %vm4150_vm2, %v5600_v47  ;;  %v5601_v51 = vpack.c.bf16 %v2891_v48, %v2891_v48  ;;  %4417 = vst.msk [vmem:[%s7113_s12 + $0x428] sm:$0xf] %vm4150_vm2, %v5740_v49  ;;  %v5741_v52 = vpack.c.bf16 %v3031_v50, %v3031_v50 }
 0x2ee   : > { %v2166_v53 = vpop.f32.mrb[0].mxu0  ;;  %v2726_v54 = vpop.f32.mrb[0].mxu1 }
 0x2ef   : > { %4278 = vst.msk [vmem:[%s7113_s12 + $0x1fc] sm:$0xf] %vm4150_vm2, %v5601_v51  ;;  %v2167_v55 = vadd.f32 %v8091_v34, %v2166_v53  ;;  %v6163_v56 = vpop.f32.mrb[1].mxu0  ;;  %4418 = vst.msk [vmem:[%s7113_s12 + $0x42c] sm:$0xf] %vm4150_vm2, %v5741_v52  ;;  %v2727_v57 = vadd.f32 %v8091_v34, %v2726_v54  ;;  %v6443_v58 = vpop.f32.mrb[1].mxu1 }
 0x2f0   : > { %v2169_v1 = vpop.f32.mrb[2].mxu0  ;;  %v2729_v59 = vpop.f32.mrb[2].mxu1 }
 0x2f1   : > { %v2892_v60 = vmax.f32 %v2167_v55, 0.0  ;;  %v2170_v61 = vadd.f32 %v8091_v34, %v2169_v1  ;;  %v6164_v62 = vpop.f32.mrb[3].mxu0  ;;  %v3032_v0 = vmax.f32 %v2727_v57, 0.0  ;;  %v2730_v2 = vadd.f32 %v8091_v34, %v2729_v59  ;;  %v6444_v3 = vpop.f32.mrb[3].mxu1 }
 0x2f3   : > { %v5602_v4 = vpack.c.bf16 %v2892_v60, %v2892_v60  ;;  %v2893_v5 = vmax.f32 %v2170_v61, 0.0  ;;  %v5742_v7 = vpack.c.bf16 %v3032_v0, %v3032_v0  ;;  %v3033_v8 = vmax.f32 %v2730_v2, 0.0 }
 0x2f5   : > { %4279 = vst.msk [vmem:[%s7113_s12 + $0x200] sm:$0xf] %vm4150_vm2, %v5602_v4  ;;  %v5603_v9 = vpack.c.bf16 %v2893_v5, %v2893_v5  ;;  %4419 = vst.msk [vmem:[%s7113_s12 + $0x430] sm:$0xf] %vm4150_vm2, %v5742_v7  ;;  %v5743_v10 = vpack.c.bf16 %v3033_v8, %v3033_v8 }
 0x2f6   : > { %v2174_v11 = vpop.f32.mrb[4].mxu0  ;;  %v2734_v12 = vpop.f32.mrb[4].mxu1 }
 0x2f7   : > { %4280 = vst.msk [vmem:[%s7113_s12 + $0x204] sm:$0xf] %vm4150_vm2, %v5603_v9  ;;  %v2175_v63 = vadd.f32 %v8091_v34, %v2174_v11  ;;  %v6167_v13 = vpop.f32.mrb[5].mxu0  ;;  %4420 = vst.msk [vmem:[%s7113_s12 + $0x434] sm:$0xf] %vm4150_vm2, %v5743_v10  ;;  %v2735_v14 = vadd.f32 %v8091_v34, %v2734_v12  ;;  %v6447_v15 = vpop.f32.mrb[5].mxu1 }
 0x2f8   : > { %v2177_v16 = vpop.f32.mrb[6].mxu0  ;;  %v2737_v17 = vpop.f32.mrb[6].mxu1 }
 0x2f9   : > { %v2894_v18 = vmax.f32 %v2175_v63, 0.0  ;;  %v2178_v19 = vadd.f32 %v8091_v34, %v2177_v16  ;;  %v6168_v20 = vpop.f32.mrb[7].mxu0  ;;  %v3034_v21 = vmax.f32 %v2735_v14, 0.0  ;;  %v2738_v22 = vadd.f32 %v8091_v34, %v2737_v17  ;;  %v6448_v23 = vpop.f32.mrb[7].mxu1 }
 0x2fb   : > { %v5604_v24 = vpack.c.bf16 %v2894_v18, %v2894_v18  ;;  %v2895_v25 = vmax.f32 %v2178_v19, 0.0  ;;  %v5744_v26 = vpack.c.bf16 %v3034_v21, %v3034_v21  ;;  %v3035_v27 = vmax.f32 %v2738_v22, 0.0 }
 0x2fd   : > { %4281 = vst.msk [vmem:[%s7113_s12 + $0x208] sm:$0xf] %vm4150_vm2, %v5604_v24  ;;  %v5605_v28 = vpack.c.bf16 %v2895_v25, %v2895_v25  ;;  %4421 = vst.msk [vmem:[%s7113_s12 + $0x438] sm:$0xf] %vm4150_vm2, %v5744_v26  ;;  %v5745_v29 = vpack.c.bf16 %v3035_v27, %v3035_v27 }
 0x2fe   : > { %v2182_v30 = vpop.f32.mrb[8].mxu0  ;;  %v2742_v31 = vpop.f32.mrb[8].mxu1 }
 0x2ff   : > { %4282 = vst.msk [vmem:[%s7113_s12 + $0x20c] sm:$0xf] %vm4150_vm2, %v5605_v28  ;;  %v2183_v32 = vadd.f32 %v8091_v34, %v2182_v30  ;;  %v6171_v33 = vpop.f32.mrb[9].mxu0  ;;  %4422 = vst.msk [vmem:[%s7113_s12 + $0x43c] sm:$0xf] %vm4150_vm2, %v5745_v29  ;;  %v2743_v35 = vadd.f32 %v8091_v34, %v2742_v31  ;;  %v6451_v36 = vpop.f32.mrb[9].mxu1 }
 0x300   : > { %v2185_v37 = vpop.f32.mrb[10].mxu0  ;;  %v2745_v38 = vpop.f32.mrb[10].mxu1 }
 0x301   : > { %v2896_v39 = vmax.f32 %v2183_v32, 0.0  ;;  %v2186_v40 = vadd.f32 %v8091_v34, %v2185_v37  ;;  %v6172_v41 = vpop.f32.mrb[11].mxu0  ;;  %v3036_v6 = vmax.f32 %v2743_v35, 0.0  ;;  %v2746_v42 = vadd.f32 %v8091_v34, %v2745_v38  ;;  %v6452_v43 = vpop.f32.mrb[11].mxu1 }
 0x303   : > { %v5606_v44 = vpack.c.bf16 %v2896_v39, %v2896_v39  ;;  %v2897_v45 = vmax.f32 %v2186_v40, 0.0  ;;  %v5746_v46 = vpack.c.bf16 %v3036_v6, %v3036_v6  ;;  %v3037_v47 = vmax.f32 %v2746_v42, 0.0 }
 0x305   : > { %4283 = vst.msk [vmem:[%s7113_s12 + $0x210] sm:$0xf] %vm4150_vm2, %v5606_v44  ;;  %v5607_v48 = vpack.c.bf16 %v2897_v45, %v2897_v45  ;;  %4423 = vst.msk [vmem:[%s7113_s12 + $0x440] sm:$0xf] %vm4150_vm2, %v5746_v46  ;;  %v5747_v49 = vpack.c.bf16 %v3037_v47, %v3037_v47 }
 0x306   : > { %v2190_v50 = vpop.f32.mrb[12].mxu0  ;;  %v2750_v51 = vpop.f32.mrb[12].mxu1 }
 0x307   : > { %4284 = vst.msk [vmem:[%s7113_s12 + $0x214] sm:$0xf] %vm4150_vm2, %v5607_v48  ;;  %v2191_v52 = vadd.f32 %v8091_v34, %v2190_v50  ;;  %v6175_v53 = vpop.f32.mrb[13].mxu0  ;;  %4424 = vst.msk [vmem:[%s7113_s12 + $0x444] sm:$0xf] %vm4150_vm2, %v5747_v49  ;;  %v2751_v54 = vadd.f32 %v8091_v34, %v2750_v51  ;;  %v6455_v55 = vpop.f32.mrb[13].mxu1 }
 0x308   : > { %v2193_v56 = vpop.f32.mrb[14].mxu0  ;;  %v2753_v57 = vpop.f32.mrb[14].mxu1 }
 0x309   : > { %v2898_v58 = vmax.f32 %v2191_v52, 0.0  ;;  %v2194_v1 = vadd.f32 %v8091_v34, %v2193_v56  ;;  %v6176_v59 = vpop.f32.mrb[15].mxu0  ;;  %v3038_v60 = vmax.f32 %v2751_v54, 0.0  ;;  %v2754_v61 = vadd.f32 %v8091_v34, %v2753_v57  ;;  %v6456_v62 = vpop.f32.mrb[15].mxu1 }
 0x30b   : > { %v5608_v0 = vpack.c.bf16 %v2898_v58, %v2898_v58  ;;  %v2899_v2 = vmax.f32 %v2194_v1, 0.0  ;;  %v5748_v3 = vpack.c.bf16 %v3038_v60, %v3038_v60  ;;  %v3039_v4 = vmax.f32 %v2754_v61, 0.0 }
 0x30d   : > { %4285 = vst.msk [vmem:[%s7113_s12 + $0x218] sm:$0xf] %vm4150_vm2, %v5608_v0  ;;  %v5609_v5 = vpack.c.bf16 %v2899_v2, %v2899_v2  ;;  %4425 = vst.msk [vmem:[%s7113_s12 + $0x448] sm:$0xf] %vm4150_vm2, %v5748_v3  ;;  %v5749_v7 = vpack.c.bf16 %v3039_v4, %v3039_v4 }
 0x30e   : > { %v2198_v8 = vpop.f32.mrb[16].mxu0  ;;  %v2758_v9 = vpop.f32.mrb[16].mxu1 }
 0x30f   : > { %4286 = vst.msk [vmem:[%s7113_s12 + $0x21c] sm:$0xf] %vm4150_vm2, %v5609_v5  ;;  %v2199_v10 = vadd.f32 %v8091_v34, %v2198_v8  ;;  %v6179_v11 = vpop.f32.mrb[17].mxu0  ;;  %4426 = vst.msk [vmem:[%s7113_s12 + $0x44c] sm:$0xf] %vm4150_vm2, %v5749_v7  ;;  %v2759_v12 = vadd.f32 %v8091_v34, %v2758_v9  ;;  %v6459_v63 = vpop.f32.mrb[17].mxu1 }
 0x310   : > { %v2201_v13 = vpop.f32.mrb[18].mxu0  ;;  %v2761_v14 = vpop.f32.mrb[18].mxu1 }
 0x311   : > { %v2900_v15 = vmax.f32 %v2199_v10, 0.0  ;;  %v2202_v16 = vadd.f32 %v8091_v34, %v2201_v13  ;;  %v6180_v17 = vpop.f32.mrb[19].mxu0  ;;  %v3040_v18 = vmax.f32 %v2759_v12, 0.0  ;;  %v6460_v19 = vpop.f32.mrb[19].mxu1 }
 0x313   : > { %v5610_v20 = vpack.c.bf16 %v2900_v15, %v2900_v15  ;;  %v2901_v21 = vmax.f32 %v2202_v16, 0.0  ;;  %v5750_v22 = vpack.c.bf16 %v3040_v18, %v3040_v18 }
 0x315   : > { %4287 = vst.msk [vmem:[%s7113_s12 + $0x220] sm:$0xf] %vm4150_vm2, %v5610_v20  ;;  %v5611_v23 = vpack.c.bf16 %v2901_v21, %v2901_v21  ;;  %4427 = vst.msk [vmem:[%s7113_s12 + $0x450] sm:$0xf] %vm4150_vm2, %v5750_v22 }
 0x316   : > { %v2206_v24 = vpop.f32.mrb[20].mxu0 }
 0x317   : > { %4288 = vst.msk [vmem:[%s7113_s12 + $0x224] sm:$0xf] %vm4150_vm2, %v5611_v23  ;;  %v2207_v25 = vadd.f32 %v8091_v34, %v2206_v24  ;;  %v6183_v26 = vpop.f32.mrb[21].mxu0 }
 0x318   : > { %v2209_v27 = vpop.f32.mrb[22].mxu0 }
 0x319   : > { %v2902_v28 = vmax.f32 %v2207_v25, 0.0  ;;  %v2210_v29 = vadd.f32 %v8091_v34, %v2209_v27  ;;  %v6184_v30 = vpop.f32.mrb[23].mxu0  ;;  %4434 = sbr.rel (!%p6841_p4) target bundleno = 891 (0x37b), region = 36 }
 0x31b   : > { %v5612_v31 = vpack.c.bf16 %v2902_v28, %v2902_v28  ;;  %v2903_v32 = vmax.f32 %v2210_v29, 0.0 }
 0x31d   : > { %4289 = vst.msk [vmem:[%s7113_s12 + $0x228] sm:$0xf] %vm4150_vm2, %v5612_v31  ;;  %v5613_v33 = vpack.c.bf16 %v2903_v32, %v2903_v32 }
 0x31f   : > { %4290 = vst.msk [vmem:[%s7113_s12 + $0x22c] sm:$0xf] %vm4150_vm2, %v5613_v33 }
 0x320   : > { %s8496_s24 = smov (!%p4437_p8, %s4436_s24), 277 }
 0x321   : > { %s5459_s30 = sshll.u32 %s8496_s24, 6 }
 0x322   : > { %p5462_p9 = scmp.eq.s32.totalorder %s5459_s30, 0 }
 0x323   : > { %s8298_s4 = sshrl.u32 (!%p5462_p9), %s8496_s24, 6 }
 0x324   : > { %4445 = sbr.rel (%p5462_p9) target bundleno = 891 (0x37b), region = 40  ;;  %p5463_p10 = scmp.le.s32.totalorder (!%p5462_p9), %s8298_s4, 0 }
 0x32b   : > { %4850 = sbr.rel (%p5463_p10) target bundleno = 870 (0x366), region = 112  ;;  %s8489_s15 = smov (!%p5463_p10), %s8292_s29 }
 0x32c   : > { %s8490_s20 = smov (!%p5463_p10), %s7113_s12  ;;  %s8307_s25 = smov (!%p5463_p10), 0  }
 0x32d   : > { %s8309_s5 = smov (!%p5463_p10), 0  }
 0x332 LB: >> { %v4461_v34 = vld [vmem:[%s6768_s20] sm:$0xf]  ;;  %v4463_v35 = vld [vmem:[%s6768_s20 + $0x4] sm:$0xf]  ;;  %v4465_v36 = vld [vmem:[%s6768_s20 + $0x8] sm:$0xf]  ;;  %s6776_s5 = sphi %s8309_s5, %s4455_s5   ;;  %s6772_s25 = sphi %s8307_s25, %s8491_s25   ;;  %s6768_s20 = sphi %s8490_s20, %s4594_s20   ;;  %s6764_s15 = sphi %s8489_s15, %s4595_s15  }
 0x333   : >> { %4462 = vst [vmem:[%s6764_s15] sm:$0xf] %v4461_v34  ;;  %4464 = vst [vmem:[%s6764_s15 + $0x4] sm:$0xf] %v4463_v35  ;;  %v4467_v37 = vld [vmem:[%s6768_s20 + $0xc] sm:$0xf]  ;;  %s4589_s6 = sadd.s32 1, %s6772_s25 }
 0x334   : >> { %4466 = vst [vmem:[%s6764_s15 + $0x8] sm:$0xf] %v4465_v36  ;;  %v4469_v38 = vld [vmem:[%s6768_s20 + $0x10] sm:$0xf]  ;;  %v4471_v39 = vld [vmem:[%s6768_s20 + $0x14] sm:$0xf]  ;;  %p4590_p11 = scmp.ge.s32.totalorder %s4589_s6, %s8298_s4 }
 0x335   : >> { %4468 = vst [vmem:[%s6764_s15 + $0xc] sm:$0xf] %v4467_v37  ;;  %4470 = vst [vmem:[%s6764_s15 + $0x10] sm:$0xf] %v4469_v38  ;;  %v4473_v40 = vld [vmem:[%s6768_s20 + $0x18] sm:$0xf] }
 0x336   : >> { %4472 = vst [vmem:[%s6764_s15 + $0x14] sm:$0xf] %v4471_v39  ;;  %v4475_v41 = vld [vmem:[%s6768_s20 + $0x1c] sm:$0xf]  ;;  %v4477_v6 = vld [vmem:[%s6768_s20 + $0x20] sm:$0xf] }
 0x337   : >> { %4474 = vst [vmem:[%s6764_s15 + $0x18] sm:$0xf] %v4473_v40  ;;  %4476 = vst [vmem:[%s6764_s15 + $0x1c] sm:$0xf] %v4475_v41  ;;  %v4479_v42 = vld [vmem:[%s6768_s20 + $0x24] sm:$0xf] }
 0x338   : >> { %4478 = vst [vmem:[%s6764_s15 + $0x20] sm:$0xf] %v4477_v6  ;;  %v4481_v43 = vld [vmem:[%s6768_s20 + $0x28] sm:$0xf]  ;;  %v4483_v44 = vld [vmem:[%s6768_s20 + $0x2c] sm:$0xf] }
 0x339   : >> { %4480 = vst [vmem:[%s6764_s15 + $0x24] sm:$0xf] %v4479_v42  ;;  %4482 = vst [vmem:[%s6764_s15 + $0x28] sm:$0xf] %v4481_v43  ;;  %v4485_v45 = vld [vmem:[%s6768_s20 + $0x30] sm:$0xf] }
 0x33a   : >> { %4484 = vst [vmem:[%s6764_s15 + $0x2c] sm:$0xf] %v4483_v44  ;;  %v4487_v46 = vld [vmem:[%s6768_s20 + $0x34] sm:$0xf]  ;;  %v4489_v47 = vld [vmem:[%s6768_s20 + $0x38] sm:$0xf] }
 0x33b   : >> { %4486 = vst [vmem:[%s6764_s15 + $0x30] sm:$0xf] %v4485_v45  ;;  %4488 = vst [vmem:[%s6764_s15 + $0x34] sm:$0xf] %v4487_v46  ;;  %v4491_v48 = vld [vmem:[%s6768_s20 + $0x3c] sm:$0xf] }
 0x33c   : >> { %4490 = vst [vmem:[%s6764_s15 + $0x38] sm:$0xf] %v4489_v47  ;;  %v4493_v49 = vld [vmem:[%s6768_s20 + $0x40] sm:$0xf]  ;;  %v4495_v50 = vld [vmem:[%s6768_s20 + $0x44] sm:$0xf] }
 0x33d   : >> { %4492 = vst [vmem:[%s6764_s15 + $0x3c] sm:$0xf] %v4491_v48  ;;  %4494 = vst [vmem:[%s6764_s15 + $0x40] sm:$0xf] %v4493_v49  ;;  %v4497_v51 = vld [vmem:[%s6768_s20 + $0x48] sm:$0xf] }
 0x33e   : >> { %4496 = vst [vmem:[%s6764_s15 + $0x44] sm:$0xf] %v4495_v50  ;;  %v4499_v52 = vld [vmem:[%s6768_s20 + $0x4c] sm:$0xf]  ;;  %v4501_v53 = vld [vmem:[%s6768_s20 + $0x50] sm:$0xf] }
 0x33f   : >> { %4498 = vst [vmem:[%s6764_s15 + $0x48] sm:$0xf] %v4497_v51  ;;  %4500 = vst [vmem:[%s6764_s15 + $0x4c] sm:$0xf] %v4499_v52  ;;  %v4503_v54 = vld [vmem:[%s6768_s20 + $0x54] sm:$0xf] }
 0x340   : >> { %4502 = vst [vmem:[%s6764_s15 + $0x50] sm:$0xf] %v4501_v53  ;;  %v4505_v55 = vld [vmem:[%s6768_s20 + $0x58] sm:$0xf]  ;;  %v4507_v56 = vld [vmem:[%s6768_s20 + $0x5c] sm:$0xf] }
 0x341   : >> { %4504 = vst [vmem:[%s6764_s15 + $0x54] sm:$0xf] %v4503_v54  ;;  %4506 = vst [vmem:[%s6764_s15 + $0x58] sm:$0xf] %v4505_v55  ;;  %v4509_v57 = vld [vmem:[%s6768_s20 + $0x60] sm:$0xf] }
 0x342   : >> { %4508 = vst [vmem:[%s6764_s15 + $0x5c] sm:$0xf] %v4507_v56  ;;  %v4511_v58 = vld [vmem:[%s6768_s20 + $0x64] sm:$0xf]  ;;  %v4513_v1 = vld [vmem:[%s6768_s20 + $0x68] sm:$0xf] }
 0x343   : >> { %4510 = vst [vmem:[%s6764_s15 + $0x60] sm:$0xf] %v4509_v57  ;;  %4512 = vst [vmem:[%s6764_s15 + $0x64] sm:$0xf] %v4511_v58  ;;  %v4515_v59 = vld [vmem:[%s6768_s20 + $0x6c] sm:$0xf] }
 0x344   : >> { %4514 = vst [vmem:[%s6764_s15 + $0x68] sm:$0xf] %v4513_v1  ;;  %v4517_v60 = vld [vmem:[%s6768_s20 + $0x70] sm:$0xf]  ;;  %v4519_v61 = vld [vmem:[%s6768_s20 + $0x74] sm:$0xf] }
 0x345   : >> { %4516 = vst [vmem:[%s6764_s15 + $0x6c] sm:$0xf] %v4515_v59  ;;  %4518 = vst [vmem:[%s6764_s15 + $0x70] sm:$0xf] %v4517_v60  ;;  %v4521_v62 = vld [vmem:[%s6768_s20 + $0x78] sm:$0xf] }
 0x346   : >> { %4520 = vst [vmem:[%s6764_s15 + $0x74] sm:$0xf] %v4519_v61  ;;  %v4523_v0 = vld [vmem:[%s6768_s20 + $0x7c] sm:$0xf]  ;;  %v4525_v2 = vld [vmem:[%s6768_s20 + $0x80] sm:$0xf] }
 0x347   : >> { %4522 = vst [vmem:[%s6764_s15 + $0x78] sm:$0xf] %v4521_v62  ;;  %4524 = vst [vmem:[%s6764_s15 + $0x7c] sm:$0xf] %v4523_v0  ;;  %v4527_v3 = vld [vmem:[%s6768_s20 + $0x84] sm:$0xf] }
 0x348   : >> { %4526 = vst [vmem:[%s6764_s15 + $0x80] sm:$0xf] %v4525_v2  ;;  %v4529_v4 = vld [vmem:[%s6768_s20 + $0x88] sm:$0xf]  ;;  %v4531_v5 = vld [vmem:[%s6768_s20 + $0x8c] sm:$0xf] }
 0x349   : >> { %4528 = vst [vmem:[%s6764_s15 + $0x84] sm:$0xf] %v4527_v3  ;;  %4530 = vst [vmem:[%s6764_s15 + $0x88] sm:$0xf] %v4529_v4  ;;  %v4533_v7 = vld [vmem:[%s6768_s20 + $0x90] sm:$0xf] }
 0x34a   : >> { %4532 = vst [vmem:[%s6764_s15 + $0x8c] sm:$0xf] %v4531_v5  ;;  %v4535_v8 = vld [vmem:[%s6768_s20 + $0x94] sm:$0xf]  ;;  %v4537_v9 = vld [vmem:[%s6768_s20 + $0x98] sm:$0xf] }
 0x34b   : >> { %4534 = vst [vmem:[%s6764_s15 + $0x90] sm:$0xf] %v4533_v7  ;;  %4536 = vst [vmem:[%s6764_s15 + $0x94] sm:$0xf] %v4535_v8  ;;  %v4539_v10 = vld [vmem:[%s6768_s20 + $0x9c] sm:$0xf] }
 0x34c   : >> { %4538 = vst [vmem:[%s6764_s15 + $0x98] sm:$0xf] %v4537_v9  ;;  %v4541_v11 = vld [vmem:[%s6768_s20 + $0xa0] sm:$0xf]  ;;  %v4543_v12 = vld [vmem:[%s6768_s20 + $0xa4] sm:$0xf] }
 0x34d   : >> { %4540 = vst [vmem:[%s6764_s15 + $0x9c] sm:$0xf] %v4539_v10  ;;  %4542 = vst [vmem:[%s6764_s15 + $0xa0] sm:$0xf] %v4541_v11  ;;  %v4545_v63 = vld [vmem:[%s6768_s20 + $0xa8] sm:$0xf] }
 0x34e   : >> { %4544 = vst [vmem:[%s6764_s15 + $0xa4] sm:$0xf] %v4543_v12  ;;  %v4547_v13 = vld [vmem:[%s6768_s20 + $0xac] sm:$0xf]  ;;  %v4549_v14 = vld [vmem:[%s6768_s20 + $0xb0] sm:$0xf] }
 0x34f   : >> { %4546 = vst [vmem:[%s6764_s15 + $0xa8] sm:$0xf] %v4545_v63  ;;  %4548 = vst [vmem:[%s6764_s15 + $0xac] sm:$0xf] %v4547_v13  ;;  %v4551_v15 = vld [vmem:[%s6768_s20 + $0xb4] sm:$0xf] }
 0x350   : >> { %4550 = vst [vmem:[%s6764_s15 + $0xb0] sm:$0xf] %v4549_v14  ;;  %v4553_v16 = vld [vmem:[%s6768_s20 + $0xb8] sm:$0xf]  ;;  %v4555_v17 = vld [vmem:[%s6768_s20 + $0xbc] sm:$0xf] }
 0x351   : >> { %4552 = vst [vmem:[%s6764_s15 + $0xb4] sm:$0xf] %v4551_v15  ;;  %4554 = vst [vmem:[%s6764_s15 + $0xb8] sm:$0xf] %v4553_v16  ;;  %v4557_v18 = vld [vmem:[%s6768_s20 + $0xc0] sm:$0xf] }
 0x352   : >> { %4556 = vst [vmem:[%s6764_s15 + $0xbc] sm:$0xf] %v4555_v17  ;;  %v4559_v19 = vld [vmem:[%s6768_s20 + $0xc4] sm:$0xf]  ;;  %v4561_v20 = vld [vmem:[%s6768_s20 + $0xc8] sm:$0xf] }
 0x353   : >> { %4558 = vst [vmem:[%s6764_s15 + $0xc0] sm:$0xf] %v4557_v18  ;;  %4560 = vst [vmem:[%s6764_s15 + $0xc4] sm:$0xf] %v4559_v19  ;;  %v4563_v21 = vld [vmem:[%s6768_s20 + $0xcc] sm:$0xf] }
 0x354   : >> { %4562 = vst [vmem:[%s6764_s15 + $0xc8] sm:$0xf] %v4561_v20  ;;  %v4565_v22 = vld [vmem:[%s6768_s20 + $0xd0] sm:$0xf]  ;;  %v4567_v23 = vld [vmem:[%s6768_s20 + $0xd4] sm:$0xf] }
 0x355   : >> { %4564 = vst [vmem:[%s6764_s15 + $0xcc] sm:$0xf] %v4563_v21  ;;  %4566 = vst [vmem:[%s6764_s15 + $0xd0] sm:$0xf] %v4565_v22  ;;  %v4569_v24 = vld [vmem:[%s6768_s20 + $0xd8] sm:$0xf] }
 0x356   : >> { %4568 = vst [vmem:[%s6764_s15 + $0xd4] sm:$0xf] %v4567_v23  ;;  %v4571_v25 = vld [vmem:[%s6768_s20 + $0xdc] sm:$0xf]  ;;  %v4573_v26 = vld [vmem:[%s6768_s20 + $0xe0] sm:$0xf] }
 0x357   : >> { %4570 = vst [vmem:[%s6764_s15 + $0xd8] sm:$0xf] %v4569_v24  ;;  %4572 = vst [vmem:[%s6764_s15 + $0xdc] sm:$0xf] %v4571_v25  ;;  %v4575_v27 = vld [vmem:[%s6768_s20 + $0xe4] sm:$0xf] }
 0x358   : >> { %4574 = vst [vmem:[%s6764_s15 + $0xe0] sm:$0xf] %v4573_v26  ;;  %v4577_v28 = vld [vmem:[%s6768_s20 + $0xe8] sm:$0xf]  ;;  %v4579_v29 = vld [vmem:[%s6768_s20 + $0xec] sm:$0xf] }
 0x359   : >> { %4576 = vst [vmem:[%s6764_s15 + $0xe4] sm:$0xf] %v4575_v27  ;;  %4578 = vst [vmem:[%s6764_s15 + $0xe8] sm:$0xf] %v4577_v28  ;;  %v4581_v30 = vld [vmem:[%s6768_s20 + $0xf0] sm:$0xf] }
 0x35a   : >> { %4580 = vst [vmem:[%s6764_s15 + $0xec] sm:$0xf] %v4579_v29  ;;  %v4583_v31 = vld [vmem:[%s6768_s20 + $0xf4] sm:$0xf]  ;;  %v4585_v32 = vld [vmem:[%s6768_s20 + $0xf8] sm:$0xf] }
 0x35b   : >> { %4582 = vst [vmem:[%s6764_s15 + $0xf0] sm:$0xf] %v4581_v30  ;;  %4584 = vst [vmem:[%s6764_s15 + $0xf4] sm:$0xf] %v4583_v31  ;;  %v4587_v33 = vld [vmem:[%s6768_s20 + $0xfc] sm:$0xf] }
 0x35c   : >> { %4586 = vst [vmem:[%s6764_s15 + $0xf8] sm:$0xf] %v4585_v32  ;;  %4588 = vst [vmem:[%s6764_s15 + $0xfc] sm:$0xf] %v4587_v33  ;;  %s8498_s6 = smov (%p4590_p11, %s4589_s6), 0  ;;  %s4455_s5 = sadd.s32 1, %s6776_s5  }
 0x35d   : >> { %s5464_s7 = sshll.u32 %s8498_s6, 8  ;;  %p4454_p12 = scmp.ge.s32.totalorder %s4455_s5, %s8298_s4 }
 0x35e   : >> { %s4594_s20 = scalar_lea.vmem %s7113_s12, %s5464_s7 [#allocation2]   ;;  %s4595_s15 = scalar_lea.vmem %s8292_s29, %s5464_s7  }
 0x35f   : >> { %s8491_s25 = smov %s8498_s6  ;;  %4457 = sbr.rel (!%p4454_p12) target bundleno = 818 (0x332), region = 118 }
 0x366 PF: > { %s8466_s8 = sand.u32 63, %s8496_s24   ;;  %s5752_s9 = sshll.u32 %s8298_s4, 8 }
 0x367   : > { %s4600_s10 = scalar_lea.vmem %s7113_s12, %s5752_s9 [#allocation2]   ;;  %s4602_s11 = scalar_lea.vmem %s8292_s29, %s5752_s9  }
 0x368   : > { %p5469_p13 = scmp.le.s32.totalorder %s8466_s8, 0 }
 0x369   : > { %s6778_s14 = smov (!%p5469_p13), %s4602_s11   ;;  %s6782_s17 = smov (!%p5469_p13), %s4600_s10  }
 0x36a   : > { %4864 = sbr.rel (%p5469_p13) target bundleno = 891 (0x37b), region = 123  ;;  %s6786_s18 = smov (!%p5469_p13), 0  }
 0x36b   : > { %s6790_s21 = smov (!%p5469_p13), 0  }
 0x371 LB: >> { %v4612_v34 = vld [vmem:[%s6784_s17] sm:$0xf]  ;;  %s4614_s22 = sadd.s32 1, %s6788_s18  ;;  %s4606_s21 = sadd.s32 1, %s6792_s21   ;;  %s6792_s21 = sphi %s6790_s21, %s4606_s21   ;;  %s6788_s18 = sphi %s6786_s18, %s6787_s18   ;;  %s6784_s17 = sphi %s6782_s17, %s4619_s17   ;;  %s6780_s14 = sphi %s6778_s14, %s4620_s14  }
 0x372   : >> { %4613 = vst [vmem:[%s6780_s14] sm:$0xf] %v4612_v34  ;;  %p4615_p0 = scmp.ge.s32.totalorder %s4614_s22, %s8466_s8  ;;  %p4605_p1 = scmp.ge.s32.totalorder %s4606_s21, %s8466_s8 }
 0x374   : >> { %s8500_s22 = smov (%p4615_p0, %s4614_s22), 0  ;;  %4608 = sbr.rel (!%p4605_p1) target bundleno = 881 (0x371), region = 129 }
 0x375   : >> { %s5470_s12 = sshll.u32 %s8500_s22, 2  ;;  %s6787_s18 = smov %s8500_s22  }
 0x376   : >> { %s4619_s17 = scalar_lea.vmem %s4600_s10, %s5470_s12 [#allocation2]   ;;  %s4620_s14 = scalar_lea.vmem %s4602_s11, %s5470_s12  }
 0x37b PF: > { %p10_p2 = scmp.ge.s32.totalorder %s6831_s16, 4   ;;  %s8492_s12 = smov %s6756_s13 }
 0x37c   : > { %s8493_s13 = smov %s6839_s19  ;;  %s8494_s14 = smov %s6831_s16 }
 0x37d   :  { %12 = sbr.rel (!%p10_p2) target bundleno = 2 (0x2), region = 140 }

// kernel: critic_forward.5
= control target key start
LH: loop header
LB: loop body
LE: loop exit
PB: predicated region body
PF: predicated region fallthrough
CT: control target
= control target key end

     0   :  { %s2348_s12 = smov 0   ;;  %s2350_s13 = smov 0   ;;  %s2878_s0 = inlined_call_operand.vmem [shape: bf16[1058,72], index: 0, kind: input, shape index: {}]   ;;  %s2879_s1 = inlined_call_operand.vmem [shape: bf16[72,16], index: 1, kind: input, shape index: {}]   ;;  %s2880_s2 = inlined_call_operand.vmem [shape: f32[1,16], index: 2, kind: input, shape index: {}]   ;;  %s2881_s3 = inlined_call_operand.vmem [shape: bf16[1058,16], index: 3, kind: output, shape index: {}]  }
   0x1   :  { %s2352_s14 = smov 0  }
   0x2 LB: > { %s2361_s15 = sadd.s32 4294967295, %s2294_s14   ;;  %s2363_s16 = sadd.s32 1, %s2294_s14   ;;  %s2294_s14 = sphi %s2352_s14, %s2888_s14   ;;  %s2290_s13 = sphi %s2350_s13, %s2887_s13   ;;  %s2286_s12 = sphi %s2348_s12, %s2886_s12  }
   0x3   : > { %s85_s17 = ssub.s32 %s2294_s14, %s2363_s16  ;;  %s88_s18 = sadd.s32 1, %s2290_s13 }
   0x4   : > { %p86_p0 = scmp.eq.s32.totalorder %s85_s17, 0  ;;  %p98_p1 = scmp.ne.s32.totalorder %s2290_s13, %s2286_s12 }
   0x5   : > { %p99_p2 = scmp.eq.s32.totalorder %s2361_s15, 1  ;;  %p1755_p3 = scmp.ge.s32.totalorder %s2294_s14, 1 }
   0x6   : > { %s2371_s19 = scalar_select %p86_p0, %s2290_s13, %s88_s18  }
   0x7   : > { %p2373_p4 = por %p99_p2, %p98_p1  ;;  %p146_p5 = scmp.lt.s32.totalorder %s2294_s14, 3 }
   0x9   : > { %p147_p6 = pnand %p1755_p3, %p146_p5 }
   0xa   : > { %v2201_v0 = vld [vmem:[%s2879_s1] sm:$0xff] (!%p147_p6)   ;;  %v2202_v1 = vld [vmem:[%s2879_s1 + $0x8] sm:$0xff] (!%p147_p6)   ;;  %s2384_s25 = smul.u32 (!%p147_p6), 67, %s2361_s15  ;;  %v2203_v2 = vld [vmem:[%s2879_s1 + $0x10] sm:$0xff] (!%p147_p6)   ;;  %vm471_vm0 = vcmask (!%p147_p6), 588800   ;;  %vm574_vm1 = vcmask (!%p147_p6), 1043456  }
   0xb   : > { %150 = sbr.rel (%p147_p6) target bundleno = 408 (0x198), region = 32  ;;  %2022 = vmatprep.subr.bf16.mxu0 (!%p147_p6), %v2201_v0  ;;  %2100 = vmatprep.subr.bf16.mxu1 (!%p147_p6), %v2201_v0  ;;  %v2204_v3 = vld [vmem:[%s2879_s1 + $0x18] sm:$0xff] (!%p147_p6)   ;;  %v2205_v6 = vld [vmem:[%s2879_s1 + $0x20] ss:$0 sps:$4 sm:$0xff] (!%p147_p6)   ;;  %s170_s10 = sand.u32 (!%p147_p6), 1, %s2286_s12   ;;  %vm1218_vm2 = vcmask (!%p147_p6), 125952  }
   0xc   : > { %2023 = vmatpush3.bf16.msra.mxu0 (!%p147_p6), %v2201_v0  ;;  %2105 = vmatpush3.bf16.msra.mxu1 (!%p147_p6), %v2201_v0  ;;  %p178_p7 = scmp.lt.s32.totalorder (!%p147_p6), %s2384_s25, 132  ;;  %v576_v7 = vsel (!%p147_p6), %vm574_vm1, %v2205_v6, 0  ;;  %v2474_v40 = vld [vmem:[%s2880_s2] ss:$0 sm:$0xff] (!%p147_p6)  ;;  %s2112_s17 = smul.u32 (!%p147_p6), 268, %s170_s10 }
   0xd   : > { %2024 = vmatprep.subr.bf16.mxu0 (!%p147_p6), %v2202_v1  ;;  %2101 = vmatprep.subr.bf16.mxu1 (!%p147_p6), %v2202_v1 }
   0xe   : > { %s2484_s12 = scalar_lea.vmem (!%p147_p6), [#allocation2], %s2112_s17  }
  0x10   : > { %2025 = vmatpush3.bf16.msra.mxu0 (!%p147_p6), %v2202_v1  ;;  %2106 = vmatpush3.bf16.msra.mxu1 (!%p147_p6), %v2202_v1 }
  0x11   : > { %2026 = vmatprep.subr.bf16.mxu0 (!%p147_p6), %v2203_v2  ;;  %2102 = vmatprep.subr.bf16.mxu1 (!%p147_p6), %v2203_v2 }
  0x12   : > { %s179_s28 = scalar_select %p178_p7, %s2384_s25, 132 }
  0x13   : > { %s1294_s18 = ssub.s32 (%p2373_p4), 133, %s2384_s25  ;;  %s1980_s21 = smul.u32 (%p2373_p4), 268, %s2361_s15 }
  0x14   : > { %s1756_s29 = sshll.u32 %s179_s28, 2  ;;  %2027 = vmatpush3.bf16.msra.mxu0 %v2203_v2  ;;  %2107 = vmatpush3.bf16.msra.mxu1 %v2203_v2  ;;  %p1295_p8 = scmp.lt.s32.totalorder (%p2373_p4), %s1294_s18, 67 }
  0x15   : > { %s2397_s7 = scalar_lea.vmem %s2878_s0, %s1756_s29  ;;  %2028 = vmatprep.subr.bf16.mxu0 %v2204_v3  ;;  %2103 = vmatprep.subr.bf16.mxu1 %v2204_v3  ;;  %s2686_s24 = scalar_lea.vmem (%p2373_p4), %s2881_s3, %s1980_s21  }
  0x16   : > { %v2206_v4 = vld [vmem:[%s2397_s7] sm:$0xff]   ;;  %v2208_v5 = vld [vmem:[%s2397_s7 + $0x90] sm:$0xff]   ;;  %v2207_v8 = vld [vmem:[%s2397_s7 + $0x8] sm:$0xff]  }
  0x17   : > { %2032 = vmatprep.mubr.msk.bf16.mxu0 %vm471_vm0, %v2206_v4  ;;  %2068 = vmatprep.mubr.msk.bf16.mxu1 %vm471_vm0, %v2208_v5  ;;  %v2209_v9 = vld [vmem:[%s2397_s7 + $0x98] sm:$0xff]   ;;  %v2210_v10 = vld [vmem:[%s2397_s7 + $0x10] sm:$0xff]   ;;  %v2212_v11 = vld [vmem:[%s2397_s7 + $0xa0] sm:$0xff]  }
  0x18   : > { %2029 = vmatpush3.bf16.msra.mxu0 %v2204_v3  ;;  %2108 = vmatpush3.bf16.msra.mxu1 %v2204_v3  ;;  %v2211_v12 = vld [vmem:[%s2397_s7 + $0x18] sm:$0xff]   ;;  %v2213_v13 = vld [vmem:[%s2397_s7 + $0xa8] sm:$0xff]   ;;  %v2214_v14 = vld [vmem:[%s2397_s7 + $0x20] sm:$0xff]  }
  0x19   : > { %2110 = vmatprep.subr.msk.bf16.mxu0 %vm574_vm1, %v2205_v6  ;;  %2111 = vmatprep.subr.msk.bf16.mxu1 %vm574_vm1, %v2205_v6  ;;  %v2216_v15 = vld [vmem:[%s2397_s7 + $0xb0] sm:$0xff]   ;;  %v2215_v16 = vld [vmem:[%s2397_s7 + $0x28] sm:$0xff]   ;;  %v2217_v17 = vld [vmem:[%s2397_s7 + $0xb8] sm:$0xff]  }
  0x1a   : > { %v2218_v18 = vld [vmem:[%s2397_s7 + $0x30] sm:$0xff]   ;;  %v2220_v19 = vld [vmem:[%s2397_s7 + $0xc0] sm:$0xff]   ;;  %v2219_v20 = vld [vmem:[%s2397_s7 + $0x38] sm:$0xff]  }
  0x1b   : > { %v2221_v21 = vld [vmem:[%s2397_s7 + $0xc8] sm:$0xff]   ;;  %v2222_v22 = vld [vmem:[%s2397_s7 + $0x40] sm:$0xff]   ;;  %v2224_v23 = vld [vmem:[%s2397_s7 + $0xd0] sm:$0xff]  }
  0x1c   : > { %2031 = vmatpush3.bf16.msra.mxu0 %v576_v7  ;;  %2109 = vmatpush3.bf16.msra.mxu1 %v576_v7  ;;  %v2223_v24 = vld [vmem:[%s2397_s7 + $0x48] sm:$0xff]   ;;  %v2225_v25 = vld [vmem:[%s2397_s7 + $0xd8] sm:$0xff]   ;;  %v2226_v26 = vld [vmem:[%s2397_s7 + $0x50] sm:$0xff]  }
  0x1d   : > { %v2228_v27 = vld [vmem:[%s2397_s7 + $0xe0] sm:$0xff]   ;;  %v2227_v28 = vld [vmem:[%s2397_s7 + $0x58] sm:$0xff]   ;;  %v2229_v29 = vld [vmem:[%s2397_s7 + $0xe8] sm:$0xff]  }
  0x1e   : > { %v2230_v30 = vld [vmem:[%s2397_s7 + $0x60] sm:$0xff]   ;;  %v2232_v31 = vld [vmem:[%s2397_s7 + $0xf0] sm:$0xff]   ;;  %v2231_v32 = vld [vmem:[%s2397_s7 + $0x68] sm:$0xff]  }
  0x1f   : > { %2033 = vmatmul.mubr.msk.bf16.vlgmr.msra.gmra.mrb[0].mxu0 %vm471_vm0, %v2207_v8  ;;  %2069 = vmatmul.mubr.msk.bf16.vlgmr.msra.gmra.mrb[0].mxu1 %vm471_vm0, %v2209_v9  ;;  %v2233_v33 = vld [vmem:[%s2397_s7 + $0xf8] sm:$0xff]   ;;  %v2234_v34 = vld [vmem:[%s2397_s7 + $0x70] sm:$0xff]   ;;  %v2236_v35 = vld [vmem:[%s2397_s7 + $0x100] sm:$0xff]  }
  0x20   : > { %2036 = vmatprep.mubr.msk.bf16.mxu0 %vm471_vm0, %v2210_v10  ;;  %2072 = vmatprep.mubr.msk.bf16.mxu1 %vm471_vm0, %v2212_v11  ;;  %v2235_v36 = vld [vmem:[%s2397_s7 + $0x78] sm:$0xff]   ;;  %v2237_v37 = vld [vmem:[%s2397_s7 + $0x108] ss:$0 sps:$4 sm:$0xff]   ;;  %v2238_v38 = vld [vmem:[%s2397_s7 + $0x80] sm:$0xff]  }
  0x21   : > { %v2239_v39 = vld [vmem:[%s2397_s7 + $0x88] sm:$0xff]  }
  0x27   : > { %2037 = vmatmul.mubr.msk.bf16.gmra.mrb[4].mxu0 %vm471_vm0, %v2211_v12  ;;  %2073 = vmatmul.mubr.msk.bf16.gmra.mrb[4].mxu1 %vm471_vm0, %v2213_v13 }
  0x28   : > { %2040 = vmatprep.mubr.msk.bf16.mxu0 %vm471_vm0, %v2214_v14  ;;  %2076 = vmatprep.mubr.msk.bf16.mxu1 %vm471_vm0, %v2216_v15 }
  0x2f   : > { %2041 = vmatmul.mubr.msk.bf16.gmra.mrb[8].mxu0 %vm471_vm0, %v2215_v16  ;;  %2077 = vmatmul.mubr.msk.bf16.gmra.mrb[8].mxu1 %vm471_vm0, %v2217_v17 }
  0x30   : > { %2044 = vmatprep.mubr.msk.bf16.mxu0 %vm471_vm0, %v2218_v18  ;;  %2080 = vmatprep.mubr.msk.bf16.mxu1 %vm471_vm0, %v2220_v19 }
  0x37   : > { %2045 = vmatmul.mubr.msk.bf16.gmra.mrb[12].mxu0 %vm471_vm0, %v2219_v20  ;;  %2081 = vmatmul.mubr.msk.bf16.gmra.mrb[12].mxu1 %vm471_vm0, %v2221_v21 }
  0x38   : > { %2048 = vmatprep.mubr.msk.bf16.mxu0 %vm471_vm0, %v2222_v22  ;;  %2084 = vmatprep.mubr.msk.bf16.mxu1 %vm471_vm0, %v2224_v23 }
  0x3f   : > { %2049 = vmatmul.mubr.msk.bf16.gmra.mrb[16].mxu0 %vm471_vm0, %v2223_v24  ;;  %2085 = vmatmul.mubr.msk.bf16.gmra.mrb[16].mxu1 %vm471_vm0, %v2225_v25 }
  0x40   : > { %2052 = vmatprep.mubr.msk.bf16.mxu0 %vm471_vm0, %v2226_v26  ;;  %2088 = vmatprep.mubr.msk.bf16.mxu1 %vm471_vm0, %v2228_v27 }
  0x47   : > { %2053 = vmatmul.mubr.msk.bf16.gmra.mrb[20].mxu0 %vm471_vm0, %v2227_v28  ;;  %2089 = vmatmul.mubr.msk.bf16.gmra.mrb[20].mxu1 %vm471_vm0, %v2229_v29 }
  0x48   : > { %2056 = vmatprep.mubr.msk.bf16.mxu0 %vm471_vm0, %v2230_v30  ;;  %2092 = vmatprep.mubr.msk.bf16.mxu1 %vm471_vm0, %v2232_v31 }
  0x4f   : > { %2057 = vmatmul.mubr.msk.bf16.gmra.mrb[24].mxu0 %vm471_vm0, %v2231_v32  ;;  %2093 = vmatmul.mubr.msk.bf16.gmra.mrb[24].mxu1 %vm471_vm0, %v2233_v33 }
  0x50   : > { %2060 = vmatprep.mubr.msk.bf16.mxu0 %vm471_vm0, %v2234_v34  ;;  %2096 = vmatprep.mubr.msk.bf16.mxu1 %vm471_vm0, %v2236_v35 }
  0x57   : > { %2061 = vmatmul.mubr.msk.bf16.gmra.mrb[28].mxu0 %vm471_vm0, %v2235_v36  ;;  %2097 = vmatmul.mubr.msk.bf16.gmra.mrb[28].mxu1 %vm471_vm0, %v2237_v37 }
  0x58   : > { %2064 = vmatprep.mubr.msk.bf16.mxu0 %vm471_vm0, %v2238_v38 }
  0x5f   : > { %2065 = vmatmul.mubr.msk.bf16.gmra.mrb[32].mxu0 %vm471_vm0, %v2239_v39 }
  0xf2   : > { %v2034_v41 = vpop.f32.mrb[0].mxu0  ;;  %v2070_v42 = vpop.f32.mrb[0].mxu1 }
  0xf3   : > { %v621_v43 = vadd.f32 %v2034_v41, %v2474_v40  ;;  %v612_v44 = vpop.f32.mrb[1].mxu0  ;;  %v765_v45 = vadd.f32 %v2070_v42, %v2474_v40  ;;  %v756_v46 = vpop.f32.mrb[1].mxu1 }
  0xf4   : > { %v613_v47 = vadd.f32 %v2474_v40, %v612_v44  ;;  %v2035_v48 = vpop.f32.mrb[2].mxu0  ;;  %v757_v49 = vadd.f32 %v2474_v40, %v756_v46  ;;  %v2071_v50 = vpop.f32.mrb[2].mxu1 }
  0xf5   : > { %v884_v51 = vmax.f32 %v621_v43, 0.0  ;;  %v624_v52 = vadd.f32 %v2035_v48, %v2474_v40  ;;  %v615_v53 = vpop.f32.mrb[3].mxu0  ;;  %v920_v54 = vmax.f32 %v765_v45, 0.0  ;;  %v768_v55 = vadd.f32 %v2071_v50, %v2474_v40  ;;  %v759_v56 = vpop.f32.mrb[3].mxu1 }
  0xf6   : > { %v882_v57 = vmax.f32 %v613_v47, 0.0  ;;  %v616_v58 = vadd.f32 %v2474_v40, %v615_v53  ;;  %v918_v59 = vmax.f32 %v757_v49, 0.0  ;;  %v760_v60 = vadd.f32 %v2474_v40, %v759_v56 }
  0xf7   : > { %v1915_v61 = vpack.c.bf16 %v884_v51, %v884_v51  ;;  %v885_v62 = vmax.f32 %v624_v52, 0.0  ;;  %v1951_v63 = vpack.c.bf16 %v920_v54, %v920_v54  ;;  %v921_v0 = vmax.f32 %v768_v55, 0.0 }
  0xf8   : > { %v1913_v1 = vpack.c.bf16 %v882_v57, %v882_v57  ;;  %v883_v2 = vmax.f32 %v616_v58, 0.0  ;;  %v1949_v3 = vpack.c.bf16 %v918_v59, %v918_v59  ;;  %v919_v4 = vmax.f32 %v760_v60, 0.0 }
  0xf9   : > { %1221 = vst.msk [vmem:[%s2484_s12 + $0x8] sm:$0xf] %vm1218_vm2, %v1915_v61  ;;  %v1916_v5 = vpack.c.bf16 %v885_v62, %v885_v62  ;;  %1257 = vst.msk [vmem:[%s2484_s12 + $0x98] sm:$0xf] %vm1218_vm2, %v1951_v63  ;;  %v1952_v6 = vpack.c.bf16 %v921_v0, %v921_v0 }
  0xfa   : > { %1219 = vst.msk [vmem:[%s2484_s12] sm:$0xf] %vm1218_vm2, %v1913_v1  ;;  %v1914_v7 = vpack.c.bf16 %v883_v2, %v883_v2  ;;  %1255 = vst.msk [vmem:[%s2484_s12 + $0x90] sm:$0xf] %vm1218_vm2, %v1949_v3  ;;  %v2038_v8 = vpop.f32.mrb[4].mxu0  ;;  %v1950_v9 = vpack.c.bf16 %v919_v4, %v919_v4  ;;  %v2074_v10 = vpop.f32.mrb[4].mxu1 }
  0xfb   : > { %1222 = vst.msk [vmem:[%s2484_s12 + $0xc] sm:$0xf] %vm1218_vm2, %v1916_v5  ;;  %1258 = vst.msk [vmem:[%s2484_s12 + $0x9c] sm:$0xf] %vm1218_vm2, %v1952_v6  ;;  %v637_v11 = vadd.f32 %v2038_v8, %v2474_v40  ;;  %v628_v12 = vpop.f32.mrb[5].mxu0  ;;  %v781_v13 = vadd.f32 %v2074_v10, %v2474_v40  ;;  %v772_v14 = vpop.f32.mrb[5].mxu1 }
  0xfc   : > { %1220 = vst.msk [vmem:[%s2484_s12 + $0x4] sm:$0xf] %vm1218_vm2, %v1914_v7  ;;  %1256 = vst.msk [vmem:[%s2484_s12 + $0x94] sm:$0xf] %vm1218_vm2, %v1950_v9  ;;  %v629_v15 = vadd.f32 %v2474_v40, %v628_v12  ;;  %v2039_v16 = vpop.f32.mrb[6].mxu0  ;;  %v773_v17 = vadd.f32 %v2474_v40, %v772_v14  ;;  %v2075_v18 = vpop.f32.mrb[6].mxu1 }
  0xfd   : > { %v888_v19 = vmax.f32 %v637_v11, 0.0  ;;  %v640_v20 = vadd.f32 %v2039_v16, %v2474_v40  ;;  %v631_v21 = vpop.f32.mrb[7].mxu0  ;;  %v924_v22 = vmax.f32 %v781_v13, 0.0  ;;  %v784_v23 = vadd.f32 %v2075_v18, %v2474_v40  ;;  %v775_v24 = vpop.f32.mrb[7].mxu1 }
  0xfe   : > { %v886_v25 = vmax.f32 %v629_v15, 0.0  ;;  %v632_v26 = vadd.f32 %v2474_v40, %v631_v21  ;;  %v922_v27 = vmax.f32 %v773_v17, 0.0  ;;  %v776_v28 = vadd.f32 %v2474_v40, %v775_v24 }
  0xff   : > { %v1919_v29 = vpack.c.bf16 %v888_v19, %v888_v19  ;;  %v889_v30 = vmax.f32 %v640_v20, 0.0  ;;  %v1955_v31 = vpack.c.bf16 %v924_v22, %v924_v22  ;;  %v925_v32 = vmax.f32 %v784_v23, 0.0 }
 0x100   : > { %v1917_v33 = vpack.c.bf16 %v886_v25, %v886_v25  ;;  %v887_v34 = vmax.f32 %v632_v26, 0.0  ;;  %v1953_v35 = vpack.c.bf16 %v922_v27, %v922_v27  ;;  %v923_v36 = vmax.f32 %v776_v28, 0.0 }
 0x101   : > { %1225 = vst.msk [vmem:[%s2484_s12 + $0x18] sm:$0xf] %vm1218_vm2, %v1919_v29  ;;  %v1920_v37 = vpack.c.bf16 %v889_v30, %v889_v30  ;;  %1261 = vst.msk [vmem:[%s2484_s12 + $0xa8] sm:$0xf] %vm1218_vm2, %v1955_v31  ;;  %v1956_v38 = vpack.c.bf16 %v925_v32, %v925_v32 }
 0x102   : > { %1223 = vst.msk [vmem:[%s2484_s12 + $0x10] sm:$0xf] %vm1218_vm2, %v1917_v33  ;;  %v1918_v39 = vpack.c.bf16 %v887_v34, %v887_v34  ;;  %1259 = vst.msk [vmem:[%s2484_s12 + $0xa0] sm:$0xf] %vm1218_vm2, %v1953_v35  ;;  %v2042_v41 = vpop.f32.mrb[8].mxu0  ;;  %v1954_v42 = vpack.c.bf16 %v923_v36, %v923_v36  ;;  %v2078_v43 = vpop.f32.mrb[8].mxu1 }
 0x103   : > { %1226 = vst.msk [vmem:[%s2484_s12 + $0x1c] sm:$0xf] %vm1218_vm2, %v1920_v37  ;;  %1262 = vst.msk [vmem:[%s2484_s12 + $0xac] sm:$0xf] %vm1218_vm2, %v1956_v38  ;;  %v653_v44 = vadd.f32 %v2042_v41, %v2474_v40  ;;  %v644_v45 = vpop.f32.mrb[9].mxu0  ;;  %v797_v46 = vadd.f32 %v2078_v43, %v2474_v40  ;;  %v788_v47 = vpop.f32.mrb[9].mxu1 }
 0x104   : > { %1224 = vst.msk [vmem:[%s2484_s12 + $0x14] sm:$0xf] %vm1218_vm2, %v1918_v39  ;;  %1260 = vst.msk [vmem:[%s2484_s12 + $0xa4] sm:$0xf] %vm1218_vm2, %v1954_v42  ;;  %v645_v48 = vadd.f32 %v2474_v40, %v644_v45  ;;  %v2043_v49 = vpop.f32.mrb[10].mxu0  ;;  %v789_v50 = vadd.f32 %v2474_v40, %v788_v47  ;;  %v2079_v51 = vpop.f32.mrb[10].mxu1 }
 0x105   : > { %v892_v52 = vmax.f32 %v653_v44, 0.0  ;;  %v656_v53 = vadd.f32 %v2043_v49, %v2474_v40  ;;  %v647_v54 = vpop.f32.mrb[11].mxu0  ;;  %v928_v55 = vmax.f32 %v797_v46, 0.0  ;;  %v800_v56 = vadd.f32 %v2079_v51, %v2474_v40  ;;  %v791_v57 = vpop.f32.mrb[11].mxu1 }
 0x106   : > { %v890_v58 = vmax.f32 %v645_v48, 0.0  ;;  %v648_v59 = vadd.f32 %v2474_v40, %v647_v54  ;;  %v926_v60 = vmax.f32 %v789_v50, 0.0  ;;  %v792_v61 = vadd.f32 %v2474_v40, %v791_v57 }
 0x107   : > { %v1923_v62 = vpack.c.bf16 %v892_v52, %v892_v52  ;;  %v893_v63 = vmax.f32 %v656_v53, 0.0  ;;  %v1959_v0 = vpack.c.bf16 %v928_v55, %v928_v55  ;;  %v929_v1 = vmax.f32 %v800_v56, 0.0 }
 0x108   : > { %v1921_v2 = vpack.c.bf16 %v890_v58, %v890_v58  ;;  %v891_v3 = vmax.f32 %v648_v59, 0.0  ;;  %v1957_v4 = vpack.c.bf16 %v926_v60, %v926_v60  ;;  %v927_v5 = vmax.f32 %v792_v61, 0.0 }
 0x109   : > { %1229 = vst.msk [vmem:[%s2484_s12 + $0x28] sm:$0xf] %vm1218_vm2, %v1923_v62  ;;  %v1924_v6 = vpack.c.bf16 %v893_v63, %v893_v63  ;;  %1265 = vst.msk [vmem:[%s2484_s12 + $0xb8] sm:$0xf] %vm1218_vm2, %v1959_v0  ;;  %v1960_v7 = vpack.c.bf16 %v929_v1, %v929_v1 }
 0x10a   : > { %1227 = vst.msk [vmem:[%s2484_s12 + $0x20] sm:$0xf] %vm1218_vm2, %v1921_v2  ;;  %v1922_v8 = vpack.c.bf16 %v891_v3, %v891_v3  ;;  %1263 = vst.msk [vmem:[%s2484_s12 + $0xb0] sm:$0xf] %vm1218_vm2, %v1957_v4  ;;  %v2046_v9 = vpop.f32.mrb[12].mxu0  ;;  %v1958_v10 = vpack.c.bf16 %v927_v5, %v927_v5  ;;  %v2082_v11 = vpop.f32.mrb[12].mxu1 }
 0x10b   : > { %1230 = vst.msk [vmem:[%s2484_s12 + $0x2c] sm:$0xf] %vm1218_vm2, %v1924_v6  ;;  %1266 = vst.msk [vmem:[%s2484_s12 + $0xbc] sm:$0xf] %vm1218_vm2, %v1960_v7  ;;  %v669_v12 = vadd.f32 %v2046_v9, %v2474_v40  ;;  %v660_v13 = vpop.f32.mrb[13].mxu0  ;;  %v813_v14 = vadd.f32 %v2082_v11, %v2474_v40  ;;  %v804_v15 = vpop.f32.mrb[13].mxu1 }
 0x10c   : > { %1228 = vst.msk [vmem:[%s2484_s12 + $0x24] sm:$0xf] %vm1218_vm2, %v1922_v8  ;;  %1264 = vst.msk [vmem:[%s2484_s12 + $0xb4] sm:$0xf] %vm1218_vm2, %v1958_v10  ;;  %v661_v16 = vadd.f32 %v2474_v40, %v660_v13  ;;  %v2047_v17 = vpop.f32.mrb[14].mxu0  ;;  %v805_v18 = vadd.f32 %v2474_v40, %v804_v15  ;;  %v2083_v19 = vpop.f32.mrb[14].mxu1 }
 0x10d   : > { %v896_v20 = vmax.f32 %v669_v12, 0.0  ;;  %v672_v21 = vadd.f32 %v2047_v17, %v2474_v40  ;;  %v663_v22 = vpop.f32.mrb[15].mxu0  ;;  %v932_v23 = vmax.f32 %v813_v14, 0.0  ;;  %v816_v24 = vadd.f32 %v2083_v19, %v2474_v40  ;;  %v807_v25 = vpop.f32.mrb[15].mxu1 }
 0x10e   : > { %v894_v26 = vmax.f32 %v661_v16, 0.0  ;;  %v664_v27 = vadd.f32 %v2474_v40, %v663_v22  ;;  %v930_v28 = vmax.f32 %v805_v18, 0.0  ;;  %v808_v29 = vadd.f32 %v2474_v40, %v807_v25 }
 0x10f   : > { %v1927_v30 = vpack.c.bf16 %v896_v20, %v896_v20  ;;  %v897_v31 = vmax.f32 %v672_v21, 0.0  ;;  %v1963_v32 = vpack.c.bf16 %v932_v23, %v932_v23  ;;  %v933_v33 = vmax.f32 %v816_v24, 0.0 }
 0x110   : > { %v1925_v34 = vpack.c.bf16 %v894_v26, %v894_v26  ;;  %v895_v35 = vmax.f32 %v664_v27, 0.0  ;;  %v1961_v36 = vpack.c.bf16 %v930_v28, %v930_v28  ;;  %v931_v37 = vmax.f32 %v808_v29, 0.0 }
 0x111   : > { %1233 = vst.msk [vmem:[%s2484_s12 + $0x38] sm:$0xf] %vm1218_vm2, %v1927_v30  ;;  %v1928_v38 = vpack.c.bf16 %v897_v31, %v897_v31  ;;  %1269 = vst.msk [vmem:[%s2484_s12 + $0xc8] sm:$0xf] %vm1218_vm2, %v1963_v32  ;;  %v1964_v39 = vpack.c.bf16 %v933_v33, %v933_v33 }
 0x112   : > { %1231 = vst.msk [vmem:[%s2484_s12 + $0x30] sm:$0xf] %vm1218_vm2, %v1925_v34  ;;  %v1926_v41 = vpack.c.bf16 %v895_v35, %v895_v35  ;;  %1267 = vst.msk [vmem:[%s2484_s12 + $0xc0] sm:$0xf] %vm1218_vm2, %v1961_v36  ;;  %v2050_v42 = vpop.f32.mrb[16].mxu0  ;;  %v1962_v43 = vpack.c.bf16 %v931_v37, %v931_v37  ;;  %v2086_v44 = vpop.f32.mrb[16].mxu1 }
 0x113   : > { %1234 = vst.msk [vmem:[%s2484_s12 + $0x3c] sm:$0xf] %vm1218_vm2, %v1928_v38  ;;  %1270 = vst.msk [vmem:[%s2484_s12 + $0xcc] sm:$0xf] %vm1218_vm2, %v1964_v39  ;;  %v685_v45 = vadd.f32 %v2050_v42, %v2474_v40  ;;  %v676_v46 = vpop.f32.mrb[17].mxu0  ;;  %v829_v47 = vadd.f32 %v2086_v44, %v2474_v40  ;;  %v820_v48 = vpop.f32.mrb[17].mxu1 }
 0x114   : > { %1232 = vst.msk [vmem:[%s2484_s12 + $0x34] sm:$0xf] %vm1218_vm2, %v1926_v41  ;;  %1268 = vst.msk [vmem:[%s2484_s12 + $0xc4] sm:$0xf] %vm1218_vm2, %v1962_v43  ;;  %v677_v49 = vadd.f32 %v2474_v40, %v676_v46  ;;  %v2051_v50 = vpop.f32.mrb[18].mxu0  ;;  %v821_v51 = vadd.f32 %v2474_v40, %v820_v48  ;;  %v2087_v52 = vpop.f32.mrb[18].mxu1 }
 0x115   : > { %v900_v53 = vmax.f32 %v685_v45, 0.0  ;;  %v688_v54 = vadd.f32 %v2051_v50, %v2474_v40  ;;  %v679_v55 = vpop.f32.mrb[19].mxu0  ;;  %v936_v56 = vmax.f32 %v829_v47, 0.0  ;;  %v832_v57 = vadd.f32 %v2087_v52, %v2474_v40  ;;  %v823_v58 = vpop.f32.mrb[19].mxu1 }
 0x116   : > { %v898_v59 = vmax.f32 %v677_v49, 0.0  ;;  %v680_v60 = vadd.f32 %v2474_v40, %v679_v55  ;;  %v934_v61 = vmax.f32 %v821_v51, 0.0  ;;  %v824_v62 = vadd.f32 %v2474_v40, %v823_v58 }
 0x117   : > { %v1931_v63 = vpack.c.bf16 %v900_v53, %v900_v53  ;;  %v901_v0 = vmax.f32 %v688_v54, 0.0  ;;  %v1967_v1 = vpack.c.bf16 %v936_v56, %v936_v56  ;;  %v937_v2 = vmax.f32 %v832_v57, 0.0 }
 0x118   : > { %v1929_v3 = vpack.c.bf16 %v898_v59, %v898_v59  ;;  %v899_v4 = vmax.f32 %v680_v60, 0.0  ;;  %v1965_v5 = vpack.c.bf16 %v934_v61, %v934_v61  ;;  %v935_v6 = vmax.f32 %v824_v62, 0.0 }
 0x119   : > { %1237 = vst.msk [vmem:[%s2484_s12 + $0x48] sm:$0xf] %vm1218_vm2, %v1931_v63  ;;  %v1932_v7 = vpack.c.bf16 %v901_v0, %v901_v0  ;;  %1273 = vst.msk [vmem:[%s2484_s12 + $0xd8] sm:$0xf] %vm1218_vm2, %v1967_v1  ;;  %v1968_v8 = vpack.c.bf16 %v937_v2, %v937_v2 }
 0x11a   : > { %1235 = vst.msk [vmem:[%s2484_s12 + $0x40] sm:$0xf] %vm1218_vm2, %v1929_v3  ;;  %v1930_v9 = vpack.c.bf16 %v899_v4, %v899_v4  ;;  %1271 = vst.msk [vmem:[%s2484_s12 + $0xd0] sm:$0xf] %vm1218_vm2, %v1965_v5  ;;  %v2054_v10 = vpop.f32.mrb[20].mxu0  ;;  %v1966_v11 = vpack.c.bf16 %v935_v6, %v935_v6  ;;  %v2090_v12 = vpop.f32.mrb[20].mxu1 }
 0x11b   : > { %1238 = vst.msk [vmem:[%s2484_s12 + $0x4c] sm:$0xf] %vm1218_vm2, %v1932_v7  ;;  %1274 = vst.msk [vmem:[%s2484_s12 + $0xdc] sm:$0xf] %vm1218_vm2, %v1968_v8  ;;  %v701_v13 = vadd.f32 %v2054_v10, %v2474_v40  ;;  %v692_v14 = vpop.f32.mrb[21].mxu0  ;;  %v845_v15 = vadd.f32 %v2090_v12, %v2474_v40  ;;  %v836_v16 = vpop.f32.mrb[21].mxu1 }
 0x11c   : > { %1236 = vst.msk [vmem:[%s2484_s12 + $0x44] sm:$0xf] %vm1218_vm2, %v1930_v9  ;;  %1272 = vst.msk [vmem:[%s2484_s12 + $0xd4] sm:$0xf] %vm1218_vm2, %v1966_v11  ;;  %v693_v17 = vadd.f32 %v2474_v40, %v692_v14  ;;  %v2055_v18 = vpop.f32.mrb[22].mxu0  ;;  %v837_v19 = vadd.f32 %v2474_v40, %v836_v16  ;;  %v2091_v20 = vpop.f32.mrb[22].mxu1 }
 0x11d   : > { %v904_v21 = vmax.f32 %v701_v13, 0.0  ;;  %v704_v22 = vadd.f32 %v2055_v18, %v2474_v40  ;;  %v695_v23 = vpop.f32.mrb[23].mxu0  ;;  %v940_v24 = vmax.f32 %v845_v15, 0.0  ;;  %v848_v25 = vadd.f32 %v2091_v20, %v2474_v40  ;;  %v839_v26 = vpop.f32.mrb[23].mxu1 }
 0x11e   : > { %v902_v27 = vmax.f32 %v693_v17, 0.0  ;;  %v696_v28 = vadd.f32 %v2474_v40, %v695_v23  ;;  %v938_v29 = vmax.f32 %v837_v19, 0.0  ;;  %v840_v30 = vadd.f32 %v2474_v40, %v839_v26 }
 0x11f   : > { %v1935_v31 = vpack.c.bf16 %v904_v21, %v904_v21  ;;  %v905_v32 = vmax.f32 %v704_v22, 0.0  ;;  %v1971_v33 = vpack.c.bf16 %v940_v24, %v940_v24  ;;  %v941_v34 = vmax.f32 %v848_v25, 0.0 }
 0x120   : > { %v1933_v35 = vpack.c.bf16 %v902_v27, %v902_v27  ;;  %v903_v36 = vmax.f32 %v696_v28, 0.0  ;;  %v1969_v37 = vpack.c.bf16 %v938_v29, %v938_v29  ;;  %v939_v38 = vmax.f32 %v840_v30, 0.0 }
 0x121   : > { %1241 = vst.msk [vmem:[%s2484_s12 + $0x58] sm:$0xf] %vm1218_vm2, %v1935_v31  ;;  %v1936_v39 = vpack.c.bf16 %v905_v32, %v905_v32  ;;  %1277 = vst.msk [vmem:[%s2484_s12 + $0xe8] sm:$0xf] %vm1218_vm2, %v1971_v33  ;;  %v1972_v41 = vpack.c.bf16 %v941_v34, %v941_v34 }
 0x122   : > { %1239 = vst.msk [vmem:[%s2484_s12 + $0x50] sm:$0xf] %vm1218_vm2, %v1933_v35  ;;  %v1934_v42 = vpack.c.bf16 %v903_v36, %v903_v36  ;;  %1275 = vst.msk [vmem:[%s2484_s12 + $0xe0] sm:$0xf] %vm1218_vm2, %v1969_v37  ;;  %v2058_v43 = vpop.f32.mrb[24].mxu0  ;;  %v1970_v44 = vpack.c.bf16 %v939_v38, %v939_v38  ;;  %v2094_v45 = vpop.f32.mrb[24].mxu1 }
 0x123   : > { %1242 = vst.msk [vmem:[%s2484_s12 + $0x5c] sm:$0xf] %vm1218_vm2, %v1936_v39  ;;  %1278 = vst.msk [vmem:[%s2484_s12 + $0xec] sm:$0xf] %vm1218_vm2, %v1972_v41  ;;  %v717_v46 = vadd.f32 %v2058_v43, %v2474_v40  ;;  %v708_v47 = vpop.f32.mrb[25].mxu0  ;;  %v861_v48 = vadd.f32 %v2094_v45, %v2474_v40  ;;  %v852_v49 = vpop.f32.mrb[25].mxu1 }
 0x124   : > { %1240 = vst.msk [vmem:[%s2484_s12 + $0x54] sm:$0xf] %vm1218_vm2, %v1934_v42  ;;  %1276 = vst.msk [vmem:[%s2484_s12 + $0xe4] sm:$0xf] %vm1218_vm2, %v1970_v44  ;;  %v709_v50 = vadd.f32 %v2474_v40, %v708_v47  ;;  %v2059_v51 = vpop.f32.mrb[26].mxu0  ;;  %v853_v52 = vadd.f32 %v2474_v40, %v852_v49  ;;  %v2095_v53 = vpop.f32.mrb[26].mxu1 }
 0x125   : > { %v908_v54 = vmax.f32 %v717_v46, 0.0  ;;  %v720_v55 = vadd.f32 %v2059_v51, %v2474_v40  ;;  %v711_v56 = vpop.f32.mrb[27].mxu0  ;;  %v944_v57 = vmax.f32 %v861_v48, 0.0  ;;  %v864_v58 = vadd.f32 %v2095_v53, %v2474_v40  ;;  %v855_v59 = vpop.f32.mrb[27].mxu1 }
 0x126   : > { %v906_v60 = vmax.f32 %v709_v50, 0.0  ;;  %v712_v61 = vadd.f32 %v2474_v40, %v711_v56  ;;  %v942_v62 = vmax.f32 %v853_v52, 0.0  ;;  %v856_v63 = vadd.f32 %v2474_v40, %v855_v59 }
 0x127   : > { %v1939_v0 = vpack.c.bf16 %v908_v54, %v908_v54  ;;  %v909_v1 = vmax.f32 %v720_v55, 0.0  ;;  %v1975_v2 = vpack.c.bf16 %v944_v57, %v944_v57  ;;  %v945_v3 = vmax.f32 %v864_v58, 0.0 }
 0x128   : > { %v1937_v4 = vpack.c.bf16 %v906_v60, %v906_v60  ;;  %v907_v5 = vmax.f32 %v712_v61, 0.0  ;;  %v1973_v6 = vpack.c.bf16 %v942_v62, %v942_v62  ;;  %v943_v7 = vmax.f32 %v856_v63, 0.0 }
 0x129   : > { %1245 = vst.msk [vmem:[%s2484_s12 + $0x68] sm:$0xf] %vm1218_vm2, %v1939_v0  ;;  %v1940_v8 = vpack.c.bf16 %v909_v1, %v909_v1  ;;  %1281 = vst.msk [vmem:[%s2484_s12 + $0xf8] sm:$0xf] %vm1218_vm2, %v1975_v2  ;;  %v1976_v9 = vpack.c.bf16 %v945_v3, %v945_v3 }
 0x12a   : > { %1243 = vst.msk [vmem:[%s2484_s12 + $0x60] sm:$0xf] %vm1218_vm2, %v1937_v4  ;;  %v1938_v10 = vpack.c.bf16 %v907_v5, %v907_v5  ;;  %1279 = vst.msk [vmem:[%s2484_s12 + $0xf0] sm:$0xf] %vm1218_vm2, %v1973_v6  ;;  %v2062_v11 = vpop.f32.mrb[28].mxu0  ;;  %v1974_v12 = vpack.c.bf16 %v943_v7, %v943_v7  ;;  %v2098_v13 = vpop.f32.mrb[28].mxu1 }
 0x12b   : > { %1246 = vst.msk [vmem:[%s2484_s12 + $0x6c] sm:$0xf] %vm1218_vm2, %v1940_v8  ;;  %1282 = vst.msk [vmem:[%s2484_s12 + $0xfc] sm:$0xf] %vm1218_vm2, %v1976_v9  ;;  %v733_v14 = vadd.f32 %v2062_v11, %v2474_v40  ;;  %v724_v15 = vpop.f32.mrb[29].mxu0  ;;  %v877_v16 = vadd.f32 %v2098_v13, %v2474_v40  ;;  %v868_v17 = vpop.f32.mrb[29].mxu1 }
 0x12c   : > { %1244 = vst.msk [vmem:[%s2484_s12 + $0x64] sm:$0xf] %vm1218_vm2, %v1938_v10  ;;  %1280 = vst.msk [vmem:[%s2484_s12 + $0xf4] sm:$0xf] %vm1218_vm2, %v1974_v12  ;;  %v725_v18 = vadd.f32 %v2474_v40, %v724_v15  ;;  %v2063_v19 = vpop.f32.mrb[30].mxu0  ;;  %v869_v20 = vadd.f32 %v2474_v40, %v868_v17  ;;  %v2099_v21 = vpop.f32.mrb[30].mxu1 }
 0x12d   : > { %v912_v22 = vmax.f32 %v733_v14, 0.0  ;;  %v736_v23 = vadd.f32 %v2063_v19, %v2474_v40  ;;  %v727_v24 = vpop.f32.mrb[31].mxu0  ;;  %v948_v25 = vmax.f32 %v877_v16, 0.0  ;;  %v871_v26 = vpop.f32.mrb[31].mxu1 }
 0x12e   : > { %v910_v27 = vmax.f32 %v725_v18, 0.0  ;;  %v728_v28 = vadd.f32 %v2474_v40, %v727_v24  ;;  %v946_v29 = vmax.f32 %v869_v20, 0.0  ;;  %v872_v30 = vadd.f32 %v2474_v40, %v871_v26 }
 0x12f   : > { %v1943_v31 = vpack.c.bf16 %v912_v22, %v912_v22  ;;  %v913_v32 = vmax.f32 %v736_v23, 0.0  ;;  %v1979_v33 = vpack.c.bf16 %v948_v25, %v948_v25 }
 0x130   : > { %v1941_v34 = vpack.c.bf16 %v910_v27, %v910_v27  ;;  %v911_v35 = vmax.f32 %v728_v28, 0.0  ;;  %v1977_v36 = vpack.c.bf16 %v946_v29, %v946_v29  ;;  %v947_v37 = vmax.f32 %v872_v30, 0.0 }
 0x131   : > { %1249 = vst.msk [vmem:[%s2484_s12 + $0x78] sm:$0xf] %vm1218_vm2, %v1943_v31  ;;  %v1944_v38 = vpack.c.bf16 %v913_v32, %v913_v32  ;;  %1285 = vst.msk [vmem:[%s2484_s12 + $0x108] sm:$0xf] %vm1218_vm2, %v1979_v33 }
 0x132   : > { %1247 = vst.msk [vmem:[%s2484_s12 + $0x70] sm:$0xf] %vm1218_vm2, %v1941_v34  ;;  %v1942_v39 = vpack.c.bf16 %v911_v35, %v911_v35  ;;  %1283 = vst.msk [vmem:[%s2484_s12 + $0x100] sm:$0xf] %vm1218_vm2, %v1977_v36  ;;  %v2066_v41 = vpop.f32.mrb[32].mxu0  ;;  %v1978_v42 = vpack.c.bf16 %v947_v37, %v947_v37 }
 0x133   : > { %1250 = vst.msk [vmem:[%s2484_s12 + $0x7c] sm:$0xf] %vm1218_vm2, %v1944_v38  ;;  %v749_v43 = vadd.f32 %v2066_v41, %v2474_v40  ;;  %v740_v44 = vpop.f32.mrb[33].mxu0 }
 0x134   : > { %1248 = vst.msk [vmem:[%s2484_s12 + $0x74] sm:$0xf] %vm1218_vm2, %v1942_v39  ;;  %1284 = vst.msk [vmem:[%s2484_s12 + $0x104] sm:$0xf] %vm1218_vm2, %v1978_v42  ;;  %v741_v45 = vadd.f32 %v2474_v40, %v740_v44  ;;  %v2067_v46 = vpop.f32.mrb[34].mxu0 }
 0x135   : > { %v916_v47 = vmax.f32 %v749_v43, 0.0  ;;  %v752_v48 = vadd.f32 %v2067_v46, %v2474_v40  ;;  %v743_v49 = vpop.f32.mrb[35].mxu0 }
 0x136   : > { %v914_v50 = vmax.f32 %v741_v45, 0.0  ;;  %v744_v51 = vadd.f32 %v2474_v40, %v743_v49  ;;  %1292 = sbr.rel (!%p2373_p4) target bundleno = 408 (0x198), region = 36 }
 0x137   : > { %v1947_v52 = vpack.c.bf16 %v916_v47, %v916_v47  ;;  %v917_v53 = vmax.f32 %v752_v48, 0.0 }
 0x138   : > { %v1945_v54 = vpack.c.bf16 %v914_v50, %v914_v50  ;;  %v915_v55 = vmax.f32 %v744_v51, 0.0 }
 0x139   : > { %1253 = vst.msk [vmem:[%s2484_s12 + $0x88] sm:$0xf] %vm1218_vm2, %v1947_v52  ;;  %v1948_v56 = vpack.c.bf16 %v917_v53, %v917_v53 }
 0x13a   : > { %1251 = vst.msk [vmem:[%s2484_s12 + $0x80] sm:$0xf] %vm1218_vm2, %v1945_v54  ;;  %v1946_v57 = vpack.c.bf16 %v915_v55, %v915_v55 }
 0x13b   : > { %1254 = vst.msk [vmem:[%s2484_s12 + $0x8c] sm:$0xf] %vm1218_vm2, %v1948_v56 }
 0x13c   : > { %1252 = vst.msk [vmem:[%s2484_s12 + $0x84] sm:$0xf] %vm1218_vm2, %v1946_v57 }
 0x13d   : > { %s2890_s18 = smov (!%p1295_p8, %s1294_s18), 67 }
 0x13e   : > { %s1898_s26 = sshll.u32 %s2890_s18, 6 }
 0x13f   : > { %p1901_p9 = scmp.eq.s32.totalorder %s1898_s26, 0 }
 0x140   : > { %s2692_s27 = sshrl.u32 (!%p1901_p9), %s2890_s18, 6 }
 0x141   : > { %1303 = sbr.rel (%p1901_p9) target bundleno = 408 (0x198), region = 40  ;;  %p1902_p10 = scmp.le.s32.totalorder (!%p1901_p9), %s2692_s27, 0 }
 0x148   : > { %1708 = sbr.rel (%p1902_p10) target bundleno = 387 (0x183), region = 112  ;;  %s2883_s15 = smov (!%p1902_p10), %s2686_s24 }
 0x149   : > { %s2884_s20 = smov (!%p1902_p10), %s2484_s12  ;;  %s2701_s25 = smov (!%p1902_p10), 0  }
 0x14a   : > { %s2703_s28 = smov (!%p1902_p10), 0  }
 0x14f LB: >> { %v1319_v40 = vld [vmem:[%s2302_s20] sm:$0xf]  ;;  %v1321_v58 = vld [vmem:[%s2302_s20 + $0x4] sm:$0xf]  ;;  %v1323_v59 = vld [vmem:[%s2302_s20 + $0x8] sm:$0xf]  ;;  %s2310_s28 = sphi %s2703_s28, %s1313_s28   ;;  %s2306_s25 = sphi %s2701_s25, %s2885_s25   ;;  %s2302_s20 = sphi %s2884_s20, %s1452_s20   ;;  %s2298_s15 = sphi %s2883_s15, %s1453_s15  }
 0x150   : >> { %1320 = vst [vmem:[%s2298_s15] sm:$0xf] %v1319_v40  ;;  %1322 = vst [vmem:[%s2298_s15 + $0x4] sm:$0xf] %v1321_v58  ;;  %v1325_v60 = vld [vmem:[%s2302_s20 + $0xc] sm:$0xf]  ;;  %s1447_s29 = sadd.s32 1, %s2306_s25 }
 0x151   : >> { %1324 = vst [vmem:[%s2298_s15 + $0x8] sm:$0xf] %v1323_v59  ;;  %v1327_v61 = vld [vmem:[%s2302_s20 + $0x10] sm:$0xf]  ;;  %v1329_v62 = vld [vmem:[%s2302_s20 + $0x14] sm:$0xf]  ;;  %p1448_p11 = scmp.ge.s32.totalorder %s1447_s29, %s2692_s27 }
 0x152   : >> { %1326 = vst [vmem:[%s2298_s15 + $0xc] sm:$0xf] %v1325_v60  ;;  %1328 = vst [vmem:[%s2298_s15 + $0x10] sm:$0xf] %v1327_v61  ;;  %v1331_v63 = vld [vmem:[%s2302_s20 + $0x18] sm:$0xf] }
 0x153   : >> { %1330 = vst [vmem:[%s2298_s15 + $0x14] sm:$0xf] %v1329_v62  ;;  %v1333_v0 = vld [vmem:[%s2302_s20 + $0x1c] sm:$0xf]  ;;  %v1335_v1 = vld [vmem:[%s2302_s20 + $0x20] sm:$0xf] }
 0x154   : >> { %1332 = vst [vmem:[%s2298_s15 + $0x18] sm:$0xf] %v1331_v63  ;;  %1334 = vst [vmem:[%s2298_s15 + $0x1c] sm:$0xf] %v1333_v0  ;;  %v1337_v2 = vld [vmem:[%s2302_s20 + $0x24] sm:$0xf] }
 0x155   : >> { %1336 = vst [vmem:[%s2298_s15 + $0x20] sm:$0xf] %v1335_v1  ;;  %v1339_v3 = vld [vmem:[%s2302_s20 + $0x28] sm:$0xf]  ;;  %v1341_v4 = vld [vmem:[%s2302_s20 + $0x2c] sm:$0xf] }
 0x156   : >> { %1338 = vst [vmem:[%s2298_s15 + $0x24] sm:$0xf] %v1337_v2  ;;  %1340 = vst [vmem:[%s2298_s15 + $0x28] sm:$0xf] %v1339_v3  ;;  %v1343_v5 = vld [vmem:[%s2302_s20 + $0x30] sm:$0xf] }
 0x157   : >> { %1342 = vst [vmem:[%s2298_s15 + $0x2c] sm:$0xf] %v1341_v4  ;;  %v1345_v6 = vld [vmem:[%s2302_s20 + $0x34] sm:$0xf]  ;;  %v1347_v7 = vld [vmem:[%s2302_s20 + $0x38] sm:$0xf] }
 0x158   : >> { %1344 = vst [vmem:[%s2298_s15 + $0x30] sm:$0xf] %v1343_v5  ;;  %1346 = vst [vmem:[%s2298_s15 + $0x34] sm:$0xf] %v1345_v6  ;;  %v1349_v8 = vld [vmem:[%s2302_s20 + $0x3c] sm:$0xf] }
 0x159   : >> { %1348 = vst [vmem:[%s2298_s15 + $0x38] sm:$0xf] %v1347_v7  ;;  %v1351_v9 = vld [vmem:[%s2302_s20 + $0x40] sm:$0xf]  ;;  %v1353_v10 = vld [vmem:[%s2302_s20 + $0x44] sm:$0xf] }
 0x15a   : >> { %1350 = vst [vmem:[%s2298_s15 + $0x3c] sm:$0xf] %v1349_v8  ;;  %1352 = vst [vmem:[%s2298_s15 + $0x40] sm:$0xf] %v1351_v9  ;;  %v1355_v11 = vld [vmem:[%s2302_s20 + $0x48] sm:$0xf] }
 0x15b   : >> { %1354 = vst [vmem:[%s2298_s15 + $0x44] sm:$0xf] %v1353_v10  ;;  %v1357_v12 = vld [vmem:[%s2302_s20 + $0x4c] sm:$0xf]  ;;  %v1359_v13 = vld [vmem:[%s2302_s20 + $0x50] sm:$0xf] }
 0x15c   : >> { %1356 = vst [vmem:[%s2298_s15 + $0x48] sm:$0xf] %v1355_v11  ;;  %1358 = vst [vmem:[%s2298_s15 + $0x4c] sm:$0xf] %v1357_v12  ;;  %v1361_v14 = vld [vmem:[%s2302_s20 + $0x54] sm:$0xf] }
 0x15d   : >> { %1360 = vst [vmem:[%s2298_s15 + $0x50] sm:$0xf] %v1359_v13  ;;  %v1363_v15 = vld [vmem:[%s2302_s20 + $0x58] sm:$0xf]  ;;  %v1365_v16 = vld [vmem:[%s2302_s20 + $0x5c] sm:$0xf] }
 0x15e   : >> { %1362 = vst [vmem:[%s2298_s15 + $0x54] sm:$0xf] %v1361_v14  ;;  %1364 = vst [vmem:[%s2298_s15 + $0x58] sm:$0xf] %v1363_v15  ;;  %v1367_v17 = vld [vmem:[%s2302_s20 + $0x60] sm:$0xf] }
 0x15f   : >> { %1366 = vst [vmem:[%s2298_s15 + $0x5c] sm:$0xf] %v1365_v16  ;;  %v1369_v18 = vld [vmem:[%s2302_s20 + $0x64] sm:$0xf]  ;;  %v1371_v19 = vld [vmem:[%s2302_s20 + $0x68] sm:$0xf] }
 0x160   : >> { %1368 = vst [vmem:[%s2298_s15 + $0x60] sm:$0xf] %v1367_v17  ;;  %1370 = vst [vmem:[%s2298_s15 + $0x64] sm:$0xf] %v1369_v18  ;;  %v1373_v20 = vld [vmem:[%s2302_s20 + $0x6c] sm:$0xf] }
 0x161   : >> { %1372 = vst [vmem:[%s2298_s15 + $0x68] sm:$0xf] %v1371_v19  ;;  %v1375_v21 = vld [vmem:[%s2302_s20 + $0x70] sm:$0xf]  ;;  %v1377_v22 = vld [vmem:[%s2302_s20 + $0x74] sm:$0xf] }
 0x162   : >> { %1374 = vst [vmem:[%s2298_s15 + $0x6c] sm:$0xf] %v1373_v20  ;;  %1376 = vst [vmem:[%s2298_s15 + $0x70] sm:$0xf] %v1375_v21  ;;  %v1379_v23 = vld [vmem:[%s2302_s20 + $0x78] sm:$0xf] }
 0x163   : >> { %1378 = vst [vmem:[%s2298_s15 + $0x74] sm:$0xf] %v1377_v22  ;;  %v1381_v24 = vld [vmem:[%s2302_s20 + $0x7c] sm:$0xf]  ;;  %v1383_v25 = vld [vmem:[%s2302_s20 + $0x80] sm:$0xf] }
 0x164   : >> { %1380 = vst [vmem:[%s2298_s15 + $0x78] sm:$0xf] %v1379_v23  ;;  %1382 = vst [vmem:[%s2298_s15 + $0x7c] sm:$0xf] %v1381_v24  ;;  %v1385_v26 = vld [vmem:[%s2302_s20 + $0x84] sm:$0xf] }
 0x165   : >> { %1384 = vst [vmem:[%s2298_s15 + $0x80] sm:$0xf] %v1383_v25  ;;  %v1387_v27 = vld [vmem:[%s2302_s20 + $0x88] sm:$0xf]  ;;  %v1389_v28 = vld [vmem:[%s2302_s20 + $0x8c] sm:$0xf] }
 0x166   : >> { %1386 = vst [vmem:[%s2298_s15 + $0x84] sm:$0xf] %v1385_v26  ;;  %1388 = vst [vmem:[%s2298_s15 + $0x88] sm:$0xf] %v1387_v27  ;;  %v1391_v29 = vld [vmem:[%s2302_s20 + $0x90] sm:$0xf] }
 0x167   : >> { %1390 = vst [vmem:[%s2298_s15 + $0x8c] sm:$0xf] %v1389_v28  ;;  %v1393_v30 = vld [vmem:[%s2302_s20 + $0x94] sm:$0xf]  ;;  %v1395_v31 = vld [vmem:[%s2302_s20 + $0x98] sm:$0xf] }
 0x168   : >> { %1392 = vst [vmem:[%s2298_s15 + $0x90] sm:$0xf] %v1391_v29  ;;  %1394 = vst [vmem:[%s2298_s15 + $0x94] sm:$0xf] %v1393_v30  ;;  %v1397_v32 = vld [vmem:[%s2302_s20 + $0x9c] sm:$0xf] }
 0x169   : >> { %1396 = vst [vmem:[%s2298_s15 + $0x98] sm:$0xf] %v1395_v31  ;;  %v1399_v33 = vld [vmem:[%s2302_s20 + $0xa0] sm:$0xf]  ;;  %v1401_v34 = vld [vmem:[%s2302_s20 + $0xa4] sm:$0xf] }
 0x16a   : >> { %1398 = vst [vmem:[%s2298_s15 + $0x9c] sm:$0xf] %v1397_v32  ;;  %1400 = vst [vmem:[%s2298_s15 + $0xa0] sm:$0xf] %v1399_v33  ;;  %v1403_v35 = vld [vmem:[%s2302_s20 + $0xa8] sm:$0xf] }
 0x16b   : >> { %1402 = vst [vmem:[%s2298_s15 + $0xa4] sm:$0xf] %v1401_v34  ;;  %v1405_v36 = vld [vmem:[%s2302_s20 + $0xac] sm:$0xf]  ;;  %v1407_v37 = vld [vmem:[%s2302_s20 + $0xb0] sm:$0xf] }
 0x16c   : >> { %1404 = vst [vmem:[%s2298_s15 + $0xa8] sm:$0xf] %v1403_v35  ;;  %1406 = vst [vmem:[%s2298_s15 + $0xac] sm:$0xf] %v1405_v36  ;;  %v1409_v38 = vld [vmem:[%s2302_s20 + $0xb4] sm:$0xf] }
 0x16d   : >> { %1408 = vst [vmem:[%s2298_s15 + $0xb0] sm:$0xf] %v1407_v37  ;;  %v1411_v39 = vld [vmem:[%s2302_s20 + $0xb8] sm:$0xf]  ;;  %v1413_v41 = vld [vmem:[%s2302_s20 + $0xbc] sm:$0xf] }
 0x16e   : >> { %1410 = vst [vmem:[%s2298_s15 + $0xb4] sm:$0xf] %v1409_v38  ;;  %1412 = vst [vmem:[%s2298_s15 + $0xb8] sm:$0xf] %v1411_v39  ;;  %v1415_v42 = vld [vmem:[%s2302_s20 + $0xc0] sm:$0xf] }
 0x16f   : >> { %1414 = vst [vmem:[%s2298_s15 + $0xbc] sm:$0xf] %v1413_v41  ;;  %v1417_v43 = vld [vmem:[%s2302_s20 + $0xc4] sm:$0xf]  ;;  %v1419_v44 = vld [vmem:[%s2302_s20 + $0xc8] sm:$0xf] }
 0x170   : >> { %1416 = vst [vmem:[%s2298_s15 + $0xc0] sm:$0xf] %v1415_v42  ;;  %1418 = vst [vmem:[%s2298_s15 + $0xc4] sm:$0xf] %v1417_v43  ;;  %v1421_v45 = vld [vmem:[%s2302_s20 + $0xcc] sm:$0xf] }
 0x171   : >> { %1420 = vst [vmem:[%s2298_s15 + $0xc8] sm:$0xf] %v1419_v44  ;;  %v1423_v46 = vld [vmem:[%s2302_s20 + $0xd0] sm:$0xf]  ;;  %v1425_v47 = vld [vmem:[%s2302_s20 + $0xd4] sm:$0xf] }
 0x172   : >> { %1422 = vst [vmem:[%s2298_s15 + $0xcc] sm:$0xf] %v1421_v45  ;;  %1424 = vst [vmem:[%s2298_s15 + $0xd0] sm:$0xf] %v1423_v46  ;;  %v1427_v48 = vld [vmem:[%s2302_s20 + $0xd8] sm:$0xf] }
 0x173   : >> { %1426 = vst [vmem:[%s2298_s15 + $0xd4] sm:$0xf] %v1425_v47  ;;  %v1429_v49 = vld [vmem:[%s2302_s20 + $0xdc] sm:$0xf]  ;;  %v1431_v50 = vld [vmem:[%s2302_s20 + $0xe0] sm:$0xf] }
 0x174   : >> { %1428 = vst [vmem:[%s2298_s15 + $0xd8] sm:$0xf] %v1427_v48  ;;  %1430 = vst [vmem:[%s2298_s15 + $0xdc] sm:$0xf] %v1429_v49  ;;  %v1433_v51 = vld [vmem:[%s2302_s20 + $0xe4] sm:$0xf] }
 0x175   : >> { %1432 = vst [vmem:[%s2298_s15 + $0xe0] sm:$0xf] %v1431_v50  ;;  %v1435_v52 = vld [vmem:[%s2302_s20 + $0xe8] sm:$0xf]  ;;  %v1437_v53 = vld [vmem:[%s2302_s20 + $0xec] sm:$0xf] }
 0x176   : >> { %1434 = vst [vmem:[%s2298_s15 + $0xe4] sm:$0xf] %v1433_v51  ;;  %1436 = vst [vmem:[%s2298_s15 + $0xe8] sm:$0xf] %v1435_v52  ;;  %v1439_v54 = vld [vmem:[%s2302_s20 + $0xf0] sm:$0xf] }
 0x177   : >> { %1438 = vst [vmem:[%s2298_s15 + $0xec] sm:$0xf] %v1437_v53  ;;  %v1441_v55 = vld [vmem:[%s2302_s20 + $0xf4] sm:$0xf]  ;;  %v1443_v56 = vld [vmem:[%s2302_s20 + $0xf8] sm:$0xf] }
 0x178   : >> { %1440 = vst [vmem:[%s2298_s15 + $0xf0] sm:$0xf] %v1439_v54  ;;  %1442 = vst [vmem:[%s2298_s15 + $0xf4] sm:$0xf] %v1441_v55  ;;  %v1445_v57 = vld [vmem:[%s2302_s20 + $0xfc] sm:$0xf] }
 0x179   : >> { %1444 = vst [vmem:[%s2298_s15 + $0xf8] sm:$0xf] %v1443_v56  ;;  %1446 = vst [vmem:[%s2298_s15 + $0xfc] sm:$0xf] %v1445_v57  ;;  %s2892_s29 = smov (%p1448_p11, %s1447_s29), 0  ;;  %s1313_s28 = sadd.s32 1, %s2310_s28  }
 0x17a   : >> { %s1903_s30 = sshll.u32 %s2892_s29, 8  ;;  %p1312_p12 = scmp.ge.s32.totalorder %s1313_s28, %s2692_s27 }
 0x17b   : >> { %s1452_s20 = scalar_lea.vmem %s2484_s12, %s1903_s30 [#allocation2]   ;;  %s1453_s15 = scalar_lea.vmem %s2686_s24, %s1903_s30  }
 0x17c   : >> { %s2885_s25 = smov %s2892_s29  ;;  %1315 = sbr.rel (!%p1312_p12) target bundleno = 335 (0x14f), region = 118 }
 0x183 PF: > { %s2860_s4 = sand.u32 63, %s2890_s18   ;;  %s1981_s5 = sshll.u32 %s2692_s27, 8 }
 0x184   : > { %s1458_s6 = scalar_lea.vmem %s2484_s12, %s1981_s5 [#allocation2]   ;;  %s1460_s7 = scalar_lea.vmem %s2686_s24, %s1981_s5  }
 0x185   : > { %p1908_p13 = scmp.le.s32.totalorder %s2860_s4, 0 }
 0x186   : > { %s2312_s8 = smov (!%p1908_p13), %s1460_s7   ;;  %s2316_s9 = smov (!%p1908_p13), %s1458_s6  }
 0x187   : > { %1722 = sbr.rel (%p1908_p13) target bundleno = 408 (0x198), region = 123  ;;  %s2320_s10 = smov (!%p1908_p13), 0  }
 0x188   : > { %s2324_s11 = smov (!%p1908_p13), 0  }
 0x18e LB: >> { %v1470_v40 = vld [vmem:[%s2318_s9] sm:$0xf]  ;;  %s1472_s14 = sadd.s32 1, %s2322_s10  ;;  %s1464_s11 = sadd.s32 1, %s2326_s11   ;;  %s2326_s11 = sphi %s2324_s11, %s1464_s11   ;;  %s2322_s10 = sphi %s2320_s10, %s2321_s10   ;;  %s2318_s9 = sphi %s2316_s9, %s1477_s9   ;;  %s2314_s8 = sphi %s2312_s8, %s1478_s8  }
 0x18f   : >> { %1471 = vst [vmem:[%s2314_s8] sm:$0xf] %v1470_v40  ;;  %p1473_p0 = scmp.ge.s32.totalorder %s1472_s14, %s2860_s4  ;;  %p1463_p1 = scmp.ge.s32.totalorder %s1464_s11, %s2860_s4 }
 0x191   : >> { %s2894_s14 = smov (%p1473_p0, %s1472_s14), 0  ;;  %1466 = sbr.rel (!%p1463_p1) target bundleno = 398 (0x18e), region = 129 }
 0x192   : >> { %s1909_s17 = sshll.u32 %s2894_s14, 2  ;;  %s2321_s10 = smov %s2894_s14  }
 0x193   : >> { %s1477_s9 = scalar_lea.vmem %s1458_s6, %s1909_s17 [#allocation2]   ;;  %s1478_s8 = scalar_lea.vmem %s1460_s7, %s1909_s17  }
 0x198 PF: > { %p10_p2 = scmp.ge.s32.totalorder %s2363_s16, 4   ;;  %s2886_s12 = smov %s2290_s13 }
 0x199   : > { %s2887_s13 = smov %s2371_s19  ;;  %s2888_s14 = smov %s2363_s16 }
 0x19a   :  { %12 = sbr.rel (!%p10_p2) target bundleno = 2 (0x2), region = 140 }

// kernel: critic_forward.6
= control target key start
LH: loop header
LB: loop body
LE: loop exit
PB: predicated region body
PF: predicated region fallthrough
CT: control target
= control target key end

     0   :  { %v863_v0 = vmov 0   ;;  %vm266_vm0 = vcmask 130048   ;;  %vm631_vm1 = vcmask 257024   ;;  %vm662_vm2 = vcmask 253952   ;;  %s1179_s1 = inlined_call_operand.vmem [shape: bf16[144,32], index: 1, kind: input, shape index: {}]   ;;  %s1180_s0 = inlined_call_operand.vmem [shape: bf16[242,144], index: 0, kind: input, shape index: {}]   ;;  %s1181_s2 = inlined_call_operand.vmem [shape: f32[1,32], index: 2, kind: input, shape index: {}]   ;;  %s1182_s3 = inlined_call_operand.vmem [shape: bf16[242,32], index: 3, kind: output, shape index: {}]  }
   0x1   :  { %315 = vmatprep.subr.bf16.mxu0 %v863_v0  ;;  %788 = vmatprep.subr.bf16.mxu1 %v863_v0  ;;  %v807_v1 = vld [vmem:[%s1179_s1] sm:$0xff]   ;;  %v808_v2 = vld [vmem:[%s1179_s1 + $0x8] sm:$0xff]   ;;  %v809_v3 = vld [vmem:[%s1179_s1 + $0x10] sm:$0xff]  }
   0x2   :  { %316 = vmatpush1.bf16.msra.mxu0 %v807_v1  ;;  %797 = vmatpush1.bf16.msra.mxu1 %v807_v1  ;;  %v810_v4 = vld [vmem:[%s1179_s1 + $0x18] sm:$0xff]   ;;  %v818_v5 = vld [vmem:[%s1180_s0 + $0x4] ss:$8 sps:$4 sm:$0xff]   ;;  %v813_v9 = vld [vmem:[%s1179_s1 + $0x30] sm:$0xff]  }
   0x3   :  { %317 = vmatprep.subr.bf16.mxu0 %v863_v0  ;;  %789 = vmatprep.subr.bf16.mxu1 %v863_v0  ;;  %v821_v6 = vld [vmem:[%s1180_s0 + $0x84] ss:$8 sps:$4 sm:$0xff]   ;;  %v814_v10 = vld [vmem:[%s1179_s1 + $0x38] sm:$0xff]   ;;  %v816_v12 = vld [vmem:[%s1180_s0] ss:$8 sps:$4 sm:$0xff]  }
   0x4   :  { %710 = vmatprep.mubr.msk.bf16.mxu0 %vm266_vm0, %v818_v5  ;;  %718 = vmatprep.mubr.msk.bf16.mxu1 %vm266_vm0, %v821_v6  ;;  %v811_v7 = vld [vmem:[%s1179_s1 + $0x20] sm:$0xff]   ;;  %v812_v8 = vld [vmem:[%s1179_s1 + $0x28] sm:$0xff]   ;;  %v822_v14 = vld [vmem:[%s1180_s0 + $0x14] ss:$8 sps:$4 sm:$0xff]  }
   0x5   :  { %v815_v11 = vld [vmem:[%s1179_s1 + $0x40] sm:$0xff]   ;;  %v824_v15 = vld [vmem:[%s1180_s0 + $0x94] ss:$8 sps:$4 sm:$0xff]   ;;  %v826_v16 = vld [vmem:[%s1180_s0 + $0x10] ss:$8 sps:$4 sm:$0xff]  }
   0x6   :  { %318 = vmatpush1.bf16.msra.mxu0 %v808_v2  ;;  %798 = vmatpush1.bf16.msra.mxu1 %v808_v2  ;;  %v819_v13 = vld [vmem:[%s1180_s0 + $0x80] ss:$8 sps:$4 sm:$0xff]   ;;  %v827_v17 = vld [vmem:[%s1180_s0 + $0x90] ss:$8 sps:$4 sm:$0xff]   ;;  %v828_v18 = vld [vmem:[%s1180_s0 + $0x24] ss:$8 sps:$4 sm:$0xff]  }
   0x7   :  { %319 = vmatprep.subr.bf16.mxu0 %v863_v0  ;;  %790 = vmatprep.subr.bf16.mxu1 %v863_v0  ;;  %v830_v19 = vld [vmem:[%s1180_s0 + $0xa4] ss:$8 sps:$4 sm:$0xff]   ;;  %v832_v20 = vld [vmem:[%s1180_s0 + $0x20] ss:$8 sps:$4 sm:$0xff]   ;;  %v834_v22 = vld [vmem:[%s1180_s0 + $0x34] ss:$8 sps:$4 sm:$0xff]  }
   0x8   :  { %v833_v21 = vld [vmem:[%s1180_s0 + $0xa0] ss:$8 sps:$4 sm:$0xff]   ;;  %v836_v23 = vld [vmem:[%s1180_s0 + $0xb4] ss:$8 sps:$4 sm:$0xff]   ;;  %v838_v24 = vld [vmem:[%s1180_s0 + $0x30] ss:$8 sps:$4 sm:$0xff]  }
   0x9   :  { %v839_v25 = vld [vmem:[%s1180_s0 + $0xb0] ss:$8 sps:$4 sm:$0xff]   ;;  %v840_v26 = vld [vmem:[%s1180_s0 + $0x44] ss:$8 sps:$4 sm:$0xff]   ;;  %v844_v28 = vld [vmem:[%s1180_s0 + $0x40] ss:$8 sps:$4 sm:$0xff]  }
   0xa   :  { %320 = vmatpush1.bf16.msra.mxu0 %v809_v3  ;;  %799 = vmatpush1.bf16.msra.mxu1 %v809_v3  ;;  %v842_v27 = vld [vmem:[%s1180_s0 + $0xc4] ss:$8 sps:$4 sm:$0xff]   ;;  %v845_v29 = vld [vmem:[%s1180_s0 + $0xc0] ss:$8 sps:$4 sm:$0xff]   ;;  %v846_v30 = vld [vmem:[%s1180_s0 + $0x54] ss:$8 sps:$4 sm:$0xff]  }
   0xb   :  { %321 = vmatprep.subr.bf16.mxu0 %v863_v0  ;;  %791 = vmatprep.subr.bf16.mxu1 %v863_v0  ;;  %v848_v31 = vld [vmem:[%s1180_s0 + $0xd4] ss:$8 sps:$4 sm:$0xff]   ;;  %v850_v32 = vld [vmem:[%s1180_s0 + $0x50] ss:$8 sps:$4 sm:$0xff]   ;;  %v852_v34 = vld [vmem:[%s1180_s0 + $0x64] ss:$8 sps:$4 sm:$0xff]  }
   0xc   :  { %v851_v33 = vld [vmem:[%s1180_s0 + $0xd0] ss:$8 sps:$4 sm:$0xff]   ;;  %v854_v35 = vld [vmem:[%s1180_s0 + $0xe4] ss:$8 sps:$4 sm:$0xff]   ;;  %v856_v37 = vld [vmem:[%s1180_s0 + $0x60] ss:$8 sps:$4 sm:$0xff]  }
   0xd   :  { %v45_v36 = vld [vmem:[%s1180_s0 + $0xf0] sm:$0x11]  ;;  %v857_v38 = vld [vmem:[%s1180_s0 + $0xe0] ss:$8 sps:$4 sm:$0xff]  }
   0xe   :  { %322 = vmatpush1.bf16.msra.mxu0 %v810_v4  ;;  %800 = vmatpush1.bf16.msra.mxu1 %v810_v4  ;;  %v858_v39 = vld [vmem:[%s1180_s0 + $0x74] ss:$8 sps:$4 sm:$0xff]   ;;  %v700_v40 = vcombine.high %v45_v36, %v45_v36  ;;  %v861_v41 = vld [vmem:[%s1180_s0 + $0x70] ss:$8 sps:$4 sm:$0xff]   ;;  %v699_v42 = vcombine.low %v45_v36, %v45_v36  ;;  %v1023_v43 = vld [vmem:[%s1181_s2] ss:$0 sm:$0xff] }
   0xf   :  { %323 = vmatprep.subr.bf16.mxu0 %v863_v0  ;;  %792 = vmatprep.subr.bf16.mxu1 %v863_v0 }
  0x12   :  { %324 = vmatpush1.bf16.msra.mxu0 %v811_v7  ;;  %801 = vmatpush1.bf16.msra.mxu1 %v811_v7 }
  0x13   :  { %325 = vmatprep.subr.bf16.mxu0 %v863_v0  ;;  %793 = vmatprep.subr.bf16.mxu1 %v863_v0 }
  0x16   :  { %326 = vmatpush1.bf16.msra.mxu0 %v812_v8  ;;  %802 = vmatpush1.bf16.msra.mxu1 %v812_v8 }
  0x17   :  { %327 = vmatprep.subr.bf16.mxu0 %v863_v0  ;;  %794 = vmatprep.subr.bf16.mxu1 %v863_v0 }
  0x1a   :  { %328 = vmatpush1.bf16.msra.mxu0 %v813_v9  ;;  %803 = vmatpush1.bf16.msra.mxu1 %v813_v9 }
  0x1b   :  { %329 = vmatprep.subr.bf16.mxu0 %v863_v0  ;;  %795 = vmatprep.subr.bf16.mxu1 %v863_v0 }
  0x1e   :  { %330 = vmatpush1.bf16.msra.mxu0 %v814_v10  ;;  %804 = vmatpush1.bf16.msra.mxu1 %v814_v10 }
  0x1f   :  { %331 = vmatprep.subr.bf16.mxu0 %v863_v0  ;;  %796 = vmatprep.subr.bf16.mxu1 %v863_v0 }
  0x22   :  { %332 = vmatpush1.bf16.msra.mxu0 %v815_v11  ;;  %805 = vmatpush1.bf16.msra.mxu1 %v815_v11 }
  0x25   :  { %348 = vmatmul.mubr.bf16.vlgmr.msra.gmra.mrb[0].mxu0 %v816_v12  ;;  %412 = vmatmul.mubr.bf16.vlgmr.msra.gmra.mrb[0].mxu1 %v819_v13 }
  0x26   :  { %711 = vmatprep.mubr.msk.bf16.mxu0 %vm266_vm0, %v822_v14  ;;  %719 = vmatprep.mubr.msk.bf16.mxu1 %vm266_vm0, %v824_v15 }
  0x2d   :  { %356 = vmatmul.mubr.bf16.gmra.mrb[4].mxu0 %v826_v16  ;;  %420 = vmatmul.mubr.bf16.gmra.mrb[4].mxu1 %v827_v17 }
  0x2e   :  { %712 = vmatprep.mubr.msk.bf16.mxu0 %vm266_vm0, %v828_v18  ;;  %720 = vmatprep.mubr.msk.bf16.mxu1 %vm266_vm0, %v830_v19 }
  0x35   :  { %364 = vmatmul.mubr.bf16.gmra.mrb[8].mxu0 %v832_v20  ;;  %428 = vmatmul.mubr.bf16.gmra.mrb[8].mxu1 %v833_v21 }
  0x36   :  { %713 = vmatprep.mubr.msk.bf16.mxu0 %vm266_vm0, %v834_v22  ;;  %721 = vmatprep.mubr.msk.bf16.mxu1 %vm266_vm0, %v836_v23 }
  0x3d   :  { %372 = vmatmul.mubr.bf16.gmra.mrb[12].mxu0 %v838_v24  ;;  %436 = vmatmul.mubr.bf16.gmra.mrb[12].mxu1 %v839_v25 }
  0x3e   :  { %714 = vmatprep.mubr.msk.bf16.mxu0 %vm266_vm0, %v840_v26  ;;  %722 = vmatprep.mubr.msk.bf16.mxu1 %vm266_vm0, %v842_v27 }
  0x45   :  { %380 = vmatmul.mubr.bf16.gmra.mrb[16].mxu0 %v844_v28  ;;  %444 = vmatmul.mubr.bf16.gmra.mrb[16].mxu1 %v845_v29 }
  0x46   :  { %715 = vmatprep.mubr.msk.bf16.mxu0 %vm266_vm0, %v846_v30  ;;  %723 = vmatprep.mubr.msk.bf16.mxu1 %vm266_vm0, %v848_v31 }
  0x4d   :  { %388 = vmatmul.mubr.bf16.gmra.mrb[20].mxu0 %v850_v32  ;;  %452 = vmatmul.mubr.bf16.gmra.mrb[20].mxu1 %v851_v33 }
  0x4e   :  { %716 = vmatprep.mubr.msk.bf16.mxu0 %vm266_vm0, %v852_v34  ;;  %724 = vmatprep.mubr.msk.bf16.mxu1 %vm266_vm0, %v854_v35 }
  0x55   :  { %396 = vmatmul.mubr.bf16.gmra.mrb[24].mxu0 %v856_v37  ;;  %460 = vmatmul.mubr.bf16.gmra.mrb[24].mxu1 %v857_v38 }
  0x56   :  { %717 = vmatprep.mubr.msk.bf16.mxu0 %vm266_vm0, %v858_v39  ;;  %725 = vmatprep.mubr.msk.bf16.mxu1 %vm266_vm0, %v700_v40 }
  0x5d   :  { %404 = vmatmul.mubr.bf16.gmra.mrb[28].mxu0 %v861_v41  ;;  %468 = vmatmul.mubr.bf16.gmra.mrb[28].mxu1 %v699_v42 }
  0xf8   :  { %v349_v44 = vpop.f32.mrb[0].mxu0  ;;  %v413_v45 = vpop.f32.mrb[0].mxu1 }
  0xf9   :  { %v350_v46 = vadd.f32 %v1023_v43, %v349_v44  ;;  %v414_v47 = vadd.f32 %v1023_v43, %v413_v45  ;;  %v351_v48 = vpop.f32.mrb[1].mxu0  ;;  %v415_v49 = vpop.f32.mrb[1].mxu1 }
  0xfa   :  { %v352_v50 = vpop.f32.mrb[2].mxu0  ;;  %v416_v51 = vpop.f32.mrb[2].mxu1 }
  0xfb   :  { %v475_v52 = vmax.f32 %v350_v46, 0.0  ;;  %v491_v53 = vmax.f32 %v414_v47, 0.0  ;;  %v353_v54 = vadd.f32 %v1023_v43, %v352_v50  ;;  %v417_v55 = vadd.f32 %v1023_v43, %v416_v51  ;;  %v354_v56 = vpop.f32.mrb[3].mxu0  ;;  %v418_v57 = vpop.f32.mrb[3].mxu1 }
  0xfd   :  { %v757_v58 = vpack.c.bf16 %v475_v52, %v475_v52  ;;  %v773_v59 = vpack.c.bf16 %v491_v53, %v491_v53  ;;  %v476_v60 = vmax.f32 %v353_v54, 0.0  ;;  %v492_v61 = vmax.f32 %v417_v55, 0.0 }
  0xff   :  { %632 = vst.msk [vmem:[%s1182_s3] sm:$0xf] %vm631_vm1, %v757_v58  ;;  %648 = vst.msk [vmem:[%s1182_s3 + $0x40] sm:$0xf] %vm631_vm1, %v773_v59  ;;  %v758_v62 = vpack.c.bf16 %v476_v60, %v476_v60  ;;  %v774_v63 = vpack.c.bf16 %v492_v61, %v492_v61 }
 0x100   :  { %v357_v0 = vpop.f32.mrb[4].mxu0  ;;  %v421_v1 = vpop.f32.mrb[4].mxu1 }
 0x101   :  { %633 = vst.msk [vmem:[%s1182_s3 + $0x4] sm:$0xf] %vm631_vm1, %v758_v62  ;;  %649 = vst.msk [vmem:[%s1182_s3 + $0x44] sm:$0xf] %vm631_vm1, %v774_v63  ;;  %v358_v2 = vadd.f32 %v1023_v43, %v357_v0  ;;  %v422_v3 = vadd.f32 %v1023_v43, %v421_v1  ;;  %v359_v4 = vpop.f32.mrb[5].mxu0  ;;  %v423_v5 = vpop.f32.mrb[5].mxu1 }
 0x102   :  { %v360_v6 = vpop.f32.mrb[6].mxu0  ;;  %v424_v7 = vpop.f32.mrb[6].mxu1 }
 0x103   :  { %v477_v8 = vmax.f32 %v358_v2, 0.0  ;;  %v493_v9 = vmax.f32 %v422_v3, 0.0  ;;  %v361_v10 = vadd.f32 %v1023_v43, %v360_v6  ;;  %v425_v11 = vadd.f32 %v1023_v43, %v424_v7  ;;  %v362_v12 = vpop.f32.mrb[7].mxu0  ;;  %v426_v13 = vpop.f32.mrb[7].mxu1 }
 0x105   :  { %v759_v14 = vpack.c.bf16 %v477_v8, %v477_v8  ;;  %v775_v15 = vpack.c.bf16 %v493_v9, %v493_v9  ;;  %v478_v16 = vmax.f32 %v361_v10, 0.0  ;;  %v494_v17 = vmax.f32 %v425_v11, 0.0 }
 0x107   :  { %634 = vst.msk [vmem:[%s1182_s3 + $0x8] sm:$0xf] %vm631_vm1, %v759_v14  ;;  %650 = vst.msk [vmem:[%s1182_s3 + $0x48] sm:$0xf] %vm631_vm1, %v775_v15  ;;  %v760_v18 = vpack.c.bf16 %v478_v16, %v478_v16  ;;  %v776_v19 = vpack.c.bf16 %v494_v17, %v494_v17 }
 0x108   :  { %v365_v20 = vpop.f32.mrb[8].mxu0  ;;  %v429_v21 = vpop.f32.mrb[8].mxu1 }
 0x109   :  { %635 = vst.msk [vmem:[%s1182_s3 + $0xc] sm:$0xf] %vm631_vm1, %v760_v18  ;;  %651 = vst.msk [vmem:[%s1182_s3 + $0x4c] sm:$0xf] %vm631_vm1, %v776_v19  ;;  %v366_v22 = vadd.f32 %v1023_v43, %v365_v20  ;;  %v430_v23 = vadd.f32 %v1023_v43, %v429_v21  ;;  %v367_v24 = vpop.f32.mrb[9].mxu0  ;;  %v431_v25 = vpop.f32.mrb[9].mxu1 }
 0x10a   :  { %v368_v26 = vpop.f32.mrb[10].mxu0  ;;  %v432_v27 = vpop.f32.mrb[10].mxu1 }
 0x10b   :  { %v479_v28 = vmax.f32 %v366_v22, 0.0  ;;  %v495_v29 = vmax.f32 %v430_v23, 0.0  ;;  %v369_v30 = vadd.f32 %v1023_v43, %v368_v26  ;;  %v433_v31 = vadd.f32 %v1023_v43, %v432_v27  ;;  %v370_v32 = vpop.f32.mrb[11].mxu0  ;;  %v434_v33 = vpop.f32.mrb[11].mxu1 }
 0x10d   :  { %v761_v34 = vpack.c.bf16 %v479_v28, %v479_v28  ;;  %v777_v35 = vpack.c.bf16 %v495_v29, %v495_v29  ;;  %v480_v36 = vmax.f32 %v369_v30, 0.0  ;;  %v496_v37 = vmax.f32 %v433_v31, 0.0 }
 0x10f   :  { %636 = vst.msk [vmem:[%s1182_s3 + $0x10] sm:$0xf] %vm631_vm1, %v761_v34  ;;  %652 = vst.msk [vmem:[%s1182_s3 + $0x50] sm:$0xf] %vm631_vm1, %v777_v35  ;;  %v762_v38 = vpack.c.bf16 %v480_v36, %v480_v36  ;;  %v778_v39 = vpack.c.bf16 %v496_v37, %v496_v37 }
 0x110   :  { %v373_v40 = vpop.f32.mrb[12].mxu0  ;;  %v437_v41 = vpop.f32.mrb[12].mxu1 }
 0x111   :  { %637 = vst.msk [vmem:[%s1182_s3 + $0x14] sm:$0xf] %vm631_vm1, %v762_v38  ;;  %653 = vst.msk [vmem:[%s1182_s3 + $0x54] sm:$0xf] %vm631_vm1, %v778_v39  ;;  %v374_v42 = vadd.f32 %v1023_v43, %v373_v40  ;;  %v438_v44 = vadd.f32 %v1023_v43, %v437_v41  ;;  %v375_v45 = vpop.f32.mrb[13].mxu0  ;;  %v439_v46 = vpop.f32.mrb[13].mxu1 }
 0x112   :  { %v376_v47 = vpop.f32.mrb[14].mxu0  ;;  %v440_v48 = vpop.f32.mrb[14].mxu1 }
 0x113   :  { %v481_v49 = vmax.f32 %v374_v42, 0.0  ;;  %v497_v50 = vmax.f32 %v438_v44, 0.0  ;;  %v377_v51 = vadd.f32 %v1023_v43, %v376_v47  ;;  %v441_v52 = vadd.f32 %v1023_v43, %v440_v48  ;;  %v378_v53 = vpop.f32.mrb[15].mxu0  ;;  %v442_v54 = vpop.f32.mrb[15].mxu1 }
 0x115   :  { %v763_v55 = vpack.c.bf16 %v481_v49, %v481_v49  ;;  %v779_v56 = vpack.c.bf16 %v497_v50, %v497_v50  ;;  %v482_v57 = vmax.f32 %v377_v51, 0.0  ;;  %v498_v58 = vmax.f32 %v441_v52, 0.0 }
 0x117   :  { %638 = vst.msk [vmem:[%s1182_s3 + $0x18] sm:$0xf] %vm631_vm1, %v763_v55  ;;  %654 = vst.msk [vmem:[%s1182_s3 + $0x58] sm:$0xf] %vm631_vm1, %v779_v56  ;;  %v764_v59 = vpack.c.bf16 %v482_v57, %v482_v57  ;;  %v780_v60 = vpack.c.bf16 %v498_v58, %v498_v58 }
 0x118   :  { %v381_v61 = vpop.f32.mrb[16].mxu0  ;;  %v445_v62 = vpop.f32.mrb[16].mxu1 }
 0x119   :  { %639 = vst.msk [vmem:[%s1182_s3 + $0x1c] sm:$0xf] %vm631_vm1, %v764_v59  ;;  %655 = vst.msk [vmem:[%s1182_s3 + $0x5c] sm:$0xf] %vm631_vm1, %v780_v60  ;;  %v382_v63 = vadd.f32 %v1023_v43, %v381_v61  ;;  %v446_v0 = vadd.f32 %v1023_v43, %v445_v62  ;;  %v383_v1 = vpop.f32.mrb[17].mxu0  ;;  %v447_v2 = vpop.f32.mrb[17].mxu1 }
 0x11a   :  { %v384_v3 = vpop.f32.mrb[18].mxu0  ;;  %v448_v4 = vpop.f32.mrb[18].mxu1 }
 0x11b   :  { %v483_v5 = vmax.f32 %v382_v63, 0.0  ;;  %v499_v6 = vmax.f32 %v446_v0, 0.0  ;;  %v385_v7 = vadd.f32 %v1023_v43, %v384_v3  ;;  %v449_v8 = vadd.f32 %v1023_v43, %v448_v4  ;;  %v386_v9 = vpop.f32.mrb[19].mxu0  ;;  %v450_v10 = vpop.f32.mrb[19].mxu1 }
 0x11d   :  { %v765_v11 = vpack.c.bf16 %v483_v5, %v483_v5  ;;  %v781_v12 = vpack.c.bf16 %v499_v6, %v499_v6  ;;  %v484_v13 = vmax.f32 %v385_v7, 0.0  ;;  %v500_v14 = vmax.f32 %v449_v8, 0.0 }
 0x11f   :  { %640 = vst.msk [vmem:[%s1182_s3 + $0x20] sm:$0xf] %vm631_vm1, %v765_v11  ;;  %656 = vst.msk [vmem:[%s1182_s3 + $0x60] sm:$0xf] %vm631_vm1, %v781_v12  ;;  %v766_v15 = vpack.c.bf16 %v484_v13, %v484_v13  ;;  %v782_v16 = vpack.c.bf16 %v500_v14, %v500_v14 }
 0x120   :  { %v389_v17 = vpop.f32.mrb[20].mxu0  ;;  %v453_v18 = vpop.f32.mrb[20].mxu1 }
 0x121   :  { %641 = vst.msk [vmem:[%s1182_s3 + $0x24] sm:$0xf] %vm631_vm1, %v766_v15  ;;  %657 = vst.msk [vmem:[%s1182_s3 + $0x64] sm:$0xf] %vm631_vm1, %v782_v16  ;;  %v390_v19 = vadd.f32 %v1023_v43, %v389_v17  ;;  %v454_v20 = vadd.f32 %v1023_v43, %v453_v18  ;;  %v391_v21 = vpop.f32.mrb[21].mxu0  ;;  %v455_v22 = vpop.f32.mrb[21].mxu1 }
 0x122   :  { %v392_v23 = vpop.f32.mrb[22].mxu0  ;;  %v456_v24 = vpop.f32.mrb[22].mxu1 }
 0x123   :  { %v485_v25 = vmax.f32 %v390_v19, 0.0  ;;  %v501_v26 = vmax.f32 %v454_v20, 0.0  ;;  %v393_v27 = vadd.f32 %v1023_v43, %v392_v23  ;;  %v457_v28 = vadd.f32 %v1023_v43, %v456_v24  ;;  %v394_v29 = vpop.f32.mrb[23].mxu0  ;;  %v458_v30 = vpop.f32.mrb[23].mxu1 }
 0x125   :  { %v767_v31 = vpack.c.bf16 %v485_v25, %v485_v25  ;;  %v783_v32 = vpack.c.bf16 %v501_v26, %v501_v26  ;;  %v486_v33 = vmax.f32 %v393_v27, 0.0  ;;  %v502_v34 = vmax.f32 %v457_v28, 0.0 }
 0x127   :  { %642 = vst.msk [vmem:[%s1182_s3 + $0x28] sm:$0xf] %vm631_vm1, %v767_v31  ;;  %658 = vst.msk [vmem:[%s1182_s3 + $0x68] sm:$0xf] %vm631_vm1, %v783_v32  ;;  %v768_v35 = vpack.c.bf16 %v486_v33, %v486_v33  ;;  %v784_v36 = vpack.c.bf16 %v502_v34, %v502_v34 }
 0x128   :  { %v397_v37 = vpop.f32.mrb[24].mxu0  ;;  %v461_v38 = vpop.f32.mrb[24].mxu1 }
 0x129   :  { %643 = vst.msk [vmem:[%s1182_s3 + $0x2c] sm:$0xf] %vm631_vm1, %v768_v35  ;;  %659 = vst.msk [vmem:[%s1182_s3 + $0x6c] sm:$0xf] %vm631_vm1, %v784_v36  ;;  %v398_v39 = vadd.f32 %v1023_v43, %v397_v37  ;;  %v462_v40 = vadd.f32 %v1023_v43, %v461_v38  ;;  %v399_v41 = vpop.f32.mrb[25].mxu0  ;;  %v463_v42 = vpop.f32.mrb[25].mxu1 }
 0x12a   :  { %v400_v44 = vpop.f32.mrb[26].mxu0  ;;  %v464_v45 = vpop.f32.mrb[26].mxu1 }
 0x12b   :  { %v487_v46 = vmax.f32 %v398_v39, 0.0  ;;  %v503_v47 = vmax.f32 %v462_v40, 0.0  ;;  %v401_v48 = vadd.f32 %v1023_v43, %v400_v44  ;;  %v465_v49 = vadd.f32 %v1023_v43, %v464_v45  ;;  %v402_v50 = vpop.f32.mrb[27].mxu0  ;;  %v466_v51 = vpop.f32.mrb[27].mxu1 }
 0x12d   :  { %v769_v52 = vpack.c.bf16 %v487_v46, %v487_v46  ;;  %v785_v53 = vpack.c.bf16 %v503_v47, %v503_v47  ;;  %v488_v54 = vmax.f32 %v401_v48, 0.0  ;;  %v504_v55 = vmax.f32 %v465_v49, 0.0 }
 0x12f   :  { %644 = vst.msk [vmem:[%s1182_s3 + $0x30] sm:$0xf] %vm631_vm1, %v769_v52  ;;  %660 = vst.msk [vmem:[%s1182_s3 + $0x70] sm:$0xf] %vm631_vm1, %v785_v53  ;;  %v770_v56 = vpack.c.bf16 %v488_v54, %v488_v54  ;;  %v786_v57 = vpack.c.bf16 %v504_v55, %v504_v55 }
 0x130   :  { %v405_v58 = vpop.f32.mrb[28].mxu0  ;;  %v469_v59 = vpop.f32.mrb[28].mxu1 }
 0x131   :  { %645 = vst.msk [vmem:[%s1182_s3 + $0x34] sm:$0xf] %vm631_vm1, %v770_v56  ;;  %661 = vst.msk [vmem:[%s1182_s3 + $0x74] sm:$0xf] %vm631_vm1, %v786_v57  ;;  %v406_v60 = vadd.f32 %v1023_v43, %v405_v58  ;;  %v470_v61 = vadd.f32 %v1023_v43, %v469_v59  ;;  %v407_v62 = vpop.f32.mrb[29].mxu0  ;;  %v471_v63 = vpop.f32.mrb[29].mxu1 }
 0x132   :  { %v408_v0 = vpop.f32.mrb[30].mxu0  ;;  %v472_v1 = vpop.f32.mrb[30].mxu1 }
 0x133   :  { %v489_v2 = vmax.f32 %v406_v60, 0.0  ;;  %v505_v3 = vmax.f32 %v470_v61, 0.0  ;;  %v409_v4 = vadd.f32 %v1023_v43, %v408_v0  ;;  %v410_v5 = vpop.f32.mrb[31].mxu0  ;;  %v473_v6 = vpop.f32.mrb[31].mxu1 }
 0x135   :  { %v771_v7 = vpack.c.bf16 %v489_v2, %v489_v2  ;;  %v787_v8 = vpack.c.bf16 %v505_v3, %v505_v3  ;;  %v490_v9 = vmax.f32 %v409_v4, 0.0 }
 0x137   :  { %646 = vst.msk [vmem:[%s1182_s3 + $0x38] sm:$0xf] %vm631_vm1, %v771_v7  ;;  %v772_v10 = vpack.c.bf16 %v490_v9, %v490_v9 }
 0x138   :  { %663 = vst.msk [vmem:[%s1182_s3 + $0x78] sm:$0x1] %vm662_vm2, %v787_v8 }
 0x139   :  { %647 = vst.msk [vmem:[%s1182_s3 + $0x3c] sm:$0xf] %vm631_vm1, %v772_v10 }

// kernel: critic_forward.7
= control target key start
LH: loop header
LB: loop body
LE: loop exit
PB: predicated region body
PF: predicated region fallthrough
CT: control target
= control target key end

     0   :  { %vm273_vm0 = vcmask 261120   ;;  %v4896_v18 = vmov 0.0   ;;  %vm4897_vm1 = vmmov 0   ;;  %vm468_vm2 = vcmask 523264   ;;  %s6242_s1 = inlined_call_operand.vmem [shape: bf16[288,64], index: 1, kind: input, shape index: {}]   ;;  %s6243_s0 = inlined_call_operand.vmem [shape: bf16[50,288], index: 0, kind: input, shape index: {}]   ;;  %s6244_s3 = inlined_call_operand.vmem [shape: bf16[9,64,128], index: 3, kind: input, shape index: {}]   ;;  %s6245_s2 = inlined_call_operand.vmem [shape: f32[1,64], index: 2, kind: input, shape index: {}]   ;;  %s6246_s5 = inlined_call_operand.vmem [shape: bf16[9,128,256], index: 5, kind: input, shape index: {}]   ;;  %s6247_s4 = inlined_call_operand.vmem [shape: f32[1,128], index: 4, kind: input, shape index: {}]   ;;  %s6248_s7 = inlined_call_operand.vmem [shape: f32[2,3], index: 7, kind: input, shape index: {}]   ;;  %s6249_s11 = inlined_call_operand.vmem [shape: bf16[128,100], index: 11, kind: input, shape index: {}]   ;;  %s6250_s10 = inlined_call_operand.vmem [shape: bf16[256,100], index: 10, kind: input, shape index: {}]   ;;  %s6251_s8 = inlined_call_operand.vmem [shape: f32[3,128], index: 8, kind: input, shape index: {}]   ;;  %s6252_s9 = inlined_call_operand.vmem [shape: f32[1,128], index: 9, kind: input, shape index: {}]   ;;  %s6253_s6 = inlined_call_operand.vmem [shape: f32[1,256], index: 6, kind: input, shape index: {}]   ;;  %s6254_s14 = inlined_call_operand.<no memory space> [shape: f32[1,1], index: 14, kind: input, shape index: {}]   ;;  %s6255_s12 = inlined_call_operand.vmem [shape: f32[1,100], index: 12, kind: input, shape index: {}]   ;;  %s6256_s13 = inlined_call_operand.vmem [shape: f32[1,100], index: 13, kind: input, shape index: {}]   ;;  %s6257_s15 = inlined_call_operand.vmem [shape: f32[2,1], index: 15, kind: output, shape index: {}]  }
   0x1   :  { %v4587_v0 = vld [vmem:[%s6242_s1 + $0x40] sm:$0xff]   ;;  %v4589_v2 = vld [vmem:[%s6242_s1 + $0x48] sm:$0xff]   ;;  %v4591_v4 = vld [vmem:[%s6242_s1 + $0x50] sm:$0xff]   ;;  %vm826_vm3 = vcmask 1040384   ;;  %vm745_vm4 = vcmask 1041408   ;;  %vm3529_vm5 = vcmask 812032  }
   0x2   :  { %v4588_v1 = vld [vmem:[%s6242_s1] sm:$0xff]   ;;  %4010 = vmatprep.subr.bf16.mxu0 %v4587_v0  ;;  %v4590_v3 = vld [vmem:[%s6242_s1 + $0x8] sm:$0xff]   ;;  %v4592_v5 = vld [vmem:[%s6242_s1 + $0x10] sm:$0xff]   ;;  %vm3541_vm6 = vcmask 1024  }
   0x3   :  { %4011 = vmatpush3.bf16.msra.mxu0 %v4588_v1  ;;  %v4593_v6 = vld [vmem:[%s6242_s1 + $0x58] sm:$0xff]   ;;  %v4595_v8 = vld [vmem:[%s6242_s1 + $0x60] sm:$0xff]   ;;  %v4597_v11 = vld [vmem:[%s6242_s1 + $0x68] sm:$0xff]  }
   0x4   :  { %4012 = vmatprep.subr.bf16.mxu0 %v4589_v2  ;;  %v4594_v7 = vld [vmem:[%s6242_s1 + $0x18] sm:$0xff]   ;;  %v4601_v9 = vld [vmem:[%s6242_s1 + $0x80] sm:$0xff]   ;;  %v4598_v12 = vld [vmem:[%s6242_s1 + $0x28] sm:$0xff]  }
   0x5   :  { %v4596_v10 = vld [vmem:[%s6242_s1 + $0x20] sm:$0xff]   ;;  %4222 = vmatprep.subr.bf16.mxu1 %v4601_v9  ;;  %v4604_v13 = vld [vmem:[%s6242_s1 + $0x88] sm:$0xff]   ;;  %v4599_v14 = vld [vmem:[%s6242_s1 + $0x70] sm:$0xff]  }
   0x6   :  { %4223 = vmatpush3.bf16.msra.mxu1 %v4601_v9  ;;  %v4607_v15 = vld [vmem:[%s6243_s0 + $0x4] ss:$12 sps:$4 sm:$0xff]   ;;  %v4608_v16 = vld [vmem:[%s6243_s0 + $0x8] ss:$12 sps:$4 sm:$0xff]   ;;  %v4609_v17 = vld [vmem:[%s6243_s0 + $0x20] ss:$12 sps:$4 sm:$0xff]  }
   0x7   :  { %4013 = vmatpush3.bf16.msra.mxu0 %v4590_v3  ;;  %4224 = vmatprep.subr.bf16.mxu1 %v4604_v13  ;;  %v4600_v19 = vld [vmem:[%s6242_s1 + $0x30] sm:$0xff]   ;;  %v4602_v20 = vld [vmem:[%s6242_s1 + $0x78] sm:$0xff]   ;;  %v4605_v24 = vld [vmem:[%s6243_s0] ss:$12 sps:$4 sm:$0xff]  }
   0x8   :  { %4014 = vmatprep.subr.bf16.mxu0 %v4591_v4  ;;  %318 = vmatprep.mubr.bf16.mxu0 %v4607_v15  ;;  %v4616_v21 = vld [vmem:[%s6243_s0 + $0x38] ss:$12 sps:$4 sm:$0xff]   ;;  %v4617_v23 = vld [vmem:[%s6243_s0 + $0x50] ss:$0 sps:$4 sm:$0x11]   ;;  %v5084_v33 = vld [vmem:[%s6244_s3 + $0x28] sm:$0xff]  }
   0x9   :  { %4226 = vmatprep.mubr.msk.bf16.mxu1 %vm273_vm0, %v4608_v16  ;;  %v4603_v22 = vld [vmem:[%s6242_s1 + $0x38] sm:$0xff]   ;;  %v4613_v27 = vld [vmem:[%s6243_s0 + $0x34] ss:$12 sps:$4 sm:$0xff]   ;;  %v65_v28 = vld [vmem:[%s6243_s0 + $0x48] sm:$0x11] }
   0xa   :  { %4225 = vmatpush3.bf16.msra.mxu1 %v4604_v13  ;;  %v4610_v25 = vld [vmem:[%s6243_s0 + $0x1c] ss:$12 sps:$4 sm:$0xff]   ;;  %v4612_v26 = vld [vmem:[%s6243_s0 + $0x18] ss:$12 sps:$4 sm:$0xff]   ;;  %v3558_v30 = vcombine.high %v65_v28, %v65_v28  ;;  %v3557_v31 = vcombine.low %v65_v28, %v65_v28  ;;  %v5091_v34 = vld [vmem:[%s6244_s3 + $0x30] sm:$0xff]  }
   0xb   :  { %4015 = vmatpush3.bf16.msra.mxu0 %v4592_v5  ;;  %4234 = vmatprep.subr.bf16.mxu1 %v4896_v18  ;;  %v4615_v29 = vld [vmem:[%s6243_s0 + $0x30] ss:$12 sps:$4 sm:$0xff]   ;;  %v5077_v32 = vld [vmem:[%s6244_s3 + $0x20] sm:$0xff]   ;;  %v5110_v37 = vld [vmem:[%s6244_s3 + $0xa8] sm:$0xff]  }
   0xc   :  { %4016 = vmatprep.subr.bf16.mxu0 %v4593_v6  ;;  %v5096_v35 = vld [vmem:[%s6244_s3 + $0xa0] sm:$0xff]   ;;  %v5104_v36 = vld [vmem:[%s6244_s3 + $0x38] sm:$0xff]   ;;  %v5123_v38 = vld [vmem:[%s6244_s3 + $0xb0] sm:$0xff]  }
   0xd   :  { %4227 = vmatmul.mubr.msk.bf16.vlgmr.msra.gmra.mrb[0].mxu1 %vm273_vm0, %v4609_v17  ;;  %v5130_v39 = vld [vmem:[%s6244_s3 + $0xb8] sm:$0xff]   ;;  %v5139_v49 = vld [vmem:[%s6245_s2] ss:$0 sm:$0xff] }
   0xe   :  { %4230 = vmatprep.mubr.msk.bf16.mxu1 %vm273_vm0, %v4616_v21  ;;  %4235 = vmatpush3.bf16.msra.mxu1 %v5077_v32  ;;  %v5149_v5 = vld [vmem:[%s6244_s3] sm:$0xff]  }
   0xf   :  { %4017 = vmatpush3.bf16.msra.mxu0 %v4594_v7  ;;  %4236 = vmatprep.subr.bf16.mxu1 %v4896_v18 }
  0x10   :  { %4018 = vmatprep.subr.bf16.mxu0 %v4595_v8 }
  0x12   :  { %4237 = vmatpush3.bf16.msra.mxu1 %v5084_v33 }
  0x13   :  { %4019 = vmatpush3.bf16.msra.mxu0 %v4596_v10  ;;  %4238 = vmatprep.subr.bf16.mxu1 %v4896_v18 }
  0x14   :  { %4020 = vmatprep.subr.bf16.mxu0 %v4597_v11 }
  0x15   :  { %4231 = vmatmul.mubr.msk.bf16.gmra.mrb[4].mxu1 %vm273_vm0, %v4617_v23 }
  0x16   :  { %4239 = vmatpush3.bf16.msra.mxu1 %v5091_v34  ;;  %4242 = vmatprep.mubr.msk.bf16.mxu1 %vm4897_vm1, %v4896_v18 }
  0x17   :  { %4021 = vmatpush3.bf16.msra.mxu0 %v4598_v12  ;;  %4240 = vmatprep.subr.bf16.mxu1 %v4896_v18  ;;  %v5158_v12 = vld [vmem:[%s6244_s3 + $0x8] sm:$0xff]  }
  0x18   :  { %4022 = vmatprep.subr.bf16.mxu0 %v4599_v14 }
  0x1a   :  { %4241 = vmatpush3.bf16.msra.mxu1 %v5104_v36 }
  0x1b   :  { %4023 = vmatpush3.bf16.msra.mxu0 %v4600_v19  ;;  %4246 = vmatprep.subr.bf16.mxu1 %v4896_v18 }
  0x1c   :  { %4024 = vmatprep.subr.bf16.mxu0 %v4602_v20 }
  0x1f   :  { %4025 = vmatpush3.bf16.msra.mxu0 %v4603_v22  ;;  %v5170_v22 = vld [vmem:[%s6244_s3 + $0x10] sm:$0xff]  }
  0x20   :  { %4294 = vmatprep.subr.bf16.mxu0 %v4896_v18 }
  0x22   :  { %319 = vmatmul.mubr.bf16.vlgmr.msra.gmra.mrb[0].mxu0 %v4605_v24 }
  0x23   :  { %326 = vmatprep.mubr.bf16.mxu0 %v4610_v25  ;;  %4295 = vmatpush3.bf16.msra.mxu0 %v5096_v35 }
  0x24   :  { %4296 = vmatprep.subr.bf16.mxu0 %v4896_v18 }
  0x27   :  { %4297 = vmatpush3.bf16.msra.mxu0 %v5110_v37 }
  0x28   :  { %4298 = vmatprep.subr.bf16.mxu0 %v4896_v18 }
  0x2a   :  { %327 = vmatmul.mubr.bf16.gmra.mrb[4].mxu0 %v4612_v26 }
  0x2b   :  { %334 = vmatprep.mubr.bf16.mxu0 %v4613_v27  ;;  %4299 = vmatpush3.bf16.msra.mxu0 %v5123_v38  ;;  %v5179_v27 = vld [vmem:[%s6244_s3 + $0xe0] sm:$0xff]  }
  0x2c   :  { %4300 = vmatprep.subr.bf16.mxu0 %v4896_v18 }
  0x2f   :  { %4301 = vmatpush3.bf16.msra.mxu0 %v5130_v39 }
  0x30   :  { %4318 = vmatprep.subr.bf16.mxu0 %v4896_v18 }
  0x32   :  { %335 = vmatmul.mubr.bf16.gmra.mrb[8].mxu0 %v4615_v29 }
  0x33   :  { %342 = vmatprep.mubr.bf16.mxu0 %v3558_v30 }
  0x3a   :  { %343 = vmatmul.mubr.bf16.gmra.mrb[12].mxu0 %v3557_v31 }
  0x3b   :  { %4302 = vmatprep.mubr.msk.bf16.mxu0 %vm4897_vm1, %v4896_v18 }
  0xe0   :  { %v4228_v40 = vpop.f32.mrb[0].mxu1 }
  0xe1   :  { %v384_v41 = vpop.f32.mrb[1].mxu1 }
  0xe2   :  { %v4229_v42 = vpop.f32.mrb[2].mxu1 }
  0xe3   :  { %v387_v43 = vpop.f32.mrb[3].mxu1 }
  0xe8   :  { %v5134_v44 = vpop.f32.mrb[4].mxu1 }
  0xe9   :  { %v400_v45 = vpop.f32.mrb[5].mxu1 }
  0xea   :  { %v4233_v47 = vpop.f32.mrb[6].mxu1 }
  0xeb   :  { %v403_v50 = vpop.f32.mrb[7].mxu1 }
  0xf5   :  { %v4026_v46 = vpop.f32.mrb[0].mxu0 }
  0xf6   :  { %v4027_v48 = vpop.f32.mrb[1].mxu0 }
  0xf7   :  { %v4028_v51 = vadd.f32 %v4027_v48, %v4026_v46  ;;  %v4029_v52 = vpop.f32.mrb[2].mxu0  ;;  %v5213_v48 = vld [vmem:[%s6244_s3 + $0x40] sm:$0xff]  }
  0xf8   :  { %v4030_v53 = vpop.f32.mrb[3].mxu0 }
  0xf9   :  { %v321_v54 = vadd.f32 %v4028_v51, %v5139_v49  ;;  %v4031_v55 = vadd.f32 %v4030_v53, %v4029_v52  ;;  %v5220_v51 = vld [vmem:[%s6244_s3 + $0xf0] sm:$0xff]  }
  0xfb   :  { %v385_v56 = vadd.f32 %v384_v41, %v321_v54  ;;  %v324_v57 = vadd.f32 %v4031_v55, %v5139_v49  ;;  %v5192_v41 = vld [vmem:[%s6244_s3 + $0x18] sm:$0xff]  }
  0xfd   :  { %v388_v58 = vadd.f32 %v387_v43, %v324_v57  ;;  %v4032_v59 = vpop.f32.mrb[4].mxu0  ;;  %v414_v61 = vmax.f32 %v385_v56, 0.0 }
  0xfe   :  { %v4033_v60 = vpop.f32.mrb[5].mxu0 }
  0xff   :  { %v415_v62 = vmax.f32 %v388_v58, 0.0  ;;  %v4034_v63 = vadd.f32 %v4033_v60, %v4032_v59  ;;  %v4035_v0 = vpop.f32.mrb[6].mxu0  ;;  %v5234_v58 = vld [vmem:[%s6244_s3 + $0x48] sm:$0xff]   ;;  %v5243_v59 = vld [vmem:[%s6244_s3 + $0xf8] sm:$0xff]  }
 0x100   :  { %v4036_v1 = vpop.f32.mrb[7].mxu0 }
 0x101   :  { %v5143_v2 = vpack.c.bf16 %v415_v62, %v414_v61  ;;  %v329_v3 = vadd.f32 %v4034_v63, %v5139_v49  ;;  %v4037_v4 = vadd.f32 %v4036_v1, %v4035_v0  ;;  %v5251_v61 = vld [vmem:[%s6244_s3 + $0x50] sm:$0xff]   ;;  %v5265_v0 = vld [vmem:[%s6244_s3 + $0x58] sm:$0xff]  }
 0x103   :  { %v393_v6 = vadd.f32 %v4228_v40, %v329_v3  ;;  %v332_v7 = vadd.f32 %v4037_v4, %v5139_v49  ;;  %v443_v8 = vrot.slane %v5143_v2, 1  ;;  %v827_v25 = vrot.slane %v5143_v2, 7  ;;  %v5280_v4 = vld [vmem:[%s6244_s3 + $0x60] sm:$0xff]  }
 0x104   :  { %v746_v28 = vrot.slane %v5143_v2, 6 }
 0x105   :  { %v396_v9 = vadd.f32 %v4229_v42, %v332_v7  ;;  %v4038_v10 = vpop.f32.mrb[8].mxu0  ;;  %4243 = vmatmul.mubr.msk.bf16.vlgmr.msra.gmra.mrb[8].mxu1 %vm468_vm2, %v443_v8  ;;  %v416_v13 = vmax.f32 %v393_v6, 0.0  ;;  %v588_v6 = vrot.slane %v5143_v2, 2  ;;  %v5291_v7 = vld [vmem:[%s6244_s3 + $0x68] sm:$0xff]   ;;  %v5302_v8 = vld [vmem:[%s6244_s3 + $0x70] sm:$0xff]  }
 0x106   :  { %4247 = vmatpush3.bf16.msra.mxu1 %v5149_v5  ;;  %v4039_v11 = vpop.f32.mrb[9].mxu0  ;;  %4254 = vmatprep.mubr.msk.bf16.mxu1 %vm4897_vm1, %v4896_v18 }
 0x107   :  { %v417_v14 = vmax.f32 %v396_v9, 0.0  ;;  %v4040_v15 = vadd.f32 %v4039_v11, %v4038_v10  ;;  %v4041_v16 = vpop.f32.mrb[10].mxu0  ;;  %4248 = vmatprep.subr.bf16.mxu1 %v4896_v18  ;;  %v5313_v9 = vld [vmem:[%s6244_s3 + $0x78] sm:$0xff]   ;;  %v5324_v10 = vld [vmem:[%s6244_s3 + $0x80] sm:$0xff]   ;;  %v666_v11 = vrot.slane %v5143_v2, 5 }
 0x108   :  { %v4042_v17 = vpop.f32.mrb[11].mxu0 }
 0x109   :  { %v5163_v19 = vpack.c.bf16 %v417_v14, %v416_v13  ;;  %v4043_v20 = vadd.f32 %v4042_v17, %v4041_v16  ;;  %v337_v21 = vadd.f32 %v4040_v15, %v5139_v49  ;;  %v5337_v13 = vld [vmem:[%s6244_s3 + $0x88] sm:$0xff]   ;;  %v5348_v14 = vld [vmem:[%s6244_s3 + $0x90] sm:$0xff]   ;;  %v5359_v15 = vld [vmem:[%s6244_s3 + $0x98] sm:$0xff]  }
 0x10a   :  { %4249 = vmatpush3.bf16.msra.mxu1 %v5158_v12  ;;  %v5370_v16 = vld [vmem:[%s6244_s3 + $0xc0] sm:$0xff]   ;;  %v5381_v17 = vld [vmem:[%s6244_s3 + $0xc8] sm:$0xff]  }
 0x10b   :  { %v401_v23 = vadd.f32 %v400_v45, %v337_v21  ;;  %v340_v24 = vadd.f32 %v4043_v20, %v5139_v49  ;;  %4250 = vmatprep.subr.bf16.mxu1 %v4896_v18  ;;  %v828_v26 = vrot.slane %v5163_v19, 7  ;;  %v747_v29 = vrot.slane %v5163_v19, 6  ;;  %v5202_v45 = vld [vmem:[%s6244_s3 + $0xe8] sm:$0xff]   ;;  %v5392_v20 = vld [vmem:[%s6244_s3 + $0xd0] sm:$0xff]   ;;  %v5403_v21 = vld [vmem:[%s6244_s3 + $0xd8] sm:$0xff]  }
 0x10c   :  { %v5256_v63 = vrot.slane %v5163_v19, 3 }
 0x10d   :  { %v418_v30 = vmax.f32 %v401_v23, 0.0  ;;  %v404_v31 = vadd.f32 %v403_v50, %v340_v24  ;;  %v5184_v40 = vsel %vm826_vm3, %v827_v25, %v828_v26  ;;  %v5195_v42 = vsel %vm745_vm4, %v746_v28, %v747_v29  ;;  %v4044_v46 = vpop.f32.mrb[12].mxu0  ;;  %v5414_v23 = vld [vmem:[%s6244_s3 + $0x100] sm:$0xff]   ;;  %v5428_v25 = vld [vmem:[%s6244_s3 + $0x108] sm:$0xff]   ;;  %v5450_v28 = vld [vmem:[%s6244_s3 + $0x118] sm:$0xff]  }
 0x10e   :  { %4251 = vmatpush3.bf16.msra.mxu1 %v5170_v22  ;;  %4303 = vmatmul.mubr.msk.bf16.vlgmr.msra.gmra.mrb[16].mxu0 %vm468_vm2, %v5184_v40  ;;  %v4045_v50 = vpop.f32.mrb[13].mxu0  ;;  %v5418_v24 = vrot.slane %v5163_v19, 2  ;;  %v5460_v29 = vrot.slane %v5163_v19, 4 }
 0x10f   :  { %v419_v43 = vmax.f32 %v404_v31, 0.0  ;;  %4319 = vmatpush3.bf16.msra.mxu0 %v5179_v27  ;;  %4252 = vmatprep.subr.bf16.mxu1 %v4896_v18  ;;  %v4046_v53 = vadd.f32 %v4045_v50, %v4044_v46  ;;  %v4047_v54 = vpop.f32.mrb[14].mxu0  ;;  %v4898_v31 = vmov 0  }
 0x110   :  { %4320 = vmatprep.subr.bf16.mxu0 %v4896_v18  ;;  %4326 = vmatprep.mubr.msk.bf16.mxu0 %vm4897_vm1, %v4896_v18  ;;  %v4048_v55 = vpop.f32.mrb[15].mxu0 }
 0x111   :  { %v5207_v47 = vpack.c.bf16 %v419_v43, %v418_v30  ;;  %v345_v57 = vadd.f32 %v4046_v53, %v5139_v49  ;;  %v4697_v30 = vld [vmem:[%s6246_s5 + $0xe4] ss:$8 sps:$4 sm:$0xff]   ;;  %4583 = vset.pattern.permute.xlu0 %v4898_v31 }
 0x112   :  { %4253 = vmatpush3.bf16.msra.mxu1 %v5192_v41  ;;  %v4706_v43 = vld [vmem:[%s6246_s5 + $0x104] ss:$8 sps:$4 sm:$0xff]  }
 0x113   :  { %4321 = vmatpush3.bf16.msra.mxu0 %v5202_v45  ;;  %4258 = vmatprep.subr.bf16.mxu1 %v4896_v18  ;;  %v1387_v52 = vrot.slane %v5207_v47, 7  ;;  %v409_v49 = vadd.f32 %v5134_v44, %v345_v57  ;;  %v1860_v1 = vrot.slane %v5207_v47, 6  ;;  %v1477_v19 = vrot.slane %v5207_v47, 1 }
 0x114   :  { %4322 = vmatprep.subr.bf16.mxu0 %v4896_v18  ;;  %v1769_v54 = vrot.slane %v5207_v47, 4 }
 0x115   :  { %4255 = vmatmul.mubr.msk.bf16.vlgmr.msra.gmra.mrb[12].mxu1 %vm468_vm2, %v5143_v2  ;;  %v5227_v56 = vsel %vm826_vm3, %v828_v26, %v1387_v52  ;;  %v420_v60 = vmax.f32 %v409_v49, 0.0  ;;  %v5439_v26 = vld [vmem:[%s6244_s3 + $0x110] sm:$0xff]  }
 0x116   :  { %4259 = vmatpush3.bf16.msra.mxu1 %v5213_v48  ;;  %4266 = vmatprep.mubr.msk.bf16.mxu1 %vm4897_vm1, %v4896_v18  ;;  %v4679_v2 = vld [vmem:[%s6246_s5 + $0xb4] ss:$8 sps:$4 sm:$0xff]  }
 0x117   :  { %4323 = vmatpush3.bf16.msra.mxu0 %v5220_v51  ;;  %4260 = vmatprep.subr.bf16.mxu1 %v4896_v18  ;;  %v424_v62 = vpack.c.bf16 %v420_v60, %v420_v60 }
 0x118   :  { %4324 = vmatprep.subr.bf16.mxu0 %v4896_v18 }
 0x119   :  { %v1861_v44 = vrot.slane %v424_v62, 6  ;;  %v4656_v62 = vld [vmem:[%s6246_s5] ss:$8 sps:$4 sm:$0xff]  }
 0x11a   :  { %4261 = vmatpush3.bf16.msra.mxu1 %v5234_v58 }
 0x11b   :  { %4325 = vmatpush3.bf16.msra.mxu0 %v5243_v59  ;;  %4262 = vmatprep.subr.bf16.mxu1 %v4896_v18  ;;  %v5274_v3 = vsel %vm745_vm4, %v1860_v1, %v1861_v44  ;;  %v4664_v44 = vld [vmem:[%s6246_s5 + $0x14] ss:$8 sps:$4 sm:$0xff]   ;;  %v4662_v1 = vld [vmem:[%s6246_s5 + $0x10] ss:$8 sps:$4 sm:$0xff]  }
 0x11c   :  { %4342 = vmatprep.subr.bf16.mxu0 %v4896_v18 }
 0x11e   :  { %4263 = vmatpush3.bf16.msra.mxu1 %v5251_v61  ;;  %4327 = vmatmul.mubr.msk.bf16.vlgmr.msra.gmra.mrb[20].mxu0 %vm468_vm2, %v5256_v63 }
 0x11f   :  { %4343 = vmatpush3.bf16.msra.mxu0 %v5077_v32  ;;  %4264 = vmatprep.subr.bf16.mxu1 %v4896_v18 }
 0x120   :  { %4344 = vmatprep.subr.bf16.mxu0 %v4896_v18  ;;  %4350 = vmatprep.mubr.msk.bf16.mxu0 %vm4897_vm1, %v4896_v18 }
 0x122   :  { %4265 = vmatpush3.bf16.msra.mxu1 %v5265_v0 }
 0x123   :  { %4345 = vmatpush3.bf16.msra.mxu0 %v5084_v33  ;;  %4270 = vmatprep.subr.bf16.mxu1 %v4896_v18 }
 0x124   :  { %4346 = vmatprep.subr.bf16.mxu0 %v4896_v18 }
 0x125   :  { %4267 = vmatmul.mubr.msk.bf16.vlgmr.msra.gmra.mrb[16].mxu1 %vm468_vm2, %v588_v6 }
 0x126   :  { %4271 = vmatpush3.bf16.msra.mxu1 %v5280_v4  ;;  %4278 = vmatprep.mubr.msk.bf16.mxu1 %vm4897_vm1, %v4896_v18 }
 0x127   :  { %4347 = vmatpush3.bf16.msra.mxu0 %v5091_v34  ;;  %4272 = vmatprep.subr.bf16.mxu1 %v4896_v18 }
 0x128   :  { %4348 = vmatprep.subr.bf16.mxu0 %v4896_v18 }
 0x12a   :  { %4273 = vmatpush3.bf16.msra.mxu1 %v5291_v7 }
 0x12b   :  { %4349 = vmatpush3.bf16.msra.mxu0 %v5104_v36  ;;  %4274 = vmatprep.subr.bf16.mxu1 %v4896_v18 }
 0x12c   :  { %4366 = vmatprep.subr.bf16.mxu0 %v4896_v18 }
 0x12e   :  { %4275 = vmatpush3.bf16.msra.mxu1 %v5302_v8  ;;  %4351 = vmatmul.mubr.msk.bf16.vlgmr.msra.gmra.mrb[24].mxu0 %vm468_vm2, %v5195_v42 }
 0x12f   :  { %4367 = vmatpush3.bf16.msra.mxu0 %v5213_v48  ;;  %4276 = vmatprep.subr.bf16.mxu1 %v4896_v18 }
 0x130   :  { %4368 = vmatprep.subr.bf16.mxu0 %v4896_v18  ;;  %4374 = vmatprep.mubr.msk.bf16.mxu0 %vm4897_vm1, %v4896_v18 }
 0x132   :  { %4277 = vmatpush3.bf16.msra.mxu1 %v5313_v9 }
 0x133   :  { %4369 = vmatpush3.bf16.msra.mxu0 %v5234_v58  ;;  %4282 = vmatprep.subr.bf16.mxu1 %v4896_v18 }
 0x134   :  { %4370 = vmatprep.subr.bf16.mxu0 %v4896_v18 }
 0x135   :  { %4279 = vmatmul.mubr.msk.bf16.vlgmr.msra.gmra.mrb[20].mxu1 %vm468_vm2, %v666_v11 }
 0x136   :  { %4283 = vmatpush3.bf16.msra.mxu1 %v5324_v10  ;;  %4290 = vmatprep.mubr.msk.bf16.mxu1 %vm4897_vm1, %v4896_v18 }
 0x137   :  { %4371 = vmatpush3.bf16.msra.mxu0 %v5251_v61  ;;  %4284 = vmatprep.subr.bf16.mxu1 %v4896_v18 }
 0x138   :  { %4372 = vmatprep.subr.bf16.mxu0 %v4896_v18 }
 0x13a   :  { %4285 = vmatpush3.bf16.msra.mxu1 %v5337_v13 }
 0x13b   :  { %4373 = vmatpush3.bf16.msra.mxu0 %v5265_v0  ;;  %4286 = vmatprep.subr.bf16.mxu1 %v4896_v18 }
 0x13c   :  { %4390 = vmatprep.subr.bf16.mxu0 %v4896_v18 }
 0x13e   :  { %4287 = vmatpush3.bf16.msra.mxu1 %v5348_v14  ;;  %4375 = vmatmul.mubr.msk.bf16.vlgmr.msra.gmra.mrb[28].mxu0 %vm468_vm2, %v5184_v40  ;;  %v4695_v40 = vld [vmem:[%s6246_s5 + $0xe0] ss:$8 sps:$4 sm:$0xff]  }
 0x13f   :  { %4391 = vmatpush3.bf16.msra.mxu0 %v5324_v10  ;;  %4288 = vmatprep.subr.bf16.mxu1 %v4896_v18 }
 0x140   :  { %4392 = vmatprep.subr.bf16.mxu0 %v4896_v18  ;;  %4398 = vmatprep.mubr.msk.bf16.mxu0 %vm4897_vm1, %v4896_v18 }
 0x142   :  { %4289 = vmatpush3.bf16.msra.mxu1 %v5359_v15 }
 0x143   :  { %4393 = vmatpush3.bf16.msra.mxu0 %v5337_v13  ;;  %4306 = vmatprep.subr.bf16.mxu1 %v4896_v18 }
 0x144   :  { %4394 = vmatprep.subr.bf16.mxu0 %v4896_v18 }
 0x145   :  { %4291 = vmatmul.mubr.msk.bf16.vlgmr.msra.gmra.mrb[24].mxu1 %vm468_vm2, %v5195_v42  ;;  %v4701_v42 = vld [vmem:[%s6246_s5 + $0xf0] ss:$8 sps:$4 sm:$0xff]  }
 0x146   :  { %4307 = vmatpush3.bf16.msra.mxu1 %v5370_v16  ;;  %4314 = vmatprep.mubr.msk.bf16.mxu1 %vm4897_vm1, %v4896_v18 }
 0x147   :  { %4395 = vmatpush3.bf16.msra.mxu0 %v5348_v14  ;;  %4308 = vmatprep.subr.bf16.mxu1 %v4896_v18 }
 0x148   :  { %4396 = vmatprep.subr.bf16.mxu0 %v4896_v18 }
 0x14a   :  { %4309 = vmatpush3.bf16.msra.mxu1 %v5381_v17 }
 0x14b   :  { %4397 = vmatpush3.bf16.msra.mxu0 %v5359_v15  ;;  %4310 = vmatprep.subr.bf16.mxu1 %v4896_v18 }
 0x14c   :  { %4414 = vmatprep.subr.bf16.mxu0 %v4896_v18 }
 0x14e   :  { %4311 = vmatpush3.bf16.msra.mxu1 %v5392_v20  ;;  %4399 = vmatmul.mubr.msk.bf16.vlgmr.msra.gmra.mrb[32].mxu0 %vm468_vm2, %v5256_v63 }
 0x14f   :  { %4415 = vmatpush3.bf16.msra.mxu0 %v5370_v16  ;;  %4312 = vmatprep.subr.bf16.mxu1 %v4896_v18 }
 0x150   :  { %4416 = vmatprep.subr.bf16.mxu0 %v4896_v18  ;;  %4422 = vmatprep.mubr.msk.bf16.mxu0 %vm4897_vm1, %v4896_v18 }
 0x152   :  { %4313 = vmatpush3.bf16.msra.mxu1 %v5403_v21 }
 0x153   :  { %4417 = vmatpush3.bf16.msra.mxu0 %v5381_v17  ;;  %4330 = vmatprep.subr.bf16.mxu1 %v4896_v18 }
 0x154   :  { %4418 = vmatprep.subr.bf16.mxu0 %v4896_v18 }
 0x155   :  { %4315 = vmatmul.mubr.msk.bf16.vlgmr.msra.gmra.mrb[28].mxu1 %vm468_vm2, %v5418_v24 }
 0x156   :  { %4331 = vmatpush3.bf16.msra.mxu1 %v5414_v23  ;;  %4338 = vmatprep.mubr.msk.bf16.mxu1 %vm4897_vm1, %v4896_v18 }
 0x157   :  { %4419 = vmatpush3.bf16.msra.mxu0 %v5392_v20  ;;  %4332 = vmatprep.subr.bf16.mxu1 %v4896_v18 }
 0x158   :  { %4420 = vmatprep.subr.bf16.mxu0 %v4896_v18 }
 0x15a   :  { %4333 = vmatpush3.bf16.msra.mxu1 %v5428_v25 }
 0x15b   :  { %4421 = vmatpush3.bf16.msra.mxu0 %v5403_v21  ;;  %4334 = vmatprep.subr.bf16.mxu1 %v4896_v18 }
 0x15c   :  { %4438 = vmatprep.subr.bf16.mxu0 %v4896_v18 }
 0x15e   :  { %4335 = vmatpush3.bf16.msra.mxu1 %v5439_v26  ;;  %4423 = vmatmul.mubr.msk.bf16.vlgmr.msra.gmra.mrb[36].mxu0 %vm468_vm2, %v5227_v56 }
 0x15f   :  { %4439 = vmatpush3.bf16.msra.mxu0 %v5414_v23  ;;  %4336 = vmatprep.subr.bf16.mxu1 %v4896_v18 }
 0x160   :  { %4440 = vmatprep.subr.bf16.mxu0 %v4896_v18  ;;  %4446 = vmatprep.mubr.msk.bf16.mxu0 %vm4897_vm1, %v4896_v18 }
 0x162   :  { %4337 = vmatpush3.bf16.msra.mxu1 %v5450_v28 }
 0x163   :  { %4441 = vmatpush3.bf16.msra.mxu0 %v5428_v25  ;;  %4354 = vmatprep.subr.bf16.mxu1 %v4896_v18 }
 0x164   :  { %4442 = vmatprep.subr.bf16.mxu0 %v4896_v18 }
 0x165   :  { %4339 = vmatmul.mubr.msk.bf16.vlgmr.msra.gmra.mrb[32].mxu1 %vm468_vm2, %v5460_v29 }
 0x166   :  { %4355 = vmatpush3.bf16.msra.mxu1 %v5149_v5  ;;  %4362 = vmatprep.mubr.msk.bf16.mxu1 %vm4897_vm1, %v4896_v18 }
 0x167   :  { %4443 = vmatpush3.bf16.msra.mxu0 %v5439_v26  ;;  %4356 = vmatprep.subr.bf16.mxu1 %v4896_v18 }
 0x168   :  { %4444 = vmatprep.subr.bf16.mxu0 %v4896_v18 }
 0x16a   :  { %4357 = vmatpush3.bf16.msra.mxu1 %v5158_v12 }
 0x16b   :  { %4445 = vmatpush3.bf16.msra.mxu0 %v5450_v28  ;;  %4358 = vmatprep.subr.bf16.mxu1 %v4896_v18 }
 0x16c   :  { %4462 = vmatprep.subr.bf16.mxu0 %v4896_v18 }
 0x16e   :  { %4359 = vmatpush3.bf16.msra.mxu1 %v5170_v22  ;;  %4447 = vmatmul.mubr.msk.bf16.vlgmr.msra.gmra.mrb[40].mxu0 %vm468_vm2, %v1477_v19 }
 0x16f   :  { %4463 = vmatpush3.bf16.msra.mxu0 %v5149_v5  ;;  %4360 = vmatprep.subr.bf16.mxu1 %v4896_v18  ;;  %v4685_v5 = vld [vmem:[%s6246_s5 + $0xc4] ss:$8 sps:$4 sm:$0xff]  }
 0x170   :  { %4464 = vmatprep.subr.bf16.mxu0 %v4896_v18  ;;  %4470 = vmatprep.mubr.msk.bf16.mxu0 %vm4897_vm1, %v4896_v18 }
 0x172   :  { %4361 = vmatpush3.bf16.msra.mxu1 %v5192_v41 }
 0x173   :  { %4465 = vmatpush3.bf16.msra.mxu0 %v5158_v12  ;;  %4378 = vmatprep.subr.bf16.mxu1 %v4896_v18  ;;  %v4683_v12 = vld [vmem:[%s6246_s5 + $0xc0] ss:$8 sps:$4 sm:$0xff]  }
 0x174   :  { %4466 = vmatprep.subr.bf16.mxu0 %v4896_v18 }
 0x175   :  { %4363 = vmatmul.mubr.msk.bf16.vlgmr.msra.gmra.mrb[36].mxu1 %vm468_vm2, %v666_v11  ;;  %v4676_v11 = vld [vmem:[%s6246_s5 + $0x34] ss:$8 sps:$4 sm:$0xff]  }
 0x176   :  { %4379 = vmatpush3.bf16.msra.mxu1 %v5280_v4  ;;  %4386 = vmatprep.mubr.msk.bf16.mxu1 %vm4897_vm1, %v4896_v18 }
 0x177   :  { %4467 = vmatpush3.bf16.msra.mxu0 %v5170_v22  ;;  %4380 = vmatprep.subr.bf16.mxu1 %v4896_v18  ;;  %v4691_v22 = vld [vmem:[%s6246_s5 + $0xd4] ss:$8 sps:$4 sm:$0xff]  }
 0x178   :  { %4468 = vmatprep.subr.bf16.mxu0 %v4896_v18 }
 0x17a   :  { %4381 = vmatpush3.bf16.msra.mxu1 %v5291_v7 }
 0x17b   :  { %4469 = vmatpush3.bf16.msra.mxu0 %v5192_v41  ;;  %4382 = vmatprep.subr.bf16.mxu1 %v4896_v18  ;;  %v4703_v41 = vld [vmem:[%s6246_s5 + $0xf4] ss:$8 sps:$4 sm:$0xff]  }
 0x17c   :  { %4486 = vmatprep.subr.bf16.mxu0 %v4896_v18 }
 0x17e   :  { %4383 = vmatpush3.bf16.msra.mxu1 %v5302_v8  ;;  %4471 = vmatmul.mubr.msk.bf16.vlgmr.msra.gmra.mrb[44].mxu0 %vm468_vm2, %v5418_v24 }
 0x17f   :  { %4487 = vmatpush3.bf16.msra.mxu0 %v5280_v4  ;;  %4384 = vmatprep.subr.bf16.mxu1 %v4896_v18  ;;  %v4670_v4 = vld [vmem:[%s6246_s5 + $0x24] ss:$8 sps:$4 sm:$0xff]  }
 0x180   :  { %4488 = vmatprep.subr.bf16.mxu0 %v4896_v18  ;;  %4494 = vmatprep.mubr.msk.bf16.mxu0 %vm4897_vm1, %v4896_v18 }
 0x182   :  { %4385 = vmatpush3.bf16.msra.mxu1 %v5313_v9 }
 0x183   :  { %4489 = vmatpush3.bf16.msra.mxu0 %v5291_v7  ;;  %4402 = vmatprep.subr.bf16.mxu1 %v4896_v18 }
 0x184   :  { %4490 = vmatprep.subr.bf16.mxu0 %v4896_v18 }
 0x185   :  { %4387 = vmatmul.mubr.msk.bf16.vlgmr.msra.gmra.mrb[40].mxu1 %vm468_vm2, %v5418_v24  ;;  %v4686_v24 = vld [vmem:[%s6246_s5 + $0x50] ss:$8 sps:$4 sm:$0xff]  }
 0x186   :  { %4403 = vmatpush3.bf16.msra.mxu1 %v5096_v35  ;;  %4410 = vmatprep.mubr.msk.bf16.mxu1 %vm4897_vm1, %v4896_v18 }
 0x187   :  { %4491 = vmatpush3.bf16.msra.mxu0 %v5302_v8  ;;  %4404 = vmatprep.subr.bf16.mxu1 %v4896_v18 }
 0x188   :  { %4492 = vmatprep.subr.bf16.mxu0 %v4896_v18 }
 0x18a   :  { %4405 = vmatpush3.bf16.msra.mxu1 %v5110_v37 }
 0x18b   :  { %4493 = vmatpush3.bf16.msra.mxu0 %v5313_v9  ;;  %4406 = vmatprep.subr.bf16.mxu1 %v4896_v18 }
 0x18c   :  { %4510 = vmatprep.subr.bf16.mxu0 %v4896_v18 }
 0x18e   :  { %4407 = vmatpush3.bf16.msra.mxu1 %v5123_v38  ;;  %4495 = vmatmul.mubr.msk.bf16.vlgmr.msra.gmra.mrb[48].mxu0 %vm468_vm2, %v5227_v56 }
 0x18f   :  { %4511 = vmatpush3.bf16.msra.mxu0 %v5096_v35  ;;  %4408 = vmatprep.subr.bf16.mxu1 %v4896_v18  ;;  %v4661_v35 = vld [vmem:[%s6246_s5 + $0x84] ss:$8 sps:$4 sm:$0xff]  }
 0x190   :  { %4512 = vmatprep.subr.bf16.mxu0 %v4896_v18  ;;  %4518 = vmatprep.mubr.msk.bf16.mxu0 %vm4897_vm1, %v4896_v18 }
 0x192   :  { %4409 = vmatpush3.bf16.msra.mxu1 %v5130_v39 }
 0x193   :  { %4513 = vmatpush3.bf16.msra.mxu0 %v5110_v37  ;;  %4426 = vmatprep.subr.bf16.mxu1 %v4896_v18  ;;  %v1814_v37 = vrot.slane %v5207_v47, 5 }
 0x194   :  { %4514 = vmatprep.subr.bf16.mxu0 %v4896_v18 }
 0x195   :  { %4411 = vmatmul.mubr.msk.bf16.vlgmr.msra.gmra.mrb[44].mxu1 %vm468_vm2, %v5460_v29 }
 0x196   :  { %4427 = vmatpush3.bf16.msra.mxu1 %v5179_v27  ;;  %4434 = vmatprep.mubr.msk.bf16.mxu1 %vm4897_vm1, %v4896_v18 }
 0x197   :  { %4515 = vmatpush3.bf16.msra.mxu0 %v5123_v38  ;;  %4428 = vmatprep.subr.bf16.mxu1 %v4896_v18  ;;  %v4667_v38 = vld [vmem:[%s6246_s5 + $0x94] ss:$8 sps:$4 sm:$0xff]  }
 0x198   :  { %4516 = vmatprep.subr.bf16.mxu0 %v4896_v18 }
 0x19a   :  { %4429 = vmatpush3.bf16.msra.mxu1 %v5202_v45 }
 0x19b   :  { %4517 = vmatpush3.bf16.msra.mxu0 %v5130_v39  ;;  %4430 = vmatprep.subr.bf16.mxu1 %v4896_v18  ;;  %v4673_v39 = vld [vmem:[%s6246_s5 + $0xa4] ss:$8 sps:$4 sm:$0xff]  }
 0x19c   :  { %4534 = vmatprep.subr.bf16.mxu0 %v4896_v18 }
 0x19e   :  { %4431 = vmatpush3.bf16.msra.mxu1 %v5220_v51  ;;  %4519 = vmatmul.mubr.msk.bf16.vlgmr.msra.gmra.mrb[52].mxu0 %vm468_vm2, %v1477_v19 }
 0x19f   :  { %4535 = vmatpush3.bf16.msra.mxu0 %v5179_v27  ;;  %4432 = vmatprep.subr.bf16.mxu1 %v4896_v18  ;;  %v4689_v27 = vld [vmem:[%s6246_s5 + $0xd0] ss:$8 sps:$4 sm:$0xff]  }
 0x1a0   :  { %4536 = vmatprep.subr.bf16.mxu0 %v4896_v18  ;;  %4542 = vmatprep.mubr.msk.bf16.mxu0 %vm4897_vm1, %v4896_v18 }
 0x1a2   :  { %4433 = vmatpush3.bf16.msra.mxu1 %v5243_v59 }
 0x1a3   :  { %4537 = vmatpush3.bf16.msra.mxu0 %v5202_v45  ;;  %4450 = vmatprep.subr.bf16.mxu1 %v4896_v18 }
 0x1a4   :  { %4538 = vmatprep.subr.bf16.mxu0 %v4896_v18 }
 0x1a5   :  { %4435 = vmatmul.mubr.msk.bf16.vlgmr.msra.gmra.mrb[48].mxu1 %vm468_vm2, %v5207_v47 }
 0x1a6   :  { %4451 = vmatpush3.bf16.msra.mxu1 %v5077_v32  ;;  %4458 = vmatprep.mubr.msk.bf16.mxu1 %vm4897_vm1, %v4896_v18  ;;  %v4659_v32 = vld [vmem:[%s6246_s5 + $0x80] ss:$8 sps:$4 sm:$0xff]  }
 0x1a7   :  { %4539 = vmatpush3.bf16.msra.mxu0 %v5220_v51  ;;  %4452 = vmatprep.subr.bf16.mxu1 %v4896_v18 }
 0x1a8   :  { %4540 = vmatprep.subr.bf16.mxu0 %v4896_v18 }
 0x1aa   :  { %4453 = vmatpush3.bf16.msra.mxu1 %v5084_v33  ;;  %v4665_v33 = vld [vmem:[%s6246_s5 + $0x90] ss:$8 sps:$4 sm:$0xff]  }
 0x1ab   :  { %4541 = vmatpush3.bf16.msra.mxu0 %v5243_v59  ;;  %4454 = vmatprep.subr.bf16.mxu1 %v4896_v18 }
 0x1ac   :  { %2026 = vmatprep.subr.bf16.mxu0 %v4661_v35  ;;  %v4692_v35 = vld [vmem:[%s6246_s5 + $0x60] ss:$8 sps:$4 sm:$0xff]  }
 0x1ae   :  { %4455 = vmatpush3.bf16.msra.mxu1 %v5091_v34  ;;  %4543 = vmatmul.mubr.msk.bf16.vlgmr.msra.gmra.mrb[56].mxu0 %vm468_vm2, %v1814_v37  ;;  %v4671_v34 = vld [vmem:[%s6246_s5 + $0xa0] ss:$8 sps:$4 sm:$0xff]   ;;  %v4700_v37 = vld [vmem:[%s6246_s5 + $0x74] ss:$8 sps:$4 sm:$0xff]  }
 0x1af   :  { %4456 = vmatprep.subr.bf16.mxu1 %v4896_v18  ;;  %2027 = vmatpush1.bf16.msra.mxu0 %v4659_v32 }
 0x1b0   :  { %2028 = vmatprep.subr.bf16.mxu0 %v4667_v38  ;;  %2058 = vmatprep.mubr.bf16.mxu0 %v4898_v31  ;;  %v4698_v38 = vld [vmem:[%s6246_s5 + $0x70] ss:$8 sps:$4 sm:$0xff]  }
 0x1b2   :  { %4457 = vmatpush3.bf16.msra.mxu1 %v5104_v36  ;;  %v4677_v36 = vld [vmem:[%s6246_s5 + $0xb0] ss:$8 sps:$4 sm:$0xff]  }
 0x1b3   :  { %4474 = vmatprep.subr.bf16.mxu1 %v4896_v18  ;;  %2029 = vmatpush1.bf16.msra.mxu0 %v4665_v33  ;;  %v4730_v33 = vld [vmem:[%s6246_s5 + $0x184] ss:$8 sps:$4 sm:$0xff]  }
 0x1b4   :  { %2030 = vmatprep.subr.bf16.mxu0 %v4673_v39 }
 0x1b5   :  { %4459 = vmatmul.mubr.msk.bf16.vlgmr.msra.gmra.mrb[52].mxu1 %vm468_vm2, %v5256_v63 }
 0x1b6   :  { %4475 = vmatpush3.bf16.msra.mxu1 %v5213_v48  ;;  %4482 = vmatprep.mubr.msk.bf16.mxu1 %vm4897_vm1, %v4896_v18 }
 0x1b7   :  { %4476 = vmatprep.subr.bf16.mxu1 %v4896_v18  ;;  %2031 = vmatpush1.bf16.msra.mxu0 %v4671_v34 }
 0x1b8   :  { %2032 = vmatprep.subr.bf16.mxu0 %v4679_v2 }
 0x1ba   :  { %4477 = vmatpush3.bf16.msra.mxu1 %v5234_v58 }
 0x1bb   :  { %4478 = vmatprep.subr.bf16.mxu1 %v4896_v18  ;;  %2033 = vmatpush1.bf16.msra.mxu0 %v4677_v36 }
 0x1bc   :  { %2034 = vmatprep.subr.bf16.mxu0 %v4685_v5 }
 0x1be   :  { %4479 = vmatpush3.bf16.msra.mxu1 %v5251_v61 }
 0x1bf   :  { %4480 = vmatprep.subr.bf16.mxu1 %v4896_v18  ;;  %2035 = vmatpush1.bf16.msra.mxu0 %v4683_v12 }
 0x1c0   :  { %2036 = vmatprep.subr.bf16.mxu0 %v4691_v22 }
 0x1c2   :  { %4481 = vmatpush3.bf16.msra.mxu1 %v5265_v0 }
 0x1c3   :  { %4498 = vmatprep.subr.bf16.mxu1 %v4896_v18  ;;  %2037 = vmatpush1.bf16.msra.mxu0 %v4689_v27 }
 0x1c4   :  { %2038 = vmatprep.subr.bf16.mxu0 %v4697_v30 }
 0x1c5   :  { %4483 = vmatmul.mubr.msk.bf16.vlgmr.msra.gmra.mrb[56].mxu1 %vm468_vm2, %v5460_v29 }
 0x1c6   :  { %4499 = vmatpush3.bf16.msra.mxu1 %v5324_v10  ;;  %4506 = vmatprep.mubr.msk.bf16.mxu1 %vm4897_vm1, %v4896_v18 }
 0x1c7   :  { %4500 = vmatprep.subr.bf16.mxu1 %v4896_v18  ;;  %2039 = vmatpush1.bf16.msra.mxu0 %v4695_v40 }
 0x1c8   :  { %2040 = vmatprep.subr.bf16.mxu0 %v4703_v41 }
 0x1ca   :  { %4501 = vmatpush3.bf16.msra.mxu1 %v5337_v13  ;;  %v4674_v13 = vld [vmem:[%s6246_s5 + $0x30] ss:$8 sps:$4 sm:$0xff]  }
 0x1cb   :  { %4502 = vmatprep.subr.bf16.mxu1 %v4896_v18  ;;  %2041 = vmatpush1.bf16.msra.mxu0 %v4701_v42 }
 0x1cc   :  { %2287 = vmatprep.subr.bf16.mxu0 %v4706_v43 }
 0x1ce   :  { %4503 = vmatpush3.bf16.msra.mxu1 %v5348_v14  ;;  %v4682_v14 = vld [vmem:[%s6246_s5 + $0x44] ss:$8 sps:$4 sm:$0xff]  }
 0x1cf   :  { %4504 = vmatprep.subr.bf16.mxu1 %v4896_v18 }
 0x1d2   :  { %4505 = vmatpush3.bf16.msra.mxu1 %v5359_v15 }
 0x1d3   :  { %4522 = vmatprep.subr.bf16.mxu1 %v4896_v18 }
 0x1d5   :  { %4507 = vmatmul.mubr.msk.bf16.vlgmr.msra.gmra.mrb[60].mxu1 %vm468_vm2, %v5207_v47  ;;  %v4658_v47 = vld [vmem:[%s6246_s5 + $0x4] ss:$8 sps:$4 sm:$0xff]  }
 0x1d6   :  { %4523 = vmatpush3.bf16.msra.mxu1 %v5370_v16  ;;  %4530 = vmatprep.mubr.msk.bf16.mxu1 %vm4897_vm1, %v4896_v18 }
 0x1d7   :  { %4524 = vmatprep.subr.bf16.mxu1 %v4896_v18 }
 0x1d8   :  { %v506_v45 = vpop.f32.mrb[8].mxu1 }
 0x1d9   :  { %v4244_v46 = vpop.f32.mrb[9].mxu1 }
 0x1da   :  { %4525 = vmatpush3.bf16.msra.mxu1 %v5381_v17  ;;  %v509_v48 = vpop.f32.mrb[10].mxu1  ;;  %v4680_v17 = vld [vmem:[%s6246_s5 + $0x40] ss:$8 sps:$4 sm:$0xff]  }
 0x1db   :  { %v4245_v50 = vpop.f32.mrb[11].mxu1  ;;  %4526 = vmatprep.subr.bf16.mxu1 %v4896_v18 }
 0x1de   :  { %4527 = vmatpush3.bf16.msra.mxu1 %v5392_v20 }
 0x1df   :  { %4528 = vmatprep.subr.bf16.mxu1 %v4896_v18 }
 0x1e1   :  { %v5668_v51 = vpop.f32.mrb[16].mxu0 }
 0x1e2   :  { %4529 = vmatpush3.bf16.msra.mxu1 %v5403_v21  ;;  %v4304_v52 = vpop.f32.mrb[17].mxu0  ;;  %v4688_v21 = vld [vmem:[%s6246_s5 + $0x54] ss:$8 sps:$4 sm:$0xff]  }
 0x1e3   :  { %v894_v53 = vpop.f32.mrb[18].mxu0  ;;  %4546 = vmatprep.subr.bf16.mxu1 %v4896_v18 }
 0x1e4   :  { %v4305_v55 = vpop.f32.mrb[19].mxu0 }
 0x1e5   :  { %4531 = vmatmul.mubr.msk.bf16.vlgmr.msra.gmra.mrb[64].mxu1 %vm468_vm2, %v1769_v54 }
 0x1e6   :  { %4547 = vmatpush3.bf16.msra.mxu1 %v5414_v23  ;;  %4554 = vmatprep.mubr.msk.bf16.mxu1 %vm4897_vm1, %v4896_v18 }
 0x1e7   :  { %4548 = vmatprep.subr.bf16.mxu1 %v4896_v18 }
 0x1e8   :  { %v573_v56 = vpop.f32.mrb[12].mxu1 }
 0x1e9   :  { %v574_v57 = vadd.f32 %v573_v56, %v506_v45  ;;  %v4256_v58 = vpop.f32.mrb[13].mxu1 }
 0x1ea   :  { %v576_v59 = vpop.f32.mrb[14].mxu1  ;;  %4549 = vmatpush3.bf16.msra.mxu1 %v5428_v25  ;;  %v4694_v25 = vld [vmem:[%s6246_s5 + $0x64] ss:$8 sps:$4 sm:$0xff]  }
 0x1eb   :  { %v4257_v49 = vpop.f32.mrb[15].mxu1  ;;  %4550 = vmatprep.subr.bf16.mxu1 %v4896_v18 }
 0x1ee   :  { %4551 = vmatpush3.bf16.msra.mxu1 %v5439_v26 }
 0x1ef   :  { %4552 = vmatprep.subr.bf16.mxu1 %v4896_v18 }
 0x1f1   :  { %v5685_v60 = vpop.f32.mrb[20].mxu0 }
 0x1f2   :  { %v4328_v61 = vpop.f32.mrb[21].mxu0  ;;  %4553 = vmatpush3.bf16.msra.mxu1 %v5450_v28 }
 0x1f3   :  { %v1050_v63 = vpop.f32.mrb[22].mxu0  ;;  %2147 = vmatprep.subr.bf16.mxu1 %v4658_v47 }
 0x1f4   :  { %v4329_v0 = vpop.f32.mrb[23].mxu0 }
 0x1f5   :  { %4555 = vmatmul.mubr.msk.bf16.vlgmr.msra.gmra.mrb[68].mxu1 %vm468_vm2, %v5274_v3  ;;  %v4668_v3 = vld [vmem:[%s6246_s5 + $0x20] ss:$8 sps:$4 sm:$0xff]  }
 0x1f6   :  { %2148 = vmatpush1.bf16.msra.mxu1 %v4656_v62  ;;  %2179 = vmatprep.mubr.bf16.mxu1 %v4898_v31 }
 0x1f7   :  { %2149 = vmatprep.subr.bf16.mxu1 %v4664_v44 }
 0x1f8   :  { %v650_v6 = vpop.f32.mrb[16].mxu1 }
 0x1f9   :  { %v656_v7 = vadd.f32 %v650_v6, %v574_v57  ;;  %v4268_v8 = vpop.f32.mrb[17].mxu1 }
 0x1fa   :  { %v653_v9 = vpop.f32.mrb[18].mxu1  ;;  %2150 = vmatpush1.bf16.msra.mxu1 %v4662_v1  ;;  %v4736_v1 = vld [vmem:[%s6246_s5 + $0x194] ss:$8 sps:$4 sm:$0xff]  }
 0x1fb   :  { %v4269_v10 = vpop.f32.mrb[19].mxu1  ;;  %2151 = vmatprep.subr.bf16.mxu1 %v4670_v4  ;;  %v4704_v4 = vld [vmem:[%s6246_s5 + $0x100] ss:$8 sps:$4 sm:$0xff]  }
 0x1fe   :  { %2152 = vmatpush1.bf16.msra.mxu1 %v4668_v3  ;;  %v4734_v3 = vld [vmem:[%s6246_s5 + $0x190] ss:$8 sps:$4 sm:$0xff]  }
 0x1ff   :  { %2153 = vmatprep.subr.bf16.mxu1 %v4676_v11  ;;  %v4742_v11 = vld [vmem:[%s6246_s5 + $0x1a4] ss:$8 sps:$4 sm:$0xff]  }
 0x201   :  { %v5715_v15 = vpop.f32.mrb[24].mxu0 }
 0x202   :  { %v4352_v16 = vpop.f32.mrb[25].mxu0  ;;  %2154 = vmatpush1.bf16.msra.mxu1 %v4674_v13  ;;  %v4707_v13 = vld [vmem:[%s6246_s5 + $0x110] ss:$8 sps:$4 sm:$0xff]  }
 0x203   :  { %v1179_v20 = vpop.f32.mrb[26].mxu0  ;;  %2155 = vmatprep.subr.bf16.mxu1 %v4682_v14  ;;  %v4712_v16 = vld [vmem:[%s6246_s5 + $0x124] ss:$8 sps:$4 sm:$0xff]  }
 0x204   :  { %v4353_v23 = vpop.f32.mrb[27].mxu0  ;;  %v4748_v20 = vld [vmem:[%s6246_s5 + $0x1b4] ss:$8 sps:$4 sm:$0xff]  }
 0x205   :  { %v4710_v23 = vld [vmem:[%s6246_s5 + $0x120] ss:$8 sps:$4 sm:$0xff]  }
 0x206   :  { %2156 = vmatpush1.bf16.msra.mxu1 %v4680_v17  ;;  %v4740_v17 = vld [vmem:[%s6246_s5 + $0x1a0] ss:$8 sps:$4 sm:$0xff]  }
 0x207   :  { %2157 = vmatprep.subr.bf16.mxu1 %v4688_v21 }
 0x208   :  { %v728_v26 = vpop.f32.mrb[20].mxu1 }
 0x209   :  { %v734_v28 = vadd.f32 %v728_v26, %v656_v7  ;;  %v4280_v29 = vpop.f32.mrb[21].mxu1  ;;  %v4709_v7 = vld [vmem:[%s6246_s5 + $0x114] ss:$8 sps:$4 sm:$0xff]  }
 0x20a   :  { %v731_v19 = vpop.f32.mrb[22].mxu1  ;;  %2158 = vmatpush1.bf16.msra.mxu1 %v4686_v24  ;;  %v4715_v26 = vld [vmem:[%s6246_s5 + $0x134] ss:$8 sps:$4 sm:$0xff]   ;;  %v4746_v29 = vld [vmem:[%s6246_s5 + $0x1b0] ss:$8 sps:$4 sm:$0xff]  }
 0x20b   :  { %v4281_v32 = vpop.f32.mrb[23].mxu1  ;;  %2159 = vmatprep.subr.bf16.mxu1 %v4694_v25 }
 0x20c   :  { %v4713_v32 = vld [vmem:[%s6246_s5 + $0x130] ss:$8 sps:$4 sm:$0xff]  }
 0x20e   :  { %2160 = vmatpush1.bf16.msra.mxu1 %v4692_v35 }
 0x20f   :  { %2161 = vmatprep.subr.bf16.mxu1 %v4700_v37  ;;  %v4718_v37 = vld [vmem:[%s6246_s5 + $0x144] ss:$8 sps:$4 sm:$0xff]  }
 0x211   :  { %v5741_v39 = vpop.f32.mrb[28].mxu0 }
 0x212   :  { %v4376_v34 = vpop.f32.mrb[29].mxu0  ;;  %2162 = vmatpush1.bf16.msra.mxu1 %v4698_v38  ;;  %v4752_v38 = vld [vmem:[%s6246_s5 + $0x1c0] ss:$8 sps:$4 sm:$0xff]  }
 0x213   :  { %v1259_v2 = vpop.f32.mrb[30].mxu0  ;;  %2427 = vmatprep.subr.bf16.mxu1 %v4730_v33  ;;  %v4760_v33 = vld [vmem:[%s6246_s5 + $0x1d4] ss:$8 sps:$4 sm:$0xff]  }
 0x214   :  { %v4377_v36 = vpop.f32.mrb[31].mxu0  ;;  %v4721_v2 = vld [vmem:[%s6246_s5 + $0x154] ss:$8 sps:$4 sm:$0xff]  }
 0x218   :  { %v810_v5 = vpop.f32.mrb[24].mxu1 }
 0x219   :  { %v816_v12 = vadd.f32 %v810_v5, %v734_v28  ;;  %v4292_v22 = vpop.f32.mrb[25].mxu1  ;;  %v4758_v5 = vld [vmem:[%s6246_s5 + $0x1d0] ss:$8 sps:$4 sm:$0xff]  }
 0x21a   :  { %v813_v27 = vpop.f32.mrb[26].mxu1  ;;  %v4766_v22 = vld [vmem:[%s6246_s5 + $0x1e4] ss:$8 sps:$4 sm:$0xff]  }
 0x21b   :  { %v4293_v30 = vpop.f32.mrb[27].mxu1  ;;  %v897_v40 = vadd.f32 %v5668_v51, %v816_v12  ;;  %v5752_v51 = vld [vmem:[%s6247_s4] ss:$0 sm:$0xff] }
 0x21c   :  { %v4719_v30 = vld [vmem:[%s6246_s5 + $0x150] ss:$8 sps:$4 sm:$0xff]  }
 0x221   :  { %v5744_v41 = vpop.f32.mrb[32].mxu0 }
 0x222   :  { %v4400_v42 = vpop.f32.mrb[33].mxu0 }
 0x223   :  { %v1341_v43 = vpop.f32.mrb[34].mxu0  ;;  %v4764_v42 = vld [vmem:[%s6246_s5 + $0x1e0] ss:$8 sps:$4 sm:$0xff]  }
 0x224   :  { %v4401_v45 = vpop.f32.mrb[35].mxu0  ;;  %v4772_v43 = vld [vmem:[%s6246_s5 + $0x1f4] ss:$8 sps:$4 sm:$0xff]  }
 0x228   :  { %v969_v46 = vpop.f32.mrb[28].mxu1 }
 0x229   :  { %v975_v48 = vadd.f32 %v969_v46, %v897_v40  ;;  %v4316_v50 = vpop.f32.mrb[29].mxu1  ;;  %v4724_v40 = vld [vmem:[%s6246_s5 + $0x164] ss:$8 sps:$4 sm:$0xff]   ;;  %v4722_v46 = vld [vmem:[%s6246_s5 + $0x160] ss:$8 sps:$4 sm:$0xff]  }
 0x22a   :  { %v972_v52 = vpop.f32.mrb[30].mxu1 }
 0x22b   :  { %v4317_v53 = vpop.f32.mrb[31].mxu1  ;;  %v1053_v54 = vadd.f32 %v5685_v60, %v975_v48  ;;  %v4728_v60 = vld [vmem:[%s6246_s5 + $0x180] ss:$8 sps:$4 sm:$0xff]   ;;  %v4727_v52 = vld [vmem:[%s6246_s5 + $0x174] ss:$8 sps:$4 sm:$0xff]  }
 0x231   :  { %v5747_v55 = vpop.f32.mrb[36].mxu0 }
 0x232   :  { %v4424_v56 = vpop.f32.mrb[37].mxu0 }
 0x233   :  { %v1429_v57 = vpop.f32.mrb[38].mxu0 }
 0x234   :  { %v4425_v58 = vpop.f32.mrb[39].mxu0 }
 0x235   :  { %v4778_v58 = vld [vmem:[%s6246_s5 + $0x284] ss:$8 sps:$4 sm:$0xff]  }
 0x238   :  { %v1125_v59 = vpop.f32.mrb[32].mxu1 }
 0x239   :  { %v1131_v49 = vadd.f32 %v1125_v59, %v1053_v54  ;;  %v4340_v47 = vpop.f32.mrb[33].mxu1  ;;  %v4770_v54 = vld [vmem:[%s6246_s5 + $0x1f0] ss:$8 sps:$4 sm:$0xff]  }
 0x23a   :  { %v1128_v61 = vpop.f32.mrb[34].mxu1  ;;  %v4725_v59 = vld [vmem:[%s6246_s5 + $0x170] ss:$8 sps:$4 sm:$0xff]  }
 0x23b   :  { %v1139_v62 = vadd.f32 %v5752_v51, %v1131_v49  ;;  %v4341_v63 = vpop.f32.mrb[35].mxu1  ;;  %v4733_v49 = vld [vmem:[%s6246_s5 + $0x204] ss:$8 sps:$4 sm:$0xff]  }
 0x23d   :  { %v1140_v44 = vmax.f32 %v1139_v62, 0.0  ;;  %v4739_v62 = vld [vmem:[%s6246_s5 + $0x214] ss:$8 sps:$4 sm:$0xff]  }
 0x23f   :  { %v5758_v0 = vpack.c.bf16 %v1140_v44, %v1140_v44 }
 0x241   :  { %2180 = vmatmul.mubr.bf16.vlgmr.msra.gmra.mrb[72].mxu1 %v5758_v0  ;;  %v1944_v6 = vrot.slane %v5758_v0, 1  ;;  %v5771_v8 = vpop.f32.mrb[40].mxu0  ;;  %v2205_v61 = vrot.slane %v5758_v0, 2  ;;  %v4745_v0 = vld [vmem:[%s6246_s5 + $0x224] ss:$8 sps:$4 sm:$0xff]  }
 0x242   :  { %v4448_v9 = vpop.f32.mrb[41].mxu0  ;;  %2428 = vmatpush1.bf16.msra.mxu1 %v4728_v60  ;;  %2459 = vmatprep.mubr.bf16.mxu1 %v4898_v31 }
 0x243   :  { %2059 = vmatmul.mubr.bf16.vlgmr.msra.gmra.mrb[60].mxu0 %v1944_v6  ;;  %v1518_v10 = vpop.f32.mrb[42].mxu0  ;;  %2429 = vmatprep.subr.bf16.mxu1 %v4736_v1  ;;  %v4737_v1 = vld [vmem:[%s6246_s5 + $0x210] ss:$8 sps:$4 sm:$0xff]   ;;  %v4743_v6 = vld [vmem:[%s6246_s5 + $0x220] ss:$8 sps:$4 sm:$0xff]  }
 0x244   :  { %2288 = vmatpush1.bf16.msra.mxu0 %v4704_v4  ;;  %v4449_v14 = vpop.f32.mrb[43].mxu0  ;;  %2319 = vmatprep.mubr.bf16.mxu0 %v4898_v31 }
 0x245   :  { %2289 = vmatprep.subr.bf16.mxu0 %v4709_v7  ;;  %v4749_v14 = vld [vmem:[%s6246_s5 + $0x230] ss:$8 sps:$4 sm:$0xff]  }
 0x246   :  { %2430 = vmatpush1.bf16.msra.mxu1 %v4734_v3  ;;  %v4751_v3 = vld [vmem:[%s6246_s5 + $0x234] ss:$8 sps:$4 sm:$0xff]  }
 0x247   :  { %2431 = vmatprep.subr.bf16.mxu1 %v4742_v11 }
 0x248   :  { %2290 = vmatpush1.bf16.msra.mxu0 %v4707_v13  ;;  %v1216_v21 = vpop.f32.mrb[36].mxu1 }
 0x249   :  { %v1217_v24 = vadd.f32 %v1216_v21, %v5715_v15  ;;  %v4364_v25 = vpop.f32.mrb[37].mxu1  ;;  %2291 = vmatprep.subr.bf16.mxu0 %v4712_v16  ;;  %v4754_v15 = vld [vmem:[%s6246_s5 + $0x1c4] ss:$8 sps:$4 sm:$0xff]  }
 0x24a   :  { %v1219_v28 = vpop.f32.mrb[38].mxu1  ;;  %2432 = vmatpush1.bf16.msra.mxu1 %v4740_v17  ;;  %v4757_v16 = vld [vmem:[%s6246_s5 + $0x244] ss:$8 sps:$4 sm:$0xff]   ;;  %v4755_v17 = vld [vmem:[%s6246_s5 + $0x240] ss:$8 sps:$4 sm:$0xff]  }
 0x24b   :  { %v4365_v19 = vpop.f32.mrb[39].mxu1  ;;  %v1262_v35 = vadd.f32 %v5741_v39, %v1217_v24  ;;  %2433 = vmatprep.subr.bf16.mxu1 %v4748_v20  ;;  %v4716_v39 = vld [vmem:[%s6246_s5 + $0x140] ss:$8 sps:$4 sm:$0xff]   ;;  %v4761_v25 = vld [vmem:[%s6246_s5 + $0x250] ss:$8 sps:$4 sm:$0xff]  }
 0x24c   :  { %2292 = vmatpush1.bf16.msra.mxu0 %v4710_v23 }
 0x24d   :  { %2293 = vmatprep.subr.bf16.mxu0 %v4715_v26  ;;  %v4769_v26 = vld [vmem:[%s6246_s5 + $0x264] ss:$8 sps:$4 sm:$0xff]  }
 0x24e   :  { %2434 = vmatpush1.bf16.msra.mxu1 %v4746_v29  ;;  %v4767_v29 = vld [vmem:[%s6246_s5 + $0x260] ss:$8 sps:$4 sm:$0xff]  }
 0x24f   :  { %2435 = vmatprep.subr.bf16.mxu1 %v4754_v15  ;;  %v4775_v15 = vld [vmem:[%s6246_s5 + $0x274] ss:$8 sps:$4 sm:$0xff]  }
 0x250   :  { %2294 = vmatpush1.bf16.msra.mxu0 %v4713_v32 }
 0x251   :  { %v5822_v34 = vpop.f32.mrb[44].mxu0  ;;  %2295 = vmatprep.subr.bf16.mxu0 %v4718_v37 }
 0x252   :  { %v4472_v36 = vpop.f32.mrb[45].mxu0  ;;  %2436 = vmatpush1.bf16.msra.mxu1 %v4752_v38 }
 0x253   :  { %v1602_v12 = vpop.f32.mrb[46].mxu0  ;;  %2437 = vmatprep.subr.bf16.mxu1 %v4760_v33  ;;  %v4773_v33 = vld [vmem:[%s6246_s5 + $0x270] ss:$8 sps:$4 sm:$0xff]  }
 0x254   :  { %2296 = vmatpush1.bf16.msra.mxu0 %v4716_v39  ;;  %v4473_v27 = vpop.f32.mrb[47].mxu0 }
 0x255   :  { %2297 = vmatprep.subr.bf16.mxu0 %v4721_v2  ;;  %v4802_v2 = vld [vmem:[%s6246_s5 + $0x304] ss:$8 sps:$4 sm:$0xff]  }
 0x256   :  { %2438 = vmatpush1.bf16.msra.mxu1 %v4758_v5  ;;  %v4776_v5 = vld [vmem:[%s6246_s5 + $0x280] ss:$8 sps:$4 sm:$0xff]  }
 0x257   :  { %2439 = vmatprep.subr.bf16.mxu1 %v4766_v22  ;;  %v4781_v22 = vld [vmem:[%s6246_s5 + $0x294] ss:$8 sps:$4 sm:$0xff]  }
 0x258   :  { %2298 = vmatpush1.bf16.msra.mxu0 %v4719_v30  ;;  %v1297_v45 = vpop.f32.mrb[40].mxu1  ;;  %v4800_v30 = vld [vmem:[%s6246_s5 + $0x300] ss:$8 sps:$4 sm:$0xff]  }
 0x259   :  { %v1303_v48 = vadd.f32 %v1297_v45, %v1262_v35  ;;  %v4388_v50 = vpop.f32.mrb[41].mxu1  ;;  %2299 = vmatprep.subr.bf16.mxu0 %v4724_v40 }
 0x25a   :  { %v1300_v53 = vpop.f32.mrb[42].mxu1  ;;  %2440 = vmatpush1.bf16.msra.mxu1 %v4764_v42  ;;  %v4806_v50 = vld [vmem:[%s6246_s5 + $0x310] ss:$8 sps:$4 sm:$0xff]  }
 0x25b   :  { %v4389_v56 = vpop.f32.mrb[43].mxu1  ;;  %v1344_v57 = vadd.f32 %v5744_v41, %v1303_v48  ;;  %2441 = vmatprep.subr.bf16.mxu1 %v4772_v43  ;;  %v4731_v41 = vld [vmem:[%s6246_s5 + $0x200] ss:$8 sps:$4 sm:$0xff]   ;;  %v4808_v43 = vld [vmem:[%s6246_s5 + $0x314] ss:$8 sps:$4 sm:$0xff]  }
 0x25c   :  { %2300 = vmatpush1.bf16.msra.mxu0 %v4722_v46  ;;  %v4779_v46 = vld [vmem:[%s6246_s5 + $0x290] ss:$8 sps:$4 sm:$0xff]   ;;  %v4784_v48 = vld [vmem:[%s6246_s5 + $0x2a4] ss:$8 sps:$4 sm:$0xff]  }
 0x25d   :  { %2301 = vmatprep.subr.bf16.mxu0 %v4727_v52  ;;  %v4814_v52 = vld [vmem:[%s6246_s5 + $0x324] ss:$8 sps:$4 sm:$0xff]  }
 0x25e   :  { %2442 = vmatpush1.bf16.msra.mxu1 %v4770_v54  ;;  %v4782_v54 = vld [vmem:[%s6246_s5 + $0x2a0] ss:$8 sps:$4 sm:$0xff]  }
 0x25f   :  { %2712 = vmatprep.subr.bf16.mxu1 %v4778_v58  ;;  %v4787_v58 = vld [vmem:[%s6246_s5 + $0x2b4] ss:$8 sps:$4 sm:$0xff]  }
 0x260   :  { %2302 = vmatpush1.bf16.msra.mxu0 %v4725_v59 }
 0x261   :  { %v5867_v47 = vpop.f32.mrb[48].mxu0  ;;  %2570 = vmatprep.subr.bf16.mxu0 %v4733_v49  ;;  %v4812_v49 = vld [vmem:[%s6246_s5 + $0x320] ss:$8 sps:$4 sm:$0xff]  }
 0x262   :  { %v4496_v63 = vpop.f32.mrb[49].mxu0 }
 0x263   :  { %2320 = vmatmul.mubr.bf16.vlgmr.msra.gmra.mrb[64].mxu0 %v2205_v61  ;;  %v1683_v44 = vpop.f32.mrb[50].mxu0  ;;  %v4820_v61 = vld [vmem:[%s6246_s5 + $0x334] ss:$8 sps:$4 sm:$0xff]   ;;  %v4818_v63 = vld [vmem:[%s6246_s5 + $0x330] ss:$8 sps:$4 sm:$0xff]  }
 0x264   :  { %v4497_v60 = vpop.f32.mrb[51].mxu0  ;;  %2571 = vmatpush1.bf16.msra.mxu0 %v4731_v41  ;;  %2602 = vmatprep.mubr.bf16.mxu0 %v4898_v31  ;;  %v4826_v44 = vld [vmem:[%s6246_s5 + $0x344] ss:$8 sps:$4 sm:$0xff]  }
 0x265   :  { %2572 = vmatprep.subr.bf16.mxu0 %v4739_v62  ;;  %v4790_v62 = vld [vmem:[%s6246_s5 + $0x2c4] ss:$8 sps:$4 sm:$0xff]   ;;  %v4788_v60 = vld [vmem:[%s6246_s5 + $0x2c0] ss:$8 sps:$4 sm:$0xff]  }
 0x268   :  { %v1379_v4 = vpop.f32.mrb[44].mxu1  ;;  %2573 = vmatpush1.bf16.msra.mxu0 %v4737_v1  ;;  %v4793_v1 = vld [vmem:[%s6246_s5 + $0x2d4] ss:$8 sps:$4 sm:$0xff]  }
 0x269   :  { %v1385_v7 = vadd.f32 %v1379_v4, %v1344_v57  ;;  %v4412_v9 = vpop.f32.mrb[45].mxu1  ;;  %2574 = vmatprep.subr.bf16.mxu0 %v4745_v0  ;;  %v4824_v0 = vld [vmem:[%s6246_s5 + $0x340] ss:$8 sps:$4 sm:$0xff]   ;;  %v4832_v4 = vld [vmem:[%s6246_s5 + $0x354] ss:$8 sps:$4 sm:$0xff]  }
 0x26a   :  { %v1382_v10 = vpop.f32.mrb[46].mxu1  ;;  %v4830_v9 = vld [vmem:[%s6246_s5 + $0x350] ss:$8 sps:$4 sm:$0xff]  }
 0x26b   :  { %v4413_v11 = vpop.f32.mrb[47].mxu1  ;;  %v1432_v13 = vadd.f32 %v5747_v55, %v1385_v7  ;;  %v4763_v55 = vld [vmem:[%s6246_s5 + $0x254] ss:$8 sps:$4 sm:$0xff]   ;;  %v4796_v7 = vld [vmem:[%s6246_s5 + $0x2e4] ss:$8 sps:$4 sm:$0xff]  }
 0x26c   :  { %2575 = vmatpush1.bf16.msra.mxu0 %v4743_v6  ;;  %v4791_v6 = vld [vmem:[%s6246_s5 + $0x2d0] ss:$8 sps:$4 sm:$0xff]   ;;  %v4794_v11 = vld [vmem:[%s6246_s5 + $0x2e0] ss:$8 sps:$4 sm:$0xff]  }
 0x26d   :  { %2576 = vmatprep.subr.bf16.mxu0 %v4751_v3  ;;  %v4838_v3 = vld [vmem:[%s6246_s5 + $0x364] ss:$8 sps:$4 sm:$0xff]  }
 0x270   :  { %2577 = vmatpush1.bf16.msra.mxu0 %v4749_v14 }
 0x271   :  { %v5896_v20 = vpop.f32.mrb[52].mxu0  ;;  %2578 = vmatprep.subr.bf16.mxu0 %v4757_v16  ;;  %v4799_v16 = vld [vmem:[%s6246_s5 + $0x2f4] ss:$8 sps:$4 sm:$0xff]  }
 0x272   :  { %v4520_v21 = vpop.f32.mrb[53].mxu0 }
 0x273   :  { %v1765_v23 = vpop.f32.mrb[54].mxu0 }
 0x274   :  { %v4521_v24 = vpop.f32.mrb[55].mxu0  ;;  %2579 = vmatpush1.bf16.msra.mxu0 %v4755_v17 }
 0x275   :  { %2580 = vmatprep.subr.bf16.mxu0 %v4763_v55  ;;  %v4836_v55 = vld [vmem:[%s6246_s5 + $0x360] ss:$8 sps:$4 sm:$0xff]   ;;  %v4844_v24 = vld [vmem:[%s6246_s5 + $0x374] ss:$8 sps:$4 sm:$0xff]  }
 0x278   :  { %v1470_v28 = vpop.f32.mrb[48].mxu1  ;;  %2581 = vmatpush1.bf16.msra.mxu0 %v4761_v25  ;;  %v4797_v25 = vld [vmem:[%s6246_s5 + $0x2f0] ss:$8 sps:$4 sm:$0xff]  }
 0x279   :  { %v1476_v19 = vadd.f32 %v1470_v28, %v1432_v13  ;;  %v4436_v35 = vpop.f32.mrb[49].mxu1  ;;  %2582 = vmatprep.subr.bf16.mxu0 %v4769_v26  ;;  %v4805_v26 = vld [vmem:[%s6246_s5 + $0x384] ss:$8 sps:$4 sm:$0xff]  }
 0x27a   :  { %v1473_v32 = vpop.f32.mrb[50].mxu1  ;;  %v4850_v28 = vld [vmem:[%s6246_s5 + $0x404] ss:$8 sps:$4 sm:$0xff]   ;;  %v4811_v35 = vld [vmem:[%s6246_s5 + $0x394] ss:$8 sps:$4 sm:$0xff]  }
 0x27b   :  { %v1521_v37 = vadd.f32 %v5771_v8, %v1476_v19  ;;  %v4437_v38 = vpop.f32.mrb[51].mxu1  ;;  %v4817_v32 = vld [vmem:[%s6246_s5 + $0x3a4] ss:$8 sps:$4 sm:$0xff]  }
 0x27c   :  { %2583 = vmatpush1.bf16.msra.mxu0 %v4767_v29  ;;  %v4803_v29 = vld [vmem:[%s6246_s5 + $0x380] ss:$8 sps:$4 sm:$0xff]  }
 0x27d   :  { %v1522_v39 = vadd.f32 %v5752_v51, %v1521_v37  ;;  %2584 = vmatprep.subr.bf16.mxu0 %v4775_v15  ;;  %v4809_v15 = vld [vmem:[%s6246_s5 + $0x390] ss:$8 sps:$4 sm:$0xff]   ;;  %v4815_v38 = vld [vmem:[%s6246_s5 + $0x3a0] ss:$8 sps:$4 sm:$0xff]  }
 0x27f   :  { %v1523_v36 = vmax.f32 %v1522_v39, 0.0 }
 0x280   :  { %2585 = vmatpush1.bf16.msra.mxu0 %v4773_v33 }
 0x281   :  { %v5924_v8 = vpack.c.bf16 %v1523_v36, %v1523_v36  ;;  %v5926_v12 = vpop.f32.mrb[56].mxu0  ;;  %2852 = vmatprep.subr.bf16.mxu0 %v4802_v2  ;;  %v4823_v2 = vld [vmem:[%s6246_s5 + $0x3b4] ss:$8 sps:$4 sm:$0xff]  }
 0x282   :  { %v4544_v27 = vpop.f32.mrb[57].mxu0 }
 0x283   :  { %v1855_v40 = vpop.f32.mrb[58].mxu0  ;;  %2460 = vmatmul.mubr.bf16.vlgmr.msra.gmra.mrb[76].mxu1 %v5924_v8  ;;  %v2488_v42 = vrot.slane %v5924_v8, 1  ;;  %v2630_v19 = vrot.slane %v5924_v8, 2  ;;  %v4829_v27 = vld [vmem:[%s6246_s5 + $0x3c4] ss:$8 sps:$4 sm:$0xff]  }
 0x284   :  { %2713 = vmatpush1.bf16.msra.mxu1 %v4776_v5  ;;  %v4545_v45 = vpop.f32.mrb[59].mxu0  ;;  %2744 = vmatprep.mubr.bf16.mxu1 %v4898_v31  ;;  %v4833_v40 = vld [vmem:[%s6246_s5 + $0x3d0] ss:$8 sps:$4 sm:$0xff]  }
 0x285   :  { %2603 = vmatmul.mubr.bf16.vlgmr.msra.gmra.mrb[68].mxu0 %v2488_v42  ;;  %2714 = vmatprep.subr.bf16.mxu1 %v4781_v22  ;;  %v4821_v22 = vld [vmem:[%s6246_s5 + $0x3b0] ss:$8 sps:$4 sm:$0xff]   ;;  %v4841_v42 = vld [vmem:[%s6246_s5 + $0x3e4] ss:$8 sps:$4 sm:$0xff]   ;;  %v4839_v45 = vld [vmem:[%s6246_s5 + $0x3e0] ss:$8 sps:$4 sm:$0xff]  }
 0x286   :  { %2853 = vmatpush1.bf16.msra.mxu0 %v4800_v30  ;;  %2884 = vmatprep.mubr.bf16.mxu0 %v4898_v31  ;;  %v4827_v30 = vld [vmem:[%s6246_s5 + $0x3c0] ss:$8 sps:$4 sm:$0xff]  }
 0x287   :  { %2854 = vmatprep.subr.bf16.mxu0 %v4808_v43 }
 0x288   :  { %2715 = vmatpush1.bf16.msra.mxu1 %v4779_v46  ;;  %v1559_v53 = vpop.f32.mrb[52].mxu1 }
 0x289   :  { %v1600_v56 = vadd.f32 %v5822_v34, %v1559_v53  ;;  %v4460_v57 = vpop.f32.mrb[53].mxu1  ;;  %2716 = vmatprep.subr.bf16.mxu1 %v4784_v48  ;;  %v4785_v34 = vld [vmem:[%s6246_s5 + $0x2b0] ss:$8 sps:$4 sm:$0xff]   ;;  %v3198_v53 = vld [vmem:[%s6248_s7] sm:$0x3] }
 0x28a   :  { %v1562_v59 = vpop.f32.mrb[54].mxu1  ;;  %2855 = vmatpush1.bf16.msra.mxu0 %v4806_v50  ;;  %v4847_v50 = vld [vmem:[%s6246_s5 + $0x3f4] ss:$8 sps:$4 sm:$0xff]   ;;  %3203 = vperm.xlu0 %4583, %v3198_v53  }
 0x28b   :  { %v4461_v41 = vpop.f32.mrb[55].mxu1  ;;  %2856 = vmatprep.subr.bf16.mxu0 %v4814_v52  ;;  %v4900_v59 = vmov 1  }
 0x28c   :  { %2717 = vmatpush1.bf16.msra.mxu1 %v4782_v54  ;;  %v4899_v54 = vmov 2  }
 0x28d   :  { %2718 = vmatprep.subr.bf16.mxu1 %v4787_v58  ;;  %4585 = vset.pattern.permute.xlu1 %v4899_v54  ;;  %v4845_v58 = vld [vmem:[%s6246_s5 + $0x3f0] ss:$8 sps:$4 sm:$0xff]  }
 0x28e   :  { %2857 = vmatpush1.bf16.msra.mxu0 %v4812_v49  ;;  %3229 = vperm.xlu1 %4585, %v3198_v53  }
 0x28f   :  { %2858 = vmatprep.subr.bf16.mxu0 %v4820_v61  ;;  %4584 = vset.pattern.permute.xlu0 %v4900_v59  ;;  %v3982_v59 = vld [vmem:[%s6252_s9] ss:$0 sm:$0xff] }
 0x290   :  { %2719 = vmatpush1.bf16.msra.mxu1 %v4785_v34  ;;  %3219 = vperm.xlu0 %4584, %v3198_v53   ;;  %v4885_v53 = vld [vmem:[%s6250_s10 + $0x60] sm:$0xff]  }
 0x291   :  { %2720 = vmatprep.subr.bf16.mxu1 %v4790_v62 }
 0x292   :  { %2859 = vmatpush1.bf16.msra.mxu0 %v4818_v63 }
 0x293   :  { %2860 = vmatprep.subr.bf16.mxu0 %v4826_v44  ;;  %v4848_v44 = vld [vmem:[%s6246_s5 + $0x400] ss:$8 sps:$4 sm:$0xff]  }
 0x294   :  { %2721 = vmatpush1.bf16.msra.mxu1 %v4788_v60  ;;  %4586 = vset.pattern.permute.xlu0 %v4899_v54 }
 0x295   :  { %2722 = vmatprep.subr.bf16.mxu1 %v4793_v1  ;;  %v4853_v1 = vld [vmem:[%s6246_s5 + $0x414] ss:$8 sps:$4 sm:$0xff]  }
 0x296   :  { %2861 = vmatpush1.bf16.msra.mxu0 %v4824_v0 }
 0x297   :  { %2862 = vmatprep.subr.bf16.mxu0 %v4832_v4  ;;  %v4851_v4 = vld [vmem:[%s6246_s5 + $0x410] ss:$8 sps:$4 sm:$0xff]  }
 0x298   :  { %2723 = vmatpush1.bf16.msra.mxu1 %v4791_v6  ;;  %v1639_v10 = vpop.f32.mrb[56].mxu1  ;;  %v4854_v6 = vld [vmem:[%s6246_s5 + $0x420] ss:$8 sps:$4 sm:$0xff]  }
 0x299   :  { %v1645_v13 = vadd.f32 %v1639_v10, %v1600_v56  ;;  %v4484_v14 = vpop.f32.mrb[57].mxu1  ;;  %2724 = vmatprep.subr.bf16.mxu1 %v4796_v7  ;;  %v4859_v7 = vld [vmem:[%s6246_s5 + $0x434] ss:$8 sps:$4 sm:$0xff]  }
 0x29a   :  { %v1642_v17 = vpop.f32.mrb[58].mxu1  ;;  %2863 = vmatpush1.bf16.msra.mxu0 %v4830_v9  ;;  %v4862_v9 = vld [vmem:[%s6246_s5 + $0x444] ss:$8 sps:$4 sm:$0xff]   ;;  %v4865_v10 = vld [vmem:[%s6246_s5 + $0x454] ss:$8 sps:$4 sm:$0xff]  }
 0x29b   :  { %v4485_v21 = vpop.f32.mrb[59].mxu1  ;;  %v1686_v23 = vadd.f32 %v5867_v47, %v1645_v13  ;;  %2864 = vmatprep.subr.bf16.mxu0 %v4838_v3  ;;  %v4842_v47 = vld [vmem:[%s6246_s5 + $0x370] ss:$8 sps:$4 sm:$0xff]   ;;  %v4860_v3 = vld [vmem:[%s6246_s5 + $0x440] ss:$8 sps:$4 sm:$0xff]  }
 0x29c   :  { %2725 = vmatpush1.bf16.msra.mxu1 %v4794_v11  ;;  %v4863_v11 = vld [vmem:[%s6246_s5 + $0x450] ss:$8 sps:$4 sm:$0xff]   ;;  %v4868_v13 = vld [vmem:[%s6246_s5 + $0x464] ss:$8 sps:$4 sm:$0xff]   ;;  %v4866_v14 = vld [vmem:[%s6246_s5 + $0x460] ss:$8 sps:$4 sm:$0xff]  }
 0x29d   :  { %2726 = vmatprep.subr.bf16.mxu1 %v4799_v16  ;;  %v4871_v16 = vld [vmem:[%s6246_s5 + $0x474] ss:$8 sps:$4 sm:$0xff]   ;;  %v4869_v17 = vld [vmem:[%s6246_s5 + $0x470] ss:$8 sps:$4 sm:$0xff]  }
 0x29e   :  { %2865 = vmatpush1.bf16.msra.mxu0 %v4836_v55 }
 0x29f   :  { %2866 = vmatprep.subr.bf16.mxu0 %v4844_v24 }
 0x2a0   :  { %2727 = vmatpush1.bf16.msra.mxu1 %v4797_v25 }
 0x2a1   :  { %2995 = vmatprep.subr.bf16.mxu1 %v4805_v26 }
 0x2a2   :  { %2867 = vmatpush1.bf16.msra.mxu0 %v4842_v47 }
 0x2a3   :  { %2745 = vmatmul.mubr.bf16.vlgmr.msra.gmra.mrb[80].mxu1 %v2630_v19  ;;  %3137 = vmatprep.subr.bf16.mxu0 %v4850_v28 }
 0x2a4   :  { %2996 = vmatpush1.bf16.msra.mxu1 %v4803_v29  ;;  %3027 = vmatprep.mubr.bf16.mxu1 %v4898_v31 }
 0x2a5   :  { %2997 = vmatprep.subr.bf16.mxu1 %v4811_v35 }
 0x2a8   :  { %v1721_v37 = vpop.f32.mrb[60].mxu1  ;;  %2998 = vmatpush1.bf16.msra.mxu1 %v4809_v15  ;;  %v4872_v15 = vld [vmem:[%s6249_s11] sm:$0xff]  }
 0x2a9   :  { %v1727_v33 = vadd.f32 %v1721_v37, %v1686_v23  ;;  %v4508_v39 = vpop.f32.mrb[61].mxu1  ;;  %2999 = vmatprep.subr.bf16.mxu1 %v4817_v32  ;;  %v4873_v32 = vld [vmem:[%s6250_s10 + $0x40] sm:$0xff]   ;;  %v3182_v37 = vlaneseq }
 0x2aa   :  { %v1724_v36 = vpop.f32.mrb[62].mxu1  ;;  %v4876_v39 = vld [vmem:[%s6250_s10 + $0x48] sm:$0xff]  }
 0x2ab   :  { %v4509_v5 = vpop.f32.mrb[63].mxu1  ;;  %v1768_v8 = vadd.f32 %v5896_v20, %v1727_v33  ;;  %v4835_v20 = vld [vmem:[%s6246_s5 + $0x3d4] ss:$8 sps:$4 sm:$0xff]   ;;  %v4875_v33 = vld [vmem:[%s6249_s11 + $0x8] sm:$0xff]   ;;  %v6148_v36 = vshrl.u32 %v3182_v37, 7 }
 0x2ac   :  { %3000 = vmatpush1.bf16.msra.mxu1 %v4815_v38  ;;  %v4874_v38 = vld [vmem:[%s6250_s10] sm:$0xff]   ;;  %v4878_v5 = vld [vmem:[%s6249_s11 + $0x10] sm:$0xff]  }
 0x2ad   :  { %3001 = vmatprep.subr.bf16.mxu1 %v4823_v2  ;;  %v4877_v2 = vld [vmem:[%s6250_s10 + $0x8] sm:$0xff]  }
 0x2b0   :  { %3002 = vmatpush1.bf16.msra.mxu1 %v4821_v22  ;;  %v4880_v22 = vld [vmem:[%s6250_s10 + $0x10] sm:$0xff]  }
 0x2b1   :  { %3003 = vmatprep.subr.bf16.mxu1 %v4829_v27  ;;  %v4881_v27 = vld [vmem:[%s6249_s11 + $0x18] sm:$0xff]  }
 0x2b4   :  { %3004 = vmatpush1.bf16.msra.mxu1 %v4827_v30  ;;  %v3184_v30 = vsub.s32 0, %v6148_v36 }
 0x2b5   :  { %3005 = vmatprep.subr.bf16.mxu1 %v4835_v20  ;;  %v4882_v20 = vld [vmem:[%s6250_s10 + $0x58] sm:$0xff]  }
 0x2b8   :  { %v1807_v43 = vpop.f32.mrb[64].mxu1  ;;  %3006 = vmatpush1.bf16.msra.mxu1 %v4833_v40 }
 0x2b9   :  { %v1813_v46 = vadd.f32 %v1807_v43, %v1768_v8  ;;  %v4532_v48 = vpop.f32.mrb[65].mxu1  ;;  %3007 = vmatprep.subr.bf16.mxu1 %v4841_v42  ;;  %v4879_v8 = vld [vmem:[%s6250_s10 + $0x50] sm:$0xff]   ;;  %v4883_v42 = vld [vmem:[%s6250_s10 + $0x18] sm:$0xff]   ;;  %v3199_v43 = vld [vmem:[%s6251_s8] sm:$0x7] }
 0x2ba   :  { %v1810_v52 = vpop.f32.mrb[66].mxu1 }
 0x2bb   :  { %v4533_v56 = vpop.f32.mrb[67].mxu1  ;;  %v1858_v57 = vadd.f32 %v5926_v12, %v1813_v46  ;;  %v3234_v46 = vsub.s32 2, %v6148_v36  ;;  %v3209_v52 = vrot.slane %v3199_v43, %v3184_v30 }
 0x2bc   :  { %3008 = vmatpush1.bf16.msra.mxu1 %v4839_v45  ;;  %v3188_v45 = vsub.s32 1, %v6148_v36  ;;  %v20_v36 = vstv %s6254_s14 }
 0x2bd   :  { %3009 = vmatprep.subr.bf16.mxu1 %v4847_v50  ;;  %21 = vst [vmem:[#allocation2] sm:$0x1] %v20_v36 }
 0x2c0   :  { %3010 = vmatpush1.bf16.msra.mxu1 %v4845_v58 }
 0x2c1   :  { %4558 = vmatprep.subr.bf16.mxu1 %v4896_v18 }
 0x2c8   :  { %v1900_v49 = vpop.f32.mrb[68].mxu1 }
 0x2c9   :  { %v1906_v41 = vadd.f32 %v1900_v49, %v1858_v57  ;;  %v4556_v61 = vpop.f32.mrb[69].mxu1  ;;  %v4884_v57 = vld [vmem:[%s6249_s11 + $0x20] sm:$0xff]  }
 0x2ca   :  { %v1903_v34 = vpop.f32.mrb[70].mxu1  ;;  %v4886_v49 = vld [vmem:[%s6250_s10 + $0x20] sm:$0xff]   ;;  %v4887_v61 = vld [vmem:[%s6249_s11 + $0x28] sm:$0xff]  }
 0x2cb   :  { %v1907_v12 = vadd.f32 %v5752_v51, %v1906_v41  ;;  %v4557_v62 = vpop.f32.mrb[71].mxu1  ;;  %v4856_v51 = vld [vmem:[%s6246_s5 + $0x424] ss:$8 sps:$4 sm:$0xff]  }
 0x2cc   :  { %v3225_v62 = vrot.slane %v3199_v43, %v3188_v45 }
 0x2cd   :  { %v1908_v63 = vmax.f32 %v1907_v12, 0.0  ;;  %v4888_v12 = vld [vmem:[%s6250_s10 + $0x68] sm:$0xff]  }
 0x2cf   :  { %v1909_v60 = vpack.c.bf16 %v1908_v63, %v1908_v63  ;;  %v3235_v63 = vrot.slane %v3199_v43, %v3234_v46 }
 0x2d1   :  { %2885 = vmatmul.mubr.bf16.vlgmr.msra.gmra.mrb[72].mxu0 %v1909_v60  ;;  %v2913_v0 = vrot.slane %v1909_v60, 1  ;;  %v3055_v55 = vrot.slane %v1909_v60, 2 }
 0x2d2   :  { %3138 = vmatpush1.bf16.msra.mxu0 %v4848_v44  ;;  %3169 = vmatprep.mubr.bf16.mxu0 %v4898_v31  ;;  %v4857_v31 = vld [vmem:[%s6246_s5 + $0x430] ss:$8 sps:$4 sm:$0xff]  }
 0x2d3   :  { %3028 = vmatmul.mubr.bf16.vlgmr.msra.gmra.mrb[84].mxu1 %v2913_v0  ;;  %3139 = vmatprep.subr.bf16.mxu0 %v4853_v1 }
 0x2d4   :  { %4574 = vmatprep.mubr.msk.bf16.mxu1 %vm4897_vm1, %v4896_v18  ;;  %4559 = vmatpush3.bf16.msra.mxu1 %v4872_v15 }
 0x2d5   :  { %4560 = vmatprep.subr.bf16.mxu1 %v4896_v18 }
 0x2d6   :  { %3140 = vmatpush1.bf16.msra.mxu0 %v4851_v4 }
 0x2d7   :  { %3141 = vmatprep.subr.bf16.mxu0 %v4856_v51 }
 0x2d8   :  { %4561 = vmatpush3.bf16.msra.mxu1 %v4875_v33 }
 0x2d9   :  { %4562 = vmatprep.subr.bf16.mxu1 %v4896_v18 }
 0x2da   :  { %3142 = vmatpush1.bf16.msra.mxu0 %v4854_v6  ;;  %v4889_v6 = vld [vmem:[%s6250_s10 + $0x28] sm:$0xff]  }
 0x2db   :  { %3143 = vmatprep.subr.bf16.mxu0 %v4859_v7  ;;  %v4890_v7 = vld [vmem:[%s6249_s11 + $0x30] sm:$0xff]  }
 0x2dc   :  { %4563 = vmatpush3.bf16.msra.mxu1 %v4878_v5 }
 0x2dd   :  { %4564 = vmatprep.subr.bf16.mxu1 %v4896_v18 }
 0x2de   :  { %3144 = vmatpush1.bf16.msra.mxu0 %v4857_v31 }
 0x2df   :  { %3145 = vmatprep.subr.bf16.mxu0 %v4862_v9  ;;  %v4891_v9 = vld [vmem:[%s6250_s10 + $0x70] sm:$0xff]  }
 0x2e0   :  { %4565 = vmatpush3.bf16.msra.mxu1 %v4881_v27 }
 0x2e1   :  { %4566 = vmatprep.subr.bf16.mxu1 %v4896_v18 }
 0x2e2   :  { %3146 = vmatpush1.bf16.msra.mxu0 %v4860_v3 }
 0x2e3   :  { %3147 = vmatprep.subr.bf16.mxu0 %v4865_v10  ;;  %v4892_v10 = vld [vmem:[%s6250_s10 + $0x30] sm:$0xff]  }
 0x2e4   :  { %4567 = vmatpush3.bf16.msra.mxu1 %v4884_v57 }
 0x2e5   :  { %4568 = vmatprep.subr.bf16.mxu1 %v4896_v18 }
 0x2e6   :  { %3148 = vmatpush1.bf16.msra.mxu0 %v4863_v11  ;;  %v4893_v11 = vld [vmem:[%s6249_s11 + $0x38] sm:$0xff]  }
 0x2e7   :  { %3149 = vmatprep.subr.bf16.mxu0 %v4868_v13 }
 0x2e8   :  { %4569 = vmatpush3.bf16.msra.mxu1 %v4887_v61 }
 0x2e9   :  { %4570 = vmatprep.subr.bf16.mxu1 %v4896_v18 }
 0x2ea   :  { %3150 = vmatpush1.bf16.msra.mxu0 %v4866_v14  ;;  %v4894_v14 = vld [vmem:[%s6250_s10 + $0x78] sm:$0xff]  }
 0x2eb   :  { %3151 = vmatprep.subr.bf16.mxu0 %v4871_v16 }
 0x2ec   :  { %4571 = vmatpush3.bf16.msra.mxu1 %v4890_v7 }
 0x2ed   :  { %4572 = vmatprep.subr.bf16.mxu1 %v4896_v18  ;;  %v4895_v18 = vld [vmem:[%s6250_s10 + $0x38] sm:$0xff]  }
 0x2ee   :  { %3152 = vmatpush1.bf16.msra.mxu0 %v4869_v17 }
 0x2ef   :  { %4200 = vmatprep.subr.bf16.mxu0 %v4873_v32 }
 0x2f0   :  { %4573 = vmatpush3.bf16.msra.mxu1 %v4893_v11 }
 0x2f1   :  { %3170 = vmatmul.mubr.bf16.vlgmr.msra.gmra.mrb[76].mxu0 %v3055_v55 }
 0x2f2   :  { %4201 = vmatpush3.bf16.msra.mxu0 %v4874_v38 }
 0x2f3   :  { %4202 = vmatprep.subr.bf16.mxu0 %v4876_v39 }
 0x2f6   :  { %4203 = vmatpush3.bf16.msra.mxu0 %v4877_v2 }
 0x2f7   :  { %4204 = vmatprep.subr.bf16.mxu0 %v4879_v8 }
 0x2fa   :  { %4205 = vmatpush3.bf16.msra.mxu0 %v4880_v22 }
 0x2fb   :  { %4206 = vmatprep.subr.bf16.mxu0 %v4882_v20 }
 0x2fe   :  { %4207 = vmatpush3.bf16.msra.mxu0 %v4883_v42 }
 0x2ff   :  { %4208 = vmatprep.subr.bf16.mxu0 %v4885_v53 }
 0x302   :  { %4209 = vmatpush3.bf16.msra.mxu0 %v4886_v49 }
 0x303   :  { %4210 = vmatprep.subr.bf16.mxu0 %v4888_v12 }
 0x306   :  { %4211 = vmatpush3.bf16.msra.mxu0 %v4889_v6  ;;  %v4007_v6 = vld [vmem:[%s6255_s12] ss:$0 sm:$0xff] }
 0x307   :  { %4212 = vmatprep.subr.bf16.mxu0 %v4891_v9 }
 0x309   :  { %v3204_v41 = vpop.permute.xlu0 %3203 }
 0x30a   :  { %v3210_v34 = vmul.f32 %v3209_v52, %v3204_v41  ;;  %4213 = vmatpush3.bf16.msra.mxu0 %v4892_v10 }
 0x30b   :  { %4214 = vmatprep.subr.bf16.mxu0 %v4894_v14  ;;  %v4009_v14 = vld [vmem:[#allocation2] ss:$0 sm:$0xff] }
 0x30c   :  { %v3217_v60 = vadd.f32 %v3982_v59, %v3210_v34 }
 0x30d   :  { %v3230_v44 = vpop.permute.xlu1 %3229 }
 0x30e   :  { %v3236_v4 = vmul.f32 %v3235_v63, %v3230_v44  ;;  %4215 = vmatpush3.bf16.msra.mxu0 %v4895_v18 }
 0x30f   :  { %v3220_v1 = vpop.permute.xlu0 %3219 }
 0x310   :  { %v3226_v0 = vmul.f32 %v3225_v62, %v3220_v1 }
 0x312   :  { %v3227_v51 = vadd.f32 %v3226_v0, %v3217_v60 }
 0x314   :  { %v2181_v21 = vpop.f32.mrb[72].mxu1  ;;  %v3237_v31 = vadd.f32 %v3236_v4, %v3227_v51 }
 0x315   :  { %v2183_v23 = vpop.f32.mrb[73].mxu1 }
 0x316   :  { %v2060_v24 = vpop.f32.mrb[60].mxu0  ;;  %v2185_v25 = vpop.f32.mrb[74].mxu1  ;;  %v3238_v3 = vmax.f32 %v3237_v31, 0.0 }
 0x317   :  { %v2182_v26 = vadd.f32 %v2181_v21, %v2060_v24  ;;  %v2062_v47 = vpop.f32.mrb[61].mxu0  ;;  %v2186_v28 = vpop.f32.mrb[75].mxu1 }
 0x318   :  { %v2184_v29 = vadd.f32 %v2183_v23, %v2062_v47  ;;  %v2064_v19 = vpop.f32.mrb[62].mxu0  ;;  %v3271_v13 = vpack.c.bf16 %v3238_v3, %v3238_v3  ;;  %v4008_v3 = vld [vmem:[%s6256_s13] ss:$0 sm:$0xff] }
 0x319   :  { %v2065_v35 = vpop.f32.mrb[63].mxu0 }
 0x31a   :  { %4575 = vmatmul.mubr.bf16.vlgmr.msra.gmra.mrb[88].mxu1 %v3271_v13 }
 0x336   :  { %v2321_v40 = vpop.f32.mrb[64].mxu0 }
 0x337   :  { %v2328_v48 = vadd.f32 %v2321_v40, %v2182_v26  ;;  %v2323_v50 = vpop.f32.mrb[65].mxu0 }
 0x338   :  { %v2329_v54 = vadd.f32 %v2323_v50, %v2184_v29  ;;  %v2325_v56 = vpop.f32.mrb[66].mxu0  ;;  %v3180_v50 = vld [vmem:[%s6253_s6] sm:$0x3] }
 0x339   :  { %v2326_v58 = vpop.f32.mrb[67].mxu0  ;;  %v3185_v52 = vrot.slane %v3180_v50, %v3184_v30 }
 0x356   :  { %v2461_v16 = vpop.f32.mrb[76].mxu1 }
 0x357   :  { %v2468_v17 = vadd.f32 %v2461_v16, %v2328_v48  ;;  %v2463_v55 = vpop.f32.mrb[77].mxu1 }
 0x358   :  { %v2469_v21 = vadd.f32 %v2463_v55, %v2329_v54  ;;  %v2465_v23 = vpop.f32.mrb[78].mxu1  ;;  %v2604_v24 = vpop.f32.mrb[68].mxu0  ;;  %v3189_v54 = vrot.slane %v3180_v50, %v3188_v45 }
 0x359   :  { %v2611_v25 = vadd.f32 %v2604_v24, %v2468_v17  ;;  %v2466_v26 = vpop.f32.mrb[79].mxu1  ;;  %v2606_v47 = vpop.f32.mrb[69].mxu0 }
 0x35a   :  { %v2612_v28 = vadd.f32 %v2606_v47, %v2469_v21  ;;  %v2608_v29 = vpop.f32.mrb[70].mxu0 }
 0x35b   :  { %v2609_v19 = vpop.f32.mrb[71].mxu0 }
 0x376   :  { %v2746_v35 = vpop.f32.mrb[80].mxu1 }
 0x377   :  { %v2753_v15 = vadd.f32 %v2746_v35, %v2611_v25  ;;  %v2748_v32 = vpop.f32.mrb[81].mxu1 }
 0x378   :  { %v2754_v37 = vadd.f32 %v2748_v32, %v2612_v28  ;;  %v2750_v38 = vpop.f32.mrb[82].mxu1 }
 0x379   :  { %v2751_v33 = vpop.f32.mrb[83].mxu1 }
 0x3a4   :  { %v2886_v39 = vpop.f32.mrb[72].mxu0 }
 0x3a5   :  { %v2893_v2 = vadd.f32 %v2886_v39, %v2753_v15  ;;  %v2888_v5 = vpop.f32.mrb[73].mxu0 }
 0x3a6   :  { %v2894_v8 = vadd.f32 %v2888_v5, %v2754_v37  ;;  %v2890_v22 = vpop.f32.mrb[74].mxu0  ;;  %v3029_v27 = vpop.f32.mrb[84].mxu1 }
 0x3a7   :  { %v3036_v20 = vadd.f32 %v3029_v27, %v2893_v2  ;;  %v2891_v40 = vpop.f32.mrb[75].mxu0  ;;  %v3031_v42 = vpop.f32.mrb[85].mxu1 }
 0x3a8   :  { %v3037_v43 = vadd.f32 %v3031_v42, %v2894_v8  ;;  %v3033_v46 = vpop.f32.mrb[86].mxu1 }
 0x3a9   :  { %v3034_v48 = vpop.f32.mrb[87].mxu1 }
 0x3c4   :  { %v3171_v53 = vpop.f32.mrb[76].mxu0 }
 0x3c5   :  { %v3178_v56 = vadd.f32 %v3171_v53, %v3036_v20  ;;  %v3173_v57 = vpop.f32.mrb[77].mxu0 }
 0x3c6   :  { %v3179_v58 = vadd.f32 %v3173_v57, %v3037_v43  ;;  %v3175_v59 = vpop.f32.mrb[78].mxu0 }
 0x3c7   :  { %v3192_v49 = vadd.f32 %v3185_v52, %v3178_v56  ;;  %v3176_v41 = vpop.f32.mrb[79].mxu0 }
 0x3c8   :  { %v3193_v61 = vadd.f32 %v3189_v54, %v3179_v58 }
 0x3c9   :  { %v3194_v34 = vmax.f32 %v3192_v49, 0.0 }
 0x3ca   :  { %v3195_v12 = vmax.f32 %v3193_v61, 0.0 }
 0x3cb   :  { %v3196_v63 = vpack.c.bf16 %v3194_v34, %v3194_v34 }
 0x3cc   :  { %v3197_v62 = vpack.c.bf16 %v3195_v12, %v3195_v12 }
 0x3ce   :  { %3504 = vmatprep.mubr.bf16.mxu0 %v3197_v62 }
 0x3cf   :  { %3505 = vmatmul.mubr.bf16.vlgmr.msra.gmra.mrb[80].mxu0 %v3196_v63 }
 0x3ed   :  { %v3370_v44 = vpop.f32.mrb[88].mxu1 }
 0x3ee   :  { %v4576_v60 = vpop.f32.mrb[89].mxu1 }
 0x3ef   :  { %v3373_v30 = vpop.f32.mrb[90].mxu1 }
 0x3f0   :  { %v4577_v1 = vpop.f32.mrb[91].mxu1 }
 0x4a2   :  { %v4216_v45 = vpop.f32.mrb[80].mxu0 }
 0x4a3   :  { %v4217_v0 = vpop.f32.mrb[81].mxu0 }
 0x4a4   :  { %v4218_v4 = vadd.f32 %v4217_v0, %v4216_v45  ;;  %v4219_v51 = vpop.f32.mrb[82].mxu0 }
 0x4a5   :  { %v4220_v7 = vpop.f32.mrb[83].mxu0 }
 0x4a6   :  { %v3507_v31 = vadd.f32 %v4218_v4, %v3370_v44 }
 0x4a8   :  { %v3519_v9 = vadd.f32 %v4007_v6, %v3507_v31 }
 0x4aa   :  { %v3520_v10 = vmax.f32 %v3519_v9, 0.0 }
 0x4ac   :  { %v3528_v11 = vmul.f32 %v4008_v3, %v3520_v10 }
 0x4ae   :  { %v3530_v13 = vsel %vm3529_vm5, %v3528_v11, 0.0 }
 0x4af   :  { %3531 = vadd.xlane.f32.xlu1 %v3530_v13 }
 0x53c   :  { %v3532_v18 = vpop.xlane.xlu1 %3531 }
 0x53d   :  { %v3540_v16 = vadd.f32 %v4009_v14, %v3532_v18 }
 0x53f   :  { %3542 = vst.msk [vmem:[%s6257_s15] sm:$0x3] %vm3541_vm6, %v3540_v16 }

</bundles_post_ra>
